<compile_context>
chip_gen: v5e
topology: v5e:2x2
jax: 0.10.0
libtpu: 0.0.40
codegen_flags: <defaults>
</compile_context>

<pallas_src>
import functools

import jax
import jax.numpy as jnp
from jax.experimental import pallas as pl
from jax.experimental.pallas import tpu as pltpu

NEG_SLOPE = 0.01  # nn.LeakyReLU default negative_slope


# ----------------------------- Pallas kernels ------------------------------ #

def _linear_kernel(x_ref, w_ref, b_ref, o_ref, *, apply_act, softmax_cols):
    """One N-tile of y = epilogue(x @ W + b) with the full K dimension.

    x_ref: (B, K) float32 (resident across the N grid)
    w_ref: (K, tn) bf16/f32 weight column block
    b_ref: (1, tn) float32
    o_ref: (B, tn) float32
    """
    x = x_ref[...].astype(w_ref.dtype)
    y = jnp.dot(x, w_ref[...], preferred_element_type=jnp.float32) + b_ref[...]

    if apply_act:  # LeakyReLU
        y = jnp.where(y > 0, y, NEG_SLOPE * y)

    if softmax_cols is not None:
        # Row softmax restricted to columns [lo, hi); other columns pass
        # through untouched.  Only valid when the whole output fits one tile.
        lo, hi = softmax_cols
        col = jax.lax.broadcasted_iota(jnp.int32, y.shape, 1)
        mask = (col >= lo) & (col < hi)
        z = jnp.where(mask, y, -jnp.inf)
        m = jnp.max(z, axis=1, keepdims=True)
        e = jnp.where(mask, jnp.exp(z - m), 0.0)
        s = jnp.sum(e, axis=1, keepdims=True)
        y = jnp.where(mask, e / s, y)

    o_ref[...] = y.astype(o_ref.dtype)


def linear_pallas(x, w, b, *, apply_act, softmax_cols=None, tn=512):
    """y = epilogue(x @ w + b); x:(B,K) f32, w:(K,N) bf16/f32, b:(1,N) f32.

    N must be a multiple of 128.  Grid is over N tiles only; the activation
    is DMA'd once per layer and full-K weight column blocks are streamed.
    """
    B, K = x.shape
    Kw, N = w.shape
    assert K == Kw, (K, Kw)
    assert N % 128 == 0, N

    tn = min(tn, N)
    while N % tn != 0:       # keep tn a multiple of 128 that divides N
        tn -= 128
    if softmax_cols is not None:
        assert tn == N, "fused softmax needs a single output tile"

    kernel = functools.partial(_linear_kernel, apply_act=apply_act,
                               softmax_cols=softmax_cols)
    return pl.pallas_call(
        kernel,
        out_shape=jax.ShapeDtypeStruct((B, N), jnp.float32),
        grid_spec=pltpu.PrefetchScalarGridSpec(
            num_scalar_prefetch=0,
            grid=(N // tn,),
            in_specs=[
                pl.BlockSpec((B, K), lambda j: (0, 0)),    # resident activations
                pl.BlockSpec((K, tn), lambda j: (0, j)),   # full-K weight stream
                pl.BlockSpec((1, tn), lambda j: (0, j)),   # bias slice
            ],
            out_specs=pl.BlockSpec((B, tn), lambda j: (0, j)),
        ),
        compiler_params=pltpu.CompilerParams(
            dimension_semantics=("parallel",)),
    )(x, w, b)


# ------------------------------ JAX glue ----------------------------------- #

def _pad_to(x, axis, mult):
    pad = (-x.shape[axis]) % mult
    if pad == 0:
        return x
    widths = [(0, 0)] * x.ndim
    widths[axis] = (0, pad)
    return jnp.pad(x, widths)


def init_linear(key, in_f, out_f):
    """Deterministic PyTorch-style U(-1/sqrt(fan_in), 1/sqrt(fan_in)) init."""
    kw, kb = jax.random.split(key)
    bound = 1.0 / float(in_f) ** 0.5
    w = jax.random.uniform(kw, (in_f, out_f), jnp.float32, -bound, bound)
    b = jax.random.uniform(kb, (out_f,), jnp.float32, -bound, bound)
    return w, b


def init_params(key, factors):
    keys = jax.random.split(key, 6)
    return {
        "linear1": init_linear(keys[0], 800, 1024),
        "linear2": init_linear(keys[1], 1024, 2048),
        "linear3": init_linear(keys[2], 2048, 5000),
        "adv":     init_linear(keys[3], 5000, 1),
        "aux":     init_linear(keys[4], 5000, 10),
        "factor":  init_linear(keys[5], 5000, factors),
    }


def prepare_params(params, weight_dtype=jnp.bfloat16):
    """One-time weight preprocessing: pad K/N to multiples of 128, fuse the
    three heads into a single matmul, and cast weights to bf16 for streaming.
    Zero padding is mathematically inert (padded bias columns stay 0)."""
    w1, b1 = params["linear1"]
    w2, b2 = params["linear2"]
    w3, b3 = params["linear3"]
    wa, ba = params["adv"]
    wx, bx = params["aux"]
    wf, bf = params["factor"]

    w_heads = jnp.concatenate([wa, wx, wf], axis=1)            # (5000, 11+F)
    b_heads = jnp.concatenate([ba, bx, bf]).reshape(1, -1)

    return {
        "w1": _pad_to(w1, 0, 128).astype(weight_dtype),        # (896, 1024)
        "b1": b1.reshape(1, -1),
        "w2": w2.astype(weight_dtype),                         # (1024, 2048)
        "b2": b2.reshape(1, -1),
        "w3": _pad_to(w3, 1, 128).astype(weight_dtype),        # (2048, 5120)
        "b3": _pad_to(b3.reshape(1, -1), 1, 128),
        "w_heads": _pad_to(_pad_to(w_heads, 1, 128), 0, 128)   # (5120, >=128)
                   .astype(weight_dtype),
        "b_heads": _pad_to(b_heads, 1, 128),
    }


def discriminator_q_forward(x, prep, factors):
    B = x.shape[0]
    x = x.reshape(B, -1)                    # x.view(batch_size, -1) -> (B, 800)
    x = _pad_to(x, 1, 128)                  # (B, 896); pad lanes are inert

    h = linear_pallas(x, prep["w1"], prep["b1"], apply_act=True)   # (B, 1024)
    h = linear_pallas(h, prep["w2"], prep["b2"], apply_act=True)   # (B, 2048)
    h = linear_pallas(h, prep["w3"], prep["b3"], apply_act=True)   # (B, 5120)

    # fused heads [adv | aux | factor] with in-kernel softmax over cols 1..10
    heads = linear_pallas(h, prep["w_heads"], prep["b_heads"],
                          apply_act=False, softmax_cols=(1, 11))   # (B, 128)

    disc = heads[:, 0:1]                                           # (B, 1)
    label = heads[:, 1:11]                                         # (B, 10)
    factor_out = heads[:, 11:11 + factors]                         # (B, F)
    return disc, label, factor_out


def ref_forward(x, params, factors, compute_dtype=jnp.bfloat16):
    """Plain-JAX reference using the same bf16 weight quantization as the
    prepared kernel parameters (f32 accumulation, f32 bias/activations)."""
    B = x.shape[0]
    h = x.reshape(B, -1)

    def lin(h, w, b):
        return jnp.dot(h.astype(compute_dtype), w.astype(compute_dtype),
                       preferred_element_type=jnp.float32) + b

    for name in ("linear1", "linear2", "linear3"):
        w, b = params[name]
        h = lin(h, w, b)
        h = jnp.where(h > 0, h, NEG_SLOPE * h)
    wa, ba = params["adv"]
    wx, bx = params["aux"]
    wf, bf = params["factor"]
    return (lin(h, wa, ba),
            jax.nn.softmax(lin(h, wx, bx), axis=1),
            lin(h, wf, bf))


# --------------------------------- main ------------------------------------ #

if __name__ == "__main__":
    batch_size = 8       # args.batch_size
    factors = 10         # args.factors

    key = jax.random.PRNGKey(0)
    kx, kp = jax.random.split(key)
    # NCHW input whose flattened size is 800: (B, 2, 20, 20)
    x = jax.random.normal(kx, (batch_size, 2, 20, 20), dtype=jnp.float32)
    params = init_params(kp, factors)
    prep = prepare_params(params)           # one-time pad/fuse/bf16 cast

    fwd = jax.jit(functools.partial(discriminator_q_forward, factors=factors))
    disc, label, fac = fwd(x, prep)
    jax.block_until_ready((disc, label, fac))

    # sanity check against a plain-JAX reference (same bf16 weight precision)
    rd, rl, rf = ref_forward(x, params, factors)
    assert disc.shape == (batch_size, 1)
    assert label.shape == (batch_size, 10)
    assert fac.shape == (batch_size, factors)
    assert jnp.allclose(disc, rd, atol=2e-3, rtol=2e-3)
    assert jnp.allclose(label, rl, atol=2e-3, rtol=2e-3)
    assert jnp.allclose(fac, rf, atol=2e-3, rtol=2e-3)

    print("KERNEL_OK")
</pallas_src>

<mosaic_0001>
module attributes {stable_mosaic.version = 11 : i64} {
  func.func @_linear_kernel(%arg0: i32, %arg1: memref<8x896xf32, #tpu.memory_space<vmem>>, %arg2: memref<896x512xbf16, #tpu.memory_space<vmem>>, %arg3: memref<1x512xf32, #tpu.memory_space<vmem>>, %arg4: memref<8x512xf32, #tpu.memory_space<vmem>>) attributes {dimension_semantics = [#tpu.dimension_semantics<parallel>], iteration_bounds = array<i64: 2>, scalar_prefetch = 0 : i64, scratch_operands = 0 : i64, tpu.core_type = #tpu.core_type<tc>, window_params = [{pipeline_mode = #tpu.pipeline_mode<synchronous>, transform_indices = @transform_0, window_bounds = array<i64: 8, 896>}, {transform_indices = @transform_1, window_bounds = array<i64: 896, 512>}, {transform_indices = @transform_2, window_bounds = array<i64: 1, 512>}, {transform_indices = @transform_3, window_bounds = array<i64: 8, 512>}]} {
    %c0 = arith.constant 0 : index
    %c0_0 = arith.constant 0 : index
    %0 = vector.load %arg1[%c0, %c0_0] : memref<8x896xf32, #tpu.memory_space<vmem>>, vector<8x896xf32>
    %1 = arith.truncf %0 : vector<8x896xf32> to vector<8x896xbf16>
    %c0_1 = arith.constant 0 : index
    %c0_2 = arith.constant 0 : index
    %2 = vector.load %arg2[%c0_1, %c0_2] : memref<896x512xbf16, #tpu.memory_space<vmem>>, vector<896x512xbf16>
    %cst = arith.constant dense<0.000000e+00> : vector<8x512xf32>
    %3 = tpu.matmul %1, %2, %cst {dimension_numbers = #tpu.dot_dimension_numbers<[1], [0], [0], [1], [0, 0, 1, 1], [], []>} : vector<8x896xbf16>, vector<896x512xbf16>, vector<8x512xf32> -> vector<8x512xf32>
    %c0_3 = arith.constant 0 : index
    %c0_4 = arith.constant 0 : index
    %4 = vector.load %arg3[%c0_3, %c0_4] : memref<1x512xf32, #tpu.memory_space<vmem>>, vector<1x512xf32>
    %5 = vector.broadcast %4 : vector<1x512xf32> to vector<8x512xf32>
    %6 = arith.addf %3, %5 : vector<8x512xf32>
    %cst_5 = arith.constant 0.000000e+00 : f32
    %7 = vector.broadcast %cst_5 : f32 to vector<8x512xf32>
    %8 = arith.cmpf ogt, %6, %7 : vector<8x512xf32>
    %cst_6 = arith.constant 0.00999999977 : f32
    %9 = vector.broadcast %cst_6 : f32 to vector<8x512xf32>
    %10 = arith.mulf %9, %6 : vector<8x512xf32>
    %11 = arith.select %8, %6, %10 : vector<8x512xi1>, vector<8x512xf32>
    %c0_7 = arith.constant 0 : index
    %c0_8 = arith.constant 0 : index
    %12 = vector.load %arg4[%c0_7, %c0_8] : memref<8x512xf32, #tpu.memory_space<vmem>>, vector<8x512xf32>
    tpu.vector_store %arg4[%c0_7, %c0_8], %11 {strides = array<i32>} : memref<8x512xf32, #tpu.memory_space<vmem>>, vector<8x512xf32>,
    return
  }
  func.func @transform_0(%arg0: i32) -> (i32, i32) {
    %c0_i32 = arith.constant 0 : i32
    %c0_i32_0 = arith.constant 0 : i32
    %c0_i32_1 = arith.constant 0 : i32
    return %c0_i32, %c0_i32_0 : i32, i32
  }
  func.func @transform_1(%arg0: i32) -> (i32, i32) {
    %c0_i32 = arith.constant 0 : i32
    %c0_i32_0 = arith.constant 0 : i32
    return %c0_i32, %arg0 : i32, i32
  }
  func.func @transform_2(%arg0: i32) -> (i32, i32) {
    %c0_i32 = arith.constant 0 : i32
    %c0_i32_0 = arith.constant 0 : i32
    return %c0_i32, %arg0 : i32, i32
  }
  func.func @transform_3(%arg0: i32) -> (i32, i32) {
    %c0_i32 = arith.constant 0 : i32
    %c0_i32_0 = arith.constant 0 : i32
    return %c0_i32, %arg0 : i32, i32
  }
}

module attributes {stable_mosaic.version = 11 : i64} {
  func.func @_linear_kernel(%arg0: i32, %arg1: memref<8x2048xf32, #tpu.memory_space<vmem>>, %arg2: memref<2048x512xbf16, #tpu.memory_space<vmem>>, %arg3: memref<1x512xf32, #tpu.memory_space<vmem>>, %arg4: memref<8x512xf32, #tpu.memory_space<vmem>>) attributes {dimension_semantics = [#tpu.dimension_semantics<parallel>], iteration_bounds = array<i64: 10>, scalar_prefetch = 0 : i64, scratch_operands = 0 : i64, tpu.core_type = #tpu.core_type<tc>, window_params = [{pipeline_mode = #tpu.pipeline_mode<synchronous>, transform_indices = @transform_0, window_bounds = array<i64: 8, 2048>}, {transform_indices = @transform_1, window_bounds = array<i64: 2048, 512>}, {transform_indices = @transform_2, window_bounds = array<i64: 1, 512>}, {transform_indices = @transform_3, window_bounds = array<i64: 8, 512>}]} {
    %c0 = arith.constant 0 : index
    %c0_0 = arith.constant 0 : index
    %0 = vector.load %arg1[%c0, %c0_0] : memref<8x2048xf32, #tpu.memory_space<vmem>>, vector<8x2048xf32>
    %1 = arith.truncf %0 : vector<8x2048xf32> to vector<8x2048xbf16>
    %c0_1 = arith.constant 0 : index
    %c0_2 = arith.constant 0 : index
    %2 = vector.load %arg2[%c0_1, %c0_2] : memref<2048x512xbf16, #tpu.memory_space<vmem>>, vector<2048x512xbf16>
    %cst = arith.constant dense<0.000000e+00> : vector<8x512xf32>
    %3 = tpu.matmul %1, %2, %cst {dimension_numbers = #tpu.dot_dimension_numbers<[1], [0], [0], [1], [0, 0, 1, 1], [], []>} : vector<8x2048xbf16>, vector<2048x512xbf16>, vector<8x512xf32> -> vector<8x512xf32>
    %c0_3 = arith.constant 0 : index
    %c0_4 = arith.constant 0 : index
    %4 = vector.load %arg3[%c0_3, %c0_4] : memref<1x512xf32, #tpu.memory_space<vmem>>, vector<1x512xf32>
    %5 = vector.broadcast %4 : vector<1x512xf32> to vector<8x512xf32>
    %6 = arith.addf %3, %5 : vector<8x512xf32>
    %cst_5 = arith.constant 0.000000e+00 : f32
    %7 = vector.broadcast %cst_5 : f32 to vector<8x512xf32>
    %8 = arith.cmpf ogt, %6, %7 : vector<8x512xf32>
    %cst_6 = arith.constant 0.00999999977 : f32
    %9 = vector.broadcast %cst_6 : f32 to vector<8x512xf32>
    %10 = arith.mulf %9, %6 : vector<8x512xf32>
    %11 = arith.select %8, %6, %10 : vector<8x512xi1>, vector<8x512xf32>
    %c0_7 = arith.constant 0 : index
    %c0_8 = arith.constant 0 : index
    %12 = vector.load %arg4[%c0_7, %c0_8] : memref<8x512xf32, #tpu.memory_space<vmem>>, vector<8x512xf32>
    tpu.vector_store %arg4[%c0_7, %c0_8], %11 {strides = array<i32>} : memref<8x512xf32, #tpu.memory_space<vmem>>, vector<8x512xf32>,
    return
  }
  func.func @transform_0(%arg0: i32) -> (i32, i32) {
    %c0_i32 = arith.constant 0 : i32
    %c0_i32_0 = arith.constant 0 : i32
    %c0_i32_1 = arith.constant 0 : i32
    return %c0_i32, %c0_i32_0 : i32, i32
  }
  func.func @transform_1(%arg0: i32) -> (i32, i32) {
    %c0_i32 = arith.constant 0 : i32
    %c0_i32_0 = arith.constant 0 : i32
    return %c0_i32, %arg0 : i32, i32
  }
  func.func @transform_2(%arg0: i32) -> (i32, i32) {
    %c0_i32 = arith.constant 0 : i32
    %c0_i32_0 = arith.constant 0 : i32
    return %c0_i32, %arg0 : i32, i32
  }
  func.func @transform_3(%arg0: i32) -> (i32, i32) {
    %c0_i32 = arith.constant 0 : i32
    %c0_i32_0 = arith.constant 0 : i32
    return %c0_i32, %arg0 : i32, i32
  }
}

module attributes {stable_mosaic.version = 11 : i64} {
  func.func @_linear_kernel(%arg0: i32, %arg1: memref<8x5120xf32, #tpu.memory_space<vmem>>, %arg2: memref<5120x128xbf16, #tpu.memory_space<vmem>>, %arg3: memref<1x128xf32, #tpu.memory_space<vmem>>, %arg4: memref<8x128xf32, #tpu.memory_space<vmem>>) attributes {dimension_semantics = [#tpu.dimension_semantics<parallel>], iteration_bounds = array<i64: 1>, scalar_prefetch = 0 : i64, scratch_operands = 0 : i64, tpu.core_type = #tpu.core_type<tc>, window_params = [{pipeline_mode = #tpu.pipeline_mode<synchronous>, transform_indices = @transform_0, window_bounds = array<i64: 8, 5120>}, {transform_indices = @transform_1, window_bounds = array<i64: 5120, 128>}, {transform_indices = @transform_2, window_bounds = array<i64: 1, 128>}, {transform_indices = @transform_3, window_bounds = array<i64: 8, 128>}]} {
    %c0 = arith.constant 0 : index
    %c0_0 = arith.constant 0 : index
    %0 = vector.load %arg1[%c0, %c0_0] : memref<8x5120xf32, #tpu.memory_space<vmem>>, vector<8x5120xf32>
    %1 = arith.truncf %0 : vector<8x5120xf32> to vector<8x5120xbf16>
    %c0_1 = arith.constant 0 : index
    %c0_2 = arith.constant 0 : index
    %2 = vector.load %arg2[%c0_1, %c0_2] : memref<5120x128xbf16, #tpu.memory_space<vmem>>, vector<5120x128xbf16>
    %cst = arith.constant dense<0.000000e+00> : vector<8x128xf32>
    %3 = tpu.matmul %1, %2, %cst {dimension_numbers = #tpu.dot_dimension_numbers<[1], [0], [0], [1], [0, 0, 1, 1], [], []>} : vector<8x5120xbf16>, vector<5120x128xbf16>, vector<8x128xf32> -> vector<8x128xf32>
    %c0_3 = arith.constant 0 : index
    %c0_4 = arith.constant 0 : index
    %4 = vector.load %arg3[%c0_3, %c0_4] : memref<1x128xf32, #tpu.memory_space<vmem>>, vector<1x128xf32>
    %5 = vector.broadcast %4 : vector<1x128xf32> to vector<8x128xf32>
    %6 = arith.addf %3, %5 : vector<8x128xf32>
    %7 = tpu.iota {dimensions = array<i32: 1>} : vector<8x128xi32>
    %c1_i32 = arith.constant 1 : i32
    %8 = vector.broadcast %c1_i32 : i32 to vector<8x128xi32>
    %9 = arith.cmpi sge, %7, %8 : vector<8x128xi32>
    %c11_i32 = arith.constant 11 : i32
    %10 = vector.broadcast %c11_i32 : i32 to vector<8x128xi32>
    %11 = arith.cmpi slt, %7, %10 : vector<8x128xi32>
    %12 = arith.andi %9, %11 : vector<8x128xi1>
    %cst_5 = arith.constant 0xFF800000 : f32
    %13 = vector.broadcast %cst_5 : f32 to vector<8x128xf32>
    %14 = arith.select %12, %6, %13 : vector<8x128xi1>, vector<8x128xf32>
    %cst_6 = arith.constant dense<0xFF800000> : vector<8xf32>
    %15 = vector.multi_reduction <maximumf>, %14, %cst_6 [1] : vector<8x128xf32> to vector<8xf32>
    %16 = vector.shape_cast %15 : vector<8xf32> to vector<8x1xf32>
    %17 = vector.broadcast %16 : vector<8x1xf32> to vector<8x128xf32>
    %18 = arith.subf %14, %17 : vector<8x128xf32>
    %19 = math.exp %18 : vector<8x128xf32>
    %cst_7 = arith.constant 0.000000e+00 : f32
    %20 = vector.broadcast %cst_7 : f32 to vector<8x128xf32>
    %21 = arith.select %12, %19, %20 : vector<8x128xi1>, vector<8x128xf32>
    %cst_8 = arith.constant dense<0.000000e+00> : vector<8xf32>
    %22 = vector.multi_reduction <add>, %21, %cst_8 [1] : vector<8x128xf32> to vector<8xf32>
    %23 = vector.shape_cast %22 : vector<8xf32> to vector<8x1xf32>
    %24 = vector.broadcast %23 : vector<8x1xf32> to vector<8x128xf32>
    %25 = arith.divf %21, %24 : vector<8x128xf32>
    %26 = arith.select %12, %25, %6 : vector<8x128xi1>, vector<8x128xf32>
    %c0_9 = arith.constant 0 : index
    %c0_10 = arith.constant 0 : index
    %27 = vector.load %arg4[%c0_9, %c0_10] : memref<8x128xf32, #tpu.memory_space<vmem>>, vector<8x128xf32>
    tpu.vector_store %arg4[%c0_9, %c0_10], %26 {strides = array<i32>} : memref<8x128xf32, #tpu.memory_space<vmem>>, vector<8x128xf32>,
    return
  }
  func.func @transform_0(%arg0: i32) -> (i32, i32) {
    %c0_i32 = arith.constant 0 : i32
    %c0_i32_0 = arith.constant 0 : i32
    %c0_i32_1 = arith.constant 0 : i32
    return %c0_i32, %c0_i32_0 : i32, i32
  }
  func.func @transform_1(%arg0: i32) -> (i32, i32) {
    %c0_i32 = arith.constant 0 : i32
    %c0_i32_0 = arith.constant 0 : i32
    return %c0_i32, %arg0 : i32, i32
  }
  func.func @transform_2(%arg0: i32) -> (i32, i32) {
    %c0_i32 = arith.constant 0 : i32
    %c0_i32_0 = arith.constant 0 : i32
    return %c0_i32, %arg0 : i32, i32
  }
  func.func @transform_3(%arg0: i32) -> (i32, i32) {
    %c0_i32 = arith.constant 0 : i32
    %c0_i32_0 = arith.constant 0 : i32
    return %c0_i32, %arg0 : i32, i32
  }
}

module attributes {stable_mosaic.version = 11 : i64} {
  func.func @_linear_kernel(%arg0: i32, %arg1: memref<8x1024xf32, #tpu.memory_space<vmem>>, %arg2: memref<1024x512xbf16, #tpu.memory_space<vmem>>, %arg3: memref<1x512xf32, #tpu.memory_space<vmem>>, %arg4: memref<8x512xf32, #tpu.memory_space<vmem>>) attributes {dimension_semantics = [#tpu.dimension_semantics<parallel>], iteration_bounds = array<i64: 4>, scalar_prefetch = 0 : i64, scratch_operands = 0 : i64, tpu.core_type = #tpu.core_type<tc>, window_params = [{pipeline_mode = #tpu.pipeline_mode<synchronous>, transform_indices = @transform_0, window_bounds = array<i64: 8, 1024>}, {transform_indices = @transform_1, window_bounds = array<i64: 1024, 512>}, {transform_indices = @transform_2, window_bounds = array<i64: 1, 512>}, {transform_indices = @transform_3, window_bounds = array<i64: 8, 512>}]} {
    %c0 = arith.constant 0 : index
    %c0_0 = arith.constant 0 : index
    %0 = vector.load %arg1[%c0, %c0_0] : memref<8x1024xf32, #tpu.memory_space<vmem>>, vector<8x1024xf32>
    %1 = arith.truncf %0 : vector<8x1024xf32> to vector<8x1024xbf16>
    %c0_1 = arith.constant 0 : index
    %c0_2 = arith.constant 0 : index
    %2 = vector.load %arg2[%c0_1, %c0_2] : memref<1024x512xbf16, #tpu.memory_space<vmem>>, vector<1024x512xbf16>
    %cst = arith.constant dense<0.000000e+00> : vector<8x512xf32>
    %3 = tpu.matmul %1, %2, %cst {dimension_numbers = #tpu.dot_dimension_numbers<[1], [0], [0], [1], [0, 0, 1, 1], [], []>} : vector<8x1024xbf16>, vector<1024x512xbf16>, vector<8x512xf32> -> vector<8x512xf32>
    %c0_3 = arith.constant 0 : index
    %c0_4 = arith.constant 0 : index
    %4 = vector.load %arg3[%c0_3, %c0_4] : memref<1x512xf32, #tpu.memory_space<vmem>>, vector<1x512xf32>
    %5 = vector.broadcast %4 : vector<1x512xf32> to vector<8x512xf32>
    %6 = arith.addf %3, %5 : vector<8x512xf32>
    %cst_5 = arith.constant 0.000000e+00 : f32
    %7 = vector.broadcast %cst_5 : f32 to vector<8x512xf32>
    %8 = arith.cmpf ogt, %6, %7 : vector<8x512xf32>
    %cst_6 = arith.constant 0.00999999977 : f32
    %9 = vector.broadcast %cst_6 : f32 to vector<8x512xf32>
    %10 = arith.mulf %9, %6 : vector<8x512xf32>
    %11 = arith.select %8, %6, %10 : vector<8x512xi1>, vector<8x512xf32>
    %c0_7 = arith.constant 0 : index
    %c0_8 = arith.constant 0 : index
    %12 = vector.load %arg4[%c0_7, %c0_8] : memref<8x512xf32, #tpu.memory_space<vmem>>, vector<8x512xf32>
    tpu.vector_store %arg4[%c0_7, %c0_8], %11 {strides = array<i32>} : memref<8x512xf32, #tpu.memory_space<vmem>>, vector<8x512xf32>,
    return
  }
  func.func @transform_0(%arg0: i32) -> (i32, i32) {
    %c0_i32 = arith.constant 0 : i32
    %c0_i32_0 = arith.constant 0 : i32
    %c0_i32_1 = arith.constant 0 : i32
    return %c0_i32, %c0_i32_0 : i32, i32
  }
  func.func @transform_1(%arg0: i32) -> (i32, i32) {
    %c0_i32 = arith.constant 0 : i32
    %c0_i32_0 = arith.constant 0 : i32
    return %c0_i32, %arg0 : i32, i32
  }
  func.func @transform_2(%arg0: i32) -> (i32, i32) {
    %c0_i32 = arith.constant 0 : i32
    %c0_i32_0 = arith.constant 0 : i32
    return %c0_i32, %arg0 : i32, i32
  }
  func.func @transform_3(%arg0: i32) -> (i32, i32) {
    %c0_i32 = arith.constant 0 : i32
    %c0_i32_0 = arith.constant 0 : i32
    return %c0_i32, %arg0 : i32, i32
  }
}

</mosaic_0001>

<bundles_post_ra>
// kernel: discriminator_q_forward.4
= control target key start
LH: loop header
LB: loop body
LE: loop exit
PB: predicated region body
PF: predicated region fallthrough
CT: control target
= control target key end

     0   :  { %8 = vsyncpa [#allocation3], 0  ;;  %s4046_s0 = inlined_call_operand.vmem [shape: f32[8,896], index: 0, kind: input, shape index: {}]   ;;  %s4047_s1 = inlined_call_operand.hbm [shape: bf16[896,1024], index: 1, kind: input, shape index: {}]   ;;  %s4048_s2 = inlined_call_operand.hbm [shape: f32[1,1024], index: 2, kind: input, shape index: {}]   ;;  %s4049_s3 = inlined_call_operand.vmem [shape: f32[8,1024], index: 3, kind: output, shape index: {}]  }
   0x1   :  { %10 = vsyncpa [#allocation3 + $0x1], 0 }
   0x2   :  { %11 = vsyncpa [#allocation5], 0 }
   0x3   :  { %13 = vsyncpa [#allocation5 + $0x1], 0  ;;  %s3380_s12 = smov 0   ;;  %s3382_s13 = smov 0  }
   0x4   :  { %s3384_s14 = smov 0   ;;  %s3386_s15 = smov 0  }
   0x5 LB: > { %s2073_s16 = sadd.s32 4294967295, %s3355_s15   ;;  %s3400_s17 = sadd.s32 1, %s3355_s15   ;;  %s3355_s15 = sphi %s3386_s15, %s4056_s15   ;;  %s3351_s14 = sphi %s3384_s14, %s4055_s14   ;;  %s3347_s13 = sphi %s3382_s13, %s4054_s13   ;;  %s3343_s12 = sphi %s3380_s12, %s4053_s12  }
   0x6   : > { %s44_s18 = ssub.s32 %s3355_s15, %s3400_s17  ;;  %s47_s19 = sadd.s32 1, %s3351_s14 }
   0x7   : > { %p45_p0 = scmp.eq.s32.totalorder %s44_s18, 0  ;;  %p54_p1 = scmp.ne.s32.totalorder %s3351_s14, %s3347_s13 }
   0x8   : > { %p55_p2 = scmp.eq.s32.totalorder %s3355_s15, 0  ;;  %p60_p3 = scmp.ne.s32.totalorder %s3347_s13, %s3343_s12 }
   0x9   : > { %s3410_s20 = scalar_select %p45_p0, %s3351_s14, %s47_s19  }
   0xa   : > { %p56_p4 = por %p55_p2, %p54_p1  ;;  %p61_p5 = scmp.eq.s32.totalorder %s2073_s16, 0 }
   0xb   : > { %p3221_p6 = scmp.lt.s32.totalorder %s3355_s15, 2  ;;  %s3420_s22 = sand.u32 1, %s3351_s14  }
   0xc   : > { %p3415_p7 = por %p61_p5, %p60_p3  ;;  %s3208_s23 = smul.u32 1792, %s3420_s22 }
   0xd   : > { %s2983_s24 = sshll.u32 %s3355_s15, 4  ;;  %p3424_p8 = pnand %p3221_p6, %p56_p4 }
   0xe   : > { %s148_s28 = scalar_lea.hbm %s4047_s1, %s2983_s24  ;;  %s143_s30 = scalar_lea.vmem [#allocation2], %s3208_s23 }
   0xf   : > { %s149_s29 = sshll.u32 %s148_s28, 4  ;;  %s151_s4 = sshll.u32 %s143_s30, 4  ;;  %s150_s29 = int_to_ptr.hbm [resolvable:$true] %s149_s29  ;;  %s152_s4 = int_to_ptr.vmem [resolvable:$true] %s151_s4 }
  0x10   : > { %s140_s5 = scalar_lea.sflag [#allocation3], %s3420_s22  ;;  %s3257_s6 = sshra.s32 %s150_s29, 4  ;;  %s3258_s6 = int_to_ptr.hbm [resolvable:$true] %s3257_s6 }
  0x11   : > { %s3259_s7 = scalar_lea.hbm %s3258_s6, 1792  ;;  %p3261_p10 = pneg %p3424_p8 }
  0x12   : > { %p3260_p9 = scmp.ne.s32.totalorder %s3258_s6, %s3259_s7  ;;  %s3264_s10 = scalar_lea.hbm %s4047_s1, 3584 }
  0x13   : > { %p3265_p13 = scmp.lt.s32.totalorder %s3258_s6, %s4047_s1  ;;  %p3266_p0 = scmp.lt.s32.totalorder %s3264_s10, %s3259_s7 }
  0x14   : > { %p3262_p11 = pnand %p3261_p10, %p3260_p9 }
  0x15   : > { %p3267_p1 = por %p3266_p0, %p3265_p13 }
  0x16   : > { %p3263_p12 = pneg %p3262_p11 }
  0x18   : > { %p3268_p2 = pnand %p3267_p1, %p3263_p12 }
  0x1a   : > { %3271 = shalt.err (!%p3268_p2)
}
  0x1b   : > { %s3357_s18 = smov 512   ;;  %s3358_s19 = smov 256  }
  0x1c   : > { %s3359_s23 = smov 16   ;;  %p2081_p3 = scmp.ge.s32.totalorder %s3355_s15, 1 }
  0x1d   : > { %3217 = dma.hbm_to_vmem [thread:$0]  (!%p3424_p8), %s150_s29, 28672, %s152_s4, %s140_s5, %s3357_s18, %s3358_s19, %s3359_s23  }
  0x1e   : > { %p178_p4 = scmp.lt.s32.totalorder %s3355_s15, 3  ;;  %s2079_s24 = sshll.u32 %s3420_s22, 2 }
  0x1f   : > { %s2080_s27 = sshll.u32 %s3355_s15, 2  ;;  %s165_s28 = scalar_lea.vmem [#allocation4], %s2079_s24 }
  0x20   : > { %p3448_p5 = pnand %p2081_p3, %p178_p4  ;;  %s173_s30 = sshll.u32 %s165_s28, 4  ;;  %s174_s30 = int_to_ptr.vmem [resolvable:$true] %s173_s30 }
  0x21   : > { %s169_s8 = scalar_lea.hbm %s4048_s2, %s2080_s27  ;;  %s162_s10 = scalar_lea.sflag [#allocation5], %s3420_s22 }
  0x22   : > { %s171_s9 = sshll.u32 %s169_s8, 4  ;;  %s3294_s12 = scalar_lea.hbm %s4048_s2, 8  ;;  %s172_s9 = int_to_ptr.hbm [resolvable:$true] %s171_s9 }
  0x23   : > { %s3287_s29 = sshra.s32 %s172_s9, 4  ;;  %s3288_s29 = int_to_ptr.hbm [resolvable:$true] %s3287_s29 }
  0x24   : > { %s3289_s4 = scalar_lea.hbm %s3288_s29, 4  ;;  %p3295_p12 = scmp.lt.s32.totalorder %s3288_s29, %s4048_s2 }
  0x25   : > { %p3290_p6 = scmp.ne.s32.totalorder %s3288_s29, %s3289_s4  ;;  %p3296_p13 = scmp.lt.s32.totalorder %s3294_s12, %s3289_s4 }
  0x27   : > { %p3292_p9 = pnand %p3290_p6, %p3261_p10  ;;  %p3297_p0 = por %p3296_p13, %p3295_p12 }
  0x29   : > { %p3293_p11 = pneg %p3292_p9 }
  0x2b   : > { %p3298_p1 = pnand %p3297_p0, %p3293_p11 }
  0x2d   : > { %3301 = shalt.err (!%p3298_p1)
}
  0x2e   : > { %3220 = dma.hbm_to_vmem [thread:$0]  (!%p3424_p8), %s172_s9, 64, %s174_s30, %s162_s10  }
  0x2f   : > { %182 = sbr.rel (%p3448_p5) target bundleno = 425 (0x1a9), region = 32  ;;  %s184_s22 = sand.u32 (!%p3448_p5), 1, %s3347_s13  }
  0x30   : > { %s3209_s23 = smul.u32 (!%p3448_p5), 1792, %s184_s22  ;;  %s185_s24 = scalar_lea.sflag (!%p3448_p5), [#allocation3], %s184_s22 }
  0x32   : > { %s3471_s27 = scalar_lea.vmem (!%p3448_p5), [#allocation2], %s3209_s23 }
  0x34   : > { %3334 = dma.done.wait (%p3415_p7), %s185_s24, 28672  }
  0x35   : > { %3336 = vsyncadd (%p3415_p7), %s185_s24, 4294938624  ;;  %s2082_s28 = sshll.u32 %s184_s22, 2  ;;  %s195_s6 = scalar_lea.sflag [#allocation5], %s184_s22 }
  0x36   : > { %s3477_s25 = scalar_lea.vmem [#allocation4], %s2082_s28 }
  0x37   : > { %3338 = dma.done.wait (%p3415_p7), %s195_s6, 64  }
  0x38   : > { %3340 = vsyncadd (%p3415_p7), %s195_s6, 4294967232  ;;  %v2199_v0 = vld [vmem:[%s3471_s27 + $0xe0] sm:$0xf]  ;;  %v3014_v1 = vld [vmem:[%s3471_s27 + $0xec] sm:$0xf0]  ;;  %s3951_s22 = sshll.u32 %s2073_s16, 2 }
  0x39   : > { %v2327_v2 = vld [vmem:[%s3471_s27 + $0x1e0] sm:$0xf]  ;;  %v2200_v3 = vor.u32 %v3014_v1, %v2199_v0  ;;  %v3046_v4 = vld [vmem:[%s3471_s27 + $0x1ec] sm:$0xf0]  ;;  %p230_p7 = scmp.lt.s32.totalorder %s3951_s22, 7 }
  0x3a   : > { %v2455_v5 = vld [vmem:[%s3471_s27 + $0x2e0] sm:$0xf]  ;;  %v3078_v6 = vld [vmem:[%s3471_s27 + $0x2ec] sm:$0xf0]  ;;  %v2328_v7 = vor.u32 %v3046_v4, %v2327_v2 }
  0x3b   : > { %v2456_v8 = vor.u32 %v3078_v6, %v2455_v5  ;;  %v2583_v9 = vld [vmem:[%s3471_s27 + $0x3e0] sm:$0xf]  ;;  %v3110_v10 = vld [vmem:[%s3471_s27 + $0x3ec] sm:$0xf0]  ;;  %1603 = vmatpush.bf16.msra.mxu0 %v2200_v3  ;;  %s4058_s22 = smov (!%p230_p7, %s3951_s22), 7 }
  0x3c   : > { %v2183_v11 = vld [vmem:[%s3471_s27 + $0xc0] sm:$0xf]  ;;  %v2584_v12 = vor.u32 %v3110_v10, %v2583_v9  ;;  %v3010_v13 = vld [vmem:[%s3471_s27 + $0xcc] sm:$0xf0]  ;;  %1616 = vmatpush.bf16.msra.mxu1 %v2328_v7  ;;  %s2084_s15 = sshll.u32 %s4058_s22, 3 }
  0x3d   : > { %v2311_v14 = vld [vmem:[%s3471_s27 + $0x1c0] sm:$0xf]  ;;  %v3042_v15 = vld [vmem:[%s3471_s27 + $0x1cc] sm:$0xf0]  ;;  %1629 = vmatpush.bf16.msra.mxu2 %v2456_v8  ;;  %v2184_v16 = vor.u32 %v3010_v13, %v2183_v11  ;;  %s4003_s24 = scalar_lea.vmem %s4049_s3, %s2084_s15 }
  0x3e   : > { %v2312_v17 = vor.u32 %v3042_v15, %v2311_v14  ;;  %v2439_v18 = vld [vmem:[%s3471_s27 + $0x2c0] sm:$0xf]  ;;  %v3074_v19 = vld [vmem:[%s3471_s27 + $0x2cc] sm:$0xf0]  ;;  %1642 = vmatpush.bf16.msra.mxu3 %v2584_v12 }
  0x3f   : > { %v2567_v20 = vld [vmem:[%s3471_s27 + $0x3c0] sm:$0xf]  ;;  %v2440_v21 = vor.u32 %v3074_v19, %v2439_v18  ;;  %v3106_v22 = vld [vmem:[%s3471_s27 + $0x3cc] sm:$0xf0]  ;;  %1604 = vmatpush.bf16.msra.mxu0 %v2184_v16 }
  0x40   : > { %v2167_v23 = vld [vmem:[%s3471_s27 + $0xa0] sm:$0xf]  ;;  %v3006_v24 = vld [vmem:[%s3471_s27 + $0xac] sm:$0xf0]  ;;  %v2568_v25 = vor.u32 %v3106_v22, %v2567_v20  ;;  %1617 = vmatpush.bf16.msra.mxu1 %v2312_v17 }
  0x41   : > { %v2295_v26 = vld [vmem:[%s3471_s27 + $0x1a0] sm:$0xf]  ;;  %v3038_v27 = vld [vmem:[%s3471_s27 + $0x1ac] sm:$0xf0]  ;;  %v2168_v29 = vor.u32 %v3006_v24, %v2167_v23  ;;  %1630 = vmatpush.bf16.msra.mxu2 %v2440_v21 }
  0x42   : > { %v2423_v28 = vld [vmem:[%s3471_s27 + $0x2a0] sm:$0xf]  ;;  %v3070_v30 = vld [vmem:[%s3471_s27 + $0x2ac] sm:$0xf0]  ;;  %v2296_v33 = vor.u32 %v3038_v27, %v2295_v26  ;;  %1643 = vmatpush.bf16.msra.mxu3 %v2568_v25 }
  0x43   : > { %v2551_v31 = vld [vmem:[%s3471_s27 + $0x3a0] sm:$0xf]  ;;  %v3102_v32 = vld [vmem:[%s3471_s27 + $0x3ac] sm:$0xf0]  ;;  %v2424_v34 = vor.u32 %v3070_v30, %v2423_v28  ;;  %1605 = vmatpush.bf16.msra.mxu0 %v2168_v29 }
  0x44   : > { %v2151_v35 = vld [vmem:[%s3471_s27 + $0x80] sm:$0xf]  ;;  %v3002_v36 = vld [vmem:[%s3471_s27 + $0x8c] sm:$0xf0]  ;;  %v2552_v38 = vor.u32 %v3102_v32, %v2551_v31  ;;  %1618 = vmatpush.bf16.msra.mxu1 %v2296_v33 }
  0x45   : > { %v2279_v37 = vld [vmem:[%s3471_s27 + $0x180] sm:$0xf]  ;;  %v3034_v39 = vld [vmem:[%s3471_s27 + $0x18c] sm:$0xf0]  ;;  %v2152_v44 = vor.u32 %v3002_v36, %v2151_v35  ;;  %1631 = vmatpush.bf16.msra.mxu2 %v2424_v34 }
  0x46   : > { %v2407_v40 = vld [vmem:[%s3471_s27 + $0x280] sm:$0xf]  ;;  %v3066_v41 = vld [vmem:[%s3471_s27 + $0x28c] sm:$0xf0]  ;;  %v2280_v45 = vor.u32 %v3034_v39, %v2279_v37  ;;  %1644 = vmatpush.bf16.msra.mxu3 %v2552_v38  ;;  %v3012_v37 = vld [vmem:[%s3471_s27 + $0xe4] sm:$0xf] }
  0x47   : > { %v2535_v42 = vld [vmem:[%s3471_s27 + $0x380] sm:$0xf]  ;;  %v3098_v43 = vld [vmem:[%s3471_s27 + $0x38c] sm:$0xf0]  ;;  %v2408_v46 = vor.u32 %v3066_v41, %v2407_v40  ;;  %1606 = vmatpush.bf16.msra.mxu0 %v2152_v44  ;;  %v2201_v38 = vld [vmem:[%s3471_s27 + $0xf0] sm:$0xf0] }
  0x48   : > { %v2135_v47 = vld [vmem:[%s3471_s27 + $0x60] sm:$0xf]  ;;  %v2998_v48 = vld [vmem:[%s3471_s27 + $0x6c] sm:$0xf0]  ;;  %v2536_v50 = vor.u32 %v3098_v43, %v2535_v42  ;;  %1619 = vmatpush.bf16.msra.mxu1 %v2280_v45 }
  0x49   : > { %v2263_v49 = vld [vmem:[%s3471_s27 + $0x160] sm:$0xf]  ;;  %v3030_v51 = vld [vmem:[%s3471_s27 + $0x16c] sm:$0xf0]  ;;  %v2136_v56 = vor.u32 %v2998_v48, %v2135_v47  ;;  %1632 = vmatpush.bf16.msra.mxu2 %v2408_v46  ;;  %v2204_v46 = vor.u32 %v3012_v37, %v2201_v38 }
  0x4a   : > { %v2391_v52 = vld [vmem:[%s3471_s27 + $0x260] sm:$0xf]  ;;  %v3062_v53 = vld [vmem:[%s3471_s27 + $0x26c] sm:$0xf0]  ;;  %v2264_v57 = vor.u32 %v3030_v51, %v2263_v49  ;;  %1645 = vmatpush.bf16.msra.mxu3 %v2536_v50  ;;  %v3008_v50 = vld [vmem:[%s3471_s27 + $0xc4] sm:$0xf] }
  0x4b   : > { %v2519_v54 = vld [vmem:[%s3471_s27 + $0x360] sm:$0xf]  ;;  %v3094_v55 = vld [vmem:[%s3471_s27 + $0x36c] sm:$0xf0]  ;;  %v2392_v58 = vor.u32 %v3062_v53, %v2391_v52  ;;  %1607 = vmatpush.bf16.msra.mxu0 %v2136_v56  ;;  %v2185_v51 = vld [vmem:[%s3471_s27 + $0xd0] sm:$0xf0] }
  0x4c   : > { %v2119_v59 = vld [vmem:[%s3471_s27 + $0x40] sm:$0xf]  ;;  %v2994_v60 = vld [vmem:[%s3471_s27 + $0x4c] sm:$0xf0]  ;;  %v2520_v62 = vor.u32 %v3094_v55, %v2519_v54  ;;  %1620 = vmatpush.bf16.msra.mxu1 %v2264_v57 }
  0x4d   : > { %v2247_v61 = vld [vmem:[%s3471_s27 + $0x140] sm:$0xf]  ;;  %v3026_v63 = vld [vmem:[%s3471_s27 + $0x14c] sm:$0xf0]  ;;  %v2120_v4 = vor.u32 %v2994_v60, %v2119_v59  ;;  %1633 = vmatpush.bf16.msra.mxu2 %v2392_v58  ;;  %v2188_v60 = vor.u32 %v3008_v50, %v2185_v51 }
  0x4e   : > { %v2375_v0 = vld [vmem:[%s3471_s27 + $0x240] sm:$0xf]  ;;  %v3058_v1 = vld [vmem:[%s3471_s27 + $0x24c] sm:$0xf0]  ;;  %v2248_v5 = vor.u32 %v3026_v63, %v2247_v61  ;;  %1646 = vmatpush.bf16.msra.mxu3 %v2520_v62 }
  0x4f   : > { %v2503_v2 = vld [vmem:[%s3471_s27 + $0x340] sm:$0xf]  ;;  %v3090_v3 = vld [vmem:[%s3471_s27 + $0x34c] sm:$0xf0]  ;;  %v2376_v6 = vor.u32 %v3058_v1, %v2375_v0  ;;  %1608 = vmatpush.bf16.msra.mxu0 %v2120_v4  ;;  %v3004_v1 = vld [vmem:[%s3471_s27 + $0xa4] sm:$0xf] }
  0x50   : > { %v2103_v7 = vld [vmem:[%s3471_s27 + $0x20] sm:$0xf]  ;;  %v2990_v8 = vld [vmem:[%s3471_s27 + $0x2c] sm:$0xf0]  ;;  %v2504_v10 = vor.u32 %v3090_v3, %v2503_v2  ;;  %1621 = vmatpush.bf16.msra.mxu1 %v2248_v5  ;;  %v2169_v2 = vld [vmem:[%s3471_s27 + $0xb0] sm:$0xf0] }
  0x51   : > { %v2231_v9 = vld [vmem:[%s3471_s27 + $0x120] sm:$0xf]  ;;  %v3022_v11 = vld [vmem:[%s3471_s27 + $0x12c] sm:$0xf0]  ;;  %v2104_v16 = vor.u32 %v2990_v8, %v2103_v7  ;;  %1634 = vmatpush.bf16.msra.mxu2 %v2376_v6 }
  0x52   : > { %v2359_v12 = vld [vmem:[%s3471_s27 + $0x220] sm:$0xf]  ;;  %v3054_v13 = vld [vmem:[%s3471_s27 + $0x22c] sm:$0xf0]  ;;  %v2232_v19 = vor.u32 %v3022_v11, %v2231_v9  ;;  %1647 = vmatpush.bf16.msra.mxu3 %v2504_v10  ;;  %v236_v10 = vld [vmem:[%s4046_s0 + $0x8] sm:$0xff] }
  0x53   : > { %v2487_v14 = vld [vmem:[%s3471_s27 + $0x320] sm:$0xf]  ;;  %v3086_v15 = vld [vmem:[%s3471_s27 + $0x32c] sm:$0xf0]  ;;  %v2360_v20 = vor.u32 %v3054_v13, %v2359_v12  ;;  %1609 = vmatpush.bf16.msra.mxu0 %v2104_v16  ;;  %v238_v11 = vld [vmem:[%s4046_s0 + $0x18] sm:$0xff]  ;;  %v2172_v12 = vor.u32 %v3004_v1, %v2169_v2  ;;  %v3595_v16 = vpack.c.bf16 %v236_v10, %v236_v10 }
  0x54   : > { %v2087_v17 = vld [vmem:[%s3471_s27] sm:$0xf]  ;;  %v2986_v18 = vld [vmem:[%s3471_s27 + $0xc] sm:$0xf0]  ;;  %v2488_v24 = vor.u32 %v3086_v15, %v2487_v14  ;;  %1622 = vmatpush.bf16.msra.mxu1 %v2232_v19  ;;  %v3599_v19 = vpack.c.bf16 %v238_v11, %v238_v11  ;;  %v2457_v10 = vld [vmem:[%s3471_s27 + $0x2f0] sm:$0xf0] }
  0x55   : > { %v2215_v21 = vld [vmem:[%s3471_s27 + $0x100] sm:$0xf]  ;;  %v3018_v22 = vld [vmem:[%s3471_s27 + $0x10c] sm:$0xf0]  ;;  %v2088_v31 = vor.u32 %v2986_v18, %v2087_v17  ;;  %1635 = vmatpush.bf16.msra.mxu2 %v2360_v20  ;;  %v3000_v17 = vld [vmem:[%s3471_s27 + $0x84] sm:$0xf] }
  0x56   : > { %v2343_v23 = vld [vmem:[%s3471_s27 + $0x200] sm:$0xf]  ;;  %v3050_v25 = vld [vmem:[%s3471_s27 + $0x20c] sm:$0xf0]  ;;  %v2216_v35 = vor.u32 %v3018_v22, %v2215_v21  ;;  %1648 = vmatpush.bf16.msra.mxu3 %v2488_v24  ;;  %v2153_v18 = vld [vmem:[%s3471_s27 + $0x90] sm:$0xf0] }
  0x57   : > { %v2471_v26 = vld [vmem:[%s3471_s27 + $0x300] sm:$0xf]  ;;  %v3082_v27 = vld [vmem:[%s3471_s27 + $0x30c] sm:$0xf0]  ;;  %v2344_v36 = vor.u32 %v3050_v25, %v2343_v23  ;;  %1610 = vmatpush.bf16.msra.mxu0 %v2088_v31  ;;  %v2137_v31 = vld [vmem:[%s3471_s27 + $0x70] sm:$0xf0] }
  0x58   : > { %v2711_v28 = vld [vmem:[%s3471_s27 + $0x4e0] sm:$0xf]  ;;  %v3142_v29 = vld [vmem:[%s3471_s27 + $0x4ec] sm:$0xf0]  ;;  %v2472_v39 = vor.u32 %v3082_v27, %v2471_v26  ;;  %1623 = vmatpush.bf16.msra.mxu1 %v2216_v35  ;;  %v2156_v26 = vor.u32 %v3000_v17, %v2153_v18  ;;  %v3108_v11 = vld [vmem:[%s3471_s27 + $0x3e4] sm:$0xf] }
  0x59   : > { %v2839_v30 = vld [vmem:[%s3471_s27 + $0x5e0] sm:$0xf]  ;;  %v3174_v32 = vld [vmem:[%s3471_s27 + $0x5ec] sm:$0xf0]  ;;  %v2712_v40 = vor.u32 %v3142_v29, %v2711_v28  ;;  %1636 = vmatpush.bf16.msra.mxu2 %v2344_v36  ;;  %v2713_v17 = vld [vmem:[%s3471_s27 + $0x4f0] sm:$0xf0] }
  0x5a   : > { %v2967_v33 = vld [vmem:[%s3471_s27 + $0x6e0] sm:$0xf]  ;;  %v3206_v34 = vld [vmem:[%s3471_s27 + $0x6ec] sm:$0xf0]  ;;  %v2840_v41 = vor.u32 %v3174_v32, %v2839_v30  ;;  %1649 = vmatpush.bf16.msra.mxu3 %v2472_v39  ;;  %v2996_v30 = vld [vmem:[%s3471_s27 + $0x64] sm:$0xf] }
  0x5b   : > { %v2968_v42 = vor.u32 %v3206_v34, %v2967_v33  ;;  %v2695_v43 = vld [vmem:[%s3471_s27 + $0x4c0] sm:$0xf]  ;;  %v3138_v44 = vld [vmem:[%s3471_s27 + $0x4cc] sm:$0xf0]  ;;  %1655 = vmatpush.bf16.msrb.mxu0 %v2712_v40  ;;  %1624 = vmatmul.bf16.vlgmr.msra.gmra.mxu1 %v3595_v16  ;;  %v2140_v38 = vor.u32 %v2996_v30, %v2137_v31  ;;  %v2441_v31 = vld [vmem:[%s3471_s27 + $0x2d0] sm:$0xf0] }
  0x5c   : > { %v2823_v45 = vld [vmem:[%s3471_s27 + $0x5c0] sm:$0xf]  ;;  %v3170_v47 = vld [vmem:[%s3471_s27 + $0x5cc] sm:$0xf0]  ;;  %v2696_v52 = vor.u32 %v3138_v44, %v2695_v43  ;;  %1668 = vmatpush.bf16.msrb.mxu1 %v2840_v41  ;;  %v2121_v43 = vld [vmem:[%s3471_s27 + $0x50] sm:$0xf0] }
  0x5d   : > { %v2951_v48 = vld [vmem:[%s3471_s27 + $0x6c0] sm:$0xf]  ;;  %v3202_v49 = vld [vmem:[%s3471_s27 + $0x6cc] sm:$0xf0]  ;;  %1681 = vmatpush.bf16.msrb.mxu2 %v2968_v42  ;;  %v2824_v55 = vor.u32 %v3170_v47, %v2823_v45  ;;  %1650 = vmatmul.bf16.vlgmr.msra.gmra.mxu3 %v3599_v19  ;;  %v2992_v42 = vld [vmem:[%s3471_s27 + $0x44] sm:$0xf] }
  0x5e   : > { %v2679_v53 = vld [vmem:[%s3471_s27 + $0x4a0] sm:$0xf]  ;;  %v3134_v54 = vld [vmem:[%s3471_s27 + $0x4ac] sm:$0xf0]  ;;  %v2952_v56 = vor.u32 %v3202_v49, %v2951_v48  ;;  %1694 = vmatpush.bf16.msrb.mxu3 %v2204_v46  ;;  %v2124_v50 = vor.u32 %v2992_v42, %v2121_v43  ;;  %v2297_v42 = vld [vmem:[%s3471_s27 + $0x1b0] sm:$0xf0] }
  0x5f   : > { %v2807_v57 = vld [vmem:[%s3471_s27 + $0x5a0] sm:$0xf]  ;;  %v3166_v58 = vld [vmem:[%s3471_s27 + $0x5ac] sm:$0xf0]  ;;  %1656 = vmatpush.bf16.msrb.mxu0 %v2696_v52  ;;  %v2680_v4 = vor.u32 %v3134_v54, %v2679_v53  ;;  %v2988_v54 = vld [vmem:[%s3471_s27 + $0x24] sm:$0xf] }
  0x60   : > { %v237_v59 = vld [vmem:[%s4046_s0 + $0x10] sm:$0xff]  ;;  %v2935_v61 = vld [vmem:[%s3471_s27 + $0x6a0] sm:$0xf]  ;;  %1669 = vmatpush.bf16.msrb.mxu1 %v2824_v55  ;;  %v2808_v7 = vor.u32 %v3166_v58, %v2807_v57  ;;  %v3068_v43 = vld [vmem:[%s3471_s27 + $0x2a4] sm:$0xf] }
  0x61   : > { %v3198_v62 = vld [vmem:[%s3471_s27 + $0x6ac] sm:$0xf0]  ;;  %v3572_v63 = vpack.c.bf16 %v237_v59, %v237_v59  ;;  %v235_v0 = vld [vmem:[%s4046_s0] sm:$0xff]  ;;  %1682 = vmatpush.bf16.msrb.mxu2 %v2952_v56  ;;  %v2105_v55 = vld [vmem:[%s3471_s27 + $0x30] sm:$0xf0] }
  0x62   : > { %v3579_v3 = vpack.c.bf16 %v235_v0, %v235_v0  ;;  %v2663_v5 = vld [vmem:[%s3471_s27 + $0x480] sm:$0xf]  ;;  %v3130_v6 = vld [vmem:[%s3471_s27 + $0x48c] sm:$0xf0]  ;;  %v2936_v8 = vor.u32 %v3198_v62, %v2935_v61  ;;  %1695 = vmatpush.bf16.msrb.mxu3 %v2188_v60  ;;  %v2108_v1 = vor.u32 %v2988_v54, %v2105_v55  ;;  %v2281_v54 = vld [vmem:[%s3471_s27 + $0x190] sm:$0xf0] }
  0x63   : > { %1637 = vmatmul.bf16.vlgmr.msra.gmra.mxu2 %v3572_v63  ;;  %v2791_v9 = vld [vmem:[%s3471_s27 + $0x580] sm:$0xf]  ;;  %v3162_v13 = vld [vmem:[%s3471_s27 + $0x58c] sm:$0xf0]  ;;  %1657 = vmatpush.bf16.msrb.mxu0 %v2680_v4  ;;  %v2664_v20 = vor.u32 %v3130_v6, %v2663_v5  ;;  %v2984_v4 = vld [vmem:[%s3471_s27 + $0x4] sm:$0xf] }
  0x64   : > { %v2919_v14 = vld [vmem:[%s3471_s27 + $0x680] sm:$0xf]  ;;  %v3194_v15 = vld [vmem:[%s3471_s27 + $0x68c] sm:$0xf0]  ;;  %1611 = vmatmul.bf16.vlgmr.msra.gmra.mxu0 %v3579_v3  ;;  %1670 = vmatpush.bf16.msrb.mxu1 %v2808_v7  ;;  %v2792_v21 = vor.u32 %v3162_v13, %v2791_v9  ;;  %v2089_v5 = vld [vmem:[%s3471_s27 + $0x10] sm:$0xf0] }
  0x65   : > { %1683 = vmatpush.bf16.msrb.mxu2 %v2936_v8  ;;  %v2920_v22 = vor.u32 %v3194_v15, %v2919_v14  ;;  %v2647_v23 = vld [vmem:[%s3471_s27 + $0x460] sm:$0xf]  ;;  %v3126_v24 = vld [vmem:[%s3471_s27 + $0x46c] sm:$0xf0]  ;;  %v3044_v6 = vld [vmem:[%s3471_s27 + $0x1e4] sm:$0xf] }
  0x66   : > { %v2775_v25 = vld [vmem:[%s3471_s27 + $0x560] sm:$0xf]  ;;  %1696 = vmatpush.bf16.msrb.mxu3 %v2172_v12  ;;  %v3158_v27 = vld [vmem:[%s3471_s27 + $0x56c] sm:$0xf0]  ;;  %v2648_v32 = vor.u32 %v3126_v24, %v2647_v23  ;;  %v2329_v7 = vld [vmem:[%s3471_s27 + $0x1f0] sm:$0xf0] }
  0x67   : > { %v2903_v28 = vld [vmem:[%s3471_s27 + $0x660] sm:$0xf]  ;;  %v3190_v29 = vld [vmem:[%s3471_s27 + $0x66c] sm:$0xf0]  ;;  %1658 = vmatpush.bf16.msrb.mxu0 %v2664_v20  ;;  %v2776_v33 = vor.u32 %v3158_v27, %v2775_v25  ;;  %v3076_v8 = vld [vmem:[%s3471_s27 + $0x2e4] sm:$0xf]  ;;  %v2092_v20 = vor.u32 %v2984_v4, %v2089_v5 }
  0x68   : > { %1671 = vmatpush.bf16.msrb.mxu1 %v2792_v21  ;;  %v2904_v34 = vor.u32 %v3190_v29, %v2903_v28  ;;  %v2631_v35 = vld [vmem:[%s3471_s27 + $0x440] sm:$0xf]  ;;  %v3122_v36 = vld [vmem:[%s3471_s27 + $0x44c] sm:$0xf0]  ;;  %v2585_v12 = vld [vmem:[%s3471_s27 + $0x3f0] sm:$0xf0]  ;;  %v2332_v21 = vor.u32 %v3044_v6, %v2329_v7  ;;  %v2460_v24 = vor.u32 %v3076_v8, %v2457_v10 }
  0x69   : > { %1684 = vmatpush.bf16.msrb.mxu2 %v2920_v22  ;;  %v2759_v37 = vld [vmem:[%s3471_s27 + $0x540] sm:$0xf]  ;;  %v3154_v39 = vld [vmem:[%s3471_s27 + $0x54c] sm:$0xf0]  ;;  %v2632_v44 = vor.u32 %v3122_v36, %v2631_v35  ;;  %v3140_v15 = vld [vmem:[%s3471_s27 + $0x4e4] sm:$0xf]  ;;  %v2588_v25 = vor.u32 %v3108_v11, %v2585_v12 }
  0x6a   : > { %1697 = vmatpush.bf16.msrb.mxu3 %v2156_v26  ;;  %v2887_v40 = vld [vmem:[%s3471_s27 + $0x640] sm:$0xf]  ;;  %v3186_v41 = vld [vmem:[%s3471_s27 + $0x64c] sm:$0xf0]  ;;  %v2760_v45 = vor.u32 %v3154_v39, %v2759_v37  ;;  %v240_v23 = vld [vmem:[%s4046_s0 + $0x28] sm:$0xff]  ;;  %v2716_v29 = vor.u32 %v3140_v15, %v2713_v17 }
  0x6b   : > { %1659 = vmatpush.bf16.msrb.mxu0 %v2648_v32  ;;  %v2888_v46 = vor.u32 %v3186_v41, %v2887_v40  ;;  %v2615_v47 = vld [vmem:[%s3471_s27 + $0x420] sm:$0xf]  ;;  %v3118_v48 = vld [vmem:[%s3471_s27 + $0x42c] sm:$0xf0]  ;;  %v3040_v26 = vld [vmem:[%s3471_s27 + $0x1c4] sm:$0xf]  ;;  %v3664_v37 = vpack.c.bf16 %v240_v23, %v240_v23 }
  0x6c   : > { %1672 = vmatpush.bf16.msrb.mxu1 %v2776_v33  ;;  %v2743_v49 = vld [vmem:[%s3471_s27 + $0x520] sm:$0xf]  ;;  %v3150_v51 = vld [vmem:[%s3471_s27 + $0x52c] sm:$0xf0]  ;;  %v2616_v56 = vor.u32 %v3118_v48, %v2615_v47  ;;  %v2313_v27 = vld [vmem:[%s3471_s27 + $0x1d0] sm:$0xf0] }
  0x6d   : > { %1685 = vmatpush.bf16.msrb.mxu2 %v2904_v34  ;;  %v2871_v52 = vld [vmem:[%s3471_s27 + $0x620] sm:$0xf]  ;;  %v3182_v53 = vld [vmem:[%s3471_s27 + $0x62c] sm:$0xf0]  ;;  %v2744_v59 = vor.u32 %v3150_v51, %v2743_v49  ;;  %v3072_v28 = vld [vmem:[%s3471_s27 + $0x2c4] sm:$0xf] }
  0x6e   : > { %1698 = vmatpush.bf16.msrb.mxu3 %v2140_v38  ;;  %v2599_v57 = vld [vmem:[%s3471_s27 + $0x400] sm:$0xf]  ;;  %v3114_v58 = vld [vmem:[%s3471_s27 + $0x40c] sm:$0xf0]  ;;  %v2872_v60 = vor.u32 %v3182_v53, %v2871_v52  ;;  %v3104_v32 = vld [vmem:[%s3471_s27 + $0x3c4] sm:$0xf]  ;;  %v2316_v38 = vor.u32 %v3040_v26, %v2313_v27  ;;  %v2444_v39 = vor.u32 %v3072_v28, %v2441_v31 }
  0x6f   : > { %1660 = vmatpush.bf16.msrb.mxu0 %v2632_v44  ;;  %v2727_v61 = vld [vmem:[%s3471_s27 + $0x500] sm:$0xf]  ;;  %v3146_v62 = vld [vmem:[%s3471_s27 + $0x50c] sm:$0xf0]  ;;  %v2600_v9 = vor.u32 %v3114_v58, %v2599_v57  ;;  %v2569_v33 = vld [vmem:[%s3471_s27 + $0x3d0] sm:$0xf0] }
  0x70   : > { %1673 = vmatpush.bf16.msrb.mxu1 %v2760_v45  ;;  %v2855_v0 = vld [vmem:[%s3471_s27 + $0x600] sm:$0xf]  ;;  %v3178_v2 = vld [vmem:[%s3471_s27 + $0x60c] sm:$0xf0]  ;;  %v2728_v13 = vor.u32 %v3146_v62, %v2727_v61  ;;  %v3136_v34 = vld [vmem:[%s3471_s27 + $0x4c4] sm:$0xf]  ;;  %v2572_v40 = vor.u32 %v3104_v32, %v2569_v33 }
  0x71   : > { %1686 = vmatpush.bf16.msrb.mxu2 %v2888_v46  ;;  %v2856_v14 = vor.u32 %v3178_v2, %v2855_v0  ;;  %v241_v18 = vld [vmem:[%s4046_s0 + $0x30] sm:$0xff]  ;;  %v239_v22 = vld [vmem:[%s4046_s0 + $0x20] sm:$0xff] }
  0x72   : > { %1699 = vmatpush.bf16.msrb.mxu3 %v2124_v50  ;;  %v3655_v30 = vpack.c.bf16 %v241_v18, %v241_v18  ;;  %v2697_v35 = vld [vmem:[%s3471_s27 + $0x4d0] sm:$0xf0]  ;;  %v3662_v36 = vpack.c.bf16 %v239_v22, %v239_v22  ;;  %v3036_v41 = vld [vmem:[%s3471_s27 + $0x1a4] sm:$0xf] }
  0x73   : > { %1661 = vmatpush.bf16.msrb.mxu0 %v2616_v56  ;;  %v2700_v44 = vor.u32 %v3136_v34, %v2697_v35  ;;  %v2425_v45 = vld [vmem:[%s3471_s27 + $0x2b0] sm:$0xf0]  ;;  %v3100_v46 = vld [vmem:[%s3471_s27 + $0x3a4] sm:$0xf]  ;;  %v2300_v50 = vor.u32 %v3036_v41, %v2297_v42 }
  0x74   : > { %1674 = vmatpush.bf16.msrb.mxu1 %v2744_v59  ;;  %v2553_v47 = vld [vmem:[%s3471_s27 + $0x3b0] sm:$0xf0]  ;;  %v3132_v48 = vld [vmem:[%s3471_s27 + $0x4a4] sm:$0xf]  ;;  %v2428_v51 = vor.u32 %v3068_v43, %v2425_v45 }
  0x75   : > { %1687 = vmatpush.bf16.msrb.mxu2 %v2872_v60  ;;  %v2681_v49 = vld [vmem:[%s3471_s27 + $0x4b0] sm:$0xf0]  ;;  %v2556_v52 = vor.u32 %v3100_v46, %v2553_v47  ;;  %v3032_v53 = vld [vmem:[%s3471_s27 + $0x184] sm:$0xf] }
  0x76   : > { %1700 = vmatpush.bf16.msrb.mxu3 %v2108_v1  ;;  %v3064_v55 = vld [vmem:[%s3471_s27 + $0x284] sm:$0xf]  ;;  %v2684_v56 = vor.u32 %v3132_v48, %v2681_v49  ;;  %v2409_v57 = vld [vmem:[%s3471_s27 + $0x290] sm:$0xf0]  ;;  %v2284_v62 = vor.u32 %v3032_v53, %v2281_v54 }
  0x77   : > { %1662 = vmatpush.bf16.msrb.mxu0 %v2600_v9  ;;  %v3096_v58 = vld [vmem:[%s3471_s27 + $0x384] sm:$0xf]  ;;  %v2537_v59 = vld [vmem:[%s3471_s27 + $0x390] sm:$0xf0]  ;;  %v2412_v0 = vor.u32 %v3064_v55, %v2409_v57 }
  0x78   : > { %1675 = vmatpush.bf16.msrb.mxu1 %v2728_v13  ;;  %v3128_v60 = vld [vmem:[%s3471_s27 + $0x484] sm:$0xf]  ;;  %v2665_v61 = vld [vmem:[%s3471_s27 + $0x490] sm:$0xf0]  ;;  %v2540_v1 = vor.u32 %v3096_v58, %v2537_v59  ;;  %v2207_v58 = vld [vmem:[%s3471_s27 + $0xe8] sm:$0xf] }
  0x79   : > { %1688 = vmatpush.bf16.msrb.mxu2 %v2856_v14  ;;  %v3028_v2 = vld [vmem:[%s3471_s27 + $0x164] sm:$0xf]  ;;  %v2265_v4 = vld [vmem:[%s3471_s27 + $0x170] sm:$0xf0]  ;;  %v2668_v6 = vor.u32 %v3128_v60, %v2665_v61  ;;  %v3015_v59 = vld [vmem:[%s3471_s27 + $0xf4] sm:$0xf0] }
  0x7a   : > { %1701 = vmatpush.bf16.msrb.mxu3 %v2092_v20  ;;  %1663 = vmatmul.bf16.vlgmr.msrb.gmra.mxu0 %v3662_v36  ;;  %v3060_v5 = vld [vmem:[%s3471_s27 + $0x264] sm:$0xf]  ;;  %v2393_v7 = vld [vmem:[%s3471_s27 + $0x270] sm:$0xf0]  ;;  %v2268_v12 = vor.u32 %v3028_v2, %v2265_v4 }
  0x7b   : > { %1707 = vmatpush.bf16.msra.mxu0 %v2332_v21  ;;  %1676 = vmatmul.bf16.vlgmr.msrb.gmra.mxu1 %v3664_v37  ;;  %v3092_v8 = vld [vmem:[%s3471_s27 + $0x364] sm:$0xf]  ;;  %v2521_v9 = vld [vmem:[%s3471_s27 + $0x370] sm:$0xf0]  ;;  %v2396_v13 = vor.u32 %v3060_v5, %v2393_v7  ;;  %v2208_v5 = vor.u32 %v3015_v59, %v2207_v58 }
  0x7c   : > { %1720 = vmatpush.bf16.msra.mxu1 %v2460_v24  ;;  %1689 = vmatmul.bf16.vlgmr.msrb.gmra.mxu2 %v3655_v30  ;;  %v3124_v10 = vld [vmem:[%s3471_s27 + $0x464] sm:$0xf]  ;;  %v2649_v11 = vld [vmem:[%s3471_s27 + $0x470] sm:$0xf0]  ;;  %v2524_v14 = vor.u32 %v3092_v8, %v2521_v9 }
  0x7d   : > { %1733 = vmatpush.bf16.msra.mxu2 %v2588_v25  ;;  %1702 = vmatmul.bf16.vlgmr.msrb.gmra.mxu3 %v3579_v3  ;;  %v3024_v15 = vld [vmem:[%s3471_s27 + $0x144] sm:$0xf]  ;;  %v2249_v17 = vld [vmem:[%s3471_s27 + $0x150] sm:$0xf0]  ;;  %v2652_v20 = vor.u32 %v3124_v10, %v2649_v11  ;;  %v2191_v11 = vld [vmem:[%s3471_s27 + $0xc8] sm:$0xf] }
  0x7e   : > { %1746 = vmatpush.bf16.msra.mxu3 %v2716_v29  ;;  %v3056_v18 = vld [vmem:[%s3471_s27 + $0x244] sm:$0xf]  ;;  %v2377_v21 = vld [vmem:[%s3471_s27 + $0x250] sm:$0xf0]  ;;  %v2252_v26 = vor.u32 %v3024_v15, %v2249_v17 }
  0x7f   : > { %1708 = vmatpush.bf16.msra.mxu0 %v2316_v38  ;;  %v3088_v22 = vld [vmem:[%s3471_s27 + $0x344] sm:$0xf]  ;;  %v2505_v23 = vld [vmem:[%s3471_s27 + $0x350] sm:$0xf0]  ;;  %v2380_v27 = vor.u32 %v3056_v18, %v2377_v21 }
  0x80   : > { %1721 = vmatpush.bf16.msra.mxu1 %v2444_v39  ;;  %v3120_v24 = vld [vmem:[%s3471_s27 + $0x444] sm:$0xf]  ;;  %v2633_v25 = vld [vmem:[%s3471_s27 + $0x450] sm:$0xf0]  ;;  %v2508_v28 = vor.u32 %v3088_v22, %v2505_v23 }
  0x81   : > { %1734 = vmatpush.bf16.msra.mxu2 %v2572_v40  ;;  %v3020_v29 = vld [vmem:[%s3471_s27 + $0x124] sm:$0xf]  ;;  %v2233_v31 = vld [vmem:[%s3471_s27 + $0x130] sm:$0xf0]  ;;  %v2636_v33 = vor.u32 %v3120_v24, %v2633_v25  ;;  %v2175_v25 = vld [vmem:[%s3471_s27 + $0xa8] sm:$0xf] }
  0x82   : > { %1747 = vmatpush.bf16.msra.mxu3 %v2700_v44  ;;  %v3052_v32 = vld [vmem:[%s3471_s27 + $0x224] sm:$0xf]  ;;  %v2361_v34 = vld [vmem:[%s3471_s27 + $0x230] sm:$0xf0]  ;;  %v2236_v41 = vor.u32 %v3020_v29, %v2233_v31 }
  0x83   : > { %1709 = vmatpush.bf16.msra.mxu0 %v2300_v50  ;;  %v3084_v35 = vld [vmem:[%s3471_s27 + $0x324] sm:$0xf]  ;;  %v2489_v38 = vld [vmem:[%s3471_s27 + $0x330] sm:$0xf0]  ;;  %v2364_v44 = vor.u32 %v3052_v32, %v2361_v34 }
  0x84   : > { %1722 = vmatpush.bf16.msra.mxu1 %v2428_v51  ;;  %v3116_v39 = vld [vmem:[%s3471_s27 + $0x424] sm:$0xf]  ;;  %v2617_v40 = vld [vmem:[%s3471_s27 + $0x430] sm:$0xf0]  ;;  %v2492_v45 = vor.u32 %v3084_v35, %v2489_v38 }
  0x85   : > { %1735 = vmatpush.bf16.msra.mxu2 %v2556_v52  ;;  %v3016_v42 = vld [vmem:[%s3471_s27 + $0x104] sm:$0xf]  ;;  %v2217_v43 = vld [vmem:[%s3471_s27 + $0x110] sm:$0xf0]  ;;  %v2620_v49 = vor.u32 %v3116_v39, %v2617_v40  ;;  %v2159_v40 = vld [vmem:[%s3471_s27 + $0x88] sm:$0xf] }
  0x86   : > { %1748 = vmatpush.bf16.msra.mxu3 %v2684_v56  ;;  %v3048_v46 = vld [vmem:[%s3471_s27 + $0x204] sm:$0xf]  ;;  %v2345_v47 = vld [vmem:[%s3471_s27 + $0x210] sm:$0xf0]  ;;  %v2220_v56 = vor.u32 %v3016_v42, %v2217_v43  ;;  %v2287_v42 = vld [vmem:[%s3471_s27 + $0x188] sm:$0xf] }
  0x87   : > { %1710 = vmatpush.bf16.msra.mxu0 %v2284_v62  ;;  %v3080_v48 = vld [vmem:[%s3471_s27 + $0x304] sm:$0xf]  ;;  %v2473_v50 = vld [vmem:[%s3471_s27 + $0x310] sm:$0xf0]  ;;  %v2348_v60 = vor.u32 %v3048_v46, %v2345_v47  ;;  %v2335_v62 = vld [vmem:[%s3471_s27 + $0x1e8] sm:$0xf] }
  0x88   : > { %1723 = vmatpush.bf16.msra.mxu1 %v2412_v0  ;;  %v3112_v51 = vld [vmem:[%s3471_s27 + $0x404] sm:$0xf]  ;;  %v2601_v52 = vld [vmem:[%s3471_s27 + $0x410] sm:$0xf0]  ;;  %v2476_v61 = vor.u32 %v3080_v48, %v2473_v50  ;;  %v3047_v0 = vld [vmem:[%s3471_s27 + $0x1f4] sm:$0xf0] }
  0x89   : > { %1736 = vmatpush.bf16.msra.mxu2 %v2540_v1  ;;  %v3172_v53 = vld [vmem:[%s3471_s27 + $0x5e4] sm:$0xf]  ;;  %v2841_v54 = vld [vmem:[%s3471_s27 + $0x5f0] sm:$0xf0]  ;;  %v2604_v1 = vor.u32 %v3112_v51, %v2601_v52  ;;  %v2336_v9 = vor.u32 %v3047_v0, %v2335_v62  ;;  %v3035_v43 = vld [vmem:[%s3471_s27 + $0x194] sm:$0xf0] }
  0x8a   : > { %1749 = vmatpush.bf16.msra.mxu3 %v2668_v6  ;;  %v3204_v55 = vld [vmem:[%s3471_s27 + $0x6e4] sm:$0xf]  ;;  %v2969_v57 = vld [vmem:[%s3471_s27 + $0x6f0] sm:$0xf0]  ;;  %v2844_v2 = vor.u32 %v3172_v53, %v2841_v54  ;;  %v2288_v50 = vor.u32 %v3035_v43, %v2287_v42  ;;  %v2143_v52 = vld [vmem:[%s3471_s27 + $0x68] sm:$0xf] }
  0x8b   : > { %1711 = vmatpush.bf16.msra.mxu0 %v2268_v12  ;;  %v2972_v4 = vor.u32 %v3204_v55, %v2969_v57  ;;  %v3168_v6 = vld [vmem:[%s3471_s27 + $0x5c4] sm:$0xf]  ;;  %v2825_v7 = vld [vmem:[%s3471_s27 + $0x5d0] sm:$0xf0]  ;;  %v3011_v12 = vld [vmem:[%s3471_s27 + $0xd4] sm:$0xf0] }
  0x8c   : > { %1724 = vmatpush.bf16.msra.mxu1 %v2396_v13  ;;  %v3200_v8 = vld [vmem:[%s3471_s27 + $0x6c4] sm:$0xf]  ;;  %v2953_v10 = vld [vmem:[%s3471_s27 + $0x6d0] sm:$0xf0]  ;;  %v2319_v13 = vld [vmem:[%s3471_s27 + $0x1c8] sm:$0xf]  ;;  %v2828_v15 = vor.u32 %v3168_v6, %v2825_v7  ;;  %v2192_v18 = vor.u32 %v3011_v12, %v2191_v11 }
  0x8d   : > { %1737 = vmatpush.bf16.msra.mxu2 %v2524_v14  ;;  %v3043_v14 = vld [vmem:[%s3471_s27 + $0x1d4] sm:$0xf0]  ;;  %v2956_v17 = vor.u32 %v3200_v8, %v2953_v10  ;;  %v2809_v21 = vld [vmem:[%s3471_s27 + $0x5b0] sm:$0xf0]  ;;  %v3196_v22 = vld [vmem:[%s3471_s27 + $0x6a4] sm:$0xf] }
  0x8e   : > { %1750 = vmatpush.bf16.msra.mxu3 %v2652_v20  ;;  %v3164_v20 = vld [vmem:[%s3471_s27 + $0x5a4] sm:$0xf]  ;;  %v2320_v23 = vor.u32 %v3043_v14, %v2319_v13  ;;  %v2937_v24 = vld [vmem:[%s3471_s27 + $0x6b0] sm:$0xf0]  ;;  %v2999_v53 = vld [vmem:[%s3471_s27 + $0x74] sm:$0xf0] }
  0x8f   : > { %1712 = vmatpush.bf16.msra.mxu0 %v2252_v26  ;;  %v3007_v26 = vld [vmem:[%s3471_s27 + $0xb4] sm:$0xf0]  ;;  %v2812_v29 = vor.u32 %v3164_v20, %v2809_v21  ;;  %v2940_v31 = vor.u32 %v3196_v22, %v2937_v24  ;;  %v2793_v34 = vld [vmem:[%s3471_s27 + $0x590] sm:$0xf0]  ;;  %v3192_v35 = vld [vmem:[%s3471_s27 + $0x684] sm:$0xf]  ;;  %v2144_v58 = vor.u32 %v2999_v53, %v2143_v52 }
  0x90   : > { %1725 = vmatpush.bf16.msra.mxu1 %v2380_v27  ;;  %v2303_v27 = vld [vmem:[%s3471_s27 + $0x1a8] sm:$0xf]  ;;  %v2176_v32 = vor.u32 %v3007_v26, %v2175_v25  ;;  %v2921_v39 = vld [vmem:[%s3471_s27 + $0x690] sm:$0xf0]  ;;  %v3156_v47 = vld [vmem:[%s3471_s27 + $0x564] sm:$0xf] }
  0x91   : > { %1738 = vmatpush.bf16.msra.mxu2 %v2508_v28  ;;  %v3039_v28 = vld [vmem:[%s3471_s27 + $0x1b4] sm:$0xf0]  ;;  %v2777_v48 = vld [vmem:[%s3471_s27 + $0x570] sm:$0xf0]  ;;  %v2271_v54 = vld [vmem:[%s3471_s27 + $0x168] sm:$0xf] }
  0x92   : > { %1751 = vmatpush.bf16.msra.mxu3 %v2636_v33  ;;  %v3160_v33 = vld [vmem:[%s3471_s27 + $0x584] sm:$0xf]  ;;  %v2304_v38 = vor.u32 %v3039_v28, %v2303_v27  ;;  %v2905_v51 = vld [vmem:[%s3471_s27 + $0x670] sm:$0xf0]  ;;  %v3031_v55 = vld [vmem:[%s3471_s27 + $0x174] sm:$0xf0] }
  0x93   : > { %1713 = vmatpush.bf16.msra.mxu0 %v2236_v41  ;;  %v3003_v41 = vld [vmem:[%s3471_s27 + $0x94] sm:$0xf0]  ;;  %v3152_v59 = vld [vmem:[%s3471_s27 + $0x544] sm:$0xf]  ;;  %v2272_v62 = vor.u32 %v3031_v55, %v2271_v54  ;;  %v2889_v0 = vld [vmem:[%s3471_s27 + $0x650] sm:$0xf0] }
  0x94   : > { %1726 = vmatpush.bf16.msra.mxu1 %v2364_v44  ;;  %v2796_v44 = vor.u32 %v3160_v33, %v2793_v34  ;;  %v2160_v46 = vor.u32 %v3003_v41, %v2159_v40  ;;  %v2745_v10 = vld [vmem:[%s3471_s27 + $0x530] sm:$0xf0]  ;;  %v3180_v11 = vld [vmem:[%s3471_s27 + $0x624] sm:$0xf]  ;;  %v2111_v14 = vld [vmem:[%s3471_s27 + $0x28] sm:$0xf] }
  0x95   : > { %1739 = vmatpush.bf16.msra.mxu2 %v2492_v45  ;;  %v2924_v45 = vor.u32 %v3192_v35, %v2921_v39  ;;  %v2873_v13 = vld [vmem:[%s3471_s27 + $0x630] sm:$0xf0]  ;;  %v3144_v21 = vld [vmem:[%s3471_s27 + $0x504] sm:$0xf]  ;;  %v2095_v27 = vld [vmem:[%s3471_s27 + $0x8] sm:$0xf] }
  0x96   : > { %1752 = vmatpush.bf16.msra.mxu3 %v2620_v49  ;;  %v3188_v49 = vld [vmem:[%s3471_s27 + $0x664] sm:$0xf]  ;;  %v2729_v22 = vld [vmem:[%s3471_s27 + $0x510] sm:$0xf0]  ;;  %v2463_v33 = vld [vmem:[%s3471_s27 + $0x2e8] sm:$0xf] }
  0x97   : > { %1714 = vmatpush.bf16.msra.mxu0 %v2220_v56  ;;  %v2780_v56 = vor.u32 %v3156_v47, %v2777_v48  ;;  %v2908_v57 = vor.u32 %v3188_v49, %v2905_v51  ;;  %v3176_v25 = vld [vmem:[%s3471_s27 + $0x604] sm:$0xf]  ;;  %v2857_v26 = vld [vmem:[%s3471_s27 + $0x610] sm:$0xf0]  ;;  %v3079_v34 = vld [vmem:[%s3471_s27 + $0x2f4] sm:$0xf0] }
  0x98   : > { %1727 = vmatpush.bf16.msra.mxu1 %v2348_v60  ;;  %v2761_v60 = vld [vmem:[%s3471_s27 + $0x550] sm:$0xf0]  ;;  %v2591_v35 = vld [vmem:[%s3471_s27 + $0x3e8] sm:$0xf]  ;;  %v3111_v39 = vld [vmem:[%s3471_s27 + $0x3f4] sm:$0xf0]  ;;  %v2860_v42 = vor.u32 %v3176_v25, %v2857_v26  ;;  %v2464_v47 = vor.u32 %v3079_v34, %v2463_v33 }
  0x99   : > { %1740 = vmatpush.bf16.msra.mxu2 %v2476_v61  ;;  %v3184_v61 = vld [vmem:[%s3471_s27 + $0x644] sm:$0xf]  ;;  %v2764_v6 = vor.u32 %v3152_v59, %v2761_v60  ;;  %v2719_v40 = vld [vmem:[%s3471_s27 + $0x4e8] sm:$0xf]  ;;  %v3143_v41 = vld [vmem:[%s3471_s27 + $0x4f4] sm:$0xf0]  ;;  %v2592_v48 = vor.u32 %v3111_v39, %v2591_v35 }
  0x9a   : > { %1753 = vmatpush.bf16.msra.mxu3 %v2604_v1  ;;  %1715 = vmatmul.bf16.vlgmr.msra.gmra.mxu0 %v3595_v16  ;;  %v2127_v1 = vld [vmem:[%s3471_s27 + $0x48] sm:$0xf]  ;;  %v2892_v7 = vor.u32 %v3184_v61, %v2889_v0  ;;  %v2720_v49 = vor.u32 %v3143_v41, %v2719_v40  ;;  %v3075_v51 = vld [vmem:[%s3471_s27 + $0x2d4] sm:$0xf0] }
  0x9b   : > { %1759 = vmatpush.bf16.msrb.mxu0 %v2844_v2  ;;  %1728 = vmatmul.bf16.vlgmr.msra.gmra.mxu1 %v3572_v63  ;;  %v2995_v2 = vld [vmem:[%s3471_s27 + $0x54] sm:$0xf0]  ;;  %v2575_v52 = vld [vmem:[%s3471_s27 + $0x3c8] sm:$0xf] }
  0x9c   : > { %1772 = vmatpush.bf16.msrb.mxu1 %v2972_v4  ;;  %1741 = vmatmul.bf16.vlgmr.msra.gmra.mxu2 %v3599_v19  ;;  %v2255_v4 = vld [vmem:[%s3471_s27 + $0x148] sm:$0xf]  ;;  %v2128_v8 = vor.u32 %v2995_v2, %v2127_v1  ;;  %v3107_v54 = vld [vmem:[%s3471_s27 + $0x3d4] sm:$0xf0] }
  0x9d   : > { %1785 = vmatpush.bf16.msrb.mxu2 %v2208_v5  ;;  %1754 = vmatmul.bf16.vlgmr.msra.gmra.mxu3 %v3662_v36  ;;  %v3027_v5 = vld [vmem:[%s3471_s27 + $0x154] sm:$0xf0]  ;;  %v2703_v55 = vld [vmem:[%s3471_s27 + $0x4c8] sm:$0xf]  ;;  %v2576_v60 = vor.u32 %v3107_v54, %v2575_v52 }
  0x9e   : > { %1798 = vmatpush.bf16.msrb.mxu3 %v2336_v9  ;;  %v3148_v9 = vld [vmem:[%s3471_s27 + $0x524] sm:$0xf]  ;;  %v2256_v12 = vor.u32 %v3027_v5, %v2255_v4  ;;  %v3071_v0 = vld [vmem:[%s3471_s27 + $0x2b4] sm:$0xf0]  ;;  %v2559_v1 = vld [vmem:[%s3471_s27 + $0x3a8] sm:$0xf] }
  0x9f   : > { %1760 = vmatpush.bf16.msrb.mxu0 %v2828_v15  ;;  %v2991_v15 = vld [vmem:[%s3471_s27 + $0x34] sm:$0xf0]  ;;  %v2748_v20 = vor.u32 %v3148_v9, %v2745_v10  ;;  %v2687_v5 = vld [vmem:[%s3471_s27 + $0x4a8] sm:$0xf] }
  0xa0   : > { %1773 = vmatpush.bf16.msrb.mxu1 %v2956_v17  ;;  %v2239_v17 = vld [vmem:[%s3471_s27 + $0x128] sm:$0xf]  ;;  %v2112_v24 = vor.u32 %v2991_v15, %v2111_v14  ;;  %v3103_v4 = vld [vmem:[%s3471_s27 + $0x3b4] sm:$0xf0] }
  0xa1   : > { %1786 = vmatpush.bf16.msrb.mxu2 %v2192_v18  ;;  %v3023_v18 = vld [vmem:[%s3471_s27 + $0x134] sm:$0xf0]  ;;  %v2560_v10 = vor.u32 %v3103_v4, %v2559_v1  ;;  %v2543_v14 = vld [vmem:[%s3471_s27 + $0x388] sm:$0xf] }
  0xa2   : > { %1799 = vmatpush.bf16.msrb.mxu3 %v2320_v23  ;;  %v2876_v23 = vor.u32 %v3180_v11, %v2873_v13  ;;  %v2240_v28 = vor.u32 %v3023_v18, %v2239_v17  ;;  %v3067_v13 = vld [vmem:[%s3471_s27 + $0x294] sm:$0xf0]  ;;  %v2671_v18 = vld [vmem:[%s3471_s27 + $0x488] sm:$0xf] }
  0xa3   : > { %1761 = vmatpush.bf16.msrb.mxu0 %v2812_v29  ;;  %v2987_v29 = vld [vmem:[%s3471_s27 + $0x14] sm:$0xf0]  ;;  %v2399_v26 = vld [vmem:[%s3471_s27 + $0x268] sm:$0xf] }
  0xa4   : > { %1774 = vmatpush.bf16.msrb.mxu1 %v2940_v31  ;;  %v2223_v31 = vld [vmem:[%s3471_s27 + $0x108] sm:$0xf]  ;;  %v2096_v43 = vor.u32 %v2987_v29, %v2095_v27  ;;  %v3099_v17 = vld [vmem:[%s3471_s27 + $0x394] sm:$0xf0] }
  0xa5   : > { %1787 = vmatpush.bf16.msrb.mxu2 %v2176_v32  ;;  %v3019_v32 = vld [vmem:[%s3471_s27 + $0x114] sm:$0xf0]  ;;  %v2783_v34 = vld [vmem:[%s3471_s27 + $0x568] sm:$0xf] }
  0xa6   : > { %1800 = vmatpush.bf16.msrb.mxu3 %v2304_v38  ;;  %v2732_v38 = vor.u32 %v3144_v21, %v2729_v22  ;;  %v2799_v21 = vld [vmem:[%s3471_s27 + $0x588] sm:$0xf]  ;;  %v3163_v22 = vld [vmem:[%s3471_s27 + $0x594] sm:$0xf0] }
  0xa7   : > { %1762 = vmatpush.bf16.msrb.mxu0 %v2796_v44  ;;  %v2847_v44 = vld [vmem:[%s3471_s27 + $0x5e8] sm:$0xf]  ;;  %v3063_v27 = vld [vmem:[%s3471_s27 + $0x274] sm:$0xf0]  ;;  %v2800_v29 = vor.u32 %v3163_v22, %v2799_v21 }
  0xa8   : > { %1775 = vmatpush.bf16.msrb.mxu1 %v2924_v45  ;;  %v3175_v45 = vld [vmem:[%s3471_s27 + $0x5f4] sm:$0xf0]  ;;  %v2383_v41 = vld [vmem:[%s3471_s27 + $0x248] sm:$0xf] }
  0xa9   : > { %1788 = vmatpush.bf16.msrb.mxu2 %v2160_v46  ;;  %v2224_v46 = vor.u32 %v3019_v32, %v2223_v31  ;;  %v2848_v53 = vor.u32 %v3175_v45, %v2847_v44  ;;  %v3095_v31 = vld [vmem:[%s3471_s27 + $0x374] sm:$0xf0]  ;;  %v2655_v32 = vld [vmem:[%s3471_s27 + $0x468] sm:$0xf] }
  0xaa   : > { %1801 = vmatpush.bf16.msrb.mxu3 %v2288_v50  ;;  %v2447_v50 = vld [vmem:[%s3471_s27 + $0x2c8] sm:$0xf]  ;;  %v3127_v33 = vld [vmem:[%s3471_s27 + $0x474] sm:$0xf0] }
  0xab   : > { %1763 = vmatpush.bf16.msrb.mxu0 %v2780_v56  ;;  %v3139_v56 = vld [vmem:[%s3471_s27 + $0x4d4] sm:$0xf0]  ;;  %v2448_v59 = vor.u32 %v3075_v51, %v2447_v50  ;;  %v2656_v40 = vor.u32 %v3127_v33, %v2655_v32  ;;  %v3009_v32 = vld [vmem:[%s3471_s27 + $0xcc] sm:$0xf] }
  0xac   : > { %1776 = vmatpush.bf16.msrb.mxu1 %v2908_v57  ;;  %v2831_v57 = vld [vmem:[%s3471_s27 + $0x5c8] sm:$0xf]  ;;  %v2704_v61 = vor.u32 %v3139_v56, %v2703_v55  ;;  %v3159_v35 = vld [vmem:[%s3471_s27 + $0x574] sm:$0xf0] }
  0xad   : > { %1789 = vmatpush.bf16.msrb.mxu2 %v2144_v58  ;;  %v3171_v58 = vld [vmem:[%s3471_s27 + $0x5d4] sm:$0xf0]  ;;  %v2784_v44 = vor.u32 %v3159_v35, %v2783_v34  ;;  %v2495_v55 = vld [vmem:[%s3471_s27 + $0x328] sm:$0xf]  ;;  %v2193_v34 = vld [vmem:[%s3471_s27 + $0xd8] sm:$0xf0] }
  0xae   : > { %1802 = vmatpush.bf16.msrb.mxu3 %v2272_v62  ;;  %v2431_v62 = vld [vmem:[%s3471_s27 + $0x2a8] sm:$0xf]  ;;  %v2832_v2 = vor.u32 %v3171_v58, %v2831_v57  ;;  %v3091_v45 = vld [vmem:[%s3471_s27 + $0x354] sm:$0xf0]  ;;  %v3041_v35 = vld [vmem:[%s3471_s27 + $0x1cc] sm:$0xf] }
  0xaf   : > { %1764 = vmatpush.bf16.msrb.mxu0 %v2764_v6  ;;  %v3135_v6 = vld [vmem:[%s3471_s27 + $0x4b4] sm:$0xf0]  ;;  %v2432_v9 = vor.u32 %v3071_v0, %v2431_v62  ;;  %v2623_v58 = vld [vmem:[%s3471_s27 + $0x428] sm:$0xf] }
  0xb0   : > { %1777 = vmatpush.bf16.msrb.mxu1 %v2892_v7  ;;  %v2815_v7 = vld [vmem:[%s3471_s27 + $0x5a8] sm:$0xf]  ;;  %v2688_v11 = vor.u32 %v3135_v6, %v2687_v5  ;;  %v3055_v54 = vld [vmem:[%s3471_s27 + $0x234] sm:$0xf0] }
  0xb1   : > { %1790 = vmatpush.bf16.msrb.mxu2 %v2128_v8  ;;  %v3167_v8 = vld [vmem:[%s3471_s27 + $0x5b4] sm:$0xf0]  ;;  %v2351_v0 = vld [vmem:[%s3471_s27 + $0x208] sm:$0xf] }
  0xb2   : > { %1803 = vmatpush.bf16.msrb.mxu3 %v2256_v12  ;;  %v2415_v12 = vld [vmem:[%s3471_s27 + $0x288] sm:$0xf]  ;;  %v2816_v15 = vor.u32 %v3167_v8, %v2815_v7  ;;  %v3087_v57 = vld [vmem:[%s3471_s27 + $0x334] sm:$0xf0] }
  0xb3   : > { %1765 = vmatpush.bf16.msrb.mxu0 %v2748_v20  ;;  %v3131_v20 = vld [vmem:[%s3471_s27 + $0x494] sm:$0xf0]  ;;  %v2479_v5 = vld [vmem:[%s3471_s27 + $0x308] sm:$0xf] }
  0xb4   : > { %1778 = vmatpush.bf16.msrb.mxu1 %v2876_v23  ;;  %v2416_v23 = vor.u32 %v3067_v13, %v2415_v12  ;;  %v2672_v25 = vor.u32 %v3131_v20, %v2671_v18  ;;  %v3051_v1 = vld [vmem:[%s3471_s27 + $0x214] sm:$0xf0]  ;;  %v2607_v7 = vld [vmem:[%s3471_s27 + $0x408] sm:$0xf]  ;;  %v3045_v18 = vld [vmem:[%s3471_s27 + $0x1ec] sm:$0xf] }
  0xb5   : > { %1791 = vmatpush.bf16.msrb.mxu2 %v2112_v24  ;;  %v2544_v24 = vor.u32 %v3099_v17, %v2543_v14  ;;  %v3083_v6 = vld [vmem:[%s3471_s27 + $0x314] sm:$0xf0]  ;;  %v2975_v12 = vld [vmem:[%s3471_s27 + $0x6e8] sm:$0xf]  ;;  %v3013_v14 = vld [vmem:[%s3471_s27 + $0xec] sm:$0xf] }
  0xb6   : > { %1804 = vmatpush.bf16.msrb.mxu3 %v2240_v28  ;;  %v2527_v28 = vld [vmem:[%s3471_s27 + $0x368] sm:$0xf]  ;;  %v3207_v13 = vld [vmem:[%s3471_s27 + $0x6f4] sm:$0xf0]  ;;  %v2209_v17 = vld [vmem:[%s3471_s27 + $0xf8] sm:$0xf0]  ;;  %v2480_v21 = vor.u32 %v3083_v6, %v2479_v5 }
  0xb7   : > { %1766 = vmatpush.bf16.msrb.mxu0 %v2732_v38  ;;  %v2400_v38 = vor.u32 %v3063_v27, %v2399_v26  ;;  %v2528_v39 = vor.u32 %v3095_v31, %v2527_v28  ;;  %v2337_v20 = vld [vmem:[%s3471_s27 + $0x1f8] sm:$0xf0]  ;;  %v2976_v26 = vor.u32 %v3207_v13, %v2975_v12  ;;  %v2212_v27 = vor.u32 %v3013_v14, %v2209_v17  ;;  %v3203_v31 = vld [vmem:[%s3471_s27 + $0x6d4] sm:$0xf0]  ;;  %v2911_v6 = vld [vmem:[%s3471_s27 + $0x668] sm:$0xf] }
  0xb8   : > { %1779 = vmatpush.bf16.msrb.mxu1 %v2860_v42  ;;  %v3059_v42 = vld [vmem:[%s3471_s27 + $0x254] sm:$0xf0]  ;;  %v2340_v28 = vor.u32 %v3045_v18, %v2337_v20  ;;  %v2273_v12 = vld [vmem:[%s3471_s27 + $0x178] sm:$0xf0]  ;;  %v3061_v13 = vld [vmem:[%s3471_s27 + $0x26c] sm:$0xf] }
  0xb9   : > { %1792 = vmatpush.bf16.msrb.mxu2 %v2096_v43  ;;  %v2511_v43 = vld [vmem:[%s3471_s27 + $0x348] sm:$0xf]  ;;  %v2384_v50 = vor.u32 %v3059_v42, %v2383_v41  ;;  %v2196_v42 = vor.u32 %v3009_v32, %v2193_v34  ;;  %v2401_v14 = vld [vmem:[%s3471_s27 + $0x278] sm:$0xf0]  ;;  %v3911_v34 = vld [vmem:[%s3477_s25] sm:$0xf] }
  0xba   : > { %1805 = vmatpush.bf16.msrb.mxu3 %v2224_v46  ;;  %1767 = vmatmul.bf16.vlgmr.msrb.gmra.mxu0 %v3664_v37  ;;  %v2639_v46 = vld [vmem:[%s3471_s27 + $0x448] sm:$0xf]  ;;  %v2512_v51 = vor.u32 %v3091_v45, %v2511_v43  ;;  %v3199_v45 = vld [vmem:[%s3471_s27 + $0x6b4] sm:$0xf0] }
  0xbb   : > { %1811 = vmatpush.bf16.msra.mxu0 %v2464_v47  ;;  %1780 = vmatmul.bf16.vlgmr.msrb.gmra.mxu1 %v3655_v30  ;;  %v3123_v47 = vld [vmem:[%s3471_s27 + $0x454] sm:$0xf0] }
  0xbc   : > { %1824 = vmatpush.bf16.msra.mxu1 %v2592_v48  ;;  %1793 = vmatmul.bf16.vlgmr.msrb.gmra.mxu2 %v3579_v3  ;;  %v2767_v48 = vld [vmem:[%s3471_s27 + $0x548] sm:$0xf]  ;;  %v2640_v52 = vor.u32 %v3123_v47, %v2639_v46  ;;  %v3005_v46 = vld [vmem:[%s3471_s27 + $0xac] sm:$0xf] }
  0xbd   : > { %1837 = vmatpush.bf16.msra.mxu2 %v2720_v49  ;;  %1806 = vmatmul.bf16.vlgmr.msrb.gmra.mxu3 %v3595_v16  ;;  %v3155_v49 = vld [vmem:[%s3471_s27 + $0x554] sm:$0xf0] }
  0xbe   : > { %1850 = vmatpush.bf16.msra.mxu3 %v2848_v53  ;;  %v2367_v53 = vld [vmem:[%s3471_s27 + $0x228] sm:$0xf]  ;;  %v2768_v56 = vor.u32 %v3155_v49, %v2767_v48  ;;  %v2177_v48 = vld [vmem:[%s3471_s27 + $0xb8] sm:$0xf0]  ;;  %v3037_v49 = vld [vmem:[%s3471_s27 + $0x1ac] sm:$0xf] }
  0xbf   : > { %1812 = vmatpush.bf16.msra.mxu0 %v2448_v59  ;;  %v3119_v59 = vld [vmem:[%s3471_s27 + $0x434] sm:$0xf0]  ;;  %v2368_v62 = vor.u32 %v3055_v54, %v2367_v53  ;;  %v2180_v54 = vor.u32 %v3005_v46, %v2177_v48  ;;  %v3053_v46 = vld [vmem:[%s3471_s27 + $0x22c] sm:$0xf]  ;;  %v475_v48 = vperm.slane %v3911_v34, 0 }
  0xc0   : > { %1825 = vmatpush.bf16.msra.mxu1 %v2576_v60  ;;  %v2751_v60 = vld [vmem:[%s3471_s27 + $0x528] sm:$0xf]  ;;  %v2624_v4 = vor.u32 %v3119_v59, %v2623_v58  ;;  %v3001_v58 = vld [vmem:[%s3471_s27 + $0x8c] sm:$0xf] }
  0xc1   : > { %1838 = vmatpush.bf16.msra.mxu2 %v2704_v61  ;;  %v3151_v61 = vld [vmem:[%s3471_s27 + $0x534] sm:$0xf0] }
  0xc2   : > { %1851 = vmatpush.bf16.msra.mxu3 %v2832_v2  ;;  %v2496_v2 = vor.u32 %v3087_v57, %v2495_v55  ;;  %v2752_v8 = vor.u32 %v3151_v61, %v2751_v60  ;;  %v3195_v57 = vld [vmem:[%s3471_s27 + $0x694] sm:$0xf0]  ;;  %v2161_v60 = vld [vmem:[%s3471_s27 + $0x98] sm:$0xf0]  ;;  %v3033_v61 = vld [vmem:[%s3471_s27 + $0x18c] sm:$0xf] }
  0xc3   : > { %1813 = vmatpush.bf16.msra.mxu0 %v2432_v9  ;;  %v3115_v9 = vld [vmem:[%s3471_s27 + $0x414] sm:$0xf0] }
  0xc4   : > { %1826 = vmatpush.bf16.msra.mxu1 %v2560_v10  ;;  %v2735_v10 = vld [vmem:[%s3471_s27 + $0x508] sm:$0xf]  ;;  %v2608_v22 = vor.u32 %v3115_v9, %v2607_v7  ;;  %v3191_v7 = vld [vmem:[%s3471_s27 + $0x674] sm:$0xf0] }
  0xc5   : > { %1839 = vmatpush.bf16.msra.mxu2 %v2688_v11  ;;  %v3147_v11 = vld [vmem:[%s3471_s27 + $0x514] sm:$0xf0]  ;;  %v2912_v17 = vor.u32 %v3191_v7, %v2911_v6 }
  0xc6   : > { %1852 = vmatpush.bf16.msra.mxu3 %v2816_v15  ;;  %v2352_v15 = vor.u32 %v3051_v1, %v2351_v0  ;;  %v3065_v0 = vld [vmem:[%s3471_s27 + $0x28c] sm:$0xf]  ;;  %v2417_v1 = vld [vmem:[%s3471_s27 + $0x298] sm:$0xf0] }
  0xc7   : > { %1814 = vmatpush.bf16.msra.mxu0 %v2416_v23  ;;  %v3077_v23 = vld [vmem:[%s3471_s27 + $0x2ec] sm:$0xf]  ;;  %v2420_v9 = vor.u32 %v3065_v0, %v2417_v1 }
  0xc8   : > { %1827 = vmatpush.bf16.msra.mxu1 %v2544_v24  ;;  %v2465_v24 = vld [vmem:[%s3471_s27 + $0x2f8] sm:$0xf0] }
  0xc9   : > { %1840 = vmatpush.bf16.msra.mxu2 %v2672_v25  ;;  %v2736_v25 = vor.u32 %v3147_v11, %v2735_v10  ;;  %v2468_v33 = vor.u32 %v3077_v23, %v2465_v24  ;;  %v2145_v10 = vld [vmem:[%s3471_s27 + $0x78] sm:$0xf0]  ;;  %v3029_v11 = vld [vmem:[%s3471_s27 + $0x16c] sm:$0xf] }
  0xca   : > { %1853 = vmatpush.bf16.msra.mxu3 %v2800_v29  ;;  %v2959_v29 = vld [vmem:[%s3471_s27 + $0x6c8] sm:$0xf]  ;;  %v2276_v20 = vor.u32 %v3029_v11, %v2273_v12  ;;  %v2993_v23 = vld [vmem:[%s3471_s27 + $0x4c] sm:$0xf] }
  0xcb   : > { %1815 = vmatpush.bf16.msra.mxu0 %v2400_v38  ;;  %v2321_v38 = vld [vmem:[%s3471_s27 + $0x1d8] sm:$0xf0]  ;;  %v2960_v41 = vor.u32 %v3203_v31, %v2959_v29  ;;  %v3057_v29 = vld [vmem:[%s3471_s27 + $0x24c] sm:$0xf] }
  0xcc   : > { %1828 = vmatpush.bf16.msra.mxu1 %v2528_v39  ;;  %v3073_v39 = vld [vmem:[%s3471_s27 + $0x2cc] sm:$0xf]  ;;  %v2324_v43 = vor.u32 %v3041_v35, %v2321_v38  ;;  %v2385_v31 = vld [vmem:[%s3471_s27 + $0x258] sm:$0xf0] }
  0xcd   : > { %1841 = vmatpush.bf16.msra.mxu2 %v2656_v40  ;;  %v2449_v40 = vld [vmem:[%s3471_s27 + $0x2d8] sm:$0xf0] }
  0xce   : > { %1854 = vmatpush.bf16.msra.mxu3 %v2784_v44  ;;  %v2943_v44 = vld [vmem:[%s3471_s27 + $0x6a8] sm:$0xf]  ;;  %v2452_v47 = vor.u32 %v3073_v39, %v2449_v40  ;;  %v3183_v40 = vld [vmem:[%s3471_s27 + $0x634] sm:$0xf0] }
  0xcf   : > { %1816 = vmatpush.bf16.msra.mxu0 %v2384_v50  ;;  %v2305_v50 = vld [vmem:[%s3471_s27 + $0x1b8] sm:$0xf0]  ;;  %v2944_v53 = vor.u32 %v3199_v45, %v2943_v44  ;;  %v2879_v39 = vld [vmem:[%s3471_s27 + $0x628] sm:$0xf]  ;;  %v3021_v44 = vld [vmem:[%s3471_s27 + $0x12c] sm:$0xf] }
  0xd0   : > { %1829 = vmatpush.bf16.msra.mxu1 %v2512_v51  ;;  %v3069_v51 = vld [vmem:[%s3471_s27 + $0x2ac] sm:$0xf]  ;;  %v2308_v55 = vor.u32 %v3037_v49, %v2305_v50  ;;  %v2241_v45 = vld [vmem:[%s3471_s27 + $0x138] sm:$0xf0]  ;;  %v2880_v50 = vor.u32 %v3183_v40, %v2879_v39 }
  0xd1   : > { %1842 = vmatpush.bf16.msra.mxu2 %v2640_v52  ;;  %v2433_v52 = vld [vmem:[%s3471_s27 + $0x2b8] sm:$0xf0] }
  0xd2   : > { %1855 = vmatpush.bf16.msra.mxu3 %v2768_v56  ;;  %v2927_v56 = vld [vmem:[%s3471_s27 + $0x688] sm:$0xf]  ;;  %v2436_v59 = vor.u32 %v3069_v51, %v2433_v52  ;;  %v3179_v52 = vld [vmem:[%s3471_s27 + $0x614] sm:$0xf0] }
  0xd3   : > { %1817 = vmatpush.bf16.msra.mxu0 %v2368_v62  ;;  %v2289_v62 = vld [vmem:[%s3471_s27 + $0x198] sm:$0xf0]  ;;  %v2863_v51 = vld [vmem:[%s3471_s27 + $0x608] sm:$0xf] }
  0xd4   : > { %1830 = vmatpush.bf16.msra.mxu1 %v2496_v2  ;;  %v2928_v2 = vor.u32 %v3195_v57, %v2927_v56  ;;  %v2292_v5 = vor.u32 %v3033_v61, %v2289_v62  ;;  %v2097_v56 = vld [vmem:[%s3471_s27 + $0x18] sm:$0xf0]  ;;  %v3017_v57 = vld [vmem:[%s3471_s27 + $0x10c] sm:$0xf]  ;;  %v2864_v7 = vor.u32 %v3179_v52, %v2863_v51 }
  0xd5   : > { %1843 = vmatpush.bf16.msra.mxu2 %v2624_v4  ;;  %v2164_v4 = vor.u32 %v3001_v58, %v2161_v60  ;;  %v2225_v60 = vld [vmem:[%s3471_s27 + $0x118] sm:$0xf0]  ;;  %v3049_v61 = vld [vmem:[%s3471_s27 + $0x20c] sm:$0xf] }
  0xd6   : > { %1856 = vmatpush.bf16.msra.mxu3 %v2752_v8  ;;  %v2997_v8 = vld [vmem:[%s3471_s27 + $0x6c] sm:$0xf]  ;;  %v2353_v62 = vld [vmem:[%s3471_s27 + $0x218] sm:$0xf0]  ;;  %v2228_v12 = vor.u32 %v3017_v57, %v2225_v60 }
  0xd7   : > { %1818 = vmatpush.bf16.msra.mxu0 %v2352_v15  ;;  %v2148_v18 = vor.u32 %v2997_v8, %v2145_v10  ;;  %v2721_v8 = vld [vmem:[%s3471_s27 + $0x4f8] sm:$0xf0]  ;;  %v3193_v57 = vld [vmem:[%s3471_s27 + $0x68c] sm:$0xf] }
  0xd8   : > { %1831 = vmatpush.bf16.msra.mxu1 %v2480_v21  ;;  %v2895_v21 = vld [vmem:[%s3471_s27 + $0x648] sm:$0xf]  ;;  %v3901_v24 = vpop.f32.mrf.mxu1  ;;  %v2849_v10 = vld [vmem:[%s3471_s27 + $0x5f8] sm:$0xf0] }
  0xd9   : > { %1844 = vmatpush.bf16.msra.mxu2 %v2608_v22  ;;  %v3187_v22 = vld [vmem:[%s3471_s27 + $0x654] sm:$0xf0]  ;;  %v2545_v52 = vld [vmem:[%s3471_s27 + $0x398] sm:$0xf0] }
  0xda   : > { %1857 = vmatpush.bf16.msra.mxu3 %v2736_v25  ;;  %1819 = vmatmul.bf16.vlgmr.msra.gmra.mxu0 %v3572_v63  ;;  %v2404_v25 = vor.u32 %v3061_v13, %v2401_v14  ;;  %v3205_v13 = vld [vmem:[%s3471_s27 + $0x6ec] sm:$0xf]  ;;  %v2977_v14 = vld [vmem:[%s3471_s27 + $0x6f8] sm:$0xf0] }
  0xdb   : > { %1863 = vmatpush.bf16.msrb.mxu0 %v2976_v26  ;;  %1832 = vmatmul.bf16.vlgmr.msra.gmra.mxu1 %v3599_v19  ;;  %v2129_v26 = vld [vmem:[%s3471_s27 + $0x58] sm:$0xf0] }
  0xdc   : > { %1876 = vmatpush.bf16.msrb.mxu1 %v2212_v27  ;;  %1845 = vmatmul.bf16.vlgmr.msra.gmra.mxu2 %v3662_v36  ;;  %v3025_v27 = vld [vmem:[%s3471_s27 + $0x14c] sm:$0xf]  ;;  %v2132_v35 = vor.u32 %v2993_v23, %v2129_v26  ;;  %v2577_v23 = vld [vmem:[%s3471_s27 + $0x3d8] sm:$0xf0]  ;;  %v2980_v26 = vor.u32 %v3205_v13, %v2977_v14 }
  0xdd   : > { %1889 = vmatpush.bf16.msrb.mxu2 %v2340_v28  ;;  %1858 = vmatmul.bf16.vlgmr.msra.gmra.mxu3 %v3664_v37  ;;  %v2257_v28 = vld [vmem:[%s3471_s27 + $0x158] sm:$0xf0] }
  0xde   : > { %1902 = vmatpush.bf16.msrb.mxu3 %v2468_v33  ;;  %v2896_v33 = vor.u32 %v3187_v22, %v2895_v21  ;;  %v2260_v38 = vor.u32 %v3025_v27, %v2257_v28  ;;  %v3105_v22 = vld [vmem:[%s3471_s27 + $0x3cc] sm:$0xf]  ;;  %v2705_v27 = vld [vmem:[%s3471_s27 + $0x4d8] sm:$0xf0] }
  0xdf   : > { %1864 = vmatpush.bf16.msrb.mxu0 %v2960_v41  ;;  %v2989_v41 = vld [vmem:[%s3471_s27 + $0x2c] sm:$0xf] }
  0xe0   : > { %1877 = vmatpush.bf16.msrb.mxu1 %v2196_v42  ;;  %v2388_v42 = vor.u32 %v3057_v29, %v2385_v31  ;;  %v1627_v58 = vpop.f32.mrf.mxu1  ;;  %v3930_v0 = vpop.f32.mrf.mxu3  ;;  %v3169_v28 = vld [vmem:[%s3471_s27 + $0x5cc] sm:$0xf]  ;;  %v2833_v29 = vld [vmem:[%s3471_s27 + $0x5d8] sm:$0xf0] }
  0xe1   : > { %1890 = vmatpush.bf16.msrb.mxu2 %v2324_v43  ;;  %v1612_v15 = vpop.f32.mrf.mxu0  ;;  %v2113_v43 = vld [vmem:[%s3471_s27 + $0x38] sm:$0xf0]  ;;  %v3201_v31 = vld [vmem:[%s3471_s27 + $0x6cc] sm:$0xf]  ;;  %v2836_v40 = vor.u32 %v3169_v28, %v2833_v29 }
  0xe2   : > { %1903 = vmatpush.bf16.msrb.mxu3 %v2452_v47  ;;  %v2369_v47 = vld [vmem:[%s3471_s27 + $0x238] sm:$0xf0]  ;;  %v1613_v1 = vadd.f32 %v1612_v15, %v475_v48  ;;  %v2356_v15 = vor.u32 %v3049_v61, %v2353_v62  ;;  %v3185_v28 = vld [vmem:[%s3471_s27 + $0x64c] sm:$0xf] }
  0xe3   : > { %1865 = vmatpush.bf16.msrb.mxu0 %v2944_v53  ;;  %v2116_v53 = vor.u32 %v2989_v41, %v2113_v43  ;;  %v3101_v41 = vld [vmem:[%s3471_s27 + $0x3ac] sm:$0xf]  ;;  %v2945_v48 = vld [vmem:[%s3471_s27 + $0x6b8] sm:$0xf0] }
  0xe4   : > { %1878 = vmatpush.bf16.msrb.mxu1 %v2180_v54  ;;  %v2244_v54 = vor.u32 %v3021_v44, %v2241_v45  ;;  %v1626_v21 = vadd.f32 %v3901_v24, %v1613_v1  ;;  %v2580_v24 = vor.u32 %v3105_v22, %v2577_v23  ;;  %v3133_v43 = vld [vmem:[%s3471_s27 + $0x4ac] sm:$0xf]  ;;  %v2689_v45 = vld [vmem:[%s3471_s27 + $0x4b8] sm:$0xf0] }
  0xe5   : > { %1891 = vmatpush.bf16.msrb.mxu2 %v2308_v55  ;;  %v2985_v55 = vld [vmem:[%s3471_s27 + $0xc] sm:$0xf]  ;;  %v2692_v51 = vor.u32 %v3133_v43, %v2689_v45  ;;  %v2929_v58 = vld [vmem:[%s3471_s27 + $0x698] sm:$0xf0] }
  0xe6   : > { %1904 = vmatpush.bf16.msrb.mxu3 %v2436_v59  ;;  %v3908_v32 = vpop.f32.mrf.mxu2  ;;  %v2372_v59 = vor.u32 %v3053_v46, %v2369_v47  ;;  %v2100_v11 = vor.u32 %v2985_v55, %v2097_v56  ;;  %v3165_v46 = vld [vmem:[%s3471_s27 + $0x5ac] sm:$0xf]  ;;  %v2817_v47 = vld [vmem:[%s3471_s27 + $0x5b8] sm:$0xf0] }
  0xe7   : > { %1866 = vmatpush.bf16.msrb.mxu0 %v2928_v2  ;;  %v3109_v2 = vld [vmem:[%s3471_s27 + $0x3ec] sm:$0xf]  ;;  %v2673_v55 = vld [vmem:[%s3471_s27 + $0x498] sm:$0xf0] }
  0xe8   : > { %1879 = vmatpush.bf16.msrb.mxu1 %v2164_v4  ;;  %v2593_v4 = vld [vmem:[%s3471_s27 + $0x3f8] sm:$0xf0]  ;;  %v3161_v56 = vld [vmem:[%s3471_s27 + $0x58c] sm:$0xf] }
  0xe9   : > { %1892 = vmatpush.bf16.msrb.mxu2 %v2292_v5  ;;  %v1614_v49 = vpop.f32.mrf.mxu0  ;;  %v3141_v5 = vld [vmem:[%s3471_s27 + $0x4ec] sm:$0xf]  ;;  %v2897_v29 = vld [vmem:[%s3471_s27 + $0x658] sm:$0xf0] }
  0xea   : > { %1905 = vmatpush.bf16.msrb.mxu3 %v2420_v9  ;;  %v3173_v9 = vld [vmem:[%s3471_s27 + $0x5ec] sm:$0xf]  ;;  %v2900_v45 = vor.u32 %v3185_v28, %v2897_v29 }
  0xeb   : > { %1867 = vmatpush.bf16.msrb.mxu0 %v2912_v17  ;;  %v2596_v17 = vor.u32 %v3109_v2, %v2593_v4  ;;  %v3093_v2 = vld [vmem:[%s3471_s27 + $0x36c] sm:$0xf]  ;;  %v2529_v4 = vld [vmem:[%s3471_s27 + $0x378] sm:$0xf0] }
  0xec   : > { %1880 = vmatpush.bf16.msrb.mxu1 %v2148_v18  ;;  %v2724_v18 = vor.u32 %v3141_v5, %v2721_v8  ;;  %v3125_v5 = vld [vmem:[%s3471_s27 + $0x46c] sm:$0xf]  ;;  %v2532_v13 = vor.u32 %v3093_v2, %v2529_v4 }
  0xed   : > { %1893 = vmatpush.bf16.msrb.mxu2 %v2276_v20  ;;  %v2852_v20 = vor.u32 %v3173_v9, %v2849_v10  ;;  %v3157_v8 = vld [vmem:[%s3471_s27 + $0x56c] sm:$0xf]  ;;  %v2785_v9 = vld [vmem:[%s3471_s27 + $0x578] sm:$0xf0] }
  0xee   : > { %1906 = vmatpush.bf16.msrb.mxu3 %v2404_v25  ;;  %v1640_v6 = vpop.f32.mrf.mxu2  ;;  %v3137_v25 = vld [vmem:[%s3471_s27 + $0x4cc] sm:$0xf] }
  0xef   : > { %1868 = vmatpush.bf16.msrb.mxu0 %v2896_v33  ;;  %v2961_v33 = vld [vmem:[%s3471_s27 + $0x6d8] sm:$0xf0]  ;;  %v2708_v39 = vor.u32 %v3137_v25, %v2705_v27  ;;  %v2932_v6 = vor.u32 %v3193_v57, %v2929_v58  ;;  %v3189_v10 = vld [vmem:[%s3471_s27 + $0x66c] sm:$0xf] }
  0xf0   : > { %1881 = vmatpush.bf16.msrb.mxu1 %v2132_v35  ;;  %v1653_v35 = vpop.f32.mrf.mxu3  ;;  %v2964_v44 = vor.u32 %v3201_v31, %v2961_v33  ;;  %v2641_v25 = vld [vmem:[%s3471_s27 + $0x458] sm:$0xf0]  ;;  %v3117_v43 = vld [vmem:[%s3471_s27 + $0x42c] sm:$0xf] }
  0xf1   : > { %1894 = vmatpush.bf16.msrb.mxu2 %v2260_v38  ;;  %v1639_v38 = vadd.f32 %v3908_v32, %v1626_v21  ;;  %v3197_v32 = vld [vmem:[%s3471_s27 + $0x6ac] sm:$0xf]  ;;  %v2769_v27 = vld [vmem:[%s3471_s27 + $0x558] sm:$0xf0] }
  0xf2   : > { %1907 = vmatpush.bf16.msrb.mxu3 %v2388_v42  ;;  %v2561_v42 = vld [vmem:[%s3471_s27 + $0x3b8] sm:$0xf0]  ;;  %v3121_v21 = vld [vmem:[%s3471_s27 + $0x44c] sm:$0xf] }
  0xf3   : > { %1869 = vmatpush.bf16.msrb.mxu0 %v2880_v50  ;;  %v2564_v49 = vor.u32 %v3101_v41, %v2561_v42  ;;  %v1652_v50 = vadd.f32 %v3930_v0, %v1639_v38  ;;  %v3085_v41 = vld [vmem:[%s3471_s27 + $0x32c] sm:$0xf]  ;;  %v2497_v42 = vld [vmem:[%s3471_s27 + $0x338] sm:$0xf0] }
  0xf4   : > { %1882 = vmatpush.bf16.msrb.mxu1 %v2116_v53  ;;  %v3129_v53 = vld [vmem:[%s3471_s27 + $0x48c] sm:$0xf]  ;;  %v2737_v57 = vld [vmem:[%s3471_s27 + $0x518] sm:$0xf0] }
  0xf5   : > { %1895 = vmatpush.bf16.msrb.mxu2 %v2244_v54  ;;  %v2948_v54 = vor.u32 %v3197_v32, %v2945_v48  ;;  %v2676_v62 = vor.u32 %v3129_v53, %v2673_v55  ;;  %v2753_v32 = vld [vmem:[%s3471_s27 + $0x538] sm:$0xf0]  ;;  %v3181_v48 = vld [vmem:[%s3471_s27 + $0x62c] sm:$0xf] }
  0xf6   : > { %1908 = vmatpush.bf16.msrb.mxu3 %v2372_v59  ;;  %v3113_v53 = vld [vmem:[%s3471_s27 + $0x40c] sm:$0xf] }
  0xf7   : > { %1870 = vmatpush.bf16.msrb.mxu0 %v2864_v7  ;;  %v1664_v60 = vpop.f32.mrf.mxu0  ;;  %v2657_v7 = vld [vmem:[%s3471_s27 + $0x478] sm:$0xf0]  ;;  %v3177_v58 = vld [vmem:[%s3471_s27 + $0x60c] sm:$0xf] }
  0xf8   : > { %1883 = vmatpush.bf16.msrb.mxu1 %v2100_v11  ;;  %v1677_v61 = vpop.f32.mrf.mxu1  ;;  %v1665_v1 = vadd.f32 %v1664_v60, %v1652_v50  ;;  %v2913_v11 = vld [vmem:[%s3471_s27 + $0x678] sm:$0xf0]  ;;  %v2660_v14 = vor.u32 %v3125_v5, %v2657_v7  ;;  %v2500_v50 = vor.u32 %v3085_v41, %v2497_v42  ;;  %v476_v7 = vperm.slane %v3911_v34, 1 }
  0xf9   : > { %1896 = vmatpush.bf16.msrb.mxu2 %v2228_v12  ;;  %v2916_v22 = vor.u32 %v3189_v10, %v2913_v11 }
  0xfa   : > { %1909 = vmatpush.bf16.msrb.mxu3 %v2356_v15  ;;  %1871 = vmatmul.bf16.vlgmr.msrb.gmra.mxu0 %v3655_v30  ;;  %v1678_v12 = vadd.f32 %v1677_v61, %v1665_v1  ;;  %v2788_v15 = vor.u32 %v3157_v8, %v2785_v9 }
  0xfb   : > { %1915 = vmatpush.bf16.msra.mxu0 %v2596_v17  ;;  %1884 = vmatmul.bf16.vlgmr.msrb.gmra.mxu1 %v3579_v3  ;;  %v2801_v3 = vld [vmem:[%s3471_s27 + $0x598] sm:$0xf0] }
  0xfc   : > { %1928 = vmatpush.bf16.msra.mxu1 %v2724_v18  ;;  %1897 = vmatmul.bf16.vlgmr.msrb.gmra.mxu2 %v3595_v16  ;;  %v3097_v16 = vld [vmem:[%s3471_s27 + $0x38c] sm:$0xf]  ;;  %v2804_v0 = vor.u32 %v3161_v56, %v2801_v3  ;;  %v2609_v56 = vld [vmem:[%s3471_s27 + $0x418] sm:$0xf0] }
  0xfd   : > { %1941 = vmatpush.bf16.msra.mxu2 %v2852_v20  ;;  %1910 = vmatmul.bf16.vlgmr.msrb.gmra.mxu3 %v3572_v63  ;;  %v2820_v63 = vor.u32 %v3165_v46, %v2817_v47  ;;  %v2548_v59 = vor.u32 %v3097_v16, %v2545_v52  ;;  %v3089_v18 = vld [vmem:[%s3471_s27 + $0x34c] sm:$0xf]  ;;  %v2513_v20 = vld [vmem:[%s3471_s27 + $0x358] sm:$0xf0] }
  0xfe   : > { %1954 = vmatpush.bf16.msra.mxu3 %v2980_v26  ;;  %v3153_v26 = vld [vmem:[%s3471_s27 + $0x54c] sm:$0xf]  ;;  %v2625_v46 = vld [vmem:[%s3471_s27 + $0x438] sm:$0xf0] }
  0xff   : > { %1916 = vmatpush.bf16.msra.mxu0 %v2580_v24  ;;  %v1690_v17 = vpop.f32.mrf.mxu2  ;;  %v2516_v24 = vor.u32 %v3089_v18, %v2513_v20  ;;  %v1666_v35 = vpop.f32.mrf.mxu0  ;;  %v3149_v47 = vld [vmem:[%s3471_s27 + $0x52c] sm:$0xf]  ;;  %v2481_v52 = vld [vmem:[%s3471_s27 + $0x318] sm:$0xf0] }
 0x100   : > { %1929 = vmatpush.bf16.msra.mxu1 %v2708_v39  ;;  %v1691_v23 = vadd.f32 %v1690_v17, %v1678_v12  ;;  %v3998_v31 = vpop.f32.mrf.mxu3  ;;  %v1679_v38 = vpop.f32.mrf.mxu1  ;;  %v2644_v39 = vor.u32 %v3121_v21, %v2641_v25  ;;  %v3081_v16 = vld [vmem:[%s3471_s27 + $0x30c] sm:$0xf] }
 0x101   : > { %1942 = vmatpush.bf16.msra.mxu2 %v2836_v40  ;;  %v2772_v40 = vor.u32 %v3153_v26, %v2769_v27  ;;  %v3145_v3 = vld [vmem:[%s3471_s27 + $0x50c] sm:$0xf]  ;;  %v2484_v61 = vor.u32 %v3081_v16, %v2481_v52  ;;  %v1704_v10 = vadd.f32 %v3998_v31, %v476_v7  ;;  %v477_v31 = vperm.slane %v3911_v34, 2 }
 0x102   : > { %1955 = vmatpush.bf16.msra.mxu3 %v2964_v44  ;;  %vm1967_vm0 = vcmp.gt.f32.partialorder %v1691_v23, 0.0  ;;  %v1971_v33 = vmul.f32 0.01, %v1691_v23 }
 0x103   : > { %1917 = vmatpush.bf16.msra.mxu0 %v2564_v49  ;;  %v2881_v49 = vld [vmem:[%s3471_s27 + $0x638] sm:$0xf0] }
 0x104   : > { %1930 = vmatpush.bf16.msra.mxu1 %v2692_v51  ;;  %v1975_v44 = vsel %vm1967_vm0, %v1691_v23, %v1971_v33  ;;  %v2628_v51 = vor.u32 %v3117_v43, %v2625_v46  ;;  %v2884_v55 = vor.u32 %v3181_v48, %v2881_v49 }
 0x105   : > { %1943 = vmatpush.bf16.msra.mxu2 %v2820_v63  ;;  %1979 = vst [vmem:[%s4003_s24] sm:$0xff] %v1975_v44  ;;  %v2756_v63 = vor.u32 %v3149_v47, %v2753_v32 }
 0x106   : > { %1956 = vmatpush.bf16.msra.mxu3 %v2948_v54 }
 0x107   : > { %1918 = vmatpush.bf16.msra.mxu0 %v2548_v59  ;;  %v1692_v54 = vpop.f32.mrf.mxu2  ;;  %v2865_v59 = vld [vmem:[%s3471_s27 + $0x618] sm:$0xf0] }
 0x108   : > { %1931 = vmatpush.bf16.msra.mxu1 %v2676_v62  ;;  %v1705_v60 = vpop.f32.mrf.mxu3  ;;  %v2612_v62 = vor.u32 %v3113_v53, %v2609_v56  ;;  %v2868_v1 = vor.u32 %v3177_v58, %v2865_v59 }
 0x109   : > { %1944 = vmatpush.bf16.msra.mxu2 %v2804_v0  ;;  %v2740_v0 = vor.u32 %v3145_v3, %v2737_v57 }
 0x10a   : > { %1957 = vmatpush.bf16.msra.mxu3 %v2932_v6 }
 0x10b   : > { %1919 = vmatpush.bf16.msra.mxu0 %v2532_v13 }
 0x10c   : > { %1932 = vmatpush.bf16.msra.mxu1 %v2660_v14 }
 0x10d   : > { %1945 = vmatpush.bf16.msra.mxu2 %v2788_v15 }
 0x10e   : > { %1958 = vmatpush.bf16.msra.mxu3 %v2916_v22 }
 0x10f   : > { %1920 = vmatpush.bf16.msra.mxu0 %v2516_v24 }
 0x110   : > { %1933 = vmatpush.bf16.msra.mxu1 %v2644_v39 }
 0x111   : > { %1946 = vmatpush.bf16.msra.mxu2 %v2772_v40 }
 0x112   : > { %1959 = vmatpush.bf16.msra.mxu3 %v2900_v45 }
 0x113   : > { %1921 = vmatpush.bf16.msra.mxu0 %v2500_v50 }
 0x114   : > { %1934 = vmatpush.bf16.msra.mxu1 %v2628_v51 }
 0x115   : > { %1947 = vmatpush.bf16.msra.mxu2 %v2756_v63 }
 0x116   : > { %1960 = vmatpush.bf16.msra.mxu3 %v2884_v55  ;;  %v478_v55 = vperm.slane %v3911_v34, 3 }
 0x117   : > { %1922 = vmatpush.bf16.msra.mxu0 %v2484_v61  ;;  %v1716_v2 = vpop.f32.mrf.mxu0 }
 0x118   : > { %1935 = vmatpush.bf16.msra.mxu1 %v2612_v62  ;;  %v1729_v4 = vpop.f32.mrf.mxu1 }
 0x119   : > { %1948 = vmatpush.bf16.msra.mxu2 %v2740_v0 }
 0x11a   : > { %1961 = vmatpush.bf16.msra.mxu3 %v2868_v1  ;;  %1923 = vmatmul.bf16.vlgmr.msra.gmra.mxu0 %v3599_v19  ;;  %v1717_v19 = vadd.f32 %v1716_v2, %v1704_v10 }
 0x11b   : > { %1936 = vmatmul.bf16.vlgmr.msra.gmra.mxu1 %v3662_v36 }
 0x11c   : > { %1949 = vmatmul.bf16.vlgmr.msra.gmra.mxu2 %v3664_v37  ;;  %v1730_v13 = vadd.f32 %v1729_v4, %v1717_v19 }
 0x11d   : > { %1962 = vmatmul.bf16.vlgmr.msra.gmra.mxu3 %v3655_v30 }
 0x11f   : > { %v1742_v5 = vpop.f32.mrf.mxu2  ;;  %v1718_v8 = vpop.f32.mrf.mxu0 }
 0x120   : > { %v1755_v6 = vpop.f32.mrf.mxu3  ;;  %v1731_v9 = vpop.f32.mrf.mxu1  ;;  %v1743_v36 = vadd.f32 %v1742_v5, %v1730_v13 }
 0x122   : > { %v1756_v14 = vadd.f32 %v1755_v6, %v1743_v36 }
 0x127   : > { %v1744_v11 = vpop.f32.mrf.mxu2 }
 0x128   : > { %v1757_v12 = vpop.f32.mrf.mxu3 }
 0x137   : > { %v1768_v37 = vpop.f32.mrf.mxu0 }
 0x138   : > { %v1769_v15 = vadd.f32 %v1768_v37, %v1756_v14  ;;  %v1781_v30 = vpop.f32.mrf.mxu1 }
 0x13a   : > { %v1782_v17 = vadd.f32 %v1781_v30, %v1769_v15 }
 0x13c   : > { %vm1968_vm1 = vcmp.gt.f32.partialorder %v1782_v17, 0.0  ;;  %v1972_v18 = vmul.f32 0.01, %v1782_v17 }
 0x13e   : > { %v1976_v20 = vsel %vm1968_vm1, %v1782_v17, %v1972_v18 }
 0x13f   : > { %v1794_v21 = vpop.f32.mrf.mxu2  ;;  %1980 = vst [vmem:[%s4003_s24 + $0x8] sm:$0xff] %v1976_v20  ;;  %v1770_v23 = vpop.f32.mrf.mxu0 }
 0x140   : > { %v1807_v22 = vpop.f32.mrf.mxu3  ;;  %v1783_v25 = vpop.f32.mrf.mxu1  ;;  %v1795_v35 = vadd.f32 %v1794_v21, %v477_v31 }
 0x142   : > { %v1808_v40 = vadd.f32 %v1807_v22, %v1795_v35 }
 0x147   : > { %v1796_v26 = vpop.f32.mrf.mxu2 }
 0x148   : > { %v1809_v27 = vpop.f32.mrf.mxu3 }
 0x157   : > { %v1820_v28 = vpop.f32.mrf.mxu0 }
 0x158   : > { %v1833_v29 = vpop.f32.mrf.mxu1  ;;  %v1821_v43 = vadd.f32 %v1820_v28, %v1808_v40 }
 0x15a   : > { %v1834_v44 = vadd.f32 %v1833_v29, %v1821_v43 }
 0x15f   : > { %v1846_v33 = vpop.f32.mrf.mxu2  ;;  %v1822_v38 = vpop.f32.mrf.mxu0 }
 0x160   : > { %v1859_v24 = vpop.f32.mrf.mxu3  ;;  %v1835_v39 = vpop.f32.mrf.mxu1  ;;  %v1847_v45 = vadd.f32 %v1846_v33, %v1834_v44 }
 0x162   : > { %v1860_v46 = vadd.f32 %v1859_v24, %v1847_v45 }
 0x167   : > { %v1848_v41 = vpop.f32.mrf.mxu2 }
 0x168   : > { %v1861_v42 = vpop.f32.mrf.mxu3 }
 0x177   : > { %v1872_v47 = vpop.f32.mrf.mxu0 }
 0x178   : > { %v1873_v32 = vadd.f32 %v1872_v47, %v1860_v46  ;;  %v1885_v48 = vpop.f32.mrf.mxu1 }
 0x179   : > { %v1886_v56 = vadd.f32 %v1885_v48, %v478_v55 }
 0x17a   : > { %vm1969_vm2 = vcmp.gt.f32.partialorder %v1873_v32, 0.0  ;;  %v1973_v49 = vmul.f32 0.01, %v1873_v32 }
 0x17c   : > { %v1977_v50 = vsel %vm1969_vm2, %v1873_v32, %v1973_v49 }
 0x17d   : > { %1981 = vst [vmem:[%s4003_s24 + $0x10] sm:$0xff] %v1977_v50 }
 0x17f   : > { %v1898_v51 = vpop.f32.mrf.mxu2  ;;  %v1874_v16 = vpop.f32.mrf.mxu0 }
 0x180   : > { %v1911_v63 = vpop.f32.mrf.mxu3  ;;  %v1887_v52 = vpop.f32.mrf.mxu1  ;;  %v1899_v3 = vadd.f32 %v1898_v51, %v1886_v56 }
 0x182   : > { %v1912_v57 = vadd.f32 %v1911_v63, %v1899_v3 }
 0x187   : > { %v1900_v53 = vpop.f32.mrf.mxu2 }
 0x188   : > { %v1913_v54 = vpop.f32.mrf.mxu3 }
 0x197   : > { %v1924_v58 = vpop.f32.mrf.mxu0 }
 0x198   : > { %v1937_v59 = vpop.f32.mrf.mxu1  ;;  %v1925_v60 = vadd.f32 %v1924_v58, %v1912_v57 }
 0x19a   : > { %v1938_v61 = vadd.f32 %v1937_v59, %v1925_v60 }
 0x19f   : > { %v1950_v62 = vpop.f32.mrf.mxu2  ;;  %v1926_v2 = vpop.f32.mrf.mxu0 }
 0x1a0   : > { %v1951_v0 = vadd.f32 %v1950_v62, %v1938_v61  ;;  %v1963_v1 = vpop.f32.mrf.mxu3  ;;  %v1939_v4 = vpop.f32.mrf.mxu1 }
 0x1a2   : > { %v1964_v5 = vadd.f32 %v1963_v1, %v1951_v0 }
 0x1a4   : > { %vm1970_vm3 = vcmp.gt.f32.partialorder %v1964_v5, 0.0  ;;  %v1974_v6 = vmul.f32 0.01, %v1964_v5 }
 0x1a6   : > { %v1978_v7 = vsel %vm1970_vm3, %v1964_v5, %v1974_v6 }
 0x1a7   : > { %1982 = vst [vmem:[%s4003_s24 + $0x18] sm:$0xff] %v1978_v7  ;;  %v1952_v8 = vpop.f32.mrf.mxu2 }
 0x1a8   : > { %v1965_v34 = vpop.f32.mrf.mxu3 }
 0x1a9 PF: > { %p16_p8 = scmp.ge.s32.totalorder %s3400_s17, 4   ;;  %s4053_s12 = smov %s3347_s13 }
 0x1aa   : > { %s4054_s13 = smov %s3351_s14  ;;  %s4055_s14 = smov %s3410_s20 }
 0x1ab   : > { %s4056_s15 = smov %s3400_s17  ;;  %18 = sbr.rel (!%p16_p8) target bundleno = 5 (0x5), region = 85 }
 0x1b0   :  { %2005 = vsyncpa [#allocation3], 1 }
 0x1b1   :  { %2007 = vsyncpa [#allocation3 + $0x1], 1 }
 0x1b2   :  { %2008 = vsyncpa [#allocation5], 1 }
 0x1b3   :  { %2010 = vsyncpa [#allocation5 + $0x1], 1 }

// kernel: discriminator_q_forward.6
= control target key start
LH: loop header
LB: loop body
LE: loop exit
PB: predicated region body
PF: predicated region fallthrough
CT: control target
= control target key end

     0   :  { %8 = vsyncpa [#allocation3], 0  ;;  %s8434_s0 = inlined_call_operand.vmem [shape: f32[8,2048], index: 0, kind: input, shape index: {}]   ;;  %s8435_s1 = inlined_call_operand.hbm [shape: bf16[2048,5120], index: 1, kind: input, shape index: {}]   ;;  %s8436_s2 = inlined_call_operand.hbm [shape: f32[1,5120], index: 2, kind: input, shape index: {}]   ;;  %s8437_s3 = inlined_call_operand.vmem [shape: f32[8,5120], index: 3, kind: output, shape index: {}]  }
   0x1   :  { %10 = vsyncpa [#allocation3 + $0x1], 0 }
   0x2   :  { %11 = vsyncpa [#allocation5], 0 }
   0x3   :  { %13 = vsyncpa [#allocation5 + $0x1], 0  ;;  %s7036_s12 = smov 0   ;;  %s7038_s13 = smov 0  }
   0x4   :  { %s7040_s14 = smov 0   ;;  %s7042_s15 = smov 0  }
   0x5 LB: > { %s4287_s16 = sadd.s32 4294967295, %s7011_s15   ;;  %s7056_s17 = sadd.s32 1, %s7011_s15   ;;  %s7011_s15 = sphi %s7042_s15, %s8445_s15   ;;  %s7007_s14 = sphi %s7040_s14, %s8444_s14   ;;  %s7003_s13 = sphi %s7038_s13, %s8443_s13   ;;  %s6999_s12 = sphi %s7036_s12, %s8442_s12  }
   0x6   : > { %s44_s18 = ssub.s32 %s7011_s15, %s7056_s17  ;;  %s47_s19 = sadd.s32 1, %s7007_s14 }
   0x7   : > { %p45_p0 = scmp.eq.s32.totalorder %s44_s18, 0  ;;  %p54_p1 = scmp.ne.s32.totalorder %s7007_s14, %s7003_s13 }
   0x8   : > { %p55_p2 = scmp.eq.s32.totalorder %s7011_s15, 0  ;;  %p60_p3 = scmp.ne.s32.totalorder %s7003_s13, %s6999_s12 }
   0x9   : > { %s7066_s20 = scalar_select %p45_p0, %s7007_s14, %s47_s19  }
   0xa   : > { %p7068_p4 = por %p55_p2, %p54_p1  ;;  %p61_p5 = scmp.eq.s32.totalorder %s4287_s16, 0 }
   0xb   : > { %p6875_p6 = scmp.lt.s32.totalorder %s7011_s15, 10  ;;  %s7080_s23 = sand.u32 1, %s7007_s14  }
   0xc   : > { %p7075_p7 = por %p61_p5, %p60_p3  ;;  %s4291_s24 = sshll.u32 %s7080_s23, 12 }
   0xd   : > { %s6351_s25 = sshll.u32 %s7011_s15, 4  ;;  %s143_s29 = scalar_lea.vmem [#allocation2], %s4291_s24 }
   0xe   : > { %s148_s28 = scalar_lea.hbm %s8435_s1, %s6351_s25  ;;  %s151_s30 = sshll.u32 %s143_s29, 4  ;;  %s152_s30 = int_to_ptr.vmem [resolvable:$true] %s151_s30 }
   0xf   : > { %s149_s4 = sshll.u32 %s148_s28, 4  ;;  %p7089_p8 = pnand %p6875_p6, %p7068_p4  ;;  %s150_s4 = int_to_ptr.hbm [resolvable:$true] %s149_s4 }
  0x10   : > { %s140_s6 = scalar_lea.sflag [#allocation3], %s7080_s23  ;;  %s6913_s7 = sshra.s32 %s150_s4, 4  ;;  %s6914_s7 = int_to_ptr.hbm [resolvable:$true] %s6913_s7 }
  0x11   : > { %s6915_s8 = scalar_lea.hbm %s6914_s7, 4096  ;;  %p6917_p10 = pneg %p7089_p8 }
  0x12   : > { %p6916_p9 = scmp.ne.s32.totalorder %s6914_s7, %s6915_s8  ;;  %s6920_s11 = scalar_lea.hbm %s8435_s1, 40960 }
  0x13   : > { %p6921_p13 = scmp.lt.s32.totalorder %s6914_s7, %s8435_s1  ;;  %p6922_p0 = scmp.lt.s32.totalorder %s6920_s11, %s6915_s8 }
  0x14   : > { %p6918_p11 = pnand %p6917_p10, %p6916_p9 }
  0x15   : > { %p6923_p1 = por %p6922_p0, %p6921_p13 }
  0x16   : > { %p6919_p12 = pneg %p6918_p11 }
  0x18   : > { %p6924_p2 = pnand %p6923_p1, %p6919_p12 }
  0x1a   : > { %6927 = shalt.err (!%p6924_p2)
}
  0x1b   : > { %s7013_s19 = smov 2560   ;;  %s7014_s21 = smov 256  }
  0x1c   : > { %s7015_s24 = smov 16   ;;  %p4296_p3 = scmp.ge.s32.totalorder %s7011_s15, 1 }
  0x1d   : > { %6871 = dma.hbm_to_vmem [thread:$0]  (!%p7089_p8), %s150_s4, 65536, %s152_s30, %s140_s6, %s7013_s19, %s7014_s21, %s7015_s24  }
  0x1e   : > { %p178_p4 = scmp.lt.s32.totalorder %s7011_s15, 11  ;;  %s4294_s25 = sshll.u32 %s7080_s23, 2 }
  0x1f   : > { %s4295_s27 = sshll.u32 %s7011_s15, 2  ;;  %s165_s28 = scalar_lea.vmem [#allocation4], %s4294_s25 }
  0x20   : > { %p7110_p5 = pnand %p4296_p3, %p178_p4  ;;  %s173_s29 = sshll.u32 %s165_s28, 4  ;;  %s174_s29 = int_to_ptr.vmem [resolvable:$true] %s173_s29 }
  0x21   : > { %s169_s9 = scalar_lea.hbm %s8436_s2, %s4295_s27  ;;  %s162_s11 = scalar_lea.sflag [#allocation5], %s7080_s23 }
  0x22   : > { %s171_s10 = sshll.u32 %s169_s9, 4  ;;  %s6950_s18 = scalar_lea.hbm %s8436_s2, 40  ;;  %s172_s10 = int_to_ptr.hbm [resolvable:$true] %s171_s10 }
  0x23   : > { %s6943_s30 = sshra.s32 %s172_s10, 4  ;;  %s6944_s30 = int_to_ptr.hbm [resolvable:$true] %s6943_s30 }
  0x24   : > { %s6945_s4 = scalar_lea.hbm %s6944_s30, 4  ;;  %p6951_p12 = scmp.lt.s32.totalorder %s6944_s30, %s8436_s2 }
  0x25   : > { %p6946_p6 = scmp.ne.s32.totalorder %s6944_s30, %s6945_s4  ;;  %p6952_p13 = scmp.lt.s32.totalorder %s6950_s18, %s6945_s4 }
  0x27   : > { %p6948_p9 = pnand %p6946_p6, %p6917_p10  ;;  %p6953_p0 = por %p6952_p13, %p6951_p12 }
  0x29   : > { %p6949_p11 = pneg %p6948_p9 }
  0x2b   : > { %p6954_p1 = pnand %p6953_p0, %p6949_p11 }
  0x2d   : > { %6957 = shalt.err (!%p6954_p1)
}
  0x2e   : > { %6874 = dma.hbm_to_vmem [thread:$0]  (!%p7089_p8), %s172_s10, 64, %s174_s29, %s162_s11  }
  0x2f   : > { %182 = sbr.rel (%p7110_p5) target bundleno = 716 (0x2cc), region = 32  ;;  %s184_s23 = sand.u32 (!%p7110_p5), 1, %s7003_s13  }
  0x30   : > { %s4297_s24 = sshll.u32 (!%p7110_p5), %s184_s23, 12  ;;  %s185_s25 = scalar_lea.sflag (!%p7110_p5), [#allocation3], %s184_s23 }
  0x31   : > { %s7133_s27 = scalar_lea.vmem (!%p7110_p5), [#allocation2], %s4297_s24 }
  0x34   : > { %6990 = dma.done.wait (%p7075_p7), %s185_s25, 65536  }
  0x35   : > { %6992 = vsyncadd (%p7075_p7), %s185_s25, 4294901760  ;;  %s4298_s28 = sshll.u32 %s184_s23, 2  ;;  %s195_s7 = scalar_lea.sflag [#allocation5], %s184_s23 }
  0x36   : > { %s7139_s5 = scalar_lea.vmem [#allocation4], %s4298_s28 }
  0x37   : > { %6994 = dma.done.wait (%p7075_p7), %s195_s7, 64  }
  0x38   : > { %6996 = vsyncadd (%p7075_p7), %s195_s7, 4294967232  ;;  %v4415_v0 = vld [vmem:[%s7133_s27 + $0xe0] sm:$0xf]  ;;  %v6382_v1 = vld [vmem:[%s7133_s27 + $0xec] sm:$0xf0]  ;;  %s7825_s21 = sshll.u32 %s4287_s16, 2 }
  0x39   : > { %v4543_v2 = vld [vmem:[%s7133_s27 + $0x1e0] sm:$0xf]  ;;  %v4416_v3 = vor.u32 %v6382_v1, %v4415_v0  ;;  %v6414_v4 = vld [vmem:[%s7133_s27 + $0x1ec] sm:$0xf0]  ;;  %p230_p7 = scmp.lt.s32.totalorder %s7825_s21, 39 }
  0x3a   : > { %v4671_v5 = vld [vmem:[%s7133_s27 + $0x2e0] sm:$0xf]  ;;  %v6446_v6 = vld [vmem:[%s7133_s27 + $0x2ec] sm:$0xf0]  ;;  %v4544_v7 = vor.u32 %v6414_v4, %v4543_v2 }
  0x3b   : > { %v4672_v8 = vor.u32 %v6446_v6, %v4671_v5  ;;  %v4799_v9 = vld [vmem:[%s7133_s27 + $0x3e0] sm:$0xf]  ;;  %v6478_v10 = vld [vmem:[%s7133_s27 + $0x3ec] sm:$0xf0]  ;;  %3349 = vmatpush.bf16.msra.mxu0 %v4416_v3  ;;  %s8447_s21 = smov (!%p230_p7, %s7825_s21), 39 }
  0x3c   : > { %v4399_v11 = vld [vmem:[%s7133_s27 + $0xc0] sm:$0xf]  ;;  %v4800_v12 = vor.u32 %v6478_v10, %v4799_v9  ;;  %v6378_v13 = vld [vmem:[%s7133_s27 + $0xcc] sm:$0xf0]  ;;  %3362 = vmatpush.bf16.msra.mxu1 %v4544_v7  ;;  %s4300_s15 = sshll.u32 %s8447_s21, 3 }
  0x3d   : > { %v4527_v14 = vld [vmem:[%s7133_s27 + $0x1c0] sm:$0xf]  ;;  %v6410_v15 = vld [vmem:[%s7133_s27 + $0x1cc] sm:$0xf0]  ;;  %3375 = vmatpush.bf16.msra.mxu2 %v4672_v8  ;;  %v4400_v16 = vor.u32 %v6378_v13, %v4399_v11  ;;  %s7869_s24 = scalar_lea.vmem %s8437_s3, %s4300_s15 }
  0x3e   : > { %v4528_v17 = vor.u32 %v6410_v15, %v4527_v14  ;;  %v4655_v18 = vld [vmem:[%s7133_s27 + $0x2c0] sm:$0xf]  ;;  %v6442_v19 = vld [vmem:[%s7133_s27 + $0x2cc] sm:$0xf0]  ;;  %3388 = vmatpush.bf16.msra.mxu3 %v4800_v12 }
  0x3f   : > { %v4783_v20 = vld [vmem:[%s7133_s27 + $0x3c0] sm:$0xf]  ;;  %v4656_v21 = vor.u32 %v6442_v19, %v4655_v18  ;;  %v6474_v22 = vld [vmem:[%s7133_s27 + $0x3cc] sm:$0xf0]  ;;  %3350 = vmatpush.bf16.msra.mxu0 %v4400_v16 }
  0x40   : > { %v4383_v23 = vld [vmem:[%s7133_s27 + $0xa0] sm:$0xf]  ;;  %v6374_v24 = vld [vmem:[%s7133_s27 + $0xac] sm:$0xf0]  ;;  %v4784_v25 = vor.u32 %v6474_v22, %v4783_v20  ;;  %3363 = vmatpush.bf16.msra.mxu1 %v4528_v17 }
  0x41   : > { %v4511_v26 = vld [vmem:[%s7133_s27 + $0x1a0] sm:$0xf]  ;;  %v6406_v27 = vld [vmem:[%s7133_s27 + $0x1ac] sm:$0xf0]  ;;  %v4384_v29 = vor.u32 %v6374_v24, %v4383_v23  ;;  %3376 = vmatpush.bf16.msra.mxu2 %v4656_v21 }
  0x42   : > { %v4639_v28 = vld [vmem:[%s7133_s27 + $0x2a0] sm:$0xf]  ;;  %v6438_v30 = vld [vmem:[%s7133_s27 + $0x2ac] sm:$0xf0]  ;;  %v4512_v33 = vor.u32 %v6406_v27, %v4511_v26  ;;  %3389 = vmatpush.bf16.msra.mxu3 %v4784_v25 }
  0x43   : > { %v4767_v31 = vld [vmem:[%s7133_s27 + $0x3a0] sm:$0xf]  ;;  %v6470_v32 = vld [vmem:[%s7133_s27 + $0x3ac] sm:$0xf0]  ;;  %v4640_v34 = vor.u32 %v6438_v30, %v4639_v28  ;;  %3351 = vmatpush.bf16.msra.mxu0 %v4384_v29 }
  0x44   : > { %v4367_v35 = vld [vmem:[%s7133_s27 + $0x80] sm:$0xf]  ;;  %v6370_v36 = vld [vmem:[%s7133_s27 + $0x8c] sm:$0xf0]  ;;  %v4768_v38 = vor.u32 %v6470_v32, %v4767_v31  ;;  %3364 = vmatpush.bf16.msra.mxu1 %v4512_v33 }
  0x45   : > { %v4495_v37 = vld [vmem:[%s7133_s27 + $0x180] sm:$0xf]  ;;  %v6402_v39 = vld [vmem:[%s7133_s27 + $0x18c] sm:$0xf0]  ;;  %v4368_v44 = vor.u32 %v6370_v36, %v4367_v35  ;;  %3377 = vmatpush.bf16.msra.mxu2 %v4640_v34 }
  0x46   : > { %v4623_v40 = vld [vmem:[%s7133_s27 + $0x280] sm:$0xf]  ;;  %v6434_v41 = vld [vmem:[%s7133_s27 + $0x28c] sm:$0xf0]  ;;  %v4496_v45 = vor.u32 %v6402_v39, %v4495_v37  ;;  %3390 = vmatpush.bf16.msra.mxu3 %v4768_v38 }
  0x47   : > { %v4751_v42 = vld [vmem:[%s7133_s27 + $0x380] sm:$0xf]  ;;  %v6466_v43 = vld [vmem:[%s7133_s27 + $0x38c] sm:$0xf0]  ;;  %v4624_v46 = vor.u32 %v6434_v41, %v4623_v40  ;;  %3352 = vmatpush.bf16.msra.mxu0 %v4368_v44 }
  0x48   : > { %v4351_v47 = vld [vmem:[%s7133_s27 + $0x60] sm:$0xf]  ;;  %v6366_v48 = vld [vmem:[%s7133_s27 + $0x6c] sm:$0xf0]  ;;  %v4752_v50 = vor.u32 %v6466_v43, %v4751_v42  ;;  %3365 = vmatpush.bf16.msra.mxu1 %v4496_v45 }
  0x49   : > { %v4479_v49 = vld [vmem:[%s7133_s27 + $0x160] sm:$0xf]  ;;  %v6398_v51 = vld [vmem:[%s7133_s27 + $0x16c] sm:$0xf0]  ;;  %v4352_v56 = vor.u32 %v6366_v48, %v4351_v47  ;;  %3378 = vmatpush.bf16.msra.mxu2 %v4624_v46 }
  0x4a   : > { %v4607_v52 = vld [vmem:[%s7133_s27 + $0x260] sm:$0xf]  ;;  %v6430_v53 = vld [vmem:[%s7133_s27 + $0x26c] sm:$0xf0]  ;;  %v4480_v57 = vor.u32 %v6398_v51, %v4479_v49  ;;  %3391 = vmatpush.bf16.msra.mxu3 %v4752_v50 }
  0x4b   : > { %v4735_v54 = vld [vmem:[%s7133_s27 + $0x360] sm:$0xf]  ;;  %v6462_v55 = vld [vmem:[%s7133_s27 + $0x36c] sm:$0xf0]  ;;  %v4608_v58 = vor.u32 %v6430_v53, %v4607_v52  ;;  %3353 = vmatpush.bf16.msra.mxu0 %v4352_v56 }
  0x4c   : > { %v4335_v59 = vld [vmem:[%s7133_s27 + $0x40] sm:$0xf]  ;;  %v6362_v60 = vld [vmem:[%s7133_s27 + $0x4c] sm:$0xf0]  ;;  %v4736_v62 = vor.u32 %v6462_v55, %v4735_v54  ;;  %3366 = vmatpush.bf16.msra.mxu1 %v4480_v57 }
  0x4d   : > { %v4463_v61 = vld [vmem:[%s7133_s27 + $0x140] sm:$0xf]  ;;  %v6394_v63 = vld [vmem:[%s7133_s27 + $0x14c] sm:$0xf0]  ;;  %v4336_v4 = vor.u32 %v6362_v60, %v4335_v59  ;;  %3379 = vmatpush.bf16.msra.mxu2 %v4608_v58 }
  0x4e   : > { %v4591_v0 = vld [vmem:[%s7133_s27 + $0x240] sm:$0xf]  ;;  %v6426_v1 = vld [vmem:[%s7133_s27 + $0x24c] sm:$0xf0]  ;;  %v4464_v5 = vor.u32 %v6394_v63, %v4463_v61  ;;  %3392 = vmatpush.bf16.msra.mxu3 %v4736_v62 }
  0x4f   : > { %v4719_v2 = vld [vmem:[%s7133_s27 + $0x340] sm:$0xf]  ;;  %v6458_v3 = vld [vmem:[%s7133_s27 + $0x34c] sm:$0xf0]  ;;  %v4592_v6 = vor.u32 %v6426_v1, %v4591_v0  ;;  %3354 = vmatpush.bf16.msra.mxu0 %v4336_v4 }
  0x50   : > { %v4319_v7 = vld [vmem:[%s7133_s27 + $0x20] sm:$0xf]  ;;  %v6358_v8 = vld [vmem:[%s7133_s27 + $0x2c] sm:$0xf0]  ;;  %v4720_v10 = vor.u32 %v6458_v3, %v4719_v2  ;;  %3367 = vmatpush.bf16.msra.mxu1 %v4464_v5 }
  0x51   : > { %v4447_v9 = vld [vmem:[%s7133_s27 + $0x120] sm:$0xf]  ;;  %v6390_v11 = vld [vmem:[%s7133_s27 + $0x12c] sm:$0xf0]  ;;  %v4320_v16 = vor.u32 %v6358_v8, %v4319_v7  ;;  %3380 = vmatpush.bf16.msra.mxu2 %v4592_v6 }
  0x52   : > { %v4575_v12 = vld [vmem:[%s7133_s27 + $0x220] sm:$0xf]  ;;  %v6422_v13 = vld [vmem:[%s7133_s27 + $0x22c] sm:$0xf0]  ;;  %v4448_v19 = vor.u32 %v6390_v11, %v4447_v9  ;;  %3393 = vmatpush.bf16.msra.mxu3 %v4720_v10  ;;  %v238_v10 = vld [vmem:[%s8434_s0 + $0x18] sm:$0xff] }
  0x53   : > { %v4703_v14 = vld [vmem:[%s7133_s27 + $0x320] sm:$0xf]  ;;  %v6454_v15 = vld [vmem:[%s7133_s27 + $0x32c] sm:$0xf0]  ;;  %v4576_v20 = vor.u32 %v6422_v13, %v4575_v12  ;;  %3355 = vmatpush.bf16.msra.mxu0 %v4320_v16  ;;  %v236_v11 = vld [vmem:[%s8434_s0 + $0x8] sm:$0xff]  ;;  %v7256_v16 = vpack.c.bf16 %v238_v10, %v238_v10 }
  0x54   : > { %v4303_v17 = vld [vmem:[%s7133_s27] sm:$0xf]  ;;  %v6354_v18 = vld [vmem:[%s7133_s27 + $0xc] sm:$0xf0]  ;;  %v4704_v24 = vor.u32 %v6454_v15, %v4703_v14  ;;  %3368 = vmatpush.bf16.msra.mxu1 %v4448_v19 }
  0x55   : > { %v4431_v21 = vld [vmem:[%s7133_s27 + $0x100] sm:$0xf]  ;;  %v6386_v22 = vld [vmem:[%s7133_s27 + $0x10c] sm:$0xf0]  ;;  %v4304_v31 = vor.u32 %v6354_v18, %v4303_v17  ;;  %3381 = vmatpush.bf16.msra.mxu2 %v4576_v20  ;;  %v7258_v17 = vpack.c.bf16 %v236_v11, %v236_v11 }
  0x56   : > { %v4559_v23 = vld [vmem:[%s7133_s27 + $0x200] sm:$0xf]  ;;  %v6418_v25 = vld [vmem:[%s7133_s27 + $0x20c] sm:$0xf0]  ;;  %v4432_v35 = vor.u32 %v6386_v22, %v4431_v21  ;;  %3394 = vmatpush.bf16.msra.mxu3 %v4704_v24 }
  0x57   : > { %v4687_v26 = vld [vmem:[%s7133_s27 + $0x300] sm:$0xf]  ;;  %v6450_v27 = vld [vmem:[%s7133_s27 + $0x30c] sm:$0xf0]  ;;  %v4560_v36 = vor.u32 %v6418_v25, %v4559_v23  ;;  %3356 = vmatpush.bf16.msra.mxu0 %v4304_v31 }
  0x58   : > { %v4927_v28 = vld [vmem:[%s7133_s27 + $0x4e0] sm:$0xf]  ;;  %v6510_v29 = vld [vmem:[%s7133_s27 + $0x4ec] sm:$0xf0]  ;;  %v4688_v39 = vor.u32 %v6450_v27, %v4687_v26  ;;  %3369 = vmatpush.bf16.msra.mxu1 %v4432_v35 }
  0x59   : > { %v5055_v30 = vld [vmem:[%s7133_s27 + $0x5e0] sm:$0xf]  ;;  %v6542_v32 = vld [vmem:[%s7133_s27 + $0x5ec] sm:$0xf0]  ;;  %v4928_v40 = vor.u32 %v6510_v29, %v4927_v28  ;;  %3382 = vmatpush.bf16.msra.mxu2 %v4560_v36 }
  0x5a   : > { %v5183_v33 = vld [vmem:[%s7133_s27 + $0x6e0] sm:$0xf]  ;;  %v6574_v34 = vld [vmem:[%s7133_s27 + $0x6ec] sm:$0xf0]  ;;  %v5056_v41 = vor.u32 %v6542_v32, %v5055_v30  ;;  %3395 = vmatpush.bf16.msra.mxu3 %v4688_v39 }
  0x5b   : > { %v5311_v37 = vld [vmem:[%s7133_s27 + $0x7e0] sm:$0xf]  ;;  %v6606_v38 = vld [vmem:[%s7133_s27 + $0x7ec] sm:$0xf0]  ;;  %v5184_v42 = vor.u32 %v6574_v34, %v5183_v33  ;;  %3401 = vmatpush.bf16.msrb.mxu0 %v4928_v40  ;;  %3370 = vmatmul.bf16.vlgmr.msra.gmra.mxu1 %v7258_v17 }
  0x5c   : > { %v4911_v43 = vld [vmem:[%s7133_s27 + $0x4c0] sm:$0xf]  ;;  %v6506_v44 = vld [vmem:[%s7133_s27 + $0x4cc] sm:$0xf0]  ;;  %v5312_v46 = vor.u32 %v6606_v38, %v5311_v37  ;;  %3414 = vmatpush.bf16.msrb.mxu1 %v5056_v41 }
  0x5d   : > { %v5039_v45 = vld [vmem:[%s7133_s27 + $0x5c0] sm:$0xf]  ;;  %v6538_v47 = vld [vmem:[%s7133_s27 + $0x5cc] sm:$0xf0]  ;;  %v4912_v52 = vor.u32 %v6506_v44, %v4911_v43  ;;  %3427 = vmatpush.bf16.msrb.mxu2 %v5184_v42  ;;  %3396 = vmatmul.bf16.vlgmr.msra.gmra.mxu3 %v7256_v16 }
  0x5e   : > { %v5167_v48 = vld [vmem:[%s7133_s27 + $0x6c0] sm:$0xf]  ;;  %v6570_v49 = vld [vmem:[%s7133_s27 + $0x6cc] sm:$0xf0]  ;;  %v5040_v54 = vor.u32 %v6538_v47, %v5039_v45  ;;  %3440 = vmatpush.bf16.msrb.mxu3 %v5312_v46 }
  0x5f   : > { %v5295_v50 = vld [vmem:[%s7133_s27 + $0x7c0] sm:$0xf]  ;;  %v6602_v51 = vld [vmem:[%s7133_s27 + $0x7cc] sm:$0xf0]  ;;  %v5168_v55 = vor.u32 %v6570_v49, %v5167_v48  ;;  %3402 = vmatpush.bf16.msrb.mxu0 %v4912_v52 }
  0x60   : > { %v4895_v53 = vld [vmem:[%s7133_s27 + $0x4a0] sm:$0xf]  ;;  %v6502_v56 = vld [vmem:[%s7133_s27 + $0x4ac] sm:$0xf0]  ;;  %v5296_v59 = vor.u32 %v6602_v51, %v5295_v50  ;;  %3415 = vmatpush.bf16.msrb.mxu1 %v5040_v54 }
  0x61   : > { %v5023_v57 = vld [vmem:[%s7133_s27 + $0x5a0] sm:$0xf]  ;;  %v237_v58 = vld [vmem:[%s8434_s0 + $0x10] sm:$0xff]  ;;  %v4896_v2 = vor.u32 %v6502_v56, %v4895_v53  ;;  %3428 = vmatpush.bf16.msrb.mxu2 %v5168_v55 }
  0x62   : > { %v6534_v60 = vld [vmem:[%s7133_s27 + $0x5ac] sm:$0xf0]  ;;  %v5151_v61 = vld [vmem:[%s7133_s27 + $0x6a0] sm:$0xf]  ;;  %v7234_v63 = vpack.c.bf16 %v237_v58, %v237_v58  ;;  %3441 = vmatpush.bf16.msrb.mxu3 %v5296_v59 }
  0x63   : > { %v6566_v62 = vld [vmem:[%s7133_s27 + $0x6ac] sm:$0xf0]  ;;  %v5279_v0 = vld [vmem:[%s7133_s27 + $0x7a0] sm:$0xf]  ;;  %v5024_v6 = vor.u32 %v6534_v60, %v5023_v57  ;;  %3403 = vmatpush.bf16.msrb.mxu0 %v4896_v2 }
  0x64   : > { %v6598_v1 = vld [vmem:[%s7133_s27 + $0x7ac] sm:$0xf0]  ;;  %v4879_v3 = vld [vmem:[%s7133_s27 + $0x480] sm:$0xf]  ;;  %3383 = vmatmul.bf16.vlgmr.msra.gmra.mxu2 %v7234_v63  ;;  %v5152_v7 = vor.u32 %v6566_v62, %v5151_v61 }
  0x65   : > { %v6498_v4 = vld [vmem:[%s7133_s27 + $0x48c] sm:$0xf0]  ;;  %v235_v5 = vld [vmem:[%s8434_s0] sm:$0xff]  ;;  %v5280_v12 = vor.u32 %v6598_v1, %v5279_v0  ;;  %3416 = vmatpush.bf16.msrb.mxu1 %v5024_v6 }
  0x66   : > { %v5007_v8 = vld [vmem:[%s7133_s27 + $0x580] sm:$0xf]  ;;  %v7245_v9 = vpack.c.bf16 %v235_v5, %v235_v5  ;;  %v6530_v13 = vld [vmem:[%s7133_s27 + $0x58c] sm:$0xf0]  ;;  %v4880_v20 = vor.u32 %v6498_v4, %v4879_v3  ;;  %3429 = vmatpush.bf16.msrb.mxu2 %v5152_v7 }
  0x67   : > { %v5135_v14 = vld [vmem:[%s7133_s27 + $0x680] sm:$0xf]  ;;  %v6562_v15 = vld [vmem:[%s7133_s27 + $0x68c] sm:$0xf0]  ;;  %v5008_v21 = vor.u32 %v6530_v13, %v5007_v8  ;;  %3442 = vmatpush.bf16.msrb.mxu3 %v5280_v12 }
  0x68   : > { %v5263_v18 = vld [vmem:[%s7133_s27 + $0x780] sm:$0xf]  ;;  %v6594_v19 = vld [vmem:[%s7133_s27 + $0x78c] sm:$0xf0]  ;;  %3357 = vmatmul.bf16.vlgmr.msra.gmra.mxu0 %v7245_v9  ;;  %v5136_v22 = vor.u32 %v6562_v15, %v5135_v14 }
  0x69   : > { %v4863_v23 = vld [vmem:[%s7133_s27 + $0x460] sm:$0xf]  ;;  %v6494_v24 = vld [vmem:[%s7133_s27 + $0x46c] sm:$0xf0]  ;;  %v5264_v26 = vor.u32 %v6594_v19, %v5263_v18  ;;  %3404 = vmatpush.bf16.msrb.mxu0 %v4880_v20  ;;  %3417 = vmatpush.bf16.msrb.mxu1 %v5008_v21 }
  0x6a   : > { %v4991_v25 = vld [vmem:[%s7133_s27 + $0x560] sm:$0xf]  ;;  %v6526_v27 = vld [vmem:[%s7133_s27 + $0x56c] sm:$0xf0]  ;;  %v4864_v32 = vor.u32 %v6494_v24, %v4863_v23  ;;  %3430 = vmatpush.bf16.msrb.mxu2 %v5136_v22  ;;  %v242_v24 = vld [vmem:[%s8434_s0 + $0x38] sm:$0xff] }
  0x6b   : > { %v5119_v28 = vld [vmem:[%s7133_s27 + $0x660] sm:$0xf]  ;;  %v6558_v29 = vld [vmem:[%s7133_s27 + $0x66c] sm:$0xf0]  ;;  %v4992_v33 = vor.u32 %v6526_v27, %v4991_v25  ;;  %3443 = vmatpush.bf16.msrb.mxu3 %v5264_v26 }
  0x6c   : > { %v5247_v30 = vld [vmem:[%s7133_s27 + $0x760] sm:$0xf]  ;;  %v6590_v31 = vld [vmem:[%s7133_s27 + $0x76c] sm:$0xf0]  ;;  %v5120_v34 = vor.u32 %v6558_v29, %v5119_v28  ;;  %v240_v29 = vld [vmem:[%s8434_s0 + $0x28] sm:$0xff] }
  0x6d   : > { %v4847_v35 = vld [vmem:[%s7133_s27 + $0x440] sm:$0xf]  ;;  %v6490_v36 = vld [vmem:[%s7133_s27 + $0x44c] sm:$0xf0]  ;;  %v5248_v38 = vor.u32 %v6590_v31, %v5247_v30  ;;  %3405 = vmatpush.bf16.msrb.mxu0 %v4864_v32  ;;  %3418 = vmatpush.bf16.msrb.mxu1 %v4992_v33 }
  0x6e   : > { %v4975_v37 = vld [vmem:[%s7133_s27 + $0x540] sm:$0xf]  ;;  %v6522_v39 = vld [vmem:[%s7133_s27 + $0x54c] sm:$0xf0]  ;;  %v4848_v44 = vor.u32 %v6490_v36, %v4847_v35  ;;  %3431 = vmatpush.bf16.msrb.mxu2 %v5120_v34 }
  0x6f   : > { %v5103_v40 = vld [vmem:[%s7133_s27 + $0x640] sm:$0xf]  ;;  %v6554_v41 = vld [vmem:[%s7133_s27 + $0x64c] sm:$0xf0]  ;;  %v4976_v45 = vor.u32 %v6522_v39, %v4975_v37  ;;  %3444 = vmatpush.bf16.msrb.mxu3 %v5248_v38  ;;  %v7329_v38 = vpack.c.bf16 %v242_v24, %v242_v24 }
  0x70   : > { %v5231_v42 = vld [vmem:[%s7133_s27 + $0x740] sm:$0xf]  ;;  %v6586_v43 = vld [vmem:[%s7133_s27 + $0x74c] sm:$0xf0]  ;;  %v5104_v46 = vor.u32 %v6554_v41, %v5103_v40  ;;  %v7331_v40 = vpack.c.bf16 %v240_v29, %v240_v29 }
  0x71   : > { %v4831_v47 = vld [vmem:[%s7133_s27 + $0x420] sm:$0xf]  ;;  %v6486_v48 = vld [vmem:[%s7133_s27 + $0x42c] sm:$0xf0]  ;;  %v5232_v50 = vor.u32 %v6586_v43, %v5231_v42  ;;  %3406 = vmatpush.bf16.msrb.mxu0 %v4848_v44  ;;  %3419 = vmatpush.bf16.msrb.mxu1 %v4976_v45 }
  0x72   : > { %v4959_v49 = vld [vmem:[%s7133_s27 + $0x520] sm:$0xf]  ;;  %v6518_v51 = vld [vmem:[%s7133_s27 + $0x52c] sm:$0xf0]  ;;  %v4832_v56 = vor.u32 %v6486_v48, %v4831_v47  ;;  %3432 = vmatpush.bf16.msrb.mxu2 %v5104_v46 }
  0x73   : > { %v5087_v52 = vld [vmem:[%s7133_s27 + $0x620] sm:$0xf]  ;;  %v6550_v53 = vld [vmem:[%s7133_s27 + $0x62c] sm:$0xf0]  ;;  %v4960_v59 = vor.u32 %v6518_v51, %v4959_v49  ;;  %3445 = vmatpush.bf16.msrb.mxu3 %v5232_v50 }
  0x74   : > { %v5215_v54 = vld [vmem:[%s7133_s27 + $0x720] sm:$0xf]  ;;  %v6582_v55 = vld [vmem:[%s7133_s27 + $0x72c] sm:$0xf0]  ;;  %v5088_v60 = vor.u32 %v6550_v53, %v5087_v52 }
  0x75   : > { %v4815_v57 = vld [vmem:[%s7133_s27 + $0x400] sm:$0xf]  ;;  %v6482_v58 = vld [vmem:[%s7133_s27 + $0x40c] sm:$0xf0]  ;;  %v5216_v1 = vor.u32 %v6582_v55, %v5215_v54  ;;  %3407 = vmatpush.bf16.msrb.mxu0 %v4832_v56  ;;  %3420 = vmatpush.bf16.msrb.mxu1 %v4960_v59 }
  0x76   : > { %v4943_v61 = vld [vmem:[%s7133_s27 + $0x500] sm:$0xf]  ;;  %v6514_v62 = vld [vmem:[%s7133_s27 + $0x50c] sm:$0xf0]  ;;  %v4816_v8 = vor.u32 %v6482_v58, %v4815_v57  ;;  %3433 = vmatpush.bf16.msrb.mxu2 %v5088_v60 }
  0x77   : > { %v5071_v0 = vld [vmem:[%s7133_s27 + $0x600] sm:$0xf]  ;;  %v6546_v2 = vld [vmem:[%s7133_s27 + $0x60c] sm:$0xf0]  ;;  %v4944_v13 = vor.u32 %v6514_v62, %v4943_v61  ;;  %3446 = vmatpush.bf16.msrb.mxu3 %v5216_v1 }
  0x78   : > { %v5199_v3 = vld [vmem:[%s7133_s27 + $0x700] sm:$0xf]  ;;  %v6578_v4 = vld [vmem:[%s7133_s27 + $0x70c] sm:$0xf0]  ;;  %v5072_v14 = vor.u32 %v6546_v2, %v5071_v0 }
  0x79   : > { %v5439_v5 = vld [vmem:[%s7133_s27 + $0x8e0] sm:$0xf]  ;;  %v6638_v6 = vld [vmem:[%s7133_s27 + $0x8ec] sm:$0xf0]  ;;  %v5200_v20 = vor.u32 %v6578_v4, %v5199_v3  ;;  %3408 = vmatpush.bf16.msrb.mxu0 %v4816_v8  ;;  %3421 = vmatpush.bf16.msrb.mxu1 %v4944_v13 }
  0x7a   : > { %v5567_v7 = vld [vmem:[%s7133_s27 + $0x9e0] sm:$0xf]  ;;  %v6670_v10 = vld [vmem:[%s7133_s27 + $0x9ec] sm:$0xf0]  ;;  %v5440_v21 = vor.u32 %v6638_v6, %v5439_v5  ;;  %3434 = vmatpush.bf16.msrb.mxu2 %v5072_v14 }
  0x7b   : > { %v5695_v11 = vld [vmem:[%s7133_s27 + $0xae0] sm:$0xf]  ;;  %v6702_v12 = vld [vmem:[%s7133_s27 + $0xaec] sm:$0xf0]  ;;  %v5568_v25 = vor.u32 %v6670_v10, %v5567_v7  ;;  %3447 = vmatpush.bf16.msrb.mxu3 %v5200_v20 }
  0x7c   : > { %v5823_v15 = vld [vmem:[%s7133_s27 + $0xbe0] sm:$0xf]  ;;  %v6734_v18 = vld [vmem:[%s7133_s27 + $0xbec] sm:$0xf0]  ;;  %v5696_v26 = vor.u32 %v6702_v12, %v5695_v11  ;;  %3422 = vmatmul.bf16.vlgmr.msrb.gmra.mxu1 %v7331_v40 }
  0x7d   : > { %v241_v19 = vld [vmem:[%s8434_s0 + $0x30] sm:$0xff]  ;;  %v5423_v22 = vld [vmem:[%s7133_s27 + $0x8c0] sm:$0xf]  ;;  %v5824_v30 = vor.u32 %v6734_v18, %v5823_v15  ;;  %3453 = vmatpush.bf16.msra.mxu0 %v5440_v21  ;;  %3466 = vmatpush.bf16.msra.mxu1 %v5568_v25 }
  0x7e   : > { %v239_v23 = vld [vmem:[%s8434_s0 + $0x20] sm:$0xff]  ;;  %v6634_v27 = vld [vmem:[%s7133_s27 + $0x8cc] sm:$0xf0]  ;;  %v7323_v34 = vpack.c.bf16 %v241_v19, %v241_v19  ;;  %3479 = vmatpush.bf16.msra.mxu2 %v5696_v26  ;;  %3448 = vmatmul.bf16.vlgmr.msrb.gmra.mxu3 %v7329_v38 }
  0x7f   : > { %v5551_v28 = vld [vmem:[%s7133_s27 + $0x9c0] sm:$0xf]  ;;  %v6666_v31 = vld [vmem:[%s7133_s27 + $0x9cc] sm:$0xf0]  ;;  %v7327_v37 = vpack.c.bf16 %v239_v23, %v239_v23  ;;  %v5424_v39 = vor.u32 %v6634_v27, %v5423_v22  ;;  %3492 = vmatpush.bf16.msra.mxu3 %v5824_v30 }
  0x80   : > { %v5679_v32 = vld [vmem:[%s7133_s27 + $0xac0] sm:$0xf]  ;;  %v6698_v33 = vld [vmem:[%s7133_s27 + $0xacc] sm:$0xf0]  ;;  %v5552_v41 = vor.u32 %v6666_v31, %v5551_v28  ;;  %3435 = vmatmul.bf16.vlgmr.msrb.gmra.mxu2 %v7323_v34 }
  0x81   : > { %v5807_v35 = vld [vmem:[%s7133_s27 + $0xbc0] sm:$0xf]  ;;  %v6730_v36 = vld [vmem:[%s7133_s27 + $0xbcc] sm:$0xf0]  ;;  %v5680_v42 = vor.u32 %v6698_v33, %v5679_v32  ;;  %3409 = vmatmul.bf16.vlgmr.msrb.gmra.mxu0 %v7327_v37 }
  0x82   : > { %v5407_v43 = vld [vmem:[%s7133_s27 + $0x8a0] sm:$0xf]  ;;  %v6630_v44 = vld [vmem:[%s7133_s27 + $0x8ac] sm:$0xf0]  ;;  %v5808_v46 = vor.u32 %v6730_v36, %v5807_v35  ;;  %3454 = vmatpush.bf16.msra.mxu0 %v5424_v39  ;;  %3467 = vmatpush.bf16.msra.mxu1 %v5552_v41 }
  0x83   : > { %v5535_v45 = vld [vmem:[%s7133_s27 + $0x9a0] sm:$0xf]  ;;  %v6662_v47 = vld [vmem:[%s7133_s27 + $0x9ac] sm:$0xf0]  ;;  %v5408_v52 = vor.u32 %v6630_v44, %v5407_v43  ;;  %3480 = vmatpush.bf16.msra.mxu2 %v5680_v42 }
  0x84   : > { %v5663_v48 = vld [vmem:[%s7133_s27 + $0xaa0] sm:$0xf]  ;;  %v6694_v49 = vld [vmem:[%s7133_s27 + $0xaac] sm:$0xf0]  ;;  %v5536_v53 = vor.u32 %v6662_v47, %v5535_v45  ;;  %3493 = vmatpush.bf16.msra.mxu3 %v5808_v46 }
  0x85   : > { %v5791_v50 = vld [vmem:[%s7133_s27 + $0xba0] sm:$0xf]  ;;  %v6726_v51 = vld [vmem:[%s7133_s27 + $0xbac] sm:$0xf0]  ;;  %v5664_v54 = vor.u32 %v6694_v49, %v5663_v48 }
  0x86   : > { %v5391_v55 = vld [vmem:[%s7133_s27 + $0x880] sm:$0xf]  ;;  %v6626_v56 = vld [vmem:[%s7133_s27 + $0x88c] sm:$0xf0]  ;;  %v5792_v58 = vor.u32 %v6726_v51, %v5791_v50  ;;  %3455 = vmatpush.bf16.msra.mxu0 %v5408_v52  ;;  %3468 = vmatpush.bf16.msra.mxu1 %v5536_v53 }
  0x87   : > { %v5519_v57 = vld [vmem:[%s7133_s27 + $0x980] sm:$0xf]  ;;  %v6658_v59 = vld [vmem:[%s7133_s27 + $0x98c] sm:$0xf0]  ;;  %v5392_v1 = vor.u32 %v6626_v56, %v5391_v55  ;;  %3481 = vmatpush.bf16.msra.mxu2 %v5664_v54 }
  0x88   : > { %v5647_v60 = vld [vmem:[%s7133_s27 + $0xa80] sm:$0xf]  ;;  %v6690_v61 = vld [vmem:[%s7133_s27 + $0xa8c] sm:$0xf0]  ;;  %v5520_v2 = vor.u32 %v6658_v59, %v5519_v57  ;;  %3494 = vmatpush.bf16.msra.mxu3 %v5792_v58 }
  0x89   : > { %v5775_v62 = vld [vmem:[%s7133_s27 + $0xb80] sm:$0xf]  ;;  %v6722_v0 = vld [vmem:[%s7133_s27 + $0xb8c] sm:$0xf0]  ;;  %v5648_v3 = vor.u32 %v6690_v61, %v5647_v60 }
  0x8a   : > { %v5375_v4 = vld [vmem:[%s7133_s27 + $0x860] sm:$0xf]  ;;  %v6622_v5 = vld [vmem:[%s7133_s27 + $0x86c] sm:$0xf0]  ;;  %v5776_v7 = vor.u32 %v6722_v0, %v5775_v62  ;;  %3456 = vmatpush.bf16.msra.mxu0 %v5392_v1  ;;  %3469 = vmatpush.bf16.msra.mxu1 %v5520_v2 }
  0x8b   : > { %v5503_v6 = vld [vmem:[%s7133_s27 + $0x960] sm:$0xf]  ;;  %v6654_v8 = vld [vmem:[%s7133_s27 + $0x96c] sm:$0xf0]  ;;  %v5376_v14 = vor.u32 %v6622_v5, %v5375_v4  ;;  %3482 = vmatpush.bf16.msra.mxu2 %v5648_v3 }
  0x8c   : > { %v5631_v10 = vld [vmem:[%s7133_s27 + $0xa60] sm:$0xf]  ;;  %v6686_v11 = vld [vmem:[%s7133_s27 + $0xa6c] sm:$0xf0]  ;;  %v5504_v15 = vor.u32 %v6654_v8, %v5503_v6  ;;  %3495 = vmatpush.bf16.msra.mxu3 %v5776_v7  ;;  %v244_v8 = vld [vmem:[%s8434_s0 + $0x48] sm:$0xff] }
  0x8d   : > { %v5759_v12 = vld [vmem:[%s7133_s27 + $0xb60] sm:$0xf]  ;;  %v6718_v13 = vld [vmem:[%s7133_s27 + $0xb6c] sm:$0xf0]  ;;  %v5632_v18 = vor.u32 %v6686_v11, %v5631_v10  ;;  %v246_v10 = vld [vmem:[%s8434_s0 + $0x58] sm:$0xff] }
  0x8e   : > { %v5359_v19 = vld [vmem:[%s7133_s27 + $0x840] sm:$0xf]  ;;  %v6618_v20 = vld [vmem:[%s7133_s27 + $0x84c] sm:$0xf0]  ;;  %v5760_v22 = vor.u32 %v6718_v13, %v5759_v12  ;;  %3457 = vmatpush.bf16.msra.mxu0 %v5376_v14  ;;  %3470 = vmatpush.bf16.msra.mxu1 %v5504_v15 }
  0x8f   : > { %v5487_v21 = vld [vmem:[%s7133_s27 + $0x940] sm:$0xf]  ;;  %v6650_v23 = vld [vmem:[%s7133_s27 + $0x94c] sm:$0xf0]  ;;  %v5360_v28 = vor.u32 %v6618_v20, %v5359_v19  ;;  %3483 = vmatpush.bf16.msra.mxu2 %v5632_v18 }
  0x90   : > { %v5615_v24 = vld [vmem:[%s7133_s27 + $0xa40] sm:$0xf]  ;;  %v6682_v25 = vld [vmem:[%s7133_s27 + $0xa4c] sm:$0xf0]  ;;  %v5488_v29 = vor.u32 %v6650_v23, %v5487_v21  ;;  %3496 = vmatpush.bf16.msra.mxu3 %v5760_v22 }
  0x91   : > { %v5743_v26 = vld [vmem:[%s7133_s27 + $0xb40] sm:$0xf]  ;;  %v6714_v27 = vld [vmem:[%s7133_s27 + $0xb4c] sm:$0xf0]  ;;  %v5616_v30 = vor.u32 %v6682_v25, %v5615_v24  ;;  %v7415_v24 = vpack.c.bf16 %v244_v8, %v244_v8 }
  0x92   : > { %v5343_v31 = vld [vmem:[%s7133_s27 + $0x820] sm:$0xf]  ;;  %v6614_v32 = vld [vmem:[%s7133_s27 + $0x82c] sm:$0xf0]  ;;  %v5744_v35 = vor.u32 %v6714_v27, %v5743_v26  ;;  %3458 = vmatpush.bf16.msra.mxu0 %v5360_v28  ;;  %3471 = vmatpush.bf16.msra.mxu1 %v5488_v29  ;;  %v7419_v27 = vpack.c.bf16 %v246_v10, %v246_v10 }
  0x93   : > { %v5471_v33 = vld [vmem:[%s7133_s27 + $0x920] sm:$0xf]  ;;  %v6646_v36 = vld [vmem:[%s7133_s27 + $0x92c] sm:$0xf0]  ;;  %v5344_v44 = vor.u32 %v6614_v32, %v5343_v31  ;;  %3484 = vmatpush.bf16.msra.mxu2 %v5616_v30 }
  0x94   : > { %v5599_v39 = vld [vmem:[%s7133_s27 + $0xa20] sm:$0xf]  ;;  %v6678_v41 = vld [vmem:[%s7133_s27 + $0xa2c] sm:$0xf0]  ;;  %v5472_v47 = vor.u32 %v6646_v36, %v5471_v33  ;;  %3497 = vmatpush.bf16.msra.mxu3 %v5744_v35 }
  0x95   : > { %v5727_v42 = vld [vmem:[%s7133_s27 + $0xb20] sm:$0xf]  ;;  %v6710_v43 = vld [vmem:[%s7133_s27 + $0xb2c] sm:$0xf0]  ;;  %v5600_v48 = vor.u32 %v6678_v41, %v5599_v39 }
  0x96   : > { %v5327_v45 = vld [vmem:[%s7133_s27 + $0x800] sm:$0xf]  ;;  %v6610_v46 = vld [vmem:[%s7133_s27 + $0x80c] sm:$0xf0]  ;;  %v5728_v52 = vor.u32 %v6710_v43, %v5727_v42  ;;  %3459 = vmatpush.bf16.msra.mxu0 %v5344_v44  ;;  %3472 = vmatpush.bf16.msra.mxu1 %v5472_v47 }
  0x97   : > { %v5455_v49 = vld [vmem:[%s7133_s27 + $0x900] sm:$0xf]  ;;  %v6642_v50 = vld [vmem:[%s7133_s27 + $0x90c] sm:$0xf0]  ;;  %v5328_v59 = vor.u32 %v6610_v46, %v5327_v45  ;;  %3485 = vmatpush.bf16.msra.mxu2 %v5600_v48 }
  0x98   : > { %v5583_v51 = vld [vmem:[%s7133_s27 + $0xa00] sm:$0xf]  ;;  %v6674_v53 = vld [vmem:[%s7133_s27 + $0xa0c] sm:$0xf0]  ;;  %v5456_v0 = vor.u32 %v6642_v50, %v5455_v49  ;;  %3498 = vmatpush.bf16.msra.mxu3 %v5728_v52 }
  0x99   : > { %v5711_v54 = vld [vmem:[%s7133_s27 + $0xb00] sm:$0xf]  ;;  %v6706_v55 = vld [vmem:[%s7133_s27 + $0xb0c] sm:$0xf0]  ;;  %v5584_v1 = vor.u32 %v6674_v53, %v5583_v51 }
  0x9a   : > { %v5951_v56 = vld [vmem:[%s7133_s27 + $0xce0] sm:$0xf]  ;;  %v6766_v57 = vld [vmem:[%s7133_s27 + $0xcec] sm:$0xf0]  ;;  %v5712_v5 = vor.u32 %v6706_v55, %v5711_v54  ;;  %3460 = vmatpush.bf16.msra.mxu0 %v5328_v59  ;;  %3473 = vmatpush.bf16.msra.mxu1 %v5456_v0 }
  0x9b   : > { %v6079_v58 = vld [vmem:[%s7133_s27 + $0xde0] sm:$0xf]  ;;  %v6798_v60 = vld [vmem:[%s7133_s27 + $0xdec] sm:$0xf0]  ;;  %v5952_v6 = vor.u32 %v6766_v57, %v5951_v56  ;;  %3486 = vmatpush.bf16.msra.mxu2 %v5584_v1 }
  0x9c   : > { %v6207_v61 = vld [vmem:[%s7133_s27 + $0xee0] sm:$0xf]  ;;  %v6830_v62 = vld [vmem:[%s7133_s27 + $0xeec] sm:$0xf0]  ;;  %v6080_v11 = vor.u32 %v6798_v60, %v6079_v58  ;;  %3499 = vmatpush.bf16.msra.mxu3 %v5712_v5 }
  0x9d   : > { %v6335_v2 = vld [vmem:[%s7133_s27 + $0xfe0] sm:$0xf]  ;;  %v6862_v3 = vld [vmem:[%s7133_s27 + $0xfec] sm:$0xf0]  ;;  %v6208_v12 = vor.u32 %v6830_v62, %v6207_v61  ;;  %3474 = vmatmul.bf16.vlgmr.msra.gmra.mxu1 %v7415_v24 }
  0x9e   : > { %v243_v4 = vld [vmem:[%s8434_s0 + $0x40] sm:$0xff]  ;;  %v245_v7 = vld [vmem:[%s8434_s0 + $0x50] sm:$0xff]  ;;  %v6336_v18 = vor.u32 %v6862_v3, %v6335_v2  ;;  %3505 = vmatpush.bf16.msrb.mxu0 %v5952_v6  ;;  %3518 = vmatpush.bf16.msrb.mxu1 %v6080_v11 }
  0x9f   : > { %v5935_v13 = vld [vmem:[%s7133_s27 + $0xcc0] sm:$0xf]  ;;  %v6762_v14 = vld [vmem:[%s7133_s27 + $0xccc] sm:$0xf0]  ;;  %v7408_v19 = vpack.c.bf16 %v243_v4, %v243_v4  ;;  %v7413_v23 = vpack.c.bf16 %v245_v7, %v245_v7  ;;  %3531 = vmatpush.bf16.msrb.mxu2 %v6208_v12  ;;  %3500 = vmatmul.bf16.vlgmr.msra.gmra.mxu3 %v7419_v27 }
  0xa0   : > { %v6063_v15 = vld [vmem:[%s7133_s27 + $0xdc0] sm:$0xf]  ;;  %v6794_v20 = vld [vmem:[%s7133_s27 + $0xdcc] sm:$0xf0]  ;;  %v5936_v28 = vor.u32 %v6762_v14, %v5935_v13  ;;  %3544 = vmatpush.bf16.msrb.mxu3 %v6336_v18 }
  0xa1   : > { %v6191_v21 = vld [vmem:[%s7133_s27 + $0xec0] sm:$0xf]  ;;  %v6826_v22 = vld [vmem:[%s7133_s27 + $0xecc] sm:$0xf0]  ;;  %v6064_v29 = vor.u32 %v6794_v20, %v6063_v15  ;;  %3461 = vmatmul.bf16.vlgmr.msra.gmra.mxu0 %v7408_v19  ;;  %3487 = vmatmul.bf16.vlgmr.msra.gmra.mxu2 %v7413_v23 }
  0xa2   : > { %v6319_v25 = vld [vmem:[%s7133_s27 + $0xfc0] sm:$0xf]  ;;  %v6858_v26 = vld [vmem:[%s7133_s27 + $0xfcc] sm:$0xf0]  ;;  %v6192_v30 = vor.u32 %v6826_v22, %v6191_v21  ;;  %3506 = vmatpush.bf16.msrb.mxu0 %v5936_v28 }
  0xa3   : > { %v5919_v31 = vld [vmem:[%s7133_s27 + $0xca0] sm:$0xf]  ;;  %v6758_v32 = vld [vmem:[%s7133_s27 + $0xcac] sm:$0xf0]  ;;  %v6320_v35 = vor.u32 %v6858_v26, %v6319_v25  ;;  %3519 = vmatpush.bf16.msrb.mxu1 %v6064_v29 }
  0xa4   : > { %v6047_v33 = vld [vmem:[%s7133_s27 + $0xda0] sm:$0xf]  ;;  %v6790_v36 = vld [vmem:[%s7133_s27 + $0xdac] sm:$0xf0]  ;;  %v5920_v44 = vor.u32 %v6758_v32, %v5919_v31  ;;  %3532 = vmatpush.bf16.msrb.mxu2 %v6192_v30 }
  0xa5   : > { %v6175_v39 = vld [vmem:[%s7133_s27 + $0xea0] sm:$0xf]  ;;  %v6822_v41 = vld [vmem:[%s7133_s27 + $0xeac] sm:$0xf0]  ;;  %v6048_v45 = vor.u32 %v6790_v36, %v6047_v33  ;;  %3545 = vmatpush.bf16.msrb.mxu3 %v6320_v35 }
  0xa6   : > { %v6303_v42 = vld [vmem:[%s7133_s27 + $0xfa0] sm:$0xf]  ;;  %v6854_v43 = vld [vmem:[%s7133_s27 + $0xfac] sm:$0xf0]  ;;  %v6176_v46 = vor.u32 %v6822_v41, %v6175_v39  ;;  %3507 = vmatpush.bf16.msrb.mxu0 %v5920_v44 }
  0xa7   : > { %v5903_v47 = vld [vmem:[%s7133_s27 + $0xc80] sm:$0xf]  ;;  %v6754_v48 = vld [vmem:[%s7133_s27 + $0xc8c] sm:$0xf0]  ;;  %v6304_v50 = vor.u32 %v6854_v43, %v6303_v42  ;;  %3520 = vmatpush.bf16.msrb.mxu1 %v6048_v45 }
  0xa8   : > { %v6031_v49 = vld [vmem:[%s7133_s27 + $0xd80] sm:$0xf]  ;;  %v6786_v51 = vld [vmem:[%s7133_s27 + $0xd8c] sm:$0xf0]  ;;  %v5904_v56 = vor.u32 %v6754_v48, %v5903_v47  ;;  %3533 = vmatpush.bf16.msrb.mxu2 %v6176_v46 }
  0xa9   : > { %v6159_v52 = vld [vmem:[%s7133_s27 + $0xe80] sm:$0xf]  ;;  %v6818_v53 = vld [vmem:[%s7133_s27 + $0xe8c] sm:$0xf0]  ;;  %v6032_v57 = vor.u32 %v6786_v51, %v6031_v49  ;;  %3546 = vmatpush.bf16.msrb.mxu3 %v6304_v50 }
  0xaa   : > { %v6287_v54 = vld [vmem:[%s7133_s27 + $0xf80] sm:$0xf]  ;;  %v6850_v55 = vld [vmem:[%s7133_s27 + $0xf8c] sm:$0xf0]  ;;  %v6160_v58 = vor.u32 %v6818_v53, %v6159_v52  ;;  %3508 = vmatpush.bf16.msrb.mxu0 %v5904_v56  ;;  %v6380_v52 = vld [vmem:[%s7133_s27 + $0xe4] sm:$0xf] }
  0xab   : > { %v5887_v59 = vld [vmem:[%s7133_s27 + $0xc60] sm:$0xf]  ;;  %v6750_v60 = vld [vmem:[%s7133_s27 + $0xc6c] sm:$0xf0]  ;;  %v6288_v62 = vor.u32 %v6850_v55, %v6287_v54  ;;  %3521 = vmatpush.bf16.msrb.mxu1 %v6032_v57  ;;  %v4417_v53 = vld [vmem:[%s7133_s27 + $0xf0] sm:$0xf0] }
  0xac   : > { %v6015_v61 = vld [vmem:[%s7133_s27 + $0xd60] sm:$0xf]  ;;  %v6782_v0 = vld [vmem:[%s7133_s27 + $0xd6c] sm:$0xf0]  ;;  %v5888_v5 = vor.u32 %v6750_v60, %v5887_v59  ;;  %3534 = vmatpush.bf16.msrb.mxu2 %v6160_v58  ;;  %v6412_v54 = vld [vmem:[%s7133_s27 + $0x1e4] sm:$0xf] }
  0xad   : > { %v6143_v1 = vld [vmem:[%s7133_s27 + $0xe60] sm:$0xf]  ;;  %v6814_v2 = vld [vmem:[%s7133_s27 + $0xe6c] sm:$0xf0]  ;;  %v6016_v6 = vor.u32 %v6782_v0, %v6015_v61  ;;  %3547 = vmatpush.bf16.msrb.mxu3 %v6288_v62  ;;  %v4545_v56 = vld [vmem:[%s7133_s27 + $0x1f0] sm:$0xf0] }
  0xae   : > { %v6271_v3 = vld [vmem:[%s7133_s27 + $0xf60] sm:$0xf]  ;;  %v6846_v4 = vld [vmem:[%s7133_s27 + $0xf6c] sm:$0xf0]  ;;  %v6144_v7 = vor.u32 %v6814_v2, %v6143_v1  ;;  %3509 = vmatpush.bf16.msrb.mxu0 %v5888_v5  ;;  %v6444_v57 = vld [vmem:[%s7133_s27 + $0x2e4] sm:$0xf]  ;;  %v4420_v2 = vor.u32 %v6380_v52, %v4417_v53 }
  0xaf   : > { %v5871_v8 = vld [vmem:[%s7133_s27 + $0xc40] sm:$0xf]  ;;  %v6746_v10 = vld [vmem:[%s7133_s27 + $0xc4c] sm:$0xf0]  ;;  %v6272_v12 = vor.u32 %v6846_v4, %v6271_v3  ;;  %3522 = vmatpush.bf16.msrb.mxu1 %v6016_v6  ;;  %v4673_v58 = vld [vmem:[%s7133_s27 + $0x2f0] sm:$0xf0]  ;;  %v4548_v6 = vor.u32 %v6412_v54, %v4545_v56 }
  0xb0   : > { %v5999_v11 = vld [vmem:[%s7133_s27 + $0xd40] sm:$0xf]  ;;  %v6778_v13 = vld [vmem:[%s7133_s27 + $0xd4c] sm:$0xf0]  ;;  %v5872_v21 = vor.u32 %v6746_v10, %v5871_v8  ;;  %3535 = vmatpush.bf16.msrb.mxu2 %v6144_v7  ;;  %v6476_v61 = vld [vmem:[%s7133_s27 + $0x3e4] sm:$0xf]  ;;  %v4676_v7 = vor.u32 %v6444_v57, %v4673_v58 }
  0xb1   : > { %v6127_v14 = vld [vmem:[%s7133_s27 + $0xe40] sm:$0xf]  ;;  %v6810_v15 = vld [vmem:[%s7133_s27 + $0xe4c] sm:$0xf0]  ;;  %v6000_v22 = vor.u32 %v6778_v13, %v5999_v11  ;;  %3548 = vmatpush.bf16.msrb.mxu3 %v6272_v12  ;;  %v4801_v62 = vld [vmem:[%s7133_s27 + $0x3f0] sm:$0xf0] }
  0xb2   : > { %v6255_v18 = vld [vmem:[%s7133_s27 + $0xf40] sm:$0xf]  ;;  %v6842_v20 = vld [vmem:[%s7133_s27 + $0xf4c] sm:$0xf0]  ;;  %v6128_v25 = vor.u32 %v6810_v15, %v6127_v14  ;;  %3510 = vmatpush.bf16.msrb.mxu0 %v5872_v21  ;;  %v248_v4 = vld [vmem:[%s8434_s0 + $0x68] sm:$0xff]  ;;  %v4804_v12 = vor.u32 %v6476_v61, %v4801_v62 }
  0xb3   : > { %v5855_v26 = vld [vmem:[%s7133_s27 + $0xc20] sm:$0xf]  ;;  %v6742_v28 = vld [vmem:[%s7133_s27 + $0xc2c] sm:$0xf0]  ;;  %v6256_v30 = vor.u32 %v6842_v20, %v6255_v18  ;;  %3523 = vmatpush.bf16.msrb.mxu1 %v6000_v22  ;;  %v250_v5 = vld [vmem:[%s8434_s0 + $0x78] sm:$0xff]  ;;  %v7503_v21 = vpack.c.bf16 %v248_v4, %v248_v4 }
  0xb4   : > { %v5983_v29 = vld [vmem:[%s7133_s27 + $0xd20] sm:$0xf]  ;;  %v6774_v31 = vld [vmem:[%s7133_s27 + $0xd2c] sm:$0xf0]  ;;  %v5856_v39 = vor.u32 %v6742_v28, %v5855_v26  ;;  %3536 = vmatpush.bf16.msrb.mxu2 %v6128_v25  ;;  %v6376_v8 = vld [vmem:[%s7133_s27 + $0xc4] sm:$0xf]  ;;  %v7507_v26 = vpack.c.bf16 %v250_v5, %v250_v5 }
  0xb5   : > { %v6111_v32 = vld [vmem:[%s7133_s27 + $0xe20] sm:$0xf]  ;;  %v6806_v33 = vld [vmem:[%s7133_s27 + $0xe2c] sm:$0xf0]  ;;  %v5984_v43 = vor.u32 %v6774_v31, %v5983_v29  ;;  %3549 = vmatpush.bf16.msrb.mxu3 %v6256_v30  ;;  %v4401_v10 = vld [vmem:[%s7133_s27 + $0xd0] sm:$0xf0] }
  0xb6   : > { %v6239_v35 = vld [vmem:[%s7133_s27 + $0xf20] sm:$0xf]  ;;  %v6838_v36 = vld [vmem:[%s7133_s27 + $0xf2c] sm:$0xf0]  ;;  %v6112_v44 = vor.u32 %v6806_v33, %v6111_v32  ;;  %3511 = vmatpush.bf16.msrb.mxu0 %v5856_v39  ;;  %v6408_v11 = vld [vmem:[%s7133_s27 + $0x1c4] sm:$0xf]  ;;  %v4404_v28 = vor.u32 %v6376_v8, %v4401_v10 }
  0xb7   : > { %v5839_v41 = vld [vmem:[%s7133_s27 + $0xc00] sm:$0xf]  ;;  %v6738_v42 = vld [vmem:[%s7133_s27 + $0xc0c] sm:$0xf0]  ;;  %v6240_v48 = vor.u32 %v6838_v36, %v6239_v35  ;;  %3524 = vmatpush.bf16.msrb.mxu1 %v5984_v43  ;;  %v4529_v14 = vld [vmem:[%s7133_s27 + $0x1d0] sm:$0xf0] }
  0xb8   : > { %v5967_v45 = vld [vmem:[%s7133_s27 + $0xd00] sm:$0xf]  ;;  %v6770_v46 = vld [vmem:[%s7133_s27 + $0xd0c] sm:$0xf0]  ;;  %v5840_v55 = vor.u32 %v6738_v42, %v5839_v41  ;;  %3537 = vmatpush.bf16.msrb.mxu2 %v6112_v44  ;;  %v6440_v15 = vld [vmem:[%s7133_s27 + $0x2c4] sm:$0xf]  ;;  %v4532_v29 = vor.u32 %v6408_v11, %v4529_v14 }
  0xb9   : > { %v6095_v47 = vld [vmem:[%s7133_s27 + $0xe00] sm:$0xf]  ;;  %v6802_v49 = vld [vmem:[%s7133_s27 + $0xe0c] sm:$0xf0]  ;;  %v5968_v59 = vor.u32 %v6770_v46, %v5967_v45  ;;  %3550 = vmatpush.bf16.msrb.mxu3 %v6240_v48  ;;  %v4657_v18 = vld [vmem:[%s7133_s27 + $0x2d0] sm:$0xf0] }
  0xba   : > { %v6223_v50 = vld [vmem:[%s7133_s27 + $0xf00] sm:$0xf]  ;;  %v6834_v51 = vld [vmem:[%s7133_s27 + $0xf0c] sm:$0xf0]  ;;  %v6096_v60 = vor.u32 %v6802_v49, %v6095_v47  ;;  %3512 = vmatpush.bf16.msrb.mxu0 %v5840_v55  ;;  %v6472_v22 = vld [vmem:[%s7133_s27 + $0x3c4] sm:$0xf]  ;;  %v4660_v30 = vor.u32 %v6440_v15, %v4657_v18 }
  0xbb   : > { %v247_v0 = vld [vmem:[%s8434_s0 + $0x60] sm:$0xff]  ;;  %v6224_v1 = vor.u32 %v6834_v51, %v6223_v50  ;;  %v249_v3 = vld [vmem:[%s8434_s0 + $0x70] sm:$0xff]  ;;  %3525 = vmatpush.bf16.msrb.mxu1 %v5968_v59 }
  0xbc   : > { %v7496_v13 = vpack.c.bf16 %v247_v0, %v247_v0  ;;  %3538 = vmatpush.bf16.msrb.mxu2 %v6096_v60  ;;  %v7501_v20 = vpack.c.bf16 %v249_v3, %v249_v3  ;;  %v4785_v25 = vld [vmem:[%s7133_s27 + $0x3d0] sm:$0xf0]  ;;  %v6372_v31 = vld [vmem:[%s7133_s27 + $0xa4] sm:$0xf] }
  0xbd   : > { %3551 = vmatpush.bf16.msrb.mxu3 %v6224_v1  ;;  %v4385_v32 = vld [vmem:[%s7133_s27 + $0xb0] sm:$0xf0]  ;;  %v6404_v33 = vld [vmem:[%s7133_s27 + $0x1a4] sm:$0xf]  ;;  %v4788_v35 = vor.u32 %v6472_v22, %v4785_v25 }
  0xbe   : > { %3557 = vmatpush.bf16.msra.mxu0 %v4420_v2  ;;  %v4513_v36 = vld [vmem:[%s7133_s27 + $0x1b0] sm:$0xf0]  ;;  %v6436_v39 = vld [vmem:[%s7133_s27 + $0x2a4] sm:$0xf]  ;;  %3526 = vmatmul.bf16.vlgmr.msrb.gmra.mxu1 %v7503_v21  ;;  %v4388_v44 = vor.u32 %v6372_v31, %v4385_v32 }
  0xbf   : > { %3570 = vmatpush.bf16.msra.mxu1 %v4548_v6  ;;  %3513 = vmatmul.bf16.vlgmr.msrb.gmra.mxu0 %v7496_v13  ;;  %v4641_v41 = vld [vmem:[%s7133_s27 + $0x2b0] sm:$0xf0]  ;;  %v6468_v42 = vld [vmem:[%s7133_s27 + $0x3a4] sm:$0xf]  ;;  %v4516_v45 = vor.u32 %v6404_v33, %v4513_v36 }
  0xc0   : > { %3583 = vmatpush.bf16.msra.mxu2 %v4676_v7  ;;  %v4769_v43 = vld [vmem:[%s7133_s27 + $0x3b0] sm:$0xf0]  ;;  %3552 = vmatmul.bf16.vlgmr.msrb.gmra.mxu3 %v7507_v26  ;;  %v4644_v46 = vor.u32 %v6436_v39, %v4641_v41  ;;  %v6368_v47 = vld [vmem:[%s7133_s27 + $0x84] sm:$0xf] }
  0xc1   : > { %3596 = vmatpush.bf16.msra.mxu3 %v4804_v12  ;;  %3539 = vmatmul.bf16.vlgmr.msrb.gmra.mxu2 %v7501_v20  ;;  %v4369_v48 = vld [vmem:[%s7133_s27 + $0x90] sm:$0xf0]  ;;  %v6400_v49 = vld [vmem:[%s7133_s27 + $0x184] sm:$0xf]  ;;  %v4772_v50 = vor.u32 %v6468_v42, %v4769_v43 }
  0xc2   : > { %3558 = vmatpush.bf16.msra.mxu0 %v4404_v28  ;;  %v4497_v51 = vld [vmem:[%s7133_s27 + $0x190] sm:$0xf0]  ;;  %v6432_v52 = vld [vmem:[%s7133_s27 + $0x284] sm:$0xf]  ;;  %v4372_v56 = vor.u32 %v6368_v47, %v4369_v48 }
  0xc3   : > { %3571 = vmatpush.bf16.msra.mxu1 %v4532_v29  ;;  %v4625_v53 = vld [vmem:[%s7133_s27 + $0x290] sm:$0xf0]  ;;  %v6464_v54 = vld [vmem:[%s7133_s27 + $0x384] sm:$0xf]  ;;  %v4500_v57 = vor.u32 %v6400_v49, %v4497_v51 }
  0xc4   : > { %3584 = vmatpush.bf16.msra.mxu2 %v4660_v30  ;;  %v4753_v55 = vld [vmem:[%s7133_s27 + $0x390] sm:$0xf0]  ;;  %v4628_v58 = vor.u32 %v6432_v52, %v4625_v53  ;;  %v6364_v59 = vld [vmem:[%s7133_s27 + $0x64] sm:$0xf] }
  0xc5   : > { %3597 = vmatpush.bf16.msra.mxu3 %v4788_v35  ;;  %v4353_v60 = vld [vmem:[%s7133_s27 + $0x70] sm:$0xf0]  ;;  %v6396_v61 = vld [vmem:[%s7133_s27 + $0x164] sm:$0xf]  ;;  %v4756_v62 = vor.u32 %v6464_v54, %v4753_v55 }
  0xc6   : > { %3559 = vmatpush.bf16.msra.mxu0 %v4388_v44  ;;  %v4481_v0 = vld [vmem:[%s7133_s27 + $0x170] sm:$0xf0]  ;;  %v6428_v1 = vld [vmem:[%s7133_s27 + $0x264] sm:$0xf]  ;;  %v4356_v5 = vor.u32 %v6364_v59, %v4353_v60 }
  0xc7   : > { %3572 = vmatpush.bf16.msra.mxu1 %v4516_v45  ;;  %v4609_v2 = vld [vmem:[%s7133_s27 + $0x270] sm:$0xf0]  ;;  %v6460_v3 = vld [vmem:[%s7133_s27 + $0x364] sm:$0xf]  ;;  %v4484_v6 = vor.u32 %v6396_v61, %v4481_v0 }
  0xc8   : > { %3585 = vmatpush.bf16.msra.mxu2 %v4644_v46  ;;  %v4737_v4 = vld [vmem:[%s7133_s27 + $0x370] sm:$0xf0]  ;;  %v4612_v7 = vor.u32 %v6428_v1, %v4609_v2  ;;  %v6360_v8 = vld [vmem:[%s7133_s27 + $0x44] sm:$0xf] }
  0xc9   : > { %3598 = vmatpush.bf16.msra.mxu3 %v4772_v50  ;;  %v4337_v10 = vld [vmem:[%s7133_s27 + $0x50] sm:$0xf0]  ;;  %v6392_v11 = vld [vmem:[%s7133_s27 + $0x144] sm:$0xf]  ;;  %v4740_v12 = vor.u32 %v6460_v3, %v4737_v4 }
  0xca   : > { %3560 = vmatpush.bf16.msra.mxu0 %v4372_v56  ;;  %v4465_v14 = vld [vmem:[%s7133_s27 + $0x150] sm:$0xf0]  ;;  %v6424_v15 = vld [vmem:[%s7133_s27 + $0x244] sm:$0xf]  ;;  %v4340_v28 = vor.u32 %v6360_v8, %v4337_v10 }
  0xcb   : > { %3573 = vmatpush.bf16.msra.mxu1 %v4500_v57  ;;  %v4593_v18 = vld [vmem:[%s7133_s27 + $0x250] sm:$0xf0]  ;;  %v6456_v22 = vld [vmem:[%s7133_s27 + $0x344] sm:$0xf]  ;;  %v4468_v29 = vor.u32 %v6392_v11, %v4465_v14 }
  0xcc   : > { %3586 = vmatpush.bf16.msra.mxu2 %v4628_v58  ;;  %v4721_v25 = vld [vmem:[%s7133_s27 + $0x350] sm:$0xf0]  ;;  %v4596_v30 = vor.u32 %v6424_v15, %v4593_v18  ;;  %v6356_v31 = vld [vmem:[%s7133_s27 + $0x24] sm:$0xf] }
  0xcd   : > { %3599 = vmatpush.bf16.msra.mxu3 %v4756_v62  ;;  %v4321_v32 = vld [vmem:[%s7133_s27 + $0x30] sm:$0xf0]  ;;  %v6388_v33 = vld [vmem:[%s7133_s27 + $0x124] sm:$0xf]  ;;  %v4724_v35 = vor.u32 %v6456_v22, %v4721_v25 }
  0xce   : > { %3561 = vmatpush.bf16.msra.mxu0 %v4356_v5  ;;  %v4449_v36 = vld [vmem:[%s7133_s27 + $0x130] sm:$0xf0]  ;;  %v6420_v39 = vld [vmem:[%s7133_s27 + $0x224] sm:$0xf]  ;;  %v4324_v44 = vor.u32 %v6356_v31, %v4321_v32 }
  0xcf   : > { %3574 = vmatpush.bf16.msra.mxu1 %v4484_v6  ;;  %v4577_v41 = vld [vmem:[%s7133_s27 + $0x230] sm:$0xf0]  ;;  %v6452_v42 = vld [vmem:[%s7133_s27 + $0x324] sm:$0xf]  ;;  %v4452_v47 = vor.u32 %v6388_v33, %v4449_v36 }
  0xd0   : > { %3587 = vmatpush.bf16.msra.mxu2 %v4612_v7  ;;  %v4705_v43 = vld [vmem:[%s7133_s27 + $0x330] sm:$0xf0]  ;;  %v6352_v45 = vld [vmem:[%s7133_s27 + $0x4] sm:$0xf]  ;;  %v4580_v48 = vor.u32 %v6420_v39, %v4577_v41 }
  0xd1   : > { %3600 = vmatpush.bf16.msra.mxu3 %v4740_v12  ;;  %v4305_v46 = vld [vmem:[%s7133_s27 + $0x10] sm:$0xf0]  ;;  %v6384_v49 = vld [vmem:[%s7133_s27 + $0x104] sm:$0xf]  ;;  %v4708_v52 = vor.u32 %v6452_v42, %v4705_v43 }
  0xd2   : > { %3562 = vmatpush.bf16.msra.mxu0 %v4340_v28  ;;  %v4433_v50 = vld [vmem:[%s7133_s27 + $0x110] sm:$0xf0]  ;;  %v6416_v51 = vld [vmem:[%s7133_s27 + $0x204] sm:$0xf]  ;;  %v4308_v59 = vor.u32 %v6352_v45, %v4305_v46 }
  0xd3   : > { %3575 = vmatpush.bf16.msra.mxu1 %v4468_v29  ;;  %v4561_v53 = vld [vmem:[%s7133_s27 + $0x210] sm:$0xf0]  ;;  %v6448_v54 = vld [vmem:[%s7133_s27 + $0x304] sm:$0xf]  ;;  %v4436_v0 = vor.u32 %v6384_v49, %v4433_v50 }
  0xd4   : > { %3588 = vmatpush.bf16.msra.mxu2 %v4596_v30  ;;  %v4689_v55 = vld [vmem:[%s7133_s27 + $0x310] sm:$0xf0]  ;;  %v6508_v56 = vld [vmem:[%s7133_s27 + $0x4e4] sm:$0xf]  ;;  %v4564_v1 = vor.u32 %v6416_v51, %v4561_v53 }
  0xd5   : > { %3601 = vmatpush.bf16.msra.mxu3 %v4724_v35  ;;  %v4929_v57 = vld [vmem:[%s7133_s27 + $0x4f0] sm:$0xf0]  ;;  %v6540_v58 = vld [vmem:[%s7133_s27 + $0x5e4] sm:$0xf]  ;;  %v4692_v4 = vor.u32 %v6448_v54, %v4689_v55 }
  0xd6   : > { %3563 = vmatpush.bf16.msra.mxu0 %v4324_v44  ;;  %v5057_v60 = vld [vmem:[%s7133_s27 + $0x5f0] sm:$0xf0]  ;;  %v6572_v61 = vld [vmem:[%s7133_s27 + $0x6e4] sm:$0xf]  ;;  %v4932_v5 = vor.u32 %v6508_v56, %v4929_v57 }
  0xd7   : > { %v5185_v62 = vld [vmem:[%s7133_s27 + $0x6f0] sm:$0xf0]  ;;  %3576 = vmatpush.bf16.msra.mxu1 %v4452_v47  ;;  %v6604_v2 = vld [vmem:[%s7133_s27 + $0x7e4] sm:$0xf]  ;;  %v5060_v6 = vor.u32 %v6540_v58, %v5057_v60 }
  0xd8   : > { %3589 = vmatpush.bf16.msra.mxu2 %v4580_v48  ;;  %v5313_v3 = vld [vmem:[%s7133_s27 + $0x7f0] sm:$0xf0]  ;;  %v5188_v7 = vor.u32 %v6572_v61, %v5185_v62  ;;  %v6504_v8 = vld [vmem:[%s7133_s27 + $0x4c4] sm:$0xf] }
  0xd9   : > { %3602 = vmatpush.bf16.msra.mxu3 %v4708_v52  ;;  %v4913_v10 = vld [vmem:[%s7133_s27 + $0x4d0] sm:$0xf0]  ;;  %v6536_v11 = vld [vmem:[%s7133_s27 + $0x5c4] sm:$0xf]  ;;  %v5316_v12 = vor.u32 %v6604_v2, %v5313_v3 }
  0xda   : > { %3564 = vmatpush.bf16.msra.mxu0 %v4308_v59  ;;  %v5041_v14 = vld [vmem:[%s7133_s27 + $0x5d0] sm:$0xf0]  ;;  %v6568_v15 = vld [vmem:[%s7133_s27 + $0x6c4] sm:$0xf]  ;;  %v4916_v28 = vor.u32 %v6504_v8, %v4913_v10 }
  0xdb   : > { %v5169_v18 = vld [vmem:[%s7133_s27 + $0x6d0] sm:$0xf0]  ;;  %3577 = vmatpush.bf16.msra.mxu1 %v4436_v0  ;;  %v6600_v22 = vld [vmem:[%s7133_s27 + $0x7c4] sm:$0xf]  ;;  %v5044_v29 = vor.u32 %v6536_v11, %v5041_v14 }
  0xdc   : > { %3590 = vmatpush.bf16.msra.mxu2 %v4564_v1  ;;  %v5297_v25 = vld [vmem:[%s7133_s27 + $0x7d0] sm:$0xf0]  ;;  %v5172_v30 = vor.u32 %v6568_v15, %v5169_v18  ;;  %v6500_v31 = vld [vmem:[%s7133_s27 + $0x4a4] sm:$0xf] }
  0xdd   : > { %3603 = vmatpush.bf16.msra.mxu3 %v4692_v4  ;;  %v4897_v32 = vld [vmem:[%s7133_s27 + $0x4b0] sm:$0xf0]  ;;  %v6532_v33 = vld [vmem:[%s7133_s27 + $0x5a4] sm:$0xf]  ;;  %v5300_v35 = vor.u32 %v6600_v22, %v5297_v25  ;;  %3565 = vmatmul.bf16.vlgmr.msra.gmra.mxu0 %v7245_v9 }
  0xde   : > { %3609 = vmatpush.bf16.msrb.mxu0 %v4932_v5  ;;  %v5025_v36 = vld [vmem:[%s7133_s27 + $0x5b0] sm:$0xf0]  ;;  %v6564_v39 = vld [vmem:[%s7133_s27 + $0x6a4] sm:$0xf]  ;;  %v4900_v44 = vor.u32 %v6500_v31, %v4897_v32  ;;  %3578 = vmatmul.bf16.vlgmr.msra.gmra.mxu1 %v7258_v17  ;;  %v3371_v32 = vpop.f32.mrf.mxu1 }
  0xdf   : > { %3622 = vmatpush.bf16.msrb.mxu1 %v5060_v6  ;;  %v5153_v41 = vld [vmem:[%s7133_s27 + $0x6b0] sm:$0xf0]  ;;  %3591 = vmatmul.bf16.vlgmr.msra.gmra.mxu2 %v7234_v63  ;;  %v6596_v42 = vld [vmem:[%s7133_s27 + $0x7a4] sm:$0xf]  ;;  %v5028_v46 = vor.u32 %v6532_v33, %v5025_v36 }
  0xe0   : > { %3635 = vmatpush.bf16.msrb.mxu2 %v5188_v7  ;;  %v5281_v43 = vld [vmem:[%s7133_s27 + $0x7b0] sm:$0xf0]  ;;  %3604 = vmatmul.bf16.vlgmr.msra.gmra.mxu3 %v7256_v16  ;;  %v6496_v45 = vld [vmem:[%s7133_s27 + $0x484] sm:$0xf]  ;;  %v5156_v47 = vor.u32 %v6564_v39, %v5153_v41 }
  0xe1   : > { %3648 = vmatpush.bf16.msrb.mxu3 %v5316_v12  ;;  %v4881_v48 = vld [vmem:[%s7133_s27 + $0x490] sm:$0xf0]  ;;  %v6528_v49 = vld [vmem:[%s7133_s27 + $0x584] sm:$0xf]  ;;  %v5284_v51 = vor.u32 %v6596_v42, %v5281_v43 }
  0xe2   : > { %3610 = vmatpush.bf16.msrb.mxu0 %v4916_v28  ;;  %v5009_v50 = vld [vmem:[%s7133_s27 + $0x590] sm:$0xf0]  ;;  %v6560_v52 = vld [vmem:[%s7133_s27 + $0x684] sm:$0xf]  ;;  %v4884_v57 = vor.u32 %v6496_v45, %v4881_v48 }
  0xe3   : > { %3623 = vmatpush.bf16.msrb.mxu1 %v5044_v29  ;;  %v5137_v53 = vld [vmem:[%s7133_s27 + $0x690] sm:$0xf0]  ;;  %v779_v54 = vld [vmem:[%s7139_s5] sm:$0xf]  ;;  %v5012_v59 = vor.u32 %v6528_v49, %v5009_v50 }
  0xe4   : > { %3636 = vmatpush.bf16.msrb.mxu2 %v5172_v30  ;;  %v6592_v55 = vld [vmem:[%s7133_s27 + $0x784] sm:$0xf]  ;;  %v5265_v56 = vld [vmem:[%s7133_s27 + $0x790] sm:$0xf0]  ;;  %v5140_v60 = vor.u32 %v6560_v52, %v5137_v53  ;;  %v781_v0 = vperm.slane %v779_v54, 0  ;;  %v7624_v52 = vpop.f32.mrf.mxu3 }
  0xe5   : > { %3649 = vmatpush.bf16.msrb.mxu3 %v5300_v35  ;;  %v6492_v58 = vld [vmem:[%s7133_s27 + $0x464] sm:$0xf]  ;;  %v4865_v61 = vld [vmem:[%s7133_s27 + $0x470] sm:$0xf0]  ;;  %v5268_v1 = vor.u32 %v6592_v55, %v5265_v56  ;;  %v3358_v8 = vpop.f32.mrf.mxu0 }
  0xe6   : > { %3611 = vmatpush.bf16.msrb.mxu0 %v4900_v44  ;;  %v6524_v62 = vld [vmem:[%s7133_s27 + $0x564] sm:$0xf]  ;;  %v4993_v2 = vld [vmem:[%s7133_s27 + $0x570] sm:$0xf0]  ;;  %v4868_v7 = vor.u32 %v6492_v58, %v4865_v61  ;;  %v3359_v18 = vadd.f32 %v3358_v8, %v781_v0 }
  0xe7   : > { %3624 = vmatpush.bf16.msrb.mxu1 %v5028_v46  ;;  %v6556_v3 = vld [vmem:[%s7133_s27 + $0x664] sm:$0xf]  ;;  %v5121_v4 = vld [vmem:[%s7133_s27 + $0x670] sm:$0xf0]  ;;  %v4996_v10 = vor.u32 %v6524_v62, %v4993_v2  ;;  %v3384_v33 = vpop.f32.mrf.mxu2 }
  0xe8   : > { %3637 = vmatpush.bf16.msrb.mxu2 %v5156_v47  ;;  %v6588_v5 = vld [vmem:[%s7133_s27 + $0x764] sm:$0xf]  ;;  %v5249_v6 = vld [vmem:[%s7133_s27 + $0x770] sm:$0xf0]  ;;  %v5124_v11 = vor.u32 %v6556_v3, %v5121_v4  ;;  %v3372_v36 = vadd.f32 %v3371_v32, %v3359_v18 }
  0xe9   : > { %3650 = vmatpush.bf16.msrb.mxu3 %v5284_v51  ;;  %v6488_v12 = vld [vmem:[%s7133_s27 + $0x444] sm:$0xf]  ;;  %v4849_v14 = vld [vmem:[%s7133_s27 + $0x450] sm:$0xf0]  ;;  %v5252_v22 = vor.u32 %v6588_v5, %v5249_v6  ;;  %v3373_v6 = vpop.f32.mrf.mxu1 }
  0xea   : > { %3612 = vmatpush.bf16.msrb.mxu0 %v4884_v57  ;;  %v6520_v15 = vld [vmem:[%s7133_s27 + $0x544] sm:$0xf]  ;;  %v4977_v25 = vld [vmem:[%s7133_s27 + $0x550] sm:$0xf0]  ;;  %v4852_v35 = vor.u32 %v6488_v12, %v4849_v14  ;;  %v7620_v49 = vadd.f32 %v3384_v33, %v3372_v36 }
  0xeb   : > { %3625 = vmatpush.bf16.msrb.mxu1 %v5012_v59  ;;  %v6552_v28 = vld [vmem:[%s7133_s27 + $0x644] sm:$0xf]  ;;  %v5105_v29 = vld [vmem:[%s7133_s27 + $0x650] sm:$0xf0]  ;;  %v4980_v39 = vor.u32 %v6520_v15, %v4977_v25 }
  0xec   : > { %3638 = vmatpush.bf16.msrb.mxu2 %v5140_v60  ;;  %v6584_v30 = vld [vmem:[%s7133_s27 + $0x744] sm:$0xf]  ;;  %v5233_v31 = vld [vmem:[%s7133_s27 + $0x750] sm:$0xf0]  ;;  %v5108_v41 = vor.u32 %v6552_v28, %v5105_v29 }
  0xed   : > { %3651 = vmatpush.bf16.msrb.mxu3 %v5268_v1  ;;  %v6484_v42 = vld [vmem:[%s7133_s27 + $0x424] sm:$0xf]  ;;  %v4833_v43 = vld [vmem:[%s7133_s27 + $0x430] sm:$0xf0]  ;;  %v5236_v45 = vor.u32 %v6584_v30, %v5233_v31  ;;  %v3360_v56 = vpop.f32.mrf.mxu0 }
  0xee   : > { %3613 = vmatpush.bf16.msrb.mxu0 %v4868_v7  ;;  %v6516_v44 = vld [vmem:[%s7133_s27 + $0x524] sm:$0xf]  ;;  %v4961_v46 = vld [vmem:[%s7133_s27 + $0x530] sm:$0xf0]  ;;  %v4836_v53 = vor.u32 %v6484_v42, %v4833_v43 }
  0xef   : > { %3626 = vmatpush.bf16.msrb.mxu1 %v4996_v10  ;;  %v6548_v47 = vld [vmem:[%s7133_s27 + $0x624] sm:$0xf]  ;;  %v5089_v48 = vld [vmem:[%s7133_s27 + $0x630] sm:$0xf0]  ;;  %v4964_v57 = vor.u32 %v6516_v44, %v4961_v46  ;;  %v3386_v7 = vpop.f32.mrf.mxu2 }
  0xf0   : > { %3639 = vmatpush.bf16.msrb.mxu2 %v5124_v11  ;;  %v6580_v50 = vld [vmem:[%s7133_s27 + $0x724] sm:$0xf]  ;;  %v5217_v51 = vld [vmem:[%s7133_s27 + $0x730] sm:$0xf0]  ;;  %v5092_v58 = vor.u32 %v6548_v47, %v5089_v48 }
  0xf1   : > { %3652 = vmatpush.bf16.msrb.mxu3 %v5252_v22  ;;  %v6480_v54 = vld [vmem:[%s7133_s27 + $0x404] sm:$0xf]  ;;  %v4817_v55 = vld [vmem:[%s7133_s27 + $0x410] sm:$0xf0]  ;;  %v5220_v62 = vor.u32 %v6580_v50, %v5217_v51 }
  0xf2   : > { %3614 = vmatpush.bf16.msrb.mxu0 %v4852_v35  ;;  %v6512_v59 = vld [vmem:[%s7133_s27 + $0x504] sm:$0xf]  ;;  %v4945_v60 = vld [vmem:[%s7133_s27 + $0x510] sm:$0xf0]  ;;  %v4820_v8 = vor.u32 %v6480_v54, %v4817_v55  ;;  %v3399_v35 = vpop.f32.mrf.mxu3 }
  0xf3   : > { %3627 = vmatpush.bf16.msrb.mxu1 %v4980_v39  ;;  %v6544_v61 = vld [vmem:[%s7133_s27 + $0x604] sm:$0xf]  ;;  %v5073_v0 = vld [vmem:[%s7133_s27 + $0x610] sm:$0xf0]  ;;  %v4948_v14 = vor.u32 %v6512_v59, %v4945_v60 }
  0xf4   : > { %3640 = vmatpush.bf16.msrb.mxu2 %v5108_v41  ;;  %v6576_v1 = vld [vmem:[%s7133_s27 + $0x704] sm:$0xf]  ;;  %v5201_v2 = vld [vmem:[%s7133_s27 + $0x710] sm:$0xf0]  ;;  %v5076_v15 = vor.u32 %v6544_v61, %v5073_v0 }
  0xf5   : > { %3653 = vmatpush.bf16.msrb.mxu3 %v5236_v45  ;;  %v6636_v3 = vld [vmem:[%s7133_s27 + $0x8e4] sm:$0xf]  ;;  %v5441_v4 = vld [vmem:[%s7133_s27 + $0x8f0] sm:$0xf0]  ;;  %v5204_v25 = vor.u32 %v6576_v1, %v5201_v2 }
  0xf6   : > { %v6668_v5 = vld [vmem:[%s7133_s27 + $0x9e4] sm:$0xf]  ;;  %3615 = vmatpush.bf16.msrb.mxu0 %v4836_v53  ;;  %v5569_v10 = vld [vmem:[%s7133_s27 + $0x9f0] sm:$0xf0]  ;;  %v5444_v28 = vor.u32 %v6636_v3, %v5441_v4 }
  0xf7   : > { %v6700_v11 = vld [vmem:[%s7133_s27 + $0xae4] sm:$0xf]  ;;  %v5697_v12 = vld [vmem:[%s7133_s27 + $0xaf0] sm:$0xf0]  ;;  %3628 = vmatpush.bf16.msrb.mxu1 %v4964_v57  ;;  %v5572_v29 = vor.u32 %v6668_v5, %v5569_v10 }
  0xf8   : > { %3641 = vmatpush.bf16.msrb.mxu2 %v5092_v58  ;;  %v6732_v18 = vld [vmem:[%s7133_s27 + $0xbe4] sm:$0xf]  ;;  %v5825_v22 = vld [vmem:[%s7133_s27 + $0xbf0] sm:$0xf0]  ;;  %v5700_v30 = vor.u32 %v6700_v11, %v5697_v12 }
  0xf9   : > { %3654 = vmatpush.bf16.msrb.mxu3 %v5220_v62  ;;  %v6632_v31 = vld [vmem:[%s7133_s27 + $0x8c4] sm:$0xf]  ;;  %v5425_v32 = vld [vmem:[%s7133_s27 + $0x8d0] sm:$0xf0]  ;;  %v5828_v36 = vor.u32 %v6732_v18, %v5825_v22  ;;  %v7675_v22 = vpop.f32.mrf.mxu1 }
  0xfa   : > { %v6664_v33 = vld [vmem:[%s7133_s27 + $0x9c4] sm:$0xf]  ;;  %3616 = vmatpush.bf16.msrb.mxu0 %v4820_v8  ;;  %v5553_v39 = vld [vmem:[%s7133_s27 + $0x9d0] sm:$0xf0]  ;;  %v5428_v45 = vor.u32 %v6632_v31, %v5425_v32 }
  0xfb   : > { %v6696_v41 = vld [vmem:[%s7133_s27 + $0xac4] sm:$0xf]  ;;  %v5681_v42 = vld [vmem:[%s7133_s27 + $0xad0] sm:$0xf0]  ;;  %3629 = vmatpush.bf16.msrb.mxu1 %v4948_v14  ;;  %v5556_v46 = vor.u32 %v6664_v33, %v5553_v39 }
  0xfc   : > { %3642 = vmatpush.bf16.msrb.mxu2 %v5076_v15  ;;  %v6728_v43 = vld [vmem:[%s7133_s27 + $0xbc4] sm:$0xf]  ;;  %v5809_v44 = vld [vmem:[%s7133_s27 + $0xbd0] sm:$0xf0]  ;;  %v5684_v47 = vor.u32 %v6696_v41, %v5681_v42 }
  0xfd   : > { %3655 = vmatpush.bf16.msrb.mxu3 %v5204_v25  ;;  %v6628_v48 = vld [vmem:[%s7133_s27 + $0x8a4] sm:$0xf]  ;;  %v5409_v50 = vld [vmem:[%s7133_s27 + $0x8b0] sm:$0xf0]  ;;  %v5812_v53 = vor.u32 %v6728_v43, %v5809_v44  ;;  %3617 = vmatmul.bf16.vlgmr.msrb.gmra.mxu0 %v7327_v37 }
  0xfe   : > { %3661 = vmatpush.bf16.msra.mxu0 %v5444_v28  ;;  %v6660_v51 = vld [vmem:[%s7133_s27 + $0x9a4] sm:$0xf]  ;;  %v5537_v54 = vld [vmem:[%s7133_s27 + $0x9b0] sm:$0xf0]  ;;  %v5412_v59 = vor.u32 %v6628_v48, %v5409_v50  ;;  %3630 = vmatmul.bf16.vlgmr.msrb.gmra.mxu1 %v7331_v40  ;;  %v7670_v10 = vpop.f32.mrf.mxu0 }
  0xff   : > { %3674 = vmatpush.bf16.msra.mxu1 %v5572_v29  ;;  %3643 = vmatmul.bf16.vlgmr.msrb.gmra.mxu2 %v7323_v34  ;;  %v6692_v55 = vld [vmem:[%s7133_s27 + $0xaa4] sm:$0xf]  ;;  %v5665_v56 = vld [vmem:[%s7133_s27 + $0xab0] sm:$0xf0]  ;;  %v5540_v60 = vor.u32 %v6660_v51, %v5537_v54 }
 0x100   : > { %3687 = vmatpush.bf16.msra.mxu2 %v5700_v30  ;;  %3656 = vmatmul.bf16.vlgmr.msrb.gmra.mxu3 %v7329_v38  ;;  %v6724_v57 = vld [vmem:[%s7133_s27 + $0xba4] sm:$0xf]  ;;  %v5793_v58 = vld [vmem:[%s7133_s27 + $0xbb0] sm:$0xf0]  ;;  %v5668_v61 = vor.u32 %v6692_v55, %v5665_v56 }
 0x101   : > { %3700 = vmatpush.bf16.msra.mxu3 %v5828_v36  ;;  %v6624_v62 = vld [vmem:[%s7133_s27 + $0x884] sm:$0xf]  ;;  %v5393_v0 = vld [vmem:[%s7133_s27 + $0x890] sm:$0xf0]  ;;  %v5796_v2 = vor.u32 %v6724_v57, %v5793_v58  ;;  %v7690_v48 = vpop.f32.mrf.mxu3 }
 0x102   : > { %3662 = vmatpush.bf16.msra.mxu0 %v5428_v45  ;;  %v6656_v1 = vld [vmem:[%s7133_s27 + $0x984] sm:$0xf]  ;;  %v5521_v3 = vld [vmem:[%s7133_s27 + $0x990] sm:$0xf0]  ;;  %v5396_v8 = vor.u32 %v6624_v62, %v5393_v0 }
 0x103   : > { %3675 = vmatpush.bf16.msra.mxu1 %v5556_v46  ;;  %v6688_v4 = vld [vmem:[%s7133_s27 + $0xa84] sm:$0xf]  ;;  %v5649_v5 = vld [vmem:[%s7133_s27 + $0xa90] sm:$0xf0]  ;;  %v5524_v11 = vor.u32 %v6656_v1, %v5521_v3  ;;  %v7685_v43 = vpop.f32.mrf.mxu2 }
 0x104   : > { %3688 = vmatpush.bf16.msra.mxu2 %v5684_v47  ;;  %v6720_v6 = vld [vmem:[%s7133_s27 + $0xb84] sm:$0xf]  ;;  %v5777_v7 = vld [vmem:[%s7133_s27 + $0xb90] sm:$0xf0]  ;;  %v5652_v12 = vor.u32 %v6688_v4, %v5649_v5 }
 0x105   : > { %3701 = vmatpush.bf16.msra.mxu3 %v5812_v53  ;;  %v6620_v14 = vld [vmem:[%s7133_s27 + $0x864] sm:$0xf]  ;;  %v5377_v15 = vld [vmem:[%s7133_s27 + $0x870] sm:$0xf0]  ;;  %v5780_v25 = vor.u32 %v6720_v6, %v5777_v7 }
 0x106   : > { %3663 = vmatpush.bf16.msra.mxu0 %v5412_v59  ;;  %v6652_v18 = vld [vmem:[%s7133_s27 + $0x964] sm:$0xf]  ;;  %v5505_v28 = vld [vmem:[%s7133_s27 + $0x970] sm:$0xf0]  ;;  %v5380_v33 = vor.u32 %v6620_v14, %v5377_v15  ;;  %v3412_v54 = vpop.f32.mrf.mxu0 }
 0x107   : > { %3676 = vmatpush.bf16.msra.mxu1 %v5540_v60  ;;  %v6684_v29 = vld [vmem:[%s7133_s27 + $0xa64] sm:$0xf]  ;;  %v5633_v30 = vld [vmem:[%s7133_s27 + $0xa70] sm:$0xf0]  ;;  %v5508_v35 = vor.u32 %v6652_v18, %v5505_v28  ;;  %v3425_v60 = vpop.f32.mrf.mxu1 }
 0x108   : > { %3689 = vmatpush.bf16.msra.mxu2 %v5668_v61  ;;  %v6716_v31 = vld [vmem:[%s7133_s27 + $0xb64] sm:$0xf]  ;;  %v5761_v32 = vld [vmem:[%s7133_s27 + $0xb70] sm:$0xf0]  ;;  %v5636_v36 = vor.u32 %v6684_v29, %v5633_v30 }
 0x109   : > { %3702 = vmatpush.bf16.msra.mxu3 %v5796_v2  ;;  %v6616_v39 = vld [vmem:[%s7133_s27 + $0x844] sm:$0xf]  ;;  %v5361_v41 = vld [vmem:[%s7133_s27 + $0x850] sm:$0xf0]  ;;  %v5764_v44 = vor.u32 %v6716_v31, %v5761_v32  ;;  %v3451_v30 = vpop.f32.mrf.mxu3 }
 0x10a   : > { %3664 = vmatpush.bf16.msra.mxu0 %v5396_v8  ;;  %v6648_v42 = vld [vmem:[%s7133_s27 + $0x944] sm:$0xf]  ;;  %v5489_v45 = vld [vmem:[%s7133_s27 + $0x950] sm:$0xf0]  ;;  %v5364_v53 = vor.u32 %v6616_v39, %v5361_v41 }
 0x10b   : > { %3677 = vmatpush.bf16.msra.mxu1 %v5524_v11  ;;  %v6680_v46 = vld [vmem:[%s7133_s27 + $0xa44] sm:$0xf]  ;;  %v5617_v47 = vld [vmem:[%s7133_s27 + $0xa50] sm:$0xf0]  ;;  %v5492_v55 = vor.u32 %v6648_v42, %v5489_v45  ;;  %v3438_v15 = vpop.f32.mrf.mxu2 }
 0x10c   : > { %3690 = vmatpush.bf16.msra.mxu2 %v5652_v12  ;;  %v6712_v50 = vld [vmem:[%s7133_s27 + $0xb44] sm:$0xf]  ;;  %v5745_v51 = vld [vmem:[%s7133_s27 + $0xb50] sm:$0xf0]  ;;  %v5620_v56 = vor.u32 %v6680_v46, %v5617_v47 }
 0x10d   : > { %3703 = vmatpush.bf16.msra.mxu3 %v5780_v25  ;;  %v6612_v57 = vld [vmem:[%s7133_s27 + $0x824] sm:$0xf]  ;;  %v5345_v58 = vld [vmem:[%s7133_s27 + $0x830] sm:$0xf0]  ;;  %v5748_v61 = vor.u32 %v6712_v50, %v5745_v51 }
 0x10e   : > { %3665 = vmatpush.bf16.msra.mxu0 %v5380_v33  ;;  %v6644_v59 = vld [vmem:[%s7133_s27 + $0x924] sm:$0xf]  ;;  %v5473_v62 = vld [vmem:[%s7133_s27 + $0x930] sm:$0xf0]  ;;  %v5348_v4 = vor.u32 %v6612_v57, %v5345_v58 }
 0x10f   : > { %3678 = vmatpush.bf16.msra.mxu1 %v5508_v35  ;;  %v6676_v0 = vld [vmem:[%s7133_s27 + $0xa24] sm:$0xf]  ;;  %v5601_v1 = vld [vmem:[%s7133_s27 + $0xa30] sm:$0xf0]  ;;  %v5476_v7 = vor.u32 %v6644_v59, %v5473_v62 }
 0x110   : > { %3691 = vmatpush.bf16.msra.mxu2 %v5636_v36  ;;  %v6708_v2 = vld [vmem:[%s7133_s27 + $0xb24] sm:$0xf]  ;;  %v5729_v3 = vld [vmem:[%s7133_s27 + $0xb30] sm:$0xf0]  ;;  %v5604_v8 = vor.u32 %v6676_v0, %v5601_v1 }
 0x111   : > { %3704 = vmatpush.bf16.msra.mxu3 %v5764_v44  ;;  %v6608_v5 = vld [vmem:[%s7133_s27 + $0x804] sm:$0xf]  ;;  %v5329_v6 = vld [vmem:[%s7133_s27 + $0x810] sm:$0xf0]  ;;  %v5732_v18 = vor.u32 %v6708_v2, %v5729_v3 }
 0x112   : > { %3666 = vmatpush.bf16.msra.mxu0 %v5364_v53  ;;  %v6640_v11 = vld [vmem:[%s7133_s27 + $0x904] sm:$0xf]  ;;  %v5457_v12 = vld [vmem:[%s7133_s27 + $0x910] sm:$0xf0]  ;;  %v5332_v35 = vor.u32 %v6608_v5, %v5329_v6 }
 0x113   : > { %3679 = vmatpush.bf16.msra.mxu1 %v5492_v55  ;;  %v6672_v14 = vld [vmem:[%s7133_s27 + $0xa04] sm:$0xf]  ;;  %v5585_v25 = vld [vmem:[%s7133_s27 + $0xa10] sm:$0xf0]  ;;  %v5460_v42 = vor.u32 %v6640_v11, %v5457_v12 }
 0x114   : > { %3692 = vmatpush.bf16.msra.mxu2 %v5620_v56  ;;  %v6704_v28 = vld [vmem:[%s7133_s27 + $0xb04] sm:$0xf]  ;;  %v5713_v29 = vld [vmem:[%s7133_s27 + $0xb10] sm:$0xf0]  ;;  %v5588_v44 = vor.u32 %v6672_v14, %v5585_v25 }
 0x115   : > { %3705 = vmatpush.bf16.msra.mxu3 %v5748_v61  ;;  %v6764_v31 = vld [vmem:[%s7133_s27 + $0xce4] sm:$0xf]  ;;  %v5953_v32 = vld [vmem:[%s7133_s27 + $0xcf0] sm:$0xf0]  ;;  %v5716_v47 = vor.u32 %v6704_v28, %v5713_v29 }
 0x116   : > { %v6796_v33 = vld [vmem:[%s7133_s27 + $0xde4] sm:$0xf]  ;;  %3667 = vmatpush.bf16.msra.mxu0 %v5348_v4  ;;  %v6081_v36 = vld [vmem:[%s7133_s27 + $0xdf0] sm:$0xf0]  ;;  %v5956_v50 = vor.u32 %v6764_v31, %v5953_v32 }
 0x117   : > { %v6828_v39 = vld [vmem:[%s7133_s27 + $0xee4] sm:$0xf]  ;;  %v6209_v41 = vld [vmem:[%s7133_s27 + $0xef0] sm:$0xf0]  ;;  %3680 = vmatpush.bf16.msra.mxu1 %v5476_v7  ;;  %v6084_v51 = vor.u32 %v6796_v33, %v6081_v36 }
 0x118   : > { %3693 = vmatpush.bf16.msra.mxu2 %v5604_v8  ;;  %v6860_v45 = vld [vmem:[%s7133_s27 + $0xfe4] sm:$0xf]  ;;  %v6337_v46 = vld [vmem:[%s7133_s27 + $0xff0] sm:$0xf0]  ;;  %v6212_v53 = vor.u32 %v6828_v39, %v6209_v41 }
 0x119   : > { %3706 = vmatpush.bf16.msra.mxu3 %v5732_v18  ;;  %v6760_v54 = vld [vmem:[%s7133_s27 + $0xcc4] sm:$0xf]  ;;  %v5937_v55 = vld [vmem:[%s7133_s27 + $0xcd0] sm:$0xf0]  ;;  %v6340_v57 = vor.u32 %v6860_v45, %v6337_v46  ;;  %v3398_v45 = vadd.f32 %v7624_v52, %v7620_v49 }
 0x11a   : > { %v6792_v56 = vld [vmem:[%s7133_s27 + $0xdc4] sm:$0xf]  ;;  %3668 = vmatpush.bf16.msra.mxu0 %v5332_v35  ;;  %v6065_v58 = vld [vmem:[%s7133_s27 + $0xdd0] sm:$0xf0]  ;;  %v5940_v0 = vor.u32 %v6760_v54, %v5937_v55 }
 0x11b   : > { %v6824_v59 = vld [vmem:[%s7133_s27 + $0xec4] sm:$0xf]  ;;  %v6193_v60 = vld [vmem:[%s7133_s27 + $0xed0] sm:$0xf0]  ;;  %3681 = vmatpush.bf16.msra.mxu1 %v5460_v42  ;;  %v6068_v1 = vor.u32 %v6792_v56, %v6065_v58  ;;  %v3411_v52 = vadd.f32 %v7670_v10, %v3398_v45 }
 0x11c   : > { %3694 = vmatpush.bf16.msra.mxu2 %v5588_v44  ;;  %v6856_v61 = vld [vmem:[%s7133_s27 + $0xfc4] sm:$0xf]  ;;  %v6321_v62 = vld [vmem:[%s7133_s27 + $0xfd0] sm:$0xf0]  ;;  %v6196_v2 = vor.u32 %v6824_v59, %v6193_v60  ;;  %v7748_v44 = vpop.f32.mrf.mxu1 }
 0x11d   : > { %3707 = vmatpush.bf16.msra.mxu3 %v5716_v47  ;;  %v6756_v3 = vld [vmem:[%s7133_s27 + $0xca4] sm:$0xf]  ;;  %v5921_v4 = vld [vmem:[%s7133_s27 + $0xcb0] sm:$0xf0]  ;;  %3669 = vmatmul.bf16.vlgmr.msra.gmra.mxu0 %v7408_v19  ;;  %v6324_v6 = vor.u32 %v6856_v61, %v6321_v62 }
 0x11e   : > { %3713 = vmatpush.bf16.msrb.mxu0 %v5956_v50  ;;  %v6788_v5 = vld [vmem:[%s7133_s27 + $0xda4] sm:$0xf]  ;;  %v6049_v7 = vld [vmem:[%s7133_s27 + $0xdb0] sm:$0xf0]  ;;  %3682 = vmatmul.bf16.vlgmr.msra.gmra.mxu1 %v7415_v24  ;;  %v5924_v15 = vor.u32 %v6756_v3, %v5921_v4  ;;  %v7744_v36 = vpop.f32.mrf.mxu0 }
 0x11f   : > { %3726 = vmatpush.bf16.msrb.mxu1 %v6084_v51  ;;  %v6820_v8 = vld [vmem:[%s7133_s27 + $0xea4] sm:$0xf]  ;;  %v6177_v11 = vld [vmem:[%s7133_s27 + $0xeb0] sm:$0xf0]  ;;  %3695 = vmatmul.bf16.vlgmr.msra.gmra.mxu2 %v7413_v23  ;;  %v6052_v18 = vor.u32 %v6788_v5, %v6049_v7 }
 0x120   : > { %3739 = vmatpush.bf16.msrb.mxu2 %v6212_v53  ;;  %v6852_v12 = vld [vmem:[%s7133_s27 + $0xfa4] sm:$0xf]  ;;  %v6305_v14 = vld [vmem:[%s7133_s27 + $0xfb0] sm:$0xf0]  ;;  %3708 = vmatmul.bf16.vlgmr.msra.gmra.mxu3 %v7419_v27  ;;  %v6180_v25 = vor.u32 %v6820_v8, %v6177_v11 }
 0x121   : > { %3752 = vmatpush.bf16.msrb.mxu3 %v6340_v57  ;;  %v6752_v28 = vld [vmem:[%s7133_s27 + $0xc84] sm:$0xf]  ;;  %v5905_v29 = vld [vmem:[%s7133_s27 + $0xc90] sm:$0xf0]  ;;  %v6308_v31 = vor.u32 %v6852_v12, %v6305_v14 }
 0x122   : > { %3714 = vmatpush.bf16.msrb.mxu0 %v5940_v0  ;;  %v6784_v30 = vld [vmem:[%s7133_s27 + $0xd84] sm:$0xf]  ;;  %v6033_v32 = vld [vmem:[%s7133_s27 + $0xd90] sm:$0xf0]  ;;  %v5908_v42 = vor.u32 %v6752_v28, %v5905_v29  ;;  %v7769_v7 = vpop.f32.mrf.mxu3 }
 0x123   : > { %3727 = vmatpush.bf16.msrb.mxu1 %v6068_v1  ;;  %v6816_v33 = vld [vmem:[%s7133_s27 + $0xe84] sm:$0xf]  ;;  %v6161_v35 = vld [vmem:[%s7133_s27 + $0xe90] sm:$0xf0]  ;;  %v6036_v46 = vor.u32 %v6784_v30, %v6033_v32 }
 0x124   : > { %3740 = vmatpush.bf16.msrb.mxu2 %v6196_v2  ;;  %v6848_v39 = vld [vmem:[%s7133_s27 + $0xf84] sm:$0xf]  ;;  %v6289_v41 = vld [vmem:[%s7133_s27 + $0xf90] sm:$0xf0]  ;;  %v6164_v47 = vor.u32 %v6816_v33, %v6161_v35  ;;  %v7764_v3 = vpop.f32.mrf.mxu2  ;;  %v3477_v14 = vpop.f32.mrf.mxu1 }
 0x125   : > { %3753 = vmatpush.bf16.msrb.mxu3 %v6324_v6  ;;  %v6748_v50 = vld [vmem:[%s7133_s27 + $0xc64] sm:$0xf]  ;;  %v5889_v51 = vld [vmem:[%s7133_s27 + $0xc70] sm:$0xf0]  ;;  %v6292_v54 = vor.u32 %v6848_v39, %v6289_v41 }
 0x126   : > { %3715 = vmatpush.bf16.msrb.mxu0 %v5924_v15  ;;  %v6780_v53 = vld [vmem:[%s7133_s27 + $0xd64] sm:$0xf]  ;;  %v6017_v55 = vld [vmem:[%s7133_s27 + $0xd70] sm:$0xf0]  ;;  %v5892_v49 = vor.u32 %v6748_v50, %v5889_v51  ;;  %v3464_v11 = vpop.f32.mrf.mxu0  ;;  %v3424_v15 = vadd.f32 %v7675_v22, %v3411_v52  ;;  %v4551_v52 = vld [vmem:[%s7133_s27 + $0x1e8] sm:$0xf] }
 0x127   : > { %3728 = vmatpush.bf16.msrb.mxu1 %v6052_v18  ;;  %v6812_v56 = vld [vmem:[%s7133_s27 + $0xe64] sm:$0xf]  ;;  %v6145_v57 = vld [vmem:[%s7133_s27 + $0xe70] sm:$0xf0]  ;;  %v6020_v60 = vor.u32 %v6780_v53, %v6017_v55 }
 0x128   : > { %3741 = vmatpush.bf16.msrb.mxu2 %v6180_v25  ;;  %v6844_v58 = vld [vmem:[%s7133_s27 + $0xf64] sm:$0xf]  ;;  %v6273_v59 = vld [vmem:[%s7133_s27 + $0xf70] sm:$0xf0]  ;;  %v6148_v61 = vor.u32 %v6812_v56, %v6145_v57 }
 0x129   : > { %3754 = vmatpush.bf16.msrb.mxu3 %v6308_v31  ;;  %v6744_v62 = vld [vmem:[%s7133_s27 + $0xc44] sm:$0xf]  ;;  %v5873_v0 = vld [vmem:[%s7133_s27 + $0xc50] sm:$0xf0]  ;;  %v6276_v2 = vor.u32 %v6844_v58, %v6273_v59 }
 0x12a   : > { %3716 = vmatpush.bf16.msrb.mxu0 %v5908_v42  ;;  %v6776_v1 = vld [vmem:[%s7133_s27 + $0xd44] sm:$0xf]  ;;  %v6001_v4 = vld [vmem:[%s7133_s27 + $0xd50] sm:$0xf0]  ;;  %v5876_v12 = vor.u32 %v6744_v62, %v5873_v0  ;;  %v6415_v62 = vld [vmem:[%s7133_s27 + $0x1f4] sm:$0xf0] }
 0x12b   : > { %3729 = vmatpush.bf16.msrb.mxu1 %v6036_v46  ;;  %v6808_v5 = vld [vmem:[%s7133_s27 + $0xe44] sm:$0xf]  ;;  %v6129_v6 = vld [vmem:[%s7133_s27 + $0xe50] sm:$0xf0]  ;;  %v6004_v18 = vor.u32 %v6776_v1, %v6001_v4  ;;  %v3437_v46 = vadd.f32 %v7685_v43, %v3424_v15  ;;  %v4423_v43 = vld [vmem:[%s7133_s27 + $0xe8] sm:$0xf]  ;;  %v4552_v14 = vor.u32 %v6415_v62, %v4551_v52 }
 0x12c   : > { %3742 = vmatpush.bf16.msrb.mxu2 %v6164_v47  ;;  %v6840_v10 = vld [vmem:[%s7133_s27 + $0xf44] sm:$0xf]  ;;  %v6257_v8 = vld [vmem:[%s7133_s27 + $0xf50] sm:$0xf0]  ;;  %v6132_v25 = vor.u32 %v6808_v5, %v6129_v6  ;;  %v3490_v59 = vpop.f32.mrf.mxu2  ;;  %v4679_v0 = vld [vmem:[%s7133_s27 + $0x2e8] sm:$0xf] }
 0x12d   : > { %3755 = vmatpush.bf16.msrb.mxu3 %v6292_v54  ;;  %v6740_v28 = vld [vmem:[%s7133_s27 + $0xc24] sm:$0xf]  ;;  %v5857_v29 = vld [vmem:[%s7133_s27 + $0xc30] sm:$0xf0]  ;;  %v6260_v31 = vor.u32 %v6840_v10, %v6257_v8  ;;  %v6447_v1 = vld [vmem:[%s7133_s27 + $0x2f4] sm:$0xf0] }
 0x12e   : > { %3717 = vmatpush.bf16.msrb.mxu0 %v5892_v49  ;;  %v6772_v30 = vld [vmem:[%s7133_s27 + $0xd24] sm:$0xf]  ;;  %v5985_v32 = vld [vmem:[%s7133_s27 + $0xd30] sm:$0xf0]  ;;  %v5860_v41 = vor.u32 %v6740_v28, %v5857_v29  ;;  %v6383_v49 = vld [vmem:[%s7133_s27 + $0xf4] sm:$0xf0]  ;;  %v4680_v15 = vor.u32 %v6447_v1, %v4679_v0 }
 0x12f   : > { %3730 = vmatpush.bf16.msrb.mxu1 %v6020_v60  ;;  %v6804_v33 = vld [vmem:[%s7133_s27 + $0xe24] sm:$0xf]  ;;  %v6113_v35 = vld [vmem:[%s7133_s27 + $0xe30] sm:$0xf0]  ;;  %v5988_v47 = vor.u32 %v6772_v30, %v5985_v32  ;;  %v3503_v60 = vpop.f32.mrf.mxu3  ;;  %v4807_v6 = vld [vmem:[%s7133_s27 + $0x3e8] sm:$0xf]  ;;  %v4424_v11 = vor.u32 %v6383_v49, %v4423_v43 }
 0x130   : > { %3743 = vmatpush.bf16.msrb.mxu2 %v6148_v61  ;;  %v6836_v39 = vld [vmem:[%s7133_s27 + $0xf24] sm:$0xf]  ;;  %v6241_v22 = vld [vmem:[%s7133_s27 + $0xf30] sm:$0xf0]  ;;  %v6116_v50 = vor.u32 %v6804_v33, %v6113_v35  ;;  %v6479_v10 = vld [vmem:[%s7133_s27 + $0x3f4] sm:$0xf0] }
 0x131   : > { %3756 = vmatpush.bf16.msrb.mxu3 %v6276_v2  ;;  %v6736_v42 = vld [vmem:[%s7133_s27 + $0xc04] sm:$0xf]  ;;  %v5841_v45 = vld [vmem:[%s7133_s27 + $0xc10] sm:$0xf0]  ;;  %v6244_v55 = vor.u32 %v6836_v39, %v6241_v22  ;;  %v3450_v2 = vadd.f32 %v7690_v48, %v3437_v46  ;;  %v6379_v48 = vld [vmem:[%s7133_s27 + $0xd4] sm:$0xf0]  ;;  %v4808_v28 = vor.u32 %v6479_v10, %v4807_v6 }
 0x132   : > { %3718 = vmatpush.bf16.msrb.mxu0 %v5876_v12  ;;  %v6768_v51 = vld [vmem:[%s7133_s27 + $0xd04] sm:$0xf]  ;;  %v5969_v53 = vld [vmem:[%s7133_s27 + $0xd10] sm:$0xf0]  ;;  %v5844_v61 = vor.u32 %v6736_v42, %v5841_v45  ;;  %v6411_v29 = vld [vmem:[%s7133_s27 + $0x1d4] sm:$0xf0] }
 0x133   : > { %3731 = vmatpush.bf16.msrb.mxu1 %v6004_v18  ;;  %v6800_v54 = vld [vmem:[%s7133_s27 + $0xe04] sm:$0xf]  ;;  %v6097_v56 = vld [vmem:[%s7133_s27 + $0xe10] sm:$0xf0]  ;;  %v5972_v4 = vor.u32 %v6768_v51, %v5969_v53  ;;  %v3463_v12 = vadd.f32 %v7744_v36, %v3450_v2  ;;  %v4407_v18 = vld [vmem:[%s7133_s27 + $0xc8] sm:$0xf] }
 0x134   : > { %3744 = vmatpush.bf16.msrb.mxu2 %v6132_v25  ;;  %v6832_v57 = vld [vmem:[%s7133_s27 + $0xf04] sm:$0xf]  ;;  %v6225_v58 = vld [vmem:[%s7133_s27 + $0xf10] sm:$0xf0]  ;;  %v6100_v5 = vor.u32 %v6800_v54, %v6097_v56  ;;  %v4535_v25 = vld [vmem:[%s7133_s27 + $0x1c8] sm:$0xf]  ;;  %v4408_v36 = vor.u32 %v6379_v48, %v4407_v18 }
 0x135   : > { %3757 = vmatpush.bf16.msrb.mxu3 %v6260_v31  ;;  %v6228_v8 = vor.u32 %v6832_v57, %v6225_v58  ;;  %v4663_v30 = vld [vmem:[%s7133_s27 + $0x2c8] sm:$0xf]  ;;  %v6443_v31 = vld [vmem:[%s7133_s27 + $0x2d4] sm:$0xf0]  ;;  %v3476_v35 = vadd.f32 %v7748_v44, %v3463_v12  ;;  %v4536_v39 = vor.u32 %v6411_v29, %v4535_v25 }
 0x136   : > { %3719 = vmatpush.bf16.msrb.mxu0 %v5860_v41  ;;  %v4791_v32 = vld [vmem:[%s7133_s27 + $0x3c8] sm:$0xf]  ;;  %v6475_v33 = vld [vmem:[%s7133_s27 + $0x3d4] sm:$0xf0]  ;;  %v4664_v22 = vor.u32 %v6443_v31, %v4663_v30 }
 0x137   : > { %3732 = vmatpush.bf16.msrb.mxu1 %v5988_v47  ;;  %v4391_v41 = vld [vmem:[%s7133_s27 + $0xa8] sm:$0xf]  ;;  %v6375_v42 = vld [vmem:[%s7133_s27 + $0xb4] sm:$0xf0]  ;;  %v4792_v46 = vor.u32 %v6475_v33, %v4791_v32  ;;  %v3489_v44 = vadd.f32 %v7764_v3, %v3476_v35 }
 0x138   : > { %3745 = vmatpush.bf16.msrb.mxu2 %v6116_v50  ;;  %v4519_v45 = vld [vmem:[%s7133_s27 + $0x1a8] sm:$0xf]  ;;  %v6407_v47 = vld [vmem:[%s7133_s27 + $0x1b4] sm:$0xf0] }
 0x139   : > { %3758 = vmatpush.bf16.msrb.mxu3 %v6244_v55  ;;  %v4647_v50 = vld [vmem:[%s7133_s27 + $0x2a8] sm:$0xf]  ;;  %v6439_v51 = vld [vmem:[%s7133_s27 + $0x2b4] sm:$0xf0]  ;;  %v4392_v55 = vor.u32 %v6375_v42, %v4391_v41  ;;  %v4520_v3 = vor.u32 %v6407_v47, %v4519_v45 }
 0x13a   : > { %3720 = vmatpush.bf16.msrb.mxu0 %v5844_v61  ;;  %v4775_v53 = vld [vmem:[%s7133_s27 + $0x3a8] sm:$0xf]  ;;  %v6471_v54 = vld [vmem:[%s7133_s27 + $0x3b4] sm:$0xf0]  ;;  %v4648_v56 = vor.u32 %v6439_v51, %v4647_v50  ;;  %v3502_v61 = vadd.f32 %v7769_v7, %v3489_v44 }
 0x13b   : > { %3733 = vmatpush.bf16.msrb.mxu1 %v5972_v4  ;;  %v4375_v57 = vld [vmem:[%s7133_s27 + $0x88] sm:$0xf]  ;;  %v6371_v58 = vld [vmem:[%s7133_s27 + $0x94] sm:$0xf0]  ;;  %v4776_v43 = vor.u32 %v6471_v54, %v4775_v53  ;;  %v3527_v4 = vpop.f32.mrf.mxu1 }
 0x13c   : > { %3746 = vmatpush.bf16.msrb.mxu2 %v6100_v5  ;;  %v4503_v59 = vld [vmem:[%s7133_s27 + $0x188] sm:$0xf]  ;;  %v6403_v49 = vld [vmem:[%s7133_s27 + $0x194] sm:$0xf0]  ;;  %v3514_v62 = vpop.f32.mrf.mxu0  ;;  %v4376_v2 = vor.u32 %v6371_v58, %v4375_v57 }
 0x13d   : > { %3759 = vmatpush.bf16.msrb.mxu3 %v6228_v8  ;;  %3721 = vmatmul.bf16.vlgmr.msrb.gmra.mxu0 %v7496_v13  ;;  %v4631_v52 = vld [vmem:[%s7133_s27 + $0x288] sm:$0xf]  ;;  %v6435_v60 = vld [vmem:[%s7133_s27 + $0x294] sm:$0xf0]  ;;  %v3515_v5 = vadd.f32 %v3514_v62, %v3502_v61  ;;  %v4504_v6 = vor.u32 %v6403_v49, %v4503_v59 }
 0x13e   : > { %3765 = vmatpush.bf16.msra.mxu0 %v4424_v11  ;;  %3734 = vmatmul.bf16.vlgmr.msrb.gmra.mxu1 %v7503_v21  ;;  %v4759_v0 = vld [vmem:[%s7133_s27 + $0x388] sm:$0xf]  ;;  %v6467_v1 = vld [vmem:[%s7133_s27 + $0x394] sm:$0xf0]  ;;  %v4632_v10 = vor.u32 %v6435_v60, %v4631_v52 }
 0x13f   : > { %3778 = vmatpush.bf16.msra.mxu1 %v4552_v14  ;;  %3747 = vmatmul.bf16.vlgmr.msrb.gmra.mxu2 %v7501_v20  ;;  %v4359_v7 = vld [vmem:[%s7133_s27 + $0x68] sm:$0xf]  ;;  %v6367_v8 = vld [vmem:[%s7133_s27 + $0x74] sm:$0xf0]  ;;  %v4760_v12 = vor.u32 %v6467_v1, %v4759_v0  ;;  %v3528_v29 = vadd.f32 %v3527_v4, %v3515_v5 }
 0x140   : > { %3791 = vmatpush.bf16.msra.mxu2 %v4680_v15  ;;  %3760 = vmatmul.bf16.vlgmr.msrb.gmra.mxu3 %v7507_v26  ;;  %v4487_v11 = vld [vmem:[%s7133_s27 + $0x168] sm:$0xf]  ;;  %v6399_v14 = vld [vmem:[%s7133_s27 + $0x174] sm:$0xf0] }
 0x141   : > { %3804 = vmatpush.bf16.msra.mxu3 %v4808_v28  ;;  %v4615_v15 = vld [vmem:[%s7133_s27 + $0x268] sm:$0xf]  ;;  %v6431_v18 = vld [vmem:[%s7133_s27 + $0x274] sm:$0xf0]  ;;  %v4360_v28 = vor.u32 %v6367_v8, %v4359_v7  ;;  %v4488_v30 = vor.u32 %v6399_v14, %v4487_v11 }
 0x142   : > { %3766 = vmatpush.bf16.msra.mxu0 %v4408_v36  ;;  %v4743_v48 = vld [vmem:[%s7133_s27 + $0x368] sm:$0xf]  ;;  %v6463_v25 = vld [vmem:[%s7133_s27 + $0x374] sm:$0xf0]  ;;  %v4616_v31 = vor.u32 %v6431_v18, %v4615_v15 }
 0x143   : > { %3779 = vmatpush.bf16.msra.mxu1 %v4536_v39  ;;  %v4343_v32 = vld [vmem:[%s7133_s27 + $0x48] sm:$0xf]  ;;  %v6363_v33 = vld [vmem:[%s7133_s27 + $0x54] sm:$0xf0]  ;;  %v4744_v35 = vor.u32 %v6463_v25, %v4743_v48  ;;  %v3529_v54 = vpop.f32.mrf.mxu1 }
 0x144   : > { %3792 = vmatpush.bf16.msra.mxu2 %v4664_v22  ;;  %v4471_v36 = vld [vmem:[%s7133_s27 + $0x148] sm:$0xf]  ;;  %v3540_v39 = vpop.f32.mrf.mxu2  ;;  %v6395_v22 = vld [vmem:[%s7133_s27 + $0x154] sm:$0xf0]  ;;  %v3516_v51 = vpop.f32.mrf.mxu0  ;;  %v4344_v44 = vor.u32 %v6363_v33, %v4343_v32 }
 0x145   : > { %3805 = vmatpush.bf16.msra.mxu3 %v4792_v46  ;;  %v4599_v41 = vld [vmem:[%s7133_s27 + $0x248] sm:$0xf]  ;;  %v6427_v42 = vld [vmem:[%s7133_s27 + $0x254] sm:$0xf0]  ;;  %v3541_v45 = vadd.f32 %v3540_v39, %v3528_v29  ;;  %v3553_v46 = vpop.f32.mrf.mxu3 }
 0x146   : > { %3767 = vmatpush.bf16.msra.mxu0 %v4392_v55  ;;  %v4727_v47 = vld [vmem:[%s7133_s27 + $0x348] sm:$0xf]  ;;  %v6459_v50 = vld [vmem:[%s7133_s27 + $0x354] sm:$0xf0] }
 0x147   : > { %3780 = vmatpush.bf16.msra.mxu1 %v4520_v3  ;;  %v4327_v53 = vld [vmem:[%s7133_s27 + $0x28] sm:$0xf]  ;;  %v3554_v55 = vadd.f32 %v3553_v46, %v3541_v45  ;;  %v4472_v3 = vor.u32 %v6395_v22, %v4471_v36  ;;  %v6359_v57 = vld [vmem:[%s7133_s27 + $0x34] sm:$0xf0] }
 0x148   : > { %3793 = vmatpush.bf16.msra.mxu2 %v4648_v56  ;;  %v4600_v56 = vor.u32 %v6427_v42, %v4599_v41  ;;  %v4455_v58 = vld [vmem:[%s7133_s27 + $0x128] sm:$0xf]  ;;  %v6391_v59 = vld [vmem:[%s7133_s27 + $0x134] sm:$0xf0]  ;;  %v4328_v0 = vor.u32 %v6359_v57, %v4327_v53 }
 0x149   : > { %3806 = vmatpush.bf16.msra.mxu3 %v4776_v43  ;;  %v4728_v43 = vor.u32 %v6459_v50, %v4727_v47  ;;  %v4583_v49 = vld [vmem:[%s7133_s27 + $0x228] sm:$0xf]  ;;  %v6423_v52 = vld [vmem:[%s7133_s27 + $0x234] sm:$0xf0]  ;;  %vm4181_vm0 = vcmp.gt.f32.partialorder %v3554_v55, 0.0  ;;  %v4456_v5 = vor.u32 %v6391_v59, %v4455_v58 }
 0x14a   : > { %3768 = vmatpush.bf16.msra.mxu0 %v4376_v2  ;;  %v4711_v60 = vld [vmem:[%s7133_s27 + $0x328] sm:$0xf]  ;;  %v4185_v61 = vmul.f32 0.01, %v3554_v55  ;;  %v6455_v62 = vld [vmem:[%s7133_s27 + $0x334] sm:$0xf0] }
 0x14b   : > { %3781 = vmatpush.bf16.msra.mxu1 %v4504_v6  ;;  %v4311_v1 = vld [vmem:[%s7133_s27 + $0x8] sm:$0xf]  ;;  %v6355_v2 = vld [vmem:[%s7133_s27 + $0x14] sm:$0xf0]  ;;  %v4584_v6 = vor.u32 %v6423_v52, %v4583_v49  ;;  %v4712_v11 = vor.u32 %v6455_v62, %v4711_v60 }
 0x14c   : > { %3794 = vmatpush.bf16.msra.mxu2 %v4632_v10  ;;  %v4189_v4 = vsel %vm4181_vm0, %v3554_v55, %v4185_v61  ;;  %v4439_v10 = vld [vmem:[%s7133_s27 + $0x108] sm:$0xf]  ;;  %v6387_v7 = vld [vmem:[%s7133_s27 + $0x114] sm:$0xf0]  ;;  %v3542_v18 = vpop.f32.mrf.mxu2 }
 0x14d   : > { %3807 = vmatpush.bf16.msra.mxu3 %v4760_v12  ;;  %v4567_v8 = vld [vmem:[%s7133_s27 + $0x208] sm:$0xf]  ;;  %4193 = vst [vmem:[%s7869_s24] sm:$0xff] %v4189_v4  ;;  %v6419_v12 = vld [vmem:[%s7133_s27 + $0x214] sm:$0xf0]  ;;  %v3555_v29 = vpop.f32.mrf.mxu3  ;;  %v4440_v36 = vor.u32 %v6387_v7, %v4439_v10 }
 0x14e   : > { %3769 = vmatpush.bf16.msra.mxu0 %v4360_v28  ;;  %v4695_v14 = vld [vmem:[%s7133_s27 + $0x308] sm:$0xf]  ;;  %v6451_v15 = vld [vmem:[%s7133_s27 + $0x314] sm:$0xf0] }
 0x14f   : > { %3782 = vmatpush.bf16.msra.mxu1 %v4488_v30  ;;  %v4935_v48 = vld [vmem:[%s7133_s27 + $0x4e8] sm:$0xf]  ;;  %v6511_v25 = vld [vmem:[%s7133_s27 + $0x4f4] sm:$0xf0]  ;;  %v4312_v30 = vor.u32 %v6355_v2, %v4311_v1  ;;  %v4696_v41 = vor.u32 %v6451_v15, %v4695_v14 }
 0x150   : > { %3795 = vmatpush.bf16.msra.mxu2 %v4616_v31  ;;  %v5063_v28 = vld [vmem:[%s7133_s27 + $0x5e8] sm:$0xf]  ;;  %v6543_v31 = vld [vmem:[%s7133_s27 + $0x5f4] sm:$0xf0]  ;;  %v4936_v42 = vor.u32 %v6511_v25, %v4935_v48 }
 0x151   : > { %3808 = vmatpush.bf16.msra.mxu3 %v4744_v35  ;;  %v5191_v32 = vld [vmem:[%s7133_s27 + $0x6e8] sm:$0xf]  ;;  %v6575_v33 = vld [vmem:[%s7133_s27 + $0x6f4] sm:$0xf0]  ;;  %v4568_v35 = vor.u32 %v6419_v12, %v4567_v8  ;;  %v5064_v45 = vor.u32 %v6543_v31, %v5063_v28 }
 0x152   : > { %3770 = vmatpush.bf16.msra.mxu0 %v4344_v44  ;;  %v5319_v39 = vld [vmem:[%s7133_s27 + $0x7e8] sm:$0xf]  ;;  %v6607_v22 = vld [vmem:[%s7133_s27 + $0x7f4] sm:$0xf0]  ;;  %v5192_v46 = vor.u32 %v6575_v33, %v5191_v32 }
 0x153   : > { %3783 = vmatpush.bf16.msra.mxu1 %v4472_v3  ;;  %v4919_v47 = vld [vmem:[%s7133_s27 + $0x4c8] sm:$0xf]  ;;  %v6507_v50 = vld [vmem:[%s7133_s27 + $0x4d4] sm:$0xf0]  ;;  %v5320_v44 = vor.u32 %v6607_v22, %v5319_v39 }
 0x154   : > { %3796 = vmatpush.bf16.msra.mxu2 %v4600_v56  ;;  %v5047_v51 = vld [vmem:[%s7133_s27 + $0x5c8] sm:$0xf]  ;;  %v6539_v53 = vld [vmem:[%s7133_s27 + $0x5d4] sm:$0xf0]  ;;  %v4920_v57 = vor.u32 %v6507_v50, %v4919_v47 }
 0x155   : > { %3809 = vmatpush.bf16.msra.mxu3 %v4728_v43  ;;  %v5175_v54 = vld [vmem:[%s7133_s27 + $0x6c8] sm:$0xf]  ;;  %v6571_v55 = vld [vmem:[%s7133_s27 + $0x6d4] sm:$0xf0]  ;;  %v5048_v58 = vor.u32 %v6539_v53, %v5047_v51 }
 0x156   : > { %3771 = vmatpush.bf16.msra.mxu0 %v4328_v0  ;;  %v5303_v3 = vld [vmem:[%s7133_s27 + $0x7c8] sm:$0xf]  ;;  %v6603_v56 = vld [vmem:[%s7133_s27 + $0x7d4] sm:$0xf0]  ;;  %v5176_v59 = vor.u32 %v6571_v55, %v5175_v54 }
 0x157   : > { %3784 = vmatpush.bf16.msra.mxu1 %v4456_v5  ;;  %v4903_v43 = vld [vmem:[%s7133_s27 + $0x4a8] sm:$0xf]  ;;  %v6503_v49 = vld [vmem:[%s7133_s27 + $0x4b4] sm:$0xf0]  ;;  %v5304_v60 = vor.u32 %v6603_v56, %v5303_v3 }
 0x158   : > { %3797 = vmatpush.bf16.msra.mxu2 %v4584_v6  ;;  %v5031_v52 = vld [vmem:[%s7133_s27 + $0x5a8] sm:$0xf]  ;;  %v6535_v61 = vld [vmem:[%s7133_s27 + $0x5b4] sm:$0xf0]  ;;  %v4904_v4 = vor.u32 %v6503_v49, %v4903_v43 }
 0x159   : > { %3810 = vmatpush.bf16.msra.mxu3 %v4712_v11  ;;  %v5159_v62 = vld [vmem:[%s7133_s27 + $0x6a8] sm:$0xf]  ;;  %v6567_v0 = vld [vmem:[%s7133_s27 + $0x6b4] sm:$0xf0]  ;;  %v5032_v6 = vor.u32 %v6535_v61, %v5031_v52  ;;  %v6911_v11 = vld [vmem:[%s7139_s5] sm:$0xf] }
 0x15a   : > { %3772 = vmatpush.bf16.msra.mxu0 %v4312_v30  ;;  %v5287_v1 = vld [vmem:[%s7133_s27 + $0x7a8] sm:$0xf]  ;;  %v6599_v2 = vld [vmem:[%s7133_s27 + $0x7b4] sm:$0xf0]  ;;  %v5160_v10 = vor.u32 %v6567_v0, %v5159_v62  ;;  %v782_v12 = vperm.slane %v6911_v11, 1  ;;  %v3566_v30 = vpop.f32.mrf.mxu0 }
 0x15b   : > { %3785 = vmatpush.bf16.msra.mxu1 %v4440_v36  ;;  %v4887_v5 = vld [vmem:[%s7133_s27 + $0x488] sm:$0xf]  ;;  %v6499_v7 = vld [vmem:[%s7133_s27 + $0x494] sm:$0xf0]  ;;  %v5288_v14 = vor.u32 %v6599_v2, %v5287_v1  ;;  %v3579_v22 = vpop.f32.mrf.mxu1 }
 0x15c   : > { %3798 = vmatpush.bf16.msra.mxu2 %v4568_v35  ;;  %v5015_v8 = vld [vmem:[%s7133_s27 + $0x588] sm:$0xf]  ;;  %v6531_v15 = vld [vmem:[%s7133_s27 + $0x594] sm:$0xf0]  ;;  %v4888_v29 = vor.u32 %v6499_v7, %v4887_v5  ;;  %v3567_v39 = vadd.f32 %v3566_v30, %v782_v12 }
 0x15d   : > { %3811 = vmatpush.bf16.msra.mxu3 %v4696_v41  ;;  %3773 = vmatmul.bf16.vlgmr.msra.gmra.mxu0 %v7245_v9  ;;  %v5143_v18 = vld [vmem:[%s7133_s27 + $0x688] sm:$0xf]  ;;  %v6563_v48 = vld [vmem:[%s7133_s27 + $0x694] sm:$0xf0]  ;;  %v5016_v31 = vor.u32 %v6531_v15, %v5015_v8 }
 0x15e   : > { %3817 = vmatpush.bf16.msrb.mxu0 %v4936_v42  ;;  %3786 = vmatmul.bf16.vlgmr.msra.gmra.mxu1 %v7258_v17  ;;  %v5271_v25 = vld [vmem:[%s7133_s27 + $0x788] sm:$0xf]  ;;  %v6595_v28 = vld [vmem:[%s7133_s27 + $0x794] sm:$0xf0]  ;;  %v5144_v32 = vor.u32 %v6563_v48, %v5143_v18  ;;  %v3580_v51 = vadd.f32 %v3579_v22, %v3567_v39 }
 0x15f   : > { %3830 = vmatpush.bf16.msrb.mxu1 %v5064_v45  ;;  %3799 = vmatmul.bf16.vlgmr.msra.gmra.mxu2 %v7234_v63  ;;  %v4871_v33 = vld [vmem:[%s7133_s27 + $0x468] sm:$0xf]  ;;  %v6495_v36 = vld [vmem:[%s7133_s27 + $0x474] sm:$0xf0]  ;;  %v5272_v41 = vor.u32 %v6595_v28, %v5271_v25 }
 0x160   : > { %3843 = vmatpush.bf16.msrb.mxu2 %v5192_v46  ;;  %3812 = vmatmul.bf16.vlgmr.msra.gmra.mxu3 %v7256_v16  ;;  %v4999_v35 = vld [vmem:[%s7133_s27 + $0x568] sm:$0xf]  ;;  %v6527_v42 = vld [vmem:[%s7133_s27 + $0x574] sm:$0xf0] }
 0x161   : > { %3856 = vmatpush.bf16.msrb.mxu3 %v5320_v44  ;;  %v5127_v45 = vld [vmem:[%s7133_s27 + $0x668] sm:$0xf]  ;;  %v6559_v46 = vld [vmem:[%s7133_s27 + $0x674] sm:$0xf0]  ;;  %v4872_v44 = vor.u32 %v6495_v36, %v4871_v33  ;;  %v5000_v53 = vor.u32 %v6527_v42, %v4999_v35 }
 0x162   : > { %3818 = vmatpush.bf16.msrb.mxu0 %v4920_v57  ;;  %v5255_v47 = vld [vmem:[%s7133_s27 + $0x768] sm:$0xf]  ;;  %v6591_v50 = vld [vmem:[%s7133_s27 + $0x774] sm:$0xf0]  ;;  %v5128_v54 = vor.u32 %v6559_v46, %v5127_v45  ;;  %v3592_v57 = vpop.f32.mrf.mxu2  ;;  %v3568_v2 = vpop.f32.mrf.mxu0 }
 0x163   : > { %3831 = vmatpush.bf16.msrb.mxu1 %v5048_v58  ;;  %v4855_v55 = vld [vmem:[%s7133_s27 + $0x448] sm:$0xf]  ;;  %v6491_v3 = vld [vmem:[%s7133_s27 + $0x454] sm:$0xf0]  ;;  %v5256_v58 = vor.u32 %v6591_v50, %v5255_v47  ;;  %v3593_v52 = vadd.f32 %v3592_v57, %v3580_v51  ;;  %v3581_v8 = vpop.f32.mrf.mxu1 }
 0x164   : > { %3844 = vmatpush.bf16.msrb.mxu2 %v5176_v59  ;;  %v4983_v56 = vld [vmem:[%s7133_s27 + $0x548] sm:$0xf]  ;;  %v6523_v59 = vld [vmem:[%s7133_s27 + $0x554] sm:$0xf0]  ;;  %v4856_v0 = vor.u32 %v6491_v3, %v4855_v55 }
 0x165   : > { %3857 = vmatpush.bf16.msrb.mxu3 %v5304_v60  ;;  %v5111_v43 = vld [vmem:[%s7133_s27 + $0x648] sm:$0xf]  ;;  %v6555_v49 = vld [vmem:[%s7133_s27 + $0x654] sm:$0xf0]  ;;  %v3605_v60 = vpop.f32.mrf.mxu3 }
 0x166   : > { %3819 = vmatpush.bf16.msrb.mxu0 %v4904_v4  ;;  %v5239_v61 = vld [vmem:[%s7133_s27 + $0x748] sm:$0xf]  ;;  %v6587_v62 = vld [vmem:[%s7133_s27 + $0x754] sm:$0xf0]  ;;  %v7934_v1 = vadd.f32 %v3605_v60, %v3593_v52  ;;  %v4984_v4 = vor.u32 %v6523_v59, %v4983_v56  ;;  %v5112_v5 = vor.u32 %v6555_v49, %v5111_v43 }
 0x167   : > { %3832 = vmatpush.bf16.msrb.mxu1 %v5032_v6  ;;  %v4839_v6 = vld [vmem:[%s7133_s27 + $0x428] sm:$0xf]  ;;  %v5240_v11 = vor.u32 %v6587_v62, %v5239_v61  ;;  %v6519_v12 = vld [vmem:[%s7133_s27 + $0x534] sm:$0xf0] }
 0x168   : > { %3845 = vmatpush.bf16.msrb.mxu2 %v5160_v10  ;;  %v6487_v10 = vld [vmem:[%s7133_s27 + $0x434] sm:$0xf0]  ;;  %v4967_v7 = vld [vmem:[%s7133_s27 + $0x528] sm:$0xf] }
 0x169   : > { %3858 = vmatpush.bf16.msrb.mxu3 %v5288_v14  ;;  %v5095_v14 = vld [vmem:[%s7133_s27 + $0x628] sm:$0xf]  ;;  %v6551_v15 = vld [vmem:[%s7133_s27 + $0x634] sm:$0xf0]  ;;  %v4840_v25 = vor.u32 %v6487_v10, %v4839_v6  ;;  %v4968_v30 = vor.u32 %v6519_v12, %v4967_v7 }
 0x16a   : > { %3820 = vmatpush.bf16.msrb.mxu0 %v4888_v29  ;;  %v5223_v18 = vld [vmem:[%s7133_s27 + $0x728] sm:$0xf]  ;;  %v6583_v48 = vld [vmem:[%s7133_s27 + $0x734] sm:$0xf0]  ;;  %v3594_v35 = vpop.f32.mrf.mxu2 }
 0x16b   : > { %3833 = vmatpush.bf16.msrb.mxu1 %v5016_v31  ;;  %v4823_v28 = vld [vmem:[%s7133_s27 + $0x408] sm:$0xf]  ;;  %v6483_v29 = vld [vmem:[%s7133_s27 + $0x414] sm:$0xf0]  ;;  %v5096_v31 = vor.u32 %v6551_v15, %v5095_v14  ;;  %v5224_v39 = vor.u32 %v6583_v48, %v5223_v18 }
 0x16c   : > { %3846 = vmatpush.bf16.msrb.mxu2 %v5144_v32  ;;  %v4951_v32 = vld [vmem:[%s7133_s27 + $0x508] sm:$0xf]  ;;  %v6515_v33 = vld [vmem:[%s7133_s27 + $0x514] sm:$0xf0]  ;;  %v4824_v51 = vor.u32 %v6483_v29, %v4823_v28 }
 0x16d   : > { %3859 = vmatpush.bf16.msrb.mxu3 %v5272_v41  ;;  %v5079_v36 = vld [vmem:[%s7133_s27 + $0x608] sm:$0xf]  ;;  %v6547_v22 = vld [vmem:[%s7133_s27 + $0x614] sm:$0xf0]  ;;  %v3607_v45 = vpop.f32.mrf.mxu3  ;;  %v4952_v55 = vor.u32 %v6515_v33, %v4951_v32 }
 0x16e   : > { %3821 = vmatpush.bf16.msrb.mxu0 %v4872_v44  ;;  %v5207_v41 = vld [vmem:[%s7133_s27 + $0x708] sm:$0xf]  ;;  %v6579_v42 = vld [vmem:[%s7133_s27 + $0x714] sm:$0xf0]  ;;  %v5080_v3 = vor.u32 %v6547_v22, %v5079_v36 }
 0x16f   : > { %3834 = vmatpush.bf16.msrb.mxu1 %v5000_v53  ;;  %v5447_v46 = vld [vmem:[%s7133_s27 + $0x8e8] sm:$0xf]  ;;  %v6639_v47 = vld [vmem:[%s7133_s27 + $0x8f4] sm:$0xf0] }
 0x170   : > { %3847 = vmatpush.bf16.msrb.mxu2 %v5128_v54  ;;  %v5575_v50 = vld [vmem:[%s7133_s27 + $0x9e8] sm:$0xf]  ;;  %v6671_v44 = vld [vmem:[%s7133_s27 + $0x9f4] sm:$0xf0]  ;;  %v5448_v59 = vor.u32 %v6639_v47, %v5447_v46 }
 0x171   : > { %3860 = vmatpush.bf16.msrb.mxu3 %v5256_v58  ;;  %v5703_v53 = vld [vmem:[%s7133_s27 + $0xae8] sm:$0xf]  ;;  %v6703_v54 = vld [vmem:[%s7133_s27 + $0xaf4] sm:$0xf0]  ;;  %v5208_v58 = vor.u32 %v6579_v42, %v5207_v41  ;;  %v5576_v43 = vor.u32 %v6671_v44, %v5575_v50 }
 0x172   : > { %3822 = vmatpush.bf16.msrb.mxu0 %v4856_v0  ;;  %v5831_v56 = vld [vmem:[%s7133_s27 + $0xbe8] sm:$0xf]  ;;  %v6735_v57 = vld [vmem:[%s7133_s27 + $0xbf4] sm:$0xf0]  ;;  %v5704_v49 = vor.u32 %v6703_v54, %v5703_v53 }
 0x173   : > { %3835 = vmatpush.bf16.msrb.mxu1 %v4984_v4  ;;  %v5431_v52 = vld [vmem:[%s7133_s27 + $0x8c8] sm:$0xf]  ;;  %v6635_v60 = vld [vmem:[%s7133_s27 + $0x8d4] sm:$0xf0]  ;;  %v5832_v62 = vor.u32 %v6735_v57, %v5831_v56 }
 0x174   : > { %3848 = vmatpush.bf16.msrb.mxu2 %v5112_v5  ;;  %v5559_v61 = vld [vmem:[%s7133_s27 + $0x9c8] sm:$0xf]  ;;  %v6667_v0 = vld [vmem:[%s7133_s27 + $0x9d4] sm:$0xf0]  ;;  %v5432_v10 = vor.u32 %v6635_v60, %v5431_v52 }
 0x175   : > { %3861 = vmatpush.bf16.msrb.mxu3 %v5240_v11  ;;  %v5687_v2 = vld [vmem:[%s7133_s27 + $0xac8] sm:$0xf]  ;;  %v6699_v4 = vld [vmem:[%s7133_s27 + $0xad4] sm:$0xf0]  ;;  %v5560_v7 = vor.u32 %v6667_v0, %v5559_v61 }
 0x176   : > { %3823 = vmatpush.bf16.msrb.mxu0 %v4840_v25  ;;  %v5815_v5 = vld [vmem:[%s7133_s27 + $0xbc8] sm:$0xf]  ;;  %v6731_v6 = vld [vmem:[%s7133_s27 + $0xbd4] sm:$0xf0]  ;;  %v5688_v8 = vor.u32 %v6699_v4, %v5687_v2 }
 0x177   : > { %3836 = vmatpush.bf16.msrb.mxu1 %v4968_v30  ;;  %v5415_v11 = vld [vmem:[%s7133_s27 + $0x8a8] sm:$0xf]  ;;  %v6631_v12 = vld [vmem:[%s7133_s27 + $0x8b4] sm:$0xf0]  ;;  %v5816_v15 = vor.u32 %v6731_v6, %v5815_v5 }
 0x178   : > { %3849 = vmatpush.bf16.msrb.mxu2 %v5096_v31  ;;  %v5543_v14 = vld [vmem:[%s7133_s27 + $0x9a8] sm:$0xf]  ;;  %v6663_v18 = vld [vmem:[%s7133_s27 + $0x9b4] sm:$0xf0]  ;;  %v5416_v30 = vor.u32 %v6631_v12, %v5415_v11 }
 0x179   : > { %3862 = vmatpush.bf16.msrb.mxu3 %v5224_v39  ;;  %v5671_v48 = vld [vmem:[%s7133_s27 + $0xaa8] sm:$0xf]  ;;  %v6695_v25 = vld [vmem:[%s7133_s27 + $0xab4] sm:$0xf0]  ;;  %v5544_v31 = vor.u32 %v6663_v18, %v5543_v14 }
 0x17a   : > { %3824 = vmatpush.bf16.msrb.mxu0 %v4824_v51  ;;  %v5799_v28 = vld [vmem:[%s7133_s27 + $0xba8] sm:$0xf]  ;;  %v6727_v29 = vld [vmem:[%s7133_s27 + $0xbb4] sm:$0xf0]  ;;  %v5672_v32 = vor.u32 %v6695_v25, %v5671_v48  ;;  %v7988_v50 = vpop.f32.mrf.mxu0 }
 0x17b   : > { %3837 = vmatpush.bf16.msrb.mxu1 %v4952_v55  ;;  %v5399_v33 = vld [vmem:[%s7133_s27 + $0x888] sm:$0xf]  ;;  %v6627_v36 = vld [vmem:[%s7133_s27 + $0x894] sm:$0xf0]  ;;  %v5800_v39 = vor.u32 %v6727_v29, %v5799_v28 }
 0x17c   : > { %3850 = vmatpush.bf16.msrb.mxu2 %v5080_v3  ;;  %v5527_v35 = vld [vmem:[%s7133_s27 + $0x988] sm:$0xf]  ;;  %v6659_v22 = vld [vmem:[%s7133_s27 + $0x994] sm:$0xf0]  ;;  %v5400_v47 = vor.u32 %v6627_v36, %v5399_v33  ;;  %v7993_v3 = vpop.f32.mrf.mxu1 }
 0x17d   : > { %3863 = vmatpush.bf16.msrb.mxu3 %v5208_v58  ;;  %3825 = vmatmul.bf16.vlgmr.msrb.gmra.mxu0 %v7327_v37  ;;  %v5655_v41 = vld [vmem:[%s7133_s27 + $0xa88] sm:$0xf]  ;;  %v6691_v42 = vld [vmem:[%s7133_s27 + $0xa94] sm:$0xf0]  ;;  %v5528_v51 = vor.u32 %v6659_v22, %v5527_v35 }
 0x17e   : > { %3869 = vmatpush.bf16.msra.mxu0 %v5448_v59  ;;  %3838 = vmatmul.bf16.vlgmr.msrb.gmra.mxu1 %v7331_v40  ;;  %v5783_v45 = vld [vmem:[%s7133_s27 + $0xb88] sm:$0xf]  ;;  %v6723_v46 = vld [vmem:[%s7133_s27 + $0xb94] sm:$0xf0]  ;;  %v5656_v44 = vor.u32 %v6691_v42, %v5655_v41 }
 0x17f   : > { %3882 = vmatpush.bf16.msra.mxu1 %v5576_v43  ;;  %3851 = vmatmul.bf16.vlgmr.msrb.gmra.mxu2 %v7323_v34  ;;  %v5383_v53 = vld [vmem:[%s7133_s27 + $0x868] sm:$0xf]  ;;  %v6623_v54 = vld [vmem:[%s7133_s27 + $0x874] sm:$0xf0]  ;;  %v5784_v56 = vor.u32 %v6723_v46, %v5783_v45 }
 0x180   : > { %3895 = vmatpush.bf16.msra.mxu2 %v5704_v49  ;;  %3864 = vmatmul.bf16.vlgmr.msrb.gmra.mxu3 %v7329_v38  ;;  %v5511_v55 = vld [vmem:[%s7133_s27 + $0x968] sm:$0xf]  ;;  %v6655_v57 = vld [vmem:[%s7133_s27 + $0x974] sm:$0xf0]  ;;  %v5384_v52 = vor.u32 %v6623_v54, %v5383_v53 }
 0x181   : > { %3908 = vmatpush.bf16.msra.mxu3 %v5832_v62  ;;  %v5639_v58 = vld [vmem:[%s7133_s27 + $0xa68] sm:$0xf]  ;;  %v6687_v59 = vld [vmem:[%s7133_s27 + $0xa74] sm:$0xf0]  ;;  %v5512_v60 = vor.u32 %v6655_v57, %v5511_v55 }
 0x182   : > { %3870 = vmatpush.bf16.msra.mxu0 %v5432_v10  ;;  %v5767_v43 = vld [vmem:[%s7133_s27 + $0xb68] sm:$0xf]  ;;  %v6719_v49 = vld [vmem:[%s7133_s27 + $0xb74] sm:$0xf0]  ;;  %v5640_v61 = vor.u32 %v6687_v59, %v5639_v58  ;;  %v8003_v4 = vpop.f32.mrf.mxu2 }
 0x183   : > { %3883 = vmatpush.bf16.msra.mxu1 %v5560_v7  ;;  %v5367_v62 = vld [vmem:[%s7133_s27 + $0x848] sm:$0xf]  ;;  %v6619_v0 = vld [vmem:[%s7133_s27 + $0x854] sm:$0xf0]  ;;  %v5768_v5 = vor.u32 %v6719_v49, %v5767_v43 }
 0x184   : > { %3896 = vmatpush.bf16.msra.mxu2 %v5688_v8  ;;  %v5495_v2 = vld [vmem:[%s7133_s27 + $0x948] sm:$0xf]  ;;  %v6651_v6 = vld [vmem:[%s7133_s27 + $0x954] sm:$0xf0]  ;;  %v8008_v8 = vpop.f32.mrf.mxu3  ;;  %v5368_v14 = vor.u32 %v6619_v0, %v5367_v62 }
 0x185   : > { %3909 = vmatpush.bf16.msra.mxu3 %v5816_v15  ;;  %v5623_v10 = vld [vmem:[%s7133_s27 + $0xa48] sm:$0xf]  ;;  %v6683_v7 = vld [vmem:[%s7133_s27 + $0xa54] sm:$0xf0]  ;;  %v3620_v15 = vpop.f32.mrf.mxu0  ;;  %v5496_v18 = vor.u32 %v6651_v6, %v5495_v2 }
 0x186   : > { %3871 = vmatpush.bf16.msra.mxu0 %v5416_v30  ;;  %v5751_v11 = vld [vmem:[%s7133_s27 + $0xb48] sm:$0xf]  ;;  %v6715_v12 = vld [vmem:[%s7133_s27 + $0xb54] sm:$0xf0]  ;;  %v5624_v48 = vor.u32 %v6683_v7, %v5623_v10  ;;  %v3633_v30 = vpop.f32.mrf.mxu1 }
 0x187   : > { %3884 = vmatpush.bf16.msra.mxu1 %v5544_v31  ;;  %v5351_v25 = vld [vmem:[%s7133_s27 + $0x828] sm:$0xf]  ;;  %v6615_v28 = vld [vmem:[%s7133_s27 + $0x834] sm:$0xf0]  ;;  %v5752_v31 = vor.u32 %v6715_v12, %v5751_v11 }
 0x188   : > { %3897 = vmatpush.bf16.msra.mxu2 %v5672_v32  ;;  %v5479_v29 = vld [vmem:[%s7133_s27 + $0x928] sm:$0xf]  ;;  %v6647_v32 = vld [vmem:[%s7133_s27 + $0x934] sm:$0xf0]  ;;  %v5352_v22 = vor.u32 %v6615_v28, %v5351_v25 }
 0x189   : > { %3910 = vmatpush.bf16.msra.mxu3 %v5800_v39  ;;  %v5607_v33 = vld [vmem:[%s7133_s27 + $0xa28] sm:$0xf]  ;;  %v6679_v36 = vld [vmem:[%s7133_s27 + $0xa34] sm:$0xf0]  ;;  %v5480_v45 = vor.u32 %v6647_v32, %v5479_v29 }
 0x18a   : > { %3872 = vmatpush.bf16.msra.mxu0 %v5400_v47  ;;  %v5735_v35 = vld [vmem:[%s7133_s27 + $0xb28] sm:$0xf]  ;;  %v6711_v39 = vld [vmem:[%s7133_s27 + $0xb34] sm:$0xf0]  ;;  %v5608_v46 = vor.u32 %v6679_v36, %v5607_v33  ;;  %v3646_v53 = vpop.f32.mrf.mxu2 }
 0x18b   : > { %3885 = vmatpush.bf16.msra.mxu1 %v5528_v51  ;;  %v5335_v41 = vld [vmem:[%s7133_s27 + $0x808] sm:$0xf]  ;;  %v6611_v42 = vld [vmem:[%s7133_s27 + $0x814] sm:$0xf0]  ;;  %v5736_v54 = vor.u32 %v6711_v39, %v5735_v35 }
 0x18c   : > { %3898 = vmatpush.bf16.msra.mxu2 %v5656_v44  ;;  %v5463_v47 = vld [vmem:[%s7133_s27 + $0x908] sm:$0xf]  ;;  %v6643_v51 = vld [vmem:[%s7133_s27 + $0x914] sm:$0xf0]  ;;  %v3659_v58 = vpop.f32.mrf.mxu3 }
 0x18d   : > { %3911 = vmatpush.bf16.msra.mxu3 %v5784_v56  ;;  %v5591_v44 = vld [vmem:[%s7133_s27 + $0xa08] sm:$0xf]  ;;  %v6675_v55 = vld [vmem:[%s7133_s27 + $0xa14] sm:$0xf0]  ;;  %v5464_v0 = vor.u32 %v6643_v51, %v5463_v47 }
 0x18e   : > { %3873 = vmatpush.bf16.msra.mxu0 %v5384_v52  ;;  %v5719_v56 = vld [vmem:[%s7133_s27 + $0xb08] sm:$0xf]  ;;  %v6707_v57 = vld [vmem:[%s7133_s27 + $0xb14] sm:$0xf0]  ;;  %v5336_v52 = vor.u32 %v6611_v42, %v5335_v41  ;;  %v5592_v2 = vor.u32 %v6675_v55, %v5591_v44 }
 0x18f   : > { %3886 = vmatpush.bf16.msra.mxu1 %v5512_v60  ;;  %v5959_v59 = vld [vmem:[%s7133_s27 + $0xce8] sm:$0xf]  ;;  %v6767_v43 = vld [vmem:[%s7133_s27 + $0xcf4] sm:$0xf0]  ;;  %v5720_v10 = vor.u32 %v6707_v57, %v5719_v56 }
 0x190   : > { %3899 = vmatpush.bf16.msra.mxu2 %v5640_v61  ;;  %v6087_v49 = vld [vmem:[%s7133_s27 + $0xde8] sm:$0xf]  ;;  %v6799_v60 = vld [vmem:[%s7133_s27 + $0xdf4] sm:$0xf0]  ;;  %v5960_v7 = vor.u32 %v6767_v43, %v5959_v59 }
 0x191   : > { %3912 = vmatpush.bf16.msra.mxu3 %v5768_v5  ;;  %v6215_v61 = vld [vmem:[%s7133_s27 + $0xee8] sm:$0xf]  ;;  %v6831_v62 = vld [vmem:[%s7133_s27 + $0xef4] sm:$0xf0]  ;;  %v6088_v11 = vor.u32 %v6799_v60, %v6087_v49 }
 0x192   : > { %3874 = vmatpush.bf16.msra.mxu0 %v5368_v14  ;;  %v6343_v5 = vld [vmem:[%s7133_s27 + $0xfe8] sm:$0xf]  ;;  %v6863_v6 = vld [vmem:[%s7133_s27 + $0xff4] sm:$0xf0]  ;;  %v6216_v12 = vor.u32 %v6831_v62, %v6215_v61 }
 0x193   : > { %3887 = vmatpush.bf16.msra.mxu1 %v5496_v18  ;;  %v5943_v14 = vld [vmem:[%s7133_s27 + $0xcc8] sm:$0xf]  ;;  %v6763_v15 = vld [vmem:[%s7133_s27 + $0xcd4] sm:$0xf0] }
 0x194   : > { %3900 = vmatpush.bf16.msra.mxu2 %v5624_v48  ;;  %v6071_v18 = vld [vmem:[%s7133_s27 + $0xdc8] sm:$0xf]  ;;  %v6344_v48 = vor.u32 %v6863_v6, %v6343_v5  ;;  %v6795_v25 = vld [vmem:[%s7133_s27 + $0xdd4] sm:$0xf0]  ;;  %v5944_v32 = vor.u32 %v6763_v15, %v5943_v14 }
 0x195   : > { %3913 = vmatpush.bf16.msra.mxu3 %v5752_v31  ;;  %v6199_v28 = vld [vmem:[%s7133_s27 + $0xec8] sm:$0xf]  ;;  %v6827_v29 = vld [vmem:[%s7133_s27 + $0xed4] sm:$0xf0]  ;;  %v6072_v33 = vor.u32 %v6795_v25, %v6071_v18 }
 0x196   : > { %3875 = vmatpush.bf16.msra.mxu0 %v5352_v22  ;;  %v6327_v30 = vld [vmem:[%s7133_s27 + $0xfc8] sm:$0xf]  ;;  %v6859_v31 = vld [vmem:[%s7133_s27 + $0xfd4] sm:$0xf0]  ;;  %v6200_v36 = vor.u32 %v6827_v29, %v6199_v28  ;;  %v3619_v28 = vadd.f32 %v7988_v50, %v7934_v1 }
 0x197   : > { %3888 = vmatpush.bf16.msra.mxu1 %v5480_v45  ;;  %v5927_v35 = vld [vmem:[%s7133_s27 + $0xca8] sm:$0xf]  ;;  %v6759_v39 = vld [vmem:[%s7133_s27 + $0xcb4] sm:$0xf0]  ;;  %v6328_v41 = vor.u32 %v6859_v31, %v6327_v30 }
 0x198   : > { %3901 = vmatpush.bf16.msra.mxu2 %v5608_v46  ;;  %v6055_v22 = vld [vmem:[%s7133_s27 + $0xda8] sm:$0xf]  ;;  %v6791_v42 = vld [vmem:[%s7133_s27 + $0xdb4] sm:$0xf0]  ;;  %v5928_v44 = vor.u32 %v6759_v39, %v5927_v35 }
 0x199   : > { %3914 = vmatpush.bf16.msra.mxu3 %v5736_v54  ;;  %v6183_v45 = vld [vmem:[%s7133_s27 + $0xea8] sm:$0xf]  ;;  %v6823_v46 = vld [vmem:[%s7133_s27 + $0xeb4] sm:$0xf0]  ;;  %v6056_v53 = vor.u32 %v6791_v42, %v6055_v22 }
 0x19a   : > { %3876 = vmatpush.bf16.msra.mxu0 %v5336_v52  ;;  %v6311_v47 = vld [vmem:[%s7133_s27 + $0xfa8] sm:$0xf]  ;;  %v6855_v51 = vld [vmem:[%s7133_s27 + $0xfb4] sm:$0xf0]  ;;  %v6184_v54 = vor.u32 %v6823_v46, %v6183_v45  ;;  %v8062_v52 = vpop.f32.mrf.mxu0 }
 0x19b   : > { %3889 = vmatpush.bf16.msra.mxu1 %v5464_v0  ;;  %v5911_v55 = vld [vmem:[%s7133_s27 + $0xc88] sm:$0xf]  ;;  %v6755_v56 = vld [vmem:[%s7133_s27 + $0xc94] sm:$0xf0]  ;;  %v6312_v58 = vor.u32 %v6855_v51, %v6311_v47  ;;  %v8066_v0 = vpop.f32.mrf.mxu1  ;;  %v3632_v51 = vadd.f32 %v7993_v3, %v3619_v28  ;;  %v6413_v28 = vld [vmem:[%s7133_s27 + $0x1ec] sm:$0xf] }
 0x19c   : > { %3902 = vmatpush.bf16.msra.mxu2 %v5592_v2  ;;  %v6039_v57 = vld [vmem:[%s7133_s27 + $0xd88] sm:$0xf]  ;;  %v6787_v59 = vld [vmem:[%s7133_s27 + $0xd94] sm:$0xf0]  ;;  %v5912_v62 = vor.u32 %v6755_v56, %v5911_v55 }
 0x19d   : > { %3915 = vmatpush.bf16.msra.mxu3 %v5720_v10  ;;  %3877 = vmatmul.bf16.vlgmr.msra.gmra.mxu0 %v7408_v19  ;;  %v6167_v43 = vld [vmem:[%s7133_s27 + $0xe88] sm:$0xf]  ;;  %v6819_v49 = vld [vmem:[%s7133_s27 + $0xe94] sm:$0xf0]  ;;  %v6040_v2 = vor.u32 %v6787_v59, %v6039_v57 }
 0x19e   : > { %3921 = vmatpush.bf16.msrb.mxu0 %v5960_v7  ;;  %3890 = vmatmul.bf16.vlgmr.msra.gmra.mxu1 %v7415_v24  ;;  %v6295_v60 = vld [vmem:[%s7133_s27 + $0xf88] sm:$0xf]  ;;  %v6851_v61 = vld [vmem:[%s7133_s27 + $0xf94] sm:$0xf0]  ;;  %v6168_v5 = vor.u32 %v6819_v49, %v6167_v43 }
 0x19f   : > { %3934 = vmatpush.bf16.msrb.mxu1 %v6088_v11  ;;  %3903 = vmatmul.bf16.vlgmr.msra.gmra.mxu2 %v7413_v23  ;;  %v5895_v6 = vld [vmem:[%s7133_s27 + $0xc68] sm:$0xf]  ;;  %v6751_v10 = vld [vmem:[%s7133_s27 + $0xc74] sm:$0xf0]  ;;  %v6296_v11 = vor.u32 %v6851_v61, %v6295_v60 }
 0x1a0   : > { %3947 = vmatpush.bf16.msrb.mxu2 %v6216_v12  ;;  %3916 = vmatmul.bf16.vlgmr.msra.gmra.mxu3 %v7419_v27  ;;  %v6023_v7 = vld [vmem:[%s7133_s27 + $0xd68] sm:$0xf]  ;;  %v6783_v12 = vld [vmem:[%s7133_s27 + $0xd74] sm:$0xf0]  ;;  %v5896_v25 = vor.u32 %v6751_v10, %v5895_v6 }
 0x1a1   : > { %3960 = vmatpush.bf16.msrb.mxu3 %v6344_v48  ;;  %v6151_v14 = vld [vmem:[%s7133_s27 + $0xe68] sm:$0xf]  ;;  %v6815_v15 = vld [vmem:[%s7133_s27 + $0xe74] sm:$0xf0]  ;;  %v6024_v29 = vor.u32 %v6783_v12, %v6023_v7 }
 0x1a2   : > { %3922 = vmatpush.bf16.msrb.mxu0 %v5944_v32  ;;  %v6279_v18 = vld [vmem:[%s7133_s27 + $0xf68] sm:$0xf]  ;;  %v6847_v48 = vld [vmem:[%s7133_s27 + $0xf74] sm:$0xf0]  ;;  %v6152_v30 = vor.u32 %v6815_v15, %v6151_v14  ;;  %v8081_v35 = vpop.f32.mrf.mxu2  ;;  %v3672_v45 = vpop.f32.mrf.mxu0 }
 0x1a3   : > { %3935 = vmatpush.bf16.msrb.mxu1 %v6072_v33  ;;  %v5879_v31 = vld [vmem:[%s7133_s27 + $0xc48] sm:$0xf]  ;;  %v6747_v32 = vld [vmem:[%s7133_s27 + $0xc54] sm:$0xf0]  ;;  %v8086_v42 = vpop.f32.mrf.mxu3  ;;  %v3685_v47 = vpop.f32.mrf.mxu1 }
 0x1a4   : > { %3948 = vmatpush.bf16.msrb.mxu2 %v6200_v36  ;;  %v6007_v33 = vld [vmem:[%s7133_s27 + $0xd48] sm:$0xf]  ;;  %v6280_v36 = vor.u32 %v6847_v48, %v6279_v18  ;;  %v6779_v39 = vld [vmem:[%s7133_s27 + $0xd54] sm:$0xf0]  ;;  %v5880_v46 = vor.u32 %v6747_v32, %v5879_v31  ;;  %v4553_v31 = vld [vmem:[%s7133_s27 + $0x1f8] sm:$0xf0] }
 0x1a5   : > { %3961 = vmatpush.bf16.msrb.mxu3 %v6328_v41  ;;  %v6135_v22 = vld [vmem:[%s7133_s27 + $0xe48] sm:$0xf]  ;;  %v6811_v41 = vld [vmem:[%s7133_s27 + $0xe54] sm:$0xf0]  ;;  %v6445_v32 = vld [vmem:[%s7133_s27 + $0x2ec] sm:$0xf]  ;;  %v4556_v47 = vor.u32 %v6413_v28, %v4553_v31 }
 0x1a6   : > { %3923 = vmatpush.bf16.msrb.mxu0 %v5928_v44  ;;  %v6263_v1 = vld [vmem:[%s7133_s27 + $0xf48] sm:$0xf]  ;;  %v6843_v50 = vld [vmem:[%s7133_s27 + $0xf54] sm:$0xf0]  ;;  %v6008_v44 = vor.u32 %v6779_v39, %v6007_v33  ;;  %v4681_v33 = vld [vmem:[%s7133_s27 + $0x2f8] sm:$0xf0] }
 0x1a7   : > { %3936 = vmatpush.bf16.msrb.mxu1 %v6056_v53  ;;  %v6136_v53 = vor.u32 %v6811_v41, %v6135_v22  ;;  %v6743_v55 = vld [vmem:[%s7133_s27 + $0xc34] sm:$0xf0]  ;;  %v5991_v56 = vld [vmem:[%s7133_s27 + $0xd28] sm:$0xf]  ;;  %v6264_v57 = vor.u32 %v6843_v50, %v6263_v1  ;;  %v6477_v41 = vld [vmem:[%s7133_s27 + $0x3ec] sm:$0xf] }
 0x1a8   : > { %3949 = vmatpush.bf16.msrb.mxu2 %v6184_v54  ;;  %v5863_v54 = vld [vmem:[%s7133_s27 + $0xc28] sm:$0xf]  ;;  %v6807_v43 = vld [vmem:[%s7133_s27 + $0xe34] sm:$0xf0]  ;;  %v4809_v1 = vld [vmem:[%s7133_s27 + $0x3f8] sm:$0xf0] }
 0x1a9   : > { %3962 = vmatpush.bf16.msrb.mxu3 %v6312_v58  ;;  %v6775_v58 = vld [vmem:[%s7133_s27 + $0xd34] sm:$0xf0]  ;;  %v6119_v59 = vld [vmem:[%s7133_s27 + $0xe28] sm:$0xf]  ;;  %v5864_v60 = vor.u32 %v6743_v55, %v5863_v54  ;;  %v4812_v54 = vor.u32 %v6477_v41, %v4809_v1  ;;  %v4537_v55 = vld [vmem:[%s7133_s27 + $0x1d8] sm:$0xf0] }
 0x1aa   : > { %3924 = vmatpush.bf16.msrb.mxu0 %v5912_v62  ;;  %v6247_v49 = vld [vmem:[%s7133_s27 + $0xf28] sm:$0xf]  ;;  %v6839_v3 = vld [vmem:[%s7133_s27 + $0xf34] sm:$0xf0]  ;;  %v6120_v6 = vor.u32 %v6807_v43, %v6119_v59  ;;  %v3698_v48 = vpop.f32.mrf.mxu2  ;;  %v4793_v59 = vld [vmem:[%s7133_s27 + $0x3d8] sm:$0xf0] }
 0x1ab   : > { %3937 = vmatpush.bf16.msrb.mxu1 %v6040_v2  ;;  %v5847_v61 = vld [vmem:[%s7133_s27 + $0xc08] sm:$0xf]  ;;  %v6739_v62 = vld [vmem:[%s7133_s27 + $0xc14] sm:$0xf0]  ;;  %v3645_v2 = vadd.f32 %v8003_v4, %v3632_v51  ;;  %v6248_v12 = vor.u32 %v6839_v3, %v6247_v49  ;;  %v6381_v4 = vld [vmem:[%s7133_s27 + $0xec] sm:$0xf]  ;;  %v4684_v51 = vor.u32 %v6445_v32, %v4681_v33 }
 0x1ac   : > { %3950 = vmatpush.bf16.msrb.mxu2 %v6168_v5  ;;  %v5992_v5 = vor.u32 %v6775_v58, %v5991_v56  ;;  %v5975_v10 = vld [vmem:[%s7133_s27 + $0xd08] sm:$0xf]  ;;  %v6771_v7 = vld [vmem:[%s7133_s27 + $0xd14] sm:$0xf0]  ;;  %v6441_v56 = vld [vmem:[%s7133_s27 + $0x2cc] sm:$0xf] }
 0x1ad   : > { %3963 = vmatpush.bf16.msrb.mxu3 %v6296_v11  ;;  %v6103_v11 = vld [vmem:[%s7133_s27 + $0xe08] sm:$0xf]  ;;  %v6803_v14 = vld [vmem:[%s7133_s27 + $0xe14] sm:$0xf0]  ;;  %v5976_v39 = vor.u32 %v6771_v7, %v5975_v10  ;;  %v6473_v58 = vld [vmem:[%s7133_s27 + $0x3cc] sm:$0xf] }
 0x1ae   : > { %3925 = vmatpush.bf16.msrb.mxu0 %v5896_v25  ;;  %v6231_v15 = vld [vmem:[%s7133_s27 + $0xf08] sm:$0xf]  ;;  %v6835_v18 = vld [vmem:[%s7133_s27 + $0xf14] sm:$0xf0]  ;;  %v4425_v25 = vld [vmem:[%s7133_s27 + $0xf8] sm:$0xf0]  ;;  %v6104_v22 = vor.u32 %v6803_v14, %v6103_v11 }
 0x1af   : > { %3938 = vmatpush.bf16.msrb.mxu1 %v6024_v29  ;;  %v3711_v29 = vpop.f32.mrf.mxu3  ;;  %v6232_v50 = vor.u32 %v6835_v18, %v6231_v15  ;;  %v4428_v45 = vor.u32 %v6381_v4, %v4425_v25  ;;  %v4649_v10 = vld [vmem:[%s7133_s27 + $0x2b8] sm:$0xf0]  ;;  %v6469_v7 = vld [vmem:[%s7133_s27 + $0x3ac] sm:$0xf] }
 0x1b0   : > { %3951 = vmatpush.bf16.msrb.mxu2 %v6152_v30  ;;  %v5848_v30 = vor.u32 %v6739_v62, %v5847_v61  ;;  %v4393_v61 = vld [vmem:[%s7133_s27 + $0xb8] sm:$0xf0]  ;;  %v6405_v62 = vld [vmem:[%s7133_s27 + $0x1ac] sm:$0xf] }
 0x1b1   : > { %3964 = vmatpush.bf16.msrb.mxu3 %v6280_v36  ;;  %v3658_v36 = vadd.f32 %v8008_v8, %v3645_v2  ;;  %v4409_v8 = vld [vmem:[%s7133_s27 + $0xd8] sm:$0xf0]  ;;  %v4796_v2 = vor.u32 %v6473_v58, %v4793_v59  ;;  %v6401_v48 = vld [vmem:[%s7133_s27 + $0x18c] sm:$0xf] }
 0x1b2   : > { %3926 = vmatpush.bf16.msrb.mxu0 %v5880_v46  ;;  %v4777_v11 = vld [vmem:[%s7133_s27 + $0x3b8] sm:$0xf0]  ;;  %v6433_v28 = vld [vmem:[%s7133_s27 + $0x28c] sm:$0xf] }
 0x1b3   : > { %3939 = vmatpush.bf16.msrb.mxu1 %v6008_v44  ;;  %v3671_v46 = vadd.f32 %v8062_v52, %v3658_v36  ;;  %v6377_v44 = vld [vmem:[%s7133_s27 + $0xcc] sm:$0xf]  ;;  %v4377_v18 = vld [vmem:[%s7133_s27 + $0x98] sm:$0xf0]  ;;  %v4780_v4 = vor.u32 %v6469_v7, %v4777_v11 }
 0x1b4   : > { %3952 = vmatpush.bf16.msrb.mxu2 %v6136_v53  ;;  %v6409_v53 = vld [vmem:[%s7133_s27 + $0x1cc] sm:$0xf]  ;;  %v4412_v52 = vor.u32 %v6377_v44, %v4409_v8  ;;  %v4505_v25 = vld [vmem:[%s7133_s27 + $0x198] sm:$0xf0] }
 0x1b5   : > { %3965 = vmatpush.bf16.msrb.mxu3 %v6264_v57  ;;  %v4665_v57 = vld [vmem:[%s7133_s27 + $0x2d8] sm:$0xf0]  ;;  %v3684_v43 = vadd.f32 %v8066_v0, %v3671_v46  ;;  %v4540_v49 = vor.u32 %v6409_v53, %v4537_v55  ;;  %v6465_v32 = vld [vmem:[%s7133_s27 + $0x38c] sm:$0xf]  ;;  %v4508_v41 = vor.u32 %v6401_v48, %v4505_v25 }
 0x1b6   : > { %3927 = vmatpush.bf16.msrb.mxu0 %v5864_v60  ;;  %v4668_v3 = vor.u32 %v6441_v56, %v4665_v57  ;;  %v6373_v60 = vld [vmem:[%s7133_s27 + $0xac] sm:$0xf]  ;;  %v4633_v29 = vld [vmem:[%s7133_s27 + $0x298] sm:$0xf0] }
 0x1b7   : > { %3940 = vmatpush.bf16.msrb.mxu1 %v5992_v5  ;;  %v4521_v5 = vld [vmem:[%s7133_s27 + $0x1b8] sm:$0xf0]  ;;  %v3697_v0 = vadd.f32 %v8081_v35, %v3684_v43  ;;  %v6369_v35 = vld [vmem:[%s7133_s27 + $0x8c] sm:$0xf]  ;;  %v4636_v1 = vor.u32 %v6433_v28, %v4633_v29 }
 0x1b8   : > { %3953 = vmatpush.bf16.msrb.mxu2 %v6120_v6  ;;  %v6437_v6 = vld [vmem:[%s7133_s27 + $0x2ac] sm:$0xf]  ;;  %v4524_v14 = vor.u32 %v6405_v62, %v4521_v5  ;;  %v4761_v33 = vld [vmem:[%s7133_s27 + $0x398] sm:$0xf0]  ;;  %v4380_v36 = vor.u32 %v6369_v35, %v4377_v18 }
 0x1b9   : > { %3966 = vmatpush.bf16.msrb.mxu3 %v6248_v12  ;;  %v4396_v12 = vor.u32 %v6373_v60, %v4393_v61  ;;  %v4652_v15 = vor.u32 %v6437_v6, %v4649_v10  ;;  %v4764_v46 = vor.u32 %v6465_v32, %v4761_v33  ;;  %v4617_v44 = vld [vmem:[%s7133_s27 + $0x278] sm:$0xf0]  ;;  %v6461_v8 = vld [vmem:[%s7133_s27 + $0x36c] sm:$0xf] }
 0x1ba   : > { %3928 = vmatpush.bf16.msrb.mxu0 %v5848_v30  ;;  %v3710_v30 = vadd.f32 %v8086_v42, %v3697_v0  ;;  %v3722_v31 = vpop.f32.mrf.mxu0  ;;  %v6397_v42 = vld [vmem:[%s7133_s27 + $0x16c] sm:$0xf]  ;;  %v4745_v53 = vld [vmem:[%s7133_s27 + $0x378] sm:$0xf0] }
 0x1bb   : > { %3941 = vmatpush.bf16.msrb.mxu1 %v5976_v39  ;;  %v3735_v39 = vpop.f32.mrf.mxu1  ;;  %v6361_v58 = vld [vmem:[%s7133_s27 + $0x4c] sm:$0xf]  ;;  %v4345_v59 = vld [vmem:[%s7133_s27 + $0x58] sm:$0xf0]  ;;  %v4748_v43 = vor.u32 %v6461_v8, %v4745_v53 }
 0x1bc   : > { %3954 = vmatpush.bf16.msrb.mxu2 %v6104_v22  ;;  %v3723_v22 = vadd.f32 %v3722_v31, %v3710_v30  ;;  %v6425_v60 = vld [vmem:[%s7133_s27 + $0x24c] sm:$0xf]  ;;  %v4601_v61 = vld [vmem:[%s7133_s27 + $0x258] sm:$0xf0]  ;;  %v4348_v0 = vor.u32 %v6361_v58, %v4345_v59 }
 0x1bd   : > { %3967 = vmatpush.bf16.msrb.mxu3 %v6232_v50  ;;  %3929 = vmatmul.bf16.vlgmr.msrb.gmra.mxu0 %v7496_v13  ;;  %v6365_v50 = vld [vmem:[%s7133_s27 + $0x6c] sm:$0xf]  ;;  %v4729_v6 = vld [vmem:[%s7133_s27 + $0x358] sm:$0xf0] }
 0x1be   : > { %3973 = vmatpush.bf16.msra.mxu0 %v4428_v45  ;;  %3942 = vmatmul.bf16.vlgmr.msrb.gmra.mxu1 %v7503_v21  ;;  %v4361_v45 = vld [vmem:[%s7133_s27 + $0x78] sm:$0xf0]  ;;  %v3736_v55 = vadd.f32 %v3735_v39, %v3723_v22  ;;  %v6457_v5 = vld [vmem:[%s7133_s27 + $0x34c] sm:$0xf] }
 0x1bf   : > { %3986 = vmatpush.bf16.msra.mxu1 %v4556_v47  ;;  %3955 = vmatmul.bf16.vlgmr.msrb.gmra.mxu2 %v7501_v20  ;;  %v4489_v47 = vld [vmem:[%s7133_s27 + $0x178] sm:$0xf0]  ;;  %v6357_v7 = vld [vmem:[%s7133_s27 + $0x2c] sm:$0xf] }
 0x1c0   : > { %3999 = vmatpush.bf16.msra.mxu2 %v4684_v51  ;;  %3968 = vmatmul.bf16.vlgmr.msrb.gmra.mxu3 %v7507_v26  ;;  %v6429_v51 = vld [vmem:[%s7133_s27 + $0x26c] sm:$0xf]  ;;  %v4492_v56 = vor.u32 %v6397_v42, %v4489_v47  ;;  %v4329_v35 = vld [vmem:[%s7133_s27 + $0x38] sm:$0xf0] }
 0x1c1   : > { %4012 = vmatpush.bf16.msra.mxu3 %v4812_v54  ;;  %v4364_v54 = vor.u32 %v6365_v50, %v4361_v45  ;;  %v4620_v57 = vor.u32 %v6429_v51, %v4617_v44  ;;  %v6389_v18 = vld [vmem:[%s7133_s27 + $0x12c] sm:$0xf]  ;;  %v4457_v48 = vld [vmem:[%s7133_s27 + $0x138] sm:$0xf0]  ;;  %v4332_v32 = vor.u32 %v6357_v7, %v4329_v35 }
 0x1c2   : > { %3974 = vmatpush.bf16.msra.mxu0 %v4412_v52  ;;  %v6393_v52 = vld [vmem:[%s7133_s27 + $0x14c] sm:$0xf]  ;;  %v3724_v10 = vpop.f32.mrf.mxu0  ;;  %v4585_v28 = vld [vmem:[%s7133_s27 + $0x238] sm:$0xf0] }
 0x1c3   : > { %3987 = vmatpush.bf16.msra.mxu1 %v4540_v49  ;;  %v3748_v49 = vpop.f32.mrf.mxu2  ;;  %v3737_v11 = vpop.f32.mrf.mxu1  ;;  %v6421_v25 = vld [vmem:[%s7133_s27 + $0x22c] sm:$0xf]  ;;  %v4713_v31 = vld [vmem:[%s7133_s27 + $0x338] sm:$0xf0] }
 0x1c4   : > { %4000 = vmatpush.bf16.msra.mxu2 %v4668_v3  ;;  %v4473_v3 = vld [vmem:[%s7133_s27 + $0x158] sm:$0xf0]  ;;  %v3749_v62 = vadd.f32 %v3748_v49, %v3736_v55  ;;  %v6453_v29 = vld [vmem:[%s7133_s27 + $0x32c] sm:$0xf] }
 0x1c5   : > { %4013 = vmatpush.bf16.msra.mxu3 %v4796_v2  ;;  %v3761_v2 = vpop.f32.mrf.mxu3  ;;  %v6353_v33 = vld [vmem:[%s7133_s27 + $0xc] sm:$0xf]  ;;  %v4441_v50 = vld [vmem:[%s7133_s27 + $0x118] sm:$0xf0] }
 0x1c6   : > { %3975 = vmatpush.bf16.msra.mxu0 %v4396_v12  ;;  %v3762_v12 = vadd.f32 %v3761_v2, %v3749_v62  ;;  %v6385_v39 = vld [vmem:[%s7133_s27 + $0x10c] sm:$0xf]  ;;  %v4569_v42 = vld [vmem:[%s7133_s27 + $0x218] sm:$0xf0] }
 0x1c7   : > { %3988 = vmatpush.bf16.msra.mxu1 %v4524_v14  ;;  %v4476_v14 = vor.u32 %v6393_v52, %v4473_v3  ;;  %v6417_v45 = vld [vmem:[%s7133_s27 + $0x20c] sm:$0xf]  ;;  %v4697_v51 = vld [vmem:[%s7133_s27 + $0x318] sm:$0xf0]  ;;  %v4444_v52 = vor.u32 %v6385_v39, %v4441_v50 }
 0x1c8   : > { %4001 = vmatpush.bf16.msra.mxu2 %v4652_v15  ;;  %v4604_v15 = vor.u32 %v6425_v60, %v4601_v61  ;;  %vm4182_vm1 = vcmp.gt.f32.partialorder %v3762_v12, 0.0  ;;  %v4186_v30 = vmul.f32 0.01, %v3762_v12  ;;  %v6449_v47 = vld [vmem:[%s7133_s27 + $0x30c] sm:$0xf] }
 0x1c9   : > { %4014 = vmatpush.bf16.msra.mxu3 %v4780_v4  ;;  %v4732_v4 = vor.u32 %v6457_v5, %v4729_v6  ;;  %v6509_v8 = vld [vmem:[%s7133_s27 + $0x4ec] sm:$0xf]  ;;  %v4937_v53 = vld [vmem:[%s7133_s27 + $0x4f8] sm:$0xf0]  ;;  %v4700_v60 = vor.u32 %v6449_v47, %v4697_v51 }
 0x1ca   : > { %3976 = vmatpush.bf16.msra.mxu0 %v4380_v36  ;;  %v4313_v36 = vld [vmem:[%s7133_s27 + $0x18] sm:$0xf0]  ;;  %v4190_v22 = vsel %vm4182_vm1, %v3762_v12, %v4186_v30  ;;  %v6573_v58 = vld [vmem:[%s7133_s27 + $0x6ec] sm:$0xf]  ;;  %v4940_v61 = vor.u32 %v6509_v8, %v4937_v53 }
 0x1cb   : > { %3989 = vmatpush.bf16.msra.mxu1 %v4508_v41  ;;  %v4460_v41 = vor.u32 %v6389_v18, %v4457_v48  ;;  %4194 = vst [vmem:[%s7869_s24 + $0x8] sm:$0xff] %v4190_v22  ;;  %v3750_v44 = vpop.f32.mrf.mxu2  ;;  %v5193_v59 = vld [vmem:[%s7133_s27 + $0x6f8] sm:$0xf0]  ;;  %v6605_v49 = vld [vmem:[%s7133_s27 + $0x7ec] sm:$0xf] }
 0x1cc   : > { %4002 = vmatpush.bf16.msra.mxu2 %v4636_v1  ;;  %v4588_v1 = vor.u32 %v6421_v25, %v4585_v28  ;;  %v5321_v3 = vld [vmem:[%s7133_s27 + $0x7f8] sm:$0xf0]  ;;  %v5196_v2 = vor.u32 %v6573_v58, %v5193_v59  ;;  %v6505_v5 = vld [vmem:[%s7133_s27 + $0x4cc] sm:$0xf] }
 0x1cd   : > { %4015 = vmatpush.bf16.msra.mxu3 %v4764_v46  ;;  %v4716_v46 = vor.u32 %v6453_v29, %v4713_v31  ;;  %v3763_v55 = vpop.f32.mrf.mxu3  ;;  %v4921_v6 = vld [vmem:[%s7133_s27 + $0x4d8] sm:$0xf0]  ;;  %v6537_v10 = vld [vmem:[%s7133_s27 + $0x5cc] sm:$0xf] }
 0x1ce   : > { %3977 = vmatpush.bf16.msra.mxu0 %v4364_v54  ;;  %v6541_v54 = vld [vmem:[%s7133_s27 + $0x5ec] sm:$0xf]  ;;  %v5049_v7 = vld [vmem:[%s7133_s27 + $0x5d8] sm:$0xf0]  ;;  %v4924_v35 = vor.u32 %v6505_v5, %v4921_v6 }
 0x1cf   : > { %3990 = vmatpush.bf16.msra.mxu1 %v4492_v56  ;;  %v4316_v56 = vor.u32 %v6353_v33, %v4313_v36  ;;  %v6569_v11 = vld [vmem:[%s7133_s27 + $0x6cc] sm:$0xf]  ;;  %v5177_v12 = vld [vmem:[%s7133_s27 + $0x6d8] sm:$0xf0]  ;;  %v5052_v18 = vor.u32 %v6537_v10, %v5049_v7 }
 0x1d0   : > { %4003 = vmatpush.bf16.msra.mxu2 %v4620_v57  ;;  %v5065_v57 = vld [vmem:[%s7133_s27 + $0x5f8] sm:$0xf0]  ;;  %v5180_v48 = vor.u32 %v6569_v11, %v5177_v12  ;;  %v6533_v28 = vld [vmem:[%s7133_s27 + $0x5ac] sm:$0xf] }
 0x1d1   : > { %4016 = vmatpush.bf16.msra.mxu3 %v4748_v43  ;;  %v4572_v43 = vor.u32 %v6417_v45, %v4569_v42  ;;  %v5068_v62 = vor.u32 %v6541_v54, %v5065_v57  ;;  %v4905_v25 = vld [vmem:[%s7133_s27 + $0x4b8] sm:$0xf0]  ;;  %v6565_v31 = vld [vmem:[%s7133_s27 + $0x6ac] sm:$0xf]  ;;  %v8214_v45 = vld [vmem:[%s7139_s5] sm:$0xf] }
 0x1d2   : > { %3978 = vmatpush.bf16.msra.mxu0 %v4348_v0  ;;  %v5324_v0 = vor.u32 %v6605_v49, %v5321_v3  ;;  %v5033_v30 = vld [vmem:[%s7133_s27 + $0x5b8] sm:$0xf0]  ;;  %v6597_v33 = vld [vmem:[%s7133_s27 + $0x7ac] sm:$0xf] }
 0x1d3   : > { %3991 = vmatpush.bf16.msra.mxu1 %v4476_v14  ;;  %v6601_v14 = vld [vmem:[%s7133_s27 + $0x7cc] sm:$0xf]  ;;  %v5289_v36 = vld [vmem:[%s7133_s27 + $0x7b8] sm:$0xf0] }
 0x1d4   : > { %4004 = vmatpush.bf16.msra.mxu2 %v4604_v15  ;;  %v5305_v15 = vld [vmem:[%s7133_s27 + $0x7d8] sm:$0xf0]  ;;  %v6497_v22 = vld [vmem:[%s7133_s27 + $0x48c] sm:$0xf] }
 0x1d5   : > { %4017 = vmatpush.bf16.msra.mxu3 %v4732_v4  ;;  %v6501_v4 = vld [vmem:[%s7133_s27 + $0x4ac] sm:$0xf]  ;;  %v5308_v29 = vor.u32 %v6601_v14, %v5305_v15  ;;  %v5017_v42 = vld [vmem:[%s7133_s27 + $0x598] sm:$0xf0] }
 0x1d6   : > { %3979 = vmatpush.bf16.msra.mxu0 %v4332_v32  ;;  %v5161_v32 = vld [vmem:[%s7133_s27 + $0x6b8] sm:$0xf0]  ;;  %v4908_v39 = vor.u32 %v6501_v4, %v4905_v25  ;;  %v6529_v50 = vld [vmem:[%s7133_s27 + $0x58c] sm:$0xf] }
 0x1d7   : > { %3992 = vmatpush.bf16.msra.mxu1 %v4460_v41  ;;  %v5036_v41 = vor.u32 %v6533_v28, %v5033_v30  ;;  %v5145_v47 = vld [vmem:[%s7133_s27 + $0x698] sm:$0xf0]  ;;  %v6593_v51 = vld [vmem:[%s7133_s27 + $0x78c] sm:$0xf]  ;;  %v5020_v53 = vor.u32 %v6529_v50, %v5017_v42 }
 0x1d8   : > { %4005 = vmatpush.bf16.msra.mxu2 %v4588_v1  ;;  %v4889_v1 = vld [vmem:[%s7133_s27 + $0x498] sm:$0xf0]  ;;  %v6493_v55 = vld [vmem:[%s7133_s27 + $0x46c] sm:$0xf] }
 0x1d9   : > { %4018 = vmatpush.bf16.msra.mxu3 %v4716_v46  ;;  %v6561_v46 = vld [vmem:[%s7133_s27 + $0x68c] sm:$0xf]  ;;  %v4892_v44 = vor.u32 %v6497_v22, %v4889_v1  ;;  %v5129_v3 = vld [vmem:[%s7133_s27 + $0x678] sm:$0xf0] }
 0x1da   : > { %3980 = vmatpush.bf16.msra.mxu0 %v4316_v56  ;;  %v3774_v8 = vpop.f32.mrf.mxu0  ;;  %v5148_v54 = vor.u32 %v6561_v46, %v5145_v47  ;;  %v4873_v56 = vld [vmem:[%s7133_s27 + $0x478] sm:$0xf0]  ;;  %v6525_v57 = vld [vmem:[%s7133_s27 + $0x56c] sm:$0xf] }
 0x1db   : > { %3993 = vmatpush.bf16.msra.mxu1 %v4444_v52  ;;  %v3787_v59 = vpop.f32.mrf.mxu1  ;;  %v6557_v49 = vld [vmem:[%s7133_s27 + $0x66c] sm:$0xf]  ;;  %v4985_v14 = vld [vmem:[%s7133_s27 + $0x558] sm:$0xf0] }
 0x1dc   : > { %4006 = vmatpush.bf16.msra.mxu2 %v4572_v43  ;;  %v5001_v43 = vld [vmem:[%s7133_s27 + $0x578] sm:$0xf0]  ;;  %v5132_v6 = vor.u32 %v6557_v49, %v5129_v3  ;;  %v6489_v10 = vld [vmem:[%s7133_s27 + $0x44c] sm:$0xf] }
 0x1dd   : > { %4019 = vmatpush.bf16.msra.mxu3 %v4700_v60  ;;  %3981 = vmatmul.bf16.vlgmr.msra.gmra.mxu0 %v7245_v9  ;;  %v783_v9 = vperm.slane %v8214_v45, 2  ;;  %v6589_v60 = vld [vmem:[%s7133_s27 + $0x76c] sm:$0xf]  ;;  %v5004_v5 = vor.u32 %v6525_v57, %v5001_v43  ;;  %v5241_v25 = vld [vmem:[%s7133_s27 + $0x758] sm:$0xf0] }
 0x1de   : > { %4025 = vmatpush.bf16.msrb.mxu0 %v4940_v61  ;;  %3994 = vmatmul.bf16.vlgmr.msra.gmra.mxu1 %v7258_v17  ;;  %v5273_v17 = vld [vmem:[%s7133_s27 + $0x798] sm:$0xf0]  ;;  %v6521_v7 = vld [vmem:[%s7133_s27 + $0x54c] sm:$0xf] }
 0x1df   : > { %4038 = vmatpush.bf16.msrb.mxu1 %v5068_v62  ;;  %4007 = vmatmul.bf16.vlgmr.msra.gmra.mxu2 %v7234_v63  ;;  %v5164_v63 = vor.u32 %v6565_v31, %v5161_v32  ;;  %v3775_v58 = vadd.f32 %v3774_v8, %v783_v9  ;;  %v5276_v52 = vor.u32 %v6593_v51, %v5273_v17  ;;  %v5257_v61 = vld [vmem:[%s7133_s27 + $0x778] sm:$0xf0]  ;;  %v6553_v15 = vld [vmem:[%s7133_s27 + $0x64c] sm:$0xf] }
 0x1e0   : > { %4051 = vmatpush.bf16.msrb.mxu2 %v5196_v2  ;;  %4020 = vmatmul.bf16.vlgmr.msra.gmra.mxu3 %v7256_v16  ;;  %v5292_v16 = vor.u32 %v6597_v33, %v5289_v36  ;;  %v4876_v2 = vor.u32 %v6493_v55, %v4873_v56  ;;  %v5260_v12 = vor.u32 %v6589_v60, %v5257_v61  ;;  %v6585_v4 = vld [vmem:[%s7133_s27 + $0x74c] sm:$0xf]  ;;  %v4841_v36 = vld [vmem:[%s7133_s27 + $0x438] sm:$0xf0] }
 0x1e1   : > { %4064 = vmatpush.bf16.msrb.mxu3 %v5324_v0  ;;  %v3788_v62 = vadd.f32 %v3787_v59, %v3775_v58  ;;  %v4857_v0 = vld [vmem:[%s7133_s27 + $0x458] sm:$0xf0]  ;;  %v4988_v31 = vor.u32 %v6521_v7, %v4985_v14  ;;  %v6485_v33 = vld [vmem:[%s7133_s27 + $0x42c] sm:$0xf] }
 0x1e2   : > { %4026 = vmatpush.bf16.msrb.mxu0 %v4924_v35  ;;  %v3800_v11 = vpop.f32.mrf.mxu2  ;;  %v5113_v35 = vld [vmem:[%s7133_s27 + $0x658] sm:$0xf0]  ;;  %v4860_v28 = vor.u32 %v6489_v10, %v4857_v0  ;;  %v3776_v30 = vpop.f32.mrf.mxu0  ;;  %v6549_v1 = vld [vmem:[%s7133_s27 + $0x62c] sm:$0xf]  ;;  %v4844_v42 = vor.u32 %v6485_v33, %v4841_v36 }
 0x1e3   : > { %4039 = vmatpush.bf16.msrb.mxu1 %v5052_v18  ;;  %v3801_v18 = vadd.f32 %v3800_v11, %v3788_v62  ;;  %v5116_v32 = vor.u32 %v6553_v15, %v5113_v35  ;;  %v3789_v22 = vpop.f32.mrf.mxu1  ;;  %v5097_v50 = vld [vmem:[%s7133_s27 + $0x638] sm:$0xf0]  ;;  %v6581_v9 = vld [vmem:[%s7133_s27 + $0x72c] sm:$0xf] }
 0x1e4   : > { %4052 = vmatpush.bf16.msrb.mxu2 %v5180_v48  ;;  %v3813_v48 = vpop.f32.mrf.mxu3  ;;  %v6481_v46 = vld [vmem:[%s7133_s27 + $0x40c] sm:$0xf]  ;;  %v4825_v47 = vld [vmem:[%s7133_s27 + $0x418] sm:$0xf0]  ;;  %v5100_v17 = vor.u32 %v6549_v1, %v5097_v50 }
 0x1e5   : > { %4065 = vmatpush.bf16.msrb.mxu3 %v5308_v29  ;;  %v8238_v29 = vadd.f32 %v3813_v48, %v3801_v18  ;;  %v4953_v8 = vld [vmem:[%s7133_s27 + $0x518] sm:$0xf0]  ;;  %v6577_v57 = vld [vmem:[%s7133_s27 + $0x70c] sm:$0xf]  ;;  %v4828_v3 = vor.u32 %v6481_v46, %v4825_v47 }
 0x1e6   : > { %4027 = vmatpush.bf16.msrb.mxu0 %v4908_v39  ;;  %v6517_v39 = vld [vmem:[%s7133_s27 + $0x52c] sm:$0xf]  ;;  %v5081_v56 = vld [vmem:[%s7133_s27 + $0x618] sm:$0xf0] }
 0x1e7   : > { %4040 = vmatpush.bf16.msrb.mxu1 %v5036_v41  ;;  %v5244_v41 = vor.u32 %v6585_v4, %v5241_v25  ;;  %v5209_v58 = vld [vmem:[%s7133_s27 + $0x718] sm:$0xf0]  ;;  %v6669_v49 = vld [vmem:[%s7133_s27 + $0x9ec] sm:$0xf] }
 0x1e8   : > { %4053 = vmatpush.bf16.msrb.mxu2 %v5164_v63  ;;  %v4969_v63 = vld [vmem:[%s7133_s27 + $0x538] sm:$0xf0]  ;;  %v6701_v61 = vld [vmem:[%s7133_s27 + $0xaec] sm:$0xf]  ;;  %v5212_v0 = vor.u32 %v6577_v57, %v5209_v58 }
 0x1e9   : > { %4066 = vmatpush.bf16.msrb.mxu3 %v5292_v16  ;;  %v5225_v16 = vld [vmem:[%s7133_s27 + $0x738] sm:$0xf0]  ;;  %v4972_v51 = vor.u32 %v6517_v39, %v4969_v63  ;;  %v6633_v14 = vld [vmem:[%s7133_s27 + $0x8cc] sm:$0xf] }
 0x1ea   : > { %4028 = vmatpush.bf16.msrb.mxu0 %v4892_v44  ;;  %v6513_v44 = vld [vmem:[%s7133_s27 + $0x50c] sm:$0xf]  ;;  %v5228_v55 = vor.u32 %v6581_v9, %v5225_v16  ;;  %v5449_v43 = vld [vmem:[%s7133_s27 + $0x8f8] sm:$0xf0] }
 0x1eb   : > { %4041 = vmatpush.bf16.msrb.mxu1 %v5020_v53  ;;  %v6545_v53 = vld [vmem:[%s7133_s27 + $0x60c] sm:$0xf]  ;;  %v5577_v60 = vld [vmem:[%s7133_s27 + $0x9f8] sm:$0xf0] }
 0x1ec   : > { %4054 = vmatpush.bf16.msrb.mxu2 %v5148_v54  ;;  %v3802_v54 = vpop.f32.mrf.mxu2  ;;  %v3815_v59 = vpop.f32.mrf.mxu3  ;;  %v5705_v62 = vld [vmem:[%s7133_s27 + $0xaf8] sm:$0xf0]  ;;  %v5580_v11 = vor.u32 %v6669_v49, %v5577_v60  ;;  %v6665_v35 = vld [vmem:[%s7133_s27 + $0x9cc] sm:$0xf] }
 0x1ed   : > { %4067 = vmatpush.bf16.msrb.mxu3 %v5276_v52  ;;  %v6637_v52 = vld [vmem:[%s7133_s27 + $0x8ec] sm:$0xf]  ;;  %v5833_v10 = vld [vmem:[%s7133_s27 + $0xbf8] sm:$0xf0] }
 0x1ee   : > { %4029 = vmatpush.bf16.msrb.mxu0 %v4876_v2  ;;  %v4956_v2 = vor.u32 %v6513_v44, %v4953_v8  ;;  %v5452_v7 = vor.u32 %v6637_v52, %v5449_v43  ;;  %v5433_v15 = vld [vmem:[%s7133_s27 + $0x8d8] sm:$0xf0]  ;;  %v6697_v4 = vld [vmem:[%s7133_s27 + $0xacc] sm:$0xf] }
 0x1ef   : > { %4042 = vmatpush.bf16.msrb.mxu1 %v5004_v5  ;;  %v5084_v5 = vor.u32 %v6545_v53, %v5081_v56  ;;  %v5561_v48 = vld [vmem:[%s7133_s27 + $0x9d8] sm:$0xf0]  ;;  %v6629_v36 = vld [vmem:[%s7133_s27 + $0x8ac] sm:$0xf] }
 0x1f0   : > { %4055 = vmatpush.bf16.msrb.mxu2 %v5132_v6  ;;  %v6733_v6 = vld [vmem:[%s7133_s27 + $0xbec] sm:$0xf]  ;;  %v5689_v25 = vld [vmem:[%s7133_s27 + $0xad8] sm:$0xf0] }
 0x1f1   : > { %4068 = vmatpush.bf16.msrb.mxu3 %v5260_v12  ;;  %v5708_v12 = vor.u32 %v6701_v61, %v5705_v62  ;;  %v5836_v18 = vor.u32 %v6733_v6, %v5833_v10  ;;  %v5817_v30 = vld [vmem:[%s7133_s27 + $0xbd8] sm:$0xf0]  ;;  %v5692_v33 = vor.u32 %v6697_v4, %v5689_v25  ;;  %v6661_v22 = vld [vmem:[%s7133_s27 + $0x9ac] sm:$0xf] }
 0x1f2   : > { %4030 = vmatpush.bf16.msrb.mxu0 %v4860_v28  ;;  %v6729_v28 = vld [vmem:[%s7133_s27 + $0xbcc] sm:$0xf]  ;;  %v5417_v39 = vld [vmem:[%s7133_s27 + $0x8b8] sm:$0xf0] }
 0x1f3   : > { %4043 = vmatpush.bf16.msrb.mxu1 %v4988_v31  ;;  %v5436_v31 = vor.u32 %v6633_v14, %v5433_v15  ;;  %v5545_v63 = vld [vmem:[%s7133_s27 + $0x9b8] sm:$0xf0]  ;;  %v6693_v1 = vld [vmem:[%s7133_s27 + $0xaac] sm:$0xf] }
 0x1f4   : > { %4056 = vmatpush.bf16.msrb.mxu2 %v5116_v32  ;;  %v5564_v32 = vor.u32 %v6665_v35, %v5561_v48  ;;  %v5673_v50 = vld [vmem:[%s7133_s27 + $0xab8] sm:$0xf0]  ;;  %v6725_v9 = vld [vmem:[%s7133_s27 + $0xbac] sm:$0xf] }
 0x1f5   : > { %4069 = vmatpush.bf16.msrb.mxu3 %v5244_v41  ;;  %v5820_v41 = vor.u32 %v6729_v28, %v5817_v30  ;;  %v5801_v16 = vld [vmem:[%s7133_s27 + $0xbb8] sm:$0xf0]  ;;  %v5676_v46 = vor.u32 %v6693_v1, %v5673_v50  ;;  %v6625_v47 = vld [vmem:[%s7133_s27 + $0x88c] sm:$0xf] }
 0x1f6   : > { %4031 = vmatpush.bf16.msrb.mxu0 %v4844_v42  ;;  %v5420_v42 = vor.u32 %v6629_v36, %v5417_v39  ;;  %v6689_v44 = vld [vmem:[%s7133_s27 + $0xa8c] sm:$0xf]  ;;  %v5657_v8 = vld [vmem:[%s7133_s27 + $0xa98] sm:$0xf0] }
 0x1f7   : > { %4044 = vmatpush.bf16.msrb.mxu1 %v4972_v51  ;;  %v5401_v51 = vld [vmem:[%s7133_s27 + $0x898] sm:$0xf0]  ;;  %v6721_v53 = vld [vmem:[%s7133_s27 + $0xb8c] sm:$0xf]  ;;  %v5660_v57 = vor.u32 %v6689_v44, %v5657_v8 }
 0x1f8   : > { %4057 = vmatpush.bf16.msrb.mxu2 %v5100_v17  ;;  %v5529_v17 = vld [vmem:[%s7133_s27 + $0x998] sm:$0xf0]  ;;  %v6621_v58 = vld [vmem:[%s7133_s27 + $0x86c] sm:$0xf] }
 0x1f9   : > { %4070 = vmatpush.bf16.msrb.mxu3 %v5228_v55  ;;  %v5785_v54 = vld [vmem:[%s7133_s27 + $0xb98] sm:$0xf0]  ;;  %v6653_v52 = vld [vmem:[%s7133_s27 + $0x96c] sm:$0xf] }
 0x1fa   : > { %4032 = vmatpush.bf16.msrb.mxu0 %v4828_v3  ;;  %v8292_v55 = vpop.f32.mrf.mxu0  ;;  %v5385_v59 = vld [vmem:[%s7133_s27 + $0x878] sm:$0xf0]  ;;  %v5788_v49 = vor.u32 %v6721_v53, %v5785_v54  ;;  %v6685_v60 = vld [vmem:[%s7133_s27 + $0xa6c] sm:$0xf] }
 0x1fb   : > { %4045 = vmatpush.bf16.msrb.mxu1 %v4956_v2  ;;  %v8297_v43 = vpop.f32.mrf.mxu1  ;;  %v5513_v3 = vld [vmem:[%s7133_s27 + $0x978] sm:$0xf0]  ;;  %v6717_v62 = vld [vmem:[%s7133_s27 + $0xb6c] sm:$0xf] }
 0x1fc   : > { %4058 = vmatpush.bf16.msrb.mxu2 %v5084_v5  ;;  %v5641_v61 = vld [vmem:[%s7133_s27 + $0xa78] sm:$0xf0]  ;;  %v5388_v5 = vor.u32 %v6621_v58, %v5385_v59  ;;  %v5516_v6 = vor.u32 %v6653_v52, %v5513_v3  ;;  %v6681_v35 = vld [vmem:[%s7133_s27 + $0xa4c] sm:$0xf] }
 0x1fd   : > { %4071 = vmatpush.bf16.msrb.mxu3 %v5212_v0  ;;  %4033 = vmatmul.bf16.vlgmr.msrb.gmra.mxu0 %v7327_v37  ;;  %v6657_v37 = vld [vmem:[%s7133_s27 + $0x98c] sm:$0xf]  ;;  %v5769_v2 = vld [vmem:[%s7133_s27 + $0xb78] sm:$0xf0]  ;;  %v5644_v10 = vor.u32 %v6685_v60, %v5641_v61 }
 0x1fe   : > { %4077 = vmatpush.bf16.msra.mxu0 %v5452_v7  ;;  %4046 = vmatmul.bf16.vlgmr.msrb.gmra.mxu1 %v7331_v40  ;;  %v5404_v40 = vor.u32 %v6625_v47, %v5401_v51  ;;  %v5532_v56 = vor.u32 %v6657_v37, %v5529_v17  ;;  %v6617_v0 = vld [vmem:[%s7133_s27 + $0x84c] sm:$0xf]  ;;  %v5369_v7 = vld [vmem:[%s7133_s27 + $0x858] sm:$0xf0]  ;;  %v5772_v14 = vor.u32 %v6717_v62, %v5769_v2 }
 0x1ff   : > { %4090 = vmatpush.bf16.msra.mxu1 %v5580_v11  ;;  %4059 = vmatmul.bf16.vlgmr.msrb.gmra.mxu2 %v7323_v34  ;;  %v5548_v34 = vor.u32 %v6661_v22, %v5545_v63  ;;  %v6649_v11 = vld [vmem:[%s7133_s27 + $0x94c] sm:$0xf]  ;;  %v5497_v15 = vld [vmem:[%s7133_s27 + $0x958] sm:$0xf0]  ;;  %v5372_v28 = vor.u32 %v6617_v0, %v5369_v7 }
 0x200   : > { %4103 = vmatpush.bf16.msra.mxu2 %v5708_v12  ;;  %4072 = vmatmul.bf16.vlgmr.msrb.gmra.mxu3 %v7329_v38  ;;  %v5804_v38 = vor.u32 %v6725_v9, %v5801_v16  ;;  %v6713_v4 = vld [vmem:[%s7133_s27 + $0xb4c] sm:$0xf]  ;;  %v5753_v25 = vld [vmem:[%s7133_s27 + $0xb58] sm:$0xf0] }
 0x201   : > { %4116 = vmatpush.bf16.msra.mxu3 %v5836_v18  ;;  %v5625_v18 = vld [vmem:[%s7133_s27 + $0xa58] sm:$0xf0]  ;;  %v6645_v39 = vld [vmem:[%s7133_s27 + $0x92c] sm:$0xf] }
 0x202   : > { %4078 = vmatpush.bf16.msra.mxu0 %v5436_v31  ;;  %v8307_v12 = vpop.f32.mrf.mxu2  ;;  %v3828_v30 = vpop.f32.mrf.mxu0  ;;  %v5500_v31 = vor.u32 %v6649_v11, %v5497_v15  ;;  %v5353_v36 = vld [vmem:[%s7133_s27 + $0x838] sm:$0xf0]  ;;  %v6677_v1 = vld [vmem:[%s7133_s27 + $0xa2c] sm:$0xf] }
 0x203   : > { %4091 = vmatpush.bf16.msra.mxu1 %v5564_v32  ;;  %v8312_v48 = vpop.f32.mrf.mxu3  ;;  %v5628_v32 = vor.u32 %v6681_v35, %v5625_v18  ;;  %v3841_v22 = vpop.f32.mrf.mxu1  ;;  %v5481_v63 = vld [vmem:[%s7133_s27 + $0x938] sm:$0xf0]  ;;  %v6709_v9 = vld [vmem:[%s7133_s27 + $0xb2c] sm:$0xf] }
 0x204   : > { %4104 = vmatpush.bf16.msra.mxu2 %v5692_v33  ;;  %v6613_v33 = vld [vmem:[%s7133_s27 + $0x82c] sm:$0xf]  ;;  %v5609_v50 = vld [vmem:[%s7133_s27 + $0xa38] sm:$0xf0]  ;;  %v5484_v47 = vor.u32 %v6645_v39, %v5481_v63 }
 0x205   : > { %4117 = vmatpush.bf16.msra.mxu3 %v5820_v41  ;;  %v5756_v41 = vor.u32 %v6713_v4, %v5753_v25  ;;  %v5737_v16 = vld [vmem:[%s7133_s27 + $0xb38] sm:$0xf0]  ;;  %v5612_v51 = vor.u32 %v6677_v1, %v5609_v50  ;;  %v6641_v37 = vld [vmem:[%s7133_s27 + $0x90c] sm:$0xf] }
 0x206   : > { %4079 = vmatpush.bf16.msra.mxu0 %v5420_v42  ;;  %v5356_v42 = vor.u32 %v6613_v33, %v5353_v36  ;;  %v6673_v17 = vld [vmem:[%s7133_s27 + $0xa0c] sm:$0xf]  ;;  %v5740_v8 = vor.u32 %v6709_v9, %v5737_v16  ;;  %v5593_v53 = vld [vmem:[%s7133_s27 + $0xa18] sm:$0xf0] }
 0x207   : > { %4092 = vmatpush.bf16.msra.mxu1 %v5548_v34  ;;  %v6609_v34 = vld [vmem:[%s7133_s27 + $0x80c] sm:$0xf]  ;;  %v5961_v58 = vld [vmem:[%s7133_s27 + $0xcf8] sm:$0xf0]  ;;  %v5596_v62 = vor.u32 %v6673_v17, %v5593_v53 }
 0x208   : > { %4105 = vmatpush.bf16.msra.mxu2 %v5676_v46  ;;  %v5337_v46 = vld [vmem:[%s7133_s27 + $0x818] sm:$0xf0]  ;;  %v6705_v54 = vld [vmem:[%s7133_s27 + $0xb0c] sm:$0xf] }
 0x209   : > { %4118 = vmatpush.bf16.msra.mxu3 %v5804_v38  ;;  %v5465_v38 = vld [vmem:[%s7133_s27 + $0x918] sm:$0xf0]  ;;  %v6797_v59 = vld [vmem:[%s7133_s27 + $0xdec] sm:$0xf]  ;;  %v5340_v52 = vor.u32 %v6609_v34, %v5337_v46 }
 0x20a   : > { %4080 = vmatpush.bf16.msra.mxu0 %v5404_v40  ;;  %v3854_v44 = vpop.f32.mrf.mxu2  ;;  %v5721_v40 = vld [vmem:[%s7133_s27 + $0xb18] sm:$0xf0]  ;;  %v6829_v3 = vld [vmem:[%s7133_s27 + $0xeec] sm:$0xf]  ;;  %v5468_v61 = vor.u32 %v6641_v37, %v5465_v38 }
 0x20b   : > { %4093 = vmatpush.bf16.msra.mxu1 %v5532_v56  ;;  %v3867_v56 = vpop.f32.mrf.mxu3  ;;  %v6217_v60 = vld [vmem:[%s7133_s27 + $0xef8] sm:$0xf0]  ;;  %v6861_v2 = vld [vmem:[%s7133_s27 + $0xfec] sm:$0xf] }
 0x20c   : > { %4106 = vmatpush.bf16.msra.mxu2 %v5660_v57  ;;  %v6765_v57 = vld [vmem:[%s7133_s27 + $0xcec] sm:$0xf]  ;;  %v6220_v7 = vor.u32 %v6829_v3, %v6217_v60  ;;  %v6073_v18 = vld [vmem:[%s7133_s27 + $0xdd8] sm:$0xf0] }
 0x20d   : > { %4119 = vmatpush.bf16.msra.mxu3 %v5788_v49  ;;  %v6089_v49 = vld [vmem:[%s7133_s27 + $0xdf8] sm:$0xf0]  ;;  %v6761_v11 = vld [vmem:[%s7133_s27 + $0xccc] sm:$0xf] }
 0x20e   : > { %4081 = vmatpush.bf16.msra.mxu0 %v5388_v5  ;;  %v6345_v5 = vld [vmem:[%s7133_s27 + $0xff8] sm:$0xf0]  ;;  %v6092_v0 = vor.u32 %v6797_v59, %v6089_v49  ;;  %v6793_v15 = vld [vmem:[%s7133_s27 + $0xdcc] sm:$0xf] }
 0x20f   : > { %4094 = vmatpush.bf16.msra.mxu1 %v5516_v6  ;;  %v5724_v6 = vor.u32 %v6705_v54, %v5721_v40  ;;  %v6348_v35 = vor.u32 %v6861_v2, %v6345_v5  ;;  %v6825_v4 = vld [vmem:[%s7133_s27 + $0xecc] sm:$0xf]  ;;  %v6201_v25 = vld [vmem:[%s7133_s27 + $0xed8] sm:$0xf0]  ;;  %v3827_v2 = vadd.f32 %v8292_v55, %v8238_v29 }
 0x210   : > { %4107 = vmatpush.bf16.msra.mxu2 %v5644_v10  ;;  %v5964_v10 = vor.u32 %v6765_v57, %v5961_v58  ;;  %v6329_v30 = vld [vmem:[%s7133_s27 + $0xfd8] sm:$0xf0]  ;;  %v6204_v33 = vor.u32 %v6825_v4, %v6201_v25  ;;  %v6757_v36 = vld [vmem:[%s7133_s27 + $0xcac] sm:$0xf] }
 0x211   : > { %4120 = vmatpush.bf16.msra.mxu3 %v5772_v14  ;;  %v5945_v14 = vld [vmem:[%s7133_s27 + $0xcd8] sm:$0xf0]  ;;  %v6789_v22 = vld [vmem:[%s7133_s27 + $0xdac] sm:$0xf] }
 0x212   : > { %4082 = vmatpush.bf16.msra.mxu0 %v5372_v28  ;;  %v6857_v28 = vld [vmem:[%s7133_s27 + $0xfcc] sm:$0xf]  ;;  %v5929_v39 = vld [vmem:[%s7133_s27 + $0xcb8] sm:$0xf0] }
 0x213   : > { %4095 = vmatpush.bf16.msra.mxu1 %v5500_v31  ;;  %v5948_v31 = vor.u32 %v6761_v11, %v5945_v14  ;;  %v6057_v63 = vld [vmem:[%s7133_s27 + $0xdb8] sm:$0xf0]  ;;  %v6821_v1 = vld [vmem:[%s7133_s27 + $0xeac] sm:$0xf] }
 0x214   : > { %4108 = vmatpush.bf16.msra.mxu2 %v5628_v32  ;;  %v6076_v32 = vor.u32 %v6793_v15, %v6073_v18  ;;  %v6185_v50 = vld [vmem:[%s7133_s27 + $0xeb8] sm:$0xf0]  ;;  %v6853_v9 = vld [vmem:[%s7133_s27 + $0xfac] sm:$0xf] }
 0x215   : > { %4121 = vmatpush.bf16.msra.mxu3 %v5756_v41  ;;  %v6332_v41 = vor.u32 %v6857_v28, %v6329_v30  ;;  %v6313_v16 = vld [vmem:[%s7133_s27 + $0xfb8] sm:$0xf0]  ;;  %v6188_v34 = vor.u32 %v6821_v1, %v6185_v50  ;;  %v6753_v46 = vld [vmem:[%s7133_s27 + $0xc8c] sm:$0xf] }
 0x216   : > { %4083 = vmatpush.bf16.msra.mxu0 %v5356_v42  ;;  %v6060_v42 = vor.u32 %v6789_v22, %v6057_v63  ;;  %v6817_v37 = vld [vmem:[%s7133_s27 + $0xe8c] sm:$0xf]  ;;  %v6169_v38 = vld [vmem:[%s7133_s27 + $0xe98] sm:$0xf0] }
 0x217   : > { %4096 = vmatpush.bf16.msra.mxu1 %v5484_v47  ;;  %v5913_v47 = vld [vmem:[%s7133_s27 + $0xc98] sm:$0xf0]  ;;  %v6849_v17 = vld [vmem:[%s7133_s27 + $0xf8c] sm:$0xf]  ;;  %v6172_v40 = vor.u32 %v6817_v37, %v6169_v38 }
 0x218   : > { %4109 = vmatpush.bf16.msra.mxu2 %v5612_v51  ;;  %v6041_v51 = vld [vmem:[%s7133_s27 + $0xd98] sm:$0xf0]  ;;  %v6749_v56 = vld [vmem:[%s7133_s27 + $0xc6c] sm:$0xf] }
 0x219   : > { %4122 = vmatpush.bf16.msra.mxu3 %v5740_v8  ;;  %v6297_v44 = vld [vmem:[%s7133_s27 + $0xf98] sm:$0xf0]  ;;  %v5916_v8 = vor.u32 %v6753_v46, %v5913_v47  ;;  %v6781_v58 = vld [vmem:[%s7133_s27 + $0xd6c] sm:$0xf] }
 0x21a   : > { %4084 = vmatpush.bf16.msra.mxu0 %v5340_v52  ;;  %v5897_v57 = vld [vmem:[%s7133_s27 + $0xc78] sm:$0xf0]  ;;  %v6300_v59 = vor.u32 %v6849_v17, %v6297_v44  ;;  %v6813_v49 = vld [vmem:[%s7133_s27 + $0xe6c] sm:$0xf] }
 0x21b   : > { %4097 = vmatpush.bf16.msra.mxu1 %v5468_v61  ;;  %v8370_v53 = vpop.f32.mrf.mxu1  ;;  %v6025_v52 = vld [vmem:[%s7133_s27 + $0xd78] sm:$0xf0]  ;;  %v6845_v60 = vld [vmem:[%s7133_s27 + $0xf6c] sm:$0xf] }
 0x21c   : > { %4110 = vmatpush.bf16.msra.mxu2 %v5596_v62  ;;  %v6153_v3 = vld [vmem:[%s7133_s27 + $0xe78] sm:$0xf0]  ;;  %v5900_v62 = vor.u32 %v6749_v56, %v5897_v57  ;;  %v6028_v5 = vor.u32 %v6781_v58, %v6025_v52  ;;  %v6841_v29 = vld [vmem:[%s7133_s27 + $0xf4c] sm:$0xf] }
 0x21d   : > { %4123 = vmatpush.bf16.msra.mxu3 %v5724_v6  ;;  %4085 = vmatmul.bf16.vlgmr.msra.gmra.mxu0 %v7408_v19  ;;  %v5932_v19 = vor.u32 %v6757_v36, %v5929_v39  ;;  %v6281_v61 = vld [vmem:[%s7133_s27 + $0xf78] sm:$0xf0]  ;;  %v6156_v6 = vor.u32 %v6813_v49, %v6153_v3  ;;  %v6741_v36 = vld [vmem:[%s7133_s27 + $0xc2c] sm:$0xf] }
 0x21e   : > { %4129 = vmatpush.bf16.msrb.mxu0 %v5964_v10  ;;  %4098 = vmatmul.bf16.vlgmr.msra.gmra.mxu1 %v7415_v24  ;;  %v6316_v24 = vor.u32 %v6853_v9, %v6313_v16  ;;  %v6745_v10 = vld [vmem:[%s7133_s27 + $0xc4c] sm:$0xf]  ;;  %v6284_v11 = vor.u32 %v6845_v60, %v6281_v61  ;;  %v6009_v15 = vld [vmem:[%s7133_s27 + $0xd58] sm:$0xf0] }
 0x21f   : > { %4142 = vmatpush.bf16.msrb.mxu1 %v6092_v0  ;;  %4111 = vmatmul.bf16.vlgmr.msra.gmra.mxu2 %v7413_v23  ;;  %v6785_v23 = vld [vmem:[%s7133_s27 + $0xd8c] sm:$0xf]  ;;  %v5881_v0 = vld [vmem:[%s7133_s27 + $0xc58] sm:$0xf0] }
 0x220   : > { %4155 = vmatpush.bf16.msrb.mxu2 %v6220_v7  ;;  %4124 = vmatmul.bf16.vlgmr.msra.gmra.mxu3 %v7419_v27  ;;  %v8366_v27 = vpop.f32.mrf.mxu0  ;;  %v6044_v54 = vor.u32 %v6785_v23, %v6041_v51  ;;  %v6777_v7 = vld [vmem:[%s7133_s27 + $0xd4c] sm:$0xf]  ;;  %v6137_v18 = vld [vmem:[%s7133_s27 + $0xe58] sm:$0xf0]  ;;  %v5884_v28 = vor.u32 %v6745_v10, %v5881_v0 }
 0x221   : > { %4168 = vmatpush.bf16.msrb.mxu3 %v6348_v35  ;;  %v6809_v35 = vld [vmem:[%s7133_s27 + $0xe4c] sm:$0xf]  ;;  %v6265_v55 = vld [vmem:[%s7133_s27 + $0xf58] sm:$0xf0] }
 0x222   : > { %4130 = vmatpush.bf16.msrb.mxu0 %v5948_v31  ;;  %v8385_v14 = vpop.f32.mrf.mxu2  ;;  %v3840_v31 = vadd.f32 %v8297_v43, %v3827_v2  ;;  %v5865_v39 = vld [vmem:[%s7133_s27 + $0xc38] sm:$0xf0]  ;;  %v6773_v22 = vld [vmem:[%s7133_s27 + $0xd2c] sm:$0xf] }
 0x223   : > { %4143 = vmatpush.bf16.msrb.mxu1 %v6076_v32  ;;  %v3917_v4 = vpop.f32.mrf.mxu3  ;;  %v3893_v30 = vpop.f32.mrf.mxu1  ;;  %v6012_v32 = vor.u32 %v6777_v7, %v6009_v15  ;;  %v5993_v63 = vld [vmem:[%s7133_s27 + $0xd38] sm:$0xf0]  ;;  %v6805_v1 = vld [vmem:[%s7133_s27 + $0xe2c] sm:$0xf]  ;;  %v5868_v16 = vor.u32 %v6741_v36, %v5865_v39  ;;  %v784_v7 = vperm.slane %v8214_v45, 3 }
 0x224   : > { %4156 = vmatpush.bf16.msrb.mxu2 %v6204_v33  ;;  %v6140_v33 = vor.u32 %v6809_v35, %v6137_v18  ;;  %v6121_v50 = vld [vmem:[%s7133_s27 + $0xe38] sm:$0xf0]  ;;  %v6837_v9 = vld [vmem:[%s7133_s27 + $0xf2c] sm:$0xf] }
 0x225   : > { %4169 = vmatpush.bf16.msrb.mxu3 %v6332_v41  ;;  %v6268_v41 = vor.u32 %v6841_v29, %v6265_v55  ;;  %v6249_v43 = vld [vmem:[%s7133_s27 + $0xf38] sm:$0xf0]  ;;  %v6737_v46 = vld [vmem:[%s7133_s27 + $0xc0c] sm:$0xf] }
 0x226   : > { %4131 = vmatpush.bf16.msrb.mxu0 %v5932_v19  ;;  %v3853_v19 = vadd.f32 %v8307_v12, %v3840_v31  ;;  %v5849_v47 = vld [vmem:[%s7133_s27 + $0xc18] sm:$0xf0]  ;;  %v6769_v23 = vld [vmem:[%s7133_s27 + $0xd0c] sm:$0xf] }
 0x227   : > { %4144 = vmatpush.bf16.msrb.mxu1 %v6060_v42  ;;  %v5996_v42 = vor.u32 %v6773_v22, %v5993_v63  ;;  %v5977_v51 = vld [vmem:[%s7133_s27 + $0xd18] sm:$0xf0]  ;;  %v6801_v37 = vld [vmem:[%s7133_s27 + $0xe0c] sm:$0xf] }
 0x228   : > { %4157 = vmatpush.bf16.msrb.mxu2 %v6188_v34  ;;  %v3880_v25 = vpop.f32.mrf.mxu0  ;;  %v6124_v34 = vor.u32 %v6805_v1, %v6121_v50  ;;  %v6105_v38 = vld [vmem:[%s7133_s27 + $0xe18] sm:$0xf0]  ;;  %v6833_v44 = vld [vmem:[%s7133_s27 + $0xf0c] sm:$0xf]  ;;  %v3866_v12 = vadd.f32 %v8312_v48, %v3853_v19  ;;  %v5980_v56 = vor.u32 %v6769_v23, %v5977_v51 }
 0x229   : > { %4170 = vmatpush.bf16.msrb.mxu3 %v6316_v24  ;;  %v6252_v24 = vor.u32 %v6837_v9, %v6249_v43  ;;  %v6108_v57 = vor.u32 %v6801_v37, %v6105_v38 }
 0x22a   : > { %4132 = vmatpush.bf16.msrb.mxu0 %v5916_v8  ;;  %v3906_v17 = vpop.f32.mrf.mxu2  ;;  %v6233_v8 = vld [vmem:[%s7133_s27 + $0xf18] sm:$0xf0] }
 0x22b   : > { %4145 = vmatpush.bf16.msrb.mxu1 %v6044_v54  ;;  %v3919_v54 = vpop.f32.mrf.mxu3  ;;  %v6236_v58 = vor.u32 %v6833_v44, %v6233_v8 }
 0x22c   : > { %4158 = vmatpush.bf16.msrb.mxu2 %v6172_v40  ;;  %v5852_v40 = vor.u32 %v6737_v46, %v5849_v47 }
 0x22d   : > { %4171 = vmatpush.bf16.msrb.mxu3 %v6300_v59  ;;  %v3879_v59 = vadd.f32 %v8366_v27, %v3866_v12 }
 0x22e   : > { %4133 = vmatpush.bf16.msrb.mxu0 %v5900_v62 }
 0x22f   : > { %4146 = vmatpush.bf16.msrb.mxu1 %v6028_v5  ;;  %v3892_v52 = vadd.f32 %v8370_v53, %v3879_v59 }
 0x230   : > { %4159 = vmatpush.bf16.msrb.mxu2 %v6156_v6 }
 0x231   : > { %4172 = vmatpush.bf16.msrb.mxu3 %v6284_v11  ;;  %v3905_v48 = vadd.f32 %v8385_v14, %v3892_v52 }
 0x232   : > { %4134 = vmatpush.bf16.msrb.mxu0 %v5884_v28 }
 0x233   : > { %4147 = vmatpush.bf16.msrb.mxu1 %v6012_v32  ;;  %v3918_v49 = vadd.f32 %v3917_v4, %v3905_v48 }
 0x234   : > { %4160 = vmatpush.bf16.msrb.mxu2 %v6140_v33 }
 0x235   : > { %4173 = vmatpush.bf16.msrb.mxu3 %v6268_v41 }
 0x236   : > { %4135 = vmatpush.bf16.msrb.mxu0 %v5868_v16 }
 0x237   : > { %4148 = vmatpush.bf16.msrb.mxu1 %v5996_v42 }
 0x238   : > { %4161 = vmatpush.bf16.msrb.mxu2 %v6124_v34 }
 0x239   : > { %4174 = vmatpush.bf16.msrb.mxu3 %v6252_v24 }
 0x23a   : > { %4136 = vmatpush.bf16.msrb.mxu0 %v5852_v40  ;;  %v3930_v3 = vpop.f32.mrf.mxu0 }
 0x23b   : > { %4149 = vmatpush.bf16.msrb.mxu1 %v5980_v56  ;;  %v3943_v27 = vpop.f32.mrf.mxu1  ;;  %v3931_v60 = vadd.f32 %v3930_v3, %v3918_v49 }
 0x23c   : > { %4162 = vmatpush.bf16.msrb.mxu2 %v6108_v57 }
 0x23d   : > { %4175 = vmatpush.bf16.msrb.mxu3 %v6236_v58  ;;  %4137 = vmatmul.bf16.vlgmr.msrb.gmra.mxu0 %v7496_v13  ;;  %v3944_v61 = vadd.f32 %v3943_v27, %v3931_v60 }
 0x23e   : > { %4150 = vmatmul.bf16.vlgmr.msrb.gmra.mxu1 %v7503_v21 }
 0x23f   : > { %4163 = vmatmul.bf16.vlgmr.msrb.gmra.mxu2 %v7501_v20 }
 0x240   : > { %4176 = vmatmul.bf16.vlgmr.msrb.gmra.mxu3 %v7507_v26 }
 0x242   : > { %v3956_v62 = vpop.f32.mrf.mxu2  ;;  %v3932_v53 = vpop.f32.mrf.mxu0 }
 0x243   : > { %v3957_v2 = vadd.f32 %v3956_v62, %v3944_v61  ;;  %v3969_v5 = vpop.f32.mrf.mxu3  ;;  %v3945_v6 = vpop.f32.mrf.mxu1 }
 0x245   : > { %v3970_v13 = vadd.f32 %v3969_v5, %v3957_v2 }
 0x247   : > { %vm4183_vm2 = vcmp.gt.f32.partialorder %v3970_v13, 0.0  ;;  %v4187_v21 = vmul.f32 0.01, %v3970_v13 }
 0x249   : > { %v4191_v10 = vsel %vm4183_vm2, %v3970_v13, %v4187_v21 }
 0x24a   : > { %4195 = vst [vmem:[%s7869_s24 + $0x10] sm:$0xff] %v4191_v10  ;;  %v3958_v20 = vpop.f32.mrf.mxu2 }
 0x24b   : > { %v3971_v0 = vpop.f32.mrf.mxu3 }
 0x25a   : > { %v3982_v26 = vpop.f32.mrf.mxu0 }
 0x25b   : > { %v3983_v11 = vadd.f32 %v3982_v26, %v784_v7  ;;  %v3995_v14 = vpop.f32.mrf.mxu1 }
 0x25d   : > { %v3996_v15 = vadd.f32 %v3995_v14, %v3983_v11 }
 0x262   : > { %v4008_v35 = vpop.f32.mrf.mxu2  ;;  %v3984_v55 = vpop.f32.mrf.mxu0 }
 0x263   : > { %v4009_v18 = vadd.f32 %v4008_v35, %v3996_v15  ;;  %v4021_v4 = vpop.f32.mrf.mxu3  ;;  %v3997_v25 = vpop.f32.mrf.mxu1 }
 0x265   : > { %v4022_v29 = vadd.f32 %v4021_v4, %v4009_v18 }
 0x26a   : > { %v4010_v28 = vpop.f32.mrf.mxu2 }
 0x26b   : > { %v4023_v30 = vpop.f32.mrf.mxu3 }
 0x27a   : > { %v4034_v31 = vpop.f32.mrf.mxu0 }
 0x27b   : > { %v4047_v32 = vpop.f32.mrf.mxu1  ;;  %v4035_v50 = vadd.f32 %v4034_v31, %v4022_v29 }
 0x27d   : > { %v4048_v19 = vadd.f32 %v4047_v32, %v4035_v50 }
 0x282   : > { %v4060_v33 = vpop.f32.mrf.mxu2  ;;  %v4036_v39 = vpop.f32.mrf.mxu0 }
 0x283   : > { %v4073_v36 = vpop.f32.mrf.mxu3  ;;  %v4049_v22 = vpop.f32.mrf.mxu1  ;;  %v4061_v34 = vadd.f32 %v4060_v33, %v4048_v19 }
 0x285   : > { %v4074_v23 = vadd.f32 %v4073_v36, %v4061_v34 }
 0x28a   : > { %v4062_v41 = vpop.f32.mrf.mxu2 }
 0x28b   : > { %v4075_v45 = vpop.f32.mrf.mxu3 }
 0x29a   : > { %v4086_v63 = vpop.f32.mrf.mxu0 }
 0x29b   : > { %v4099_v1 = vpop.f32.mrf.mxu1  ;;  %v4087_v24 = vadd.f32 %v4086_v63, %v4074_v23 }
 0x29d   : > { %v4100_v51 = vadd.f32 %v4099_v1, %v4087_v24 }
 0x2a2   : > { %v4112_v9 = vpop.f32.mrf.mxu2  ;;  %v4088_v16 = vpop.f32.mrf.mxu0 }
 0x2a3   : > { %v4125_v43 = vpop.f32.mrf.mxu3  ;;  %v4101_v42 = vpop.f32.mrf.mxu1  ;;  %v4113_v37 = vadd.f32 %v4112_v9, %v4100_v51 }
 0x2a5   : > { %v4126_v38 = vadd.f32 %v4125_v43, %v4113_v37 }
 0x2aa   : > { %v4114_v46 = vpop.f32.mrf.mxu2 }
 0x2ab   : > { %v4127_v47 = vpop.f32.mrf.mxu3 }
 0x2ba   : > { %v4138_v17 = vpop.f32.mrf.mxu0 }
 0x2bb   : > { %v4151_v44 = vpop.f32.mrf.mxu1  ;;  %v4139_v8 = vadd.f32 %v4138_v17, %v4126_v38 }
 0x2bd   : > { %v4152_v54 = vadd.f32 %v4151_v44, %v4139_v8 }
 0x2c2   : > { %v4164_v40 = vpop.f32.mrf.mxu2  ;;  %v4140_v57 = vpop.f32.mrf.mxu0 }
 0x2c3   : > { %v4165_v12 = vadd.f32 %v4164_v40, %v4152_v54  ;;  %v4177_v56 = vpop.f32.mrf.mxu3  ;;  %v4153_v58 = vpop.f32.mrf.mxu1 }
 0x2c5   : > { %v4178_v59 = vadd.f32 %v4177_v56, %v4165_v12 }
 0x2c7   : > { %vm4184_vm3 = vcmp.gt.f32.partialorder %v4178_v59, 0.0  ;;  %v4188_v52 = vmul.f32 0.01, %v4178_v59 }
 0x2c9   : > { %v4192_v48 = vsel %vm4184_vm3, %v4178_v59, %v4188_v52 }
 0x2ca   : > { %4196 = vst [vmem:[%s7869_s24 + $0x18] sm:$0xff] %v4192_v48  ;;  %v4166_v49 = vpop.f32.mrf.mxu2 }
 0x2cb   : > { %v4179_v3 = vpop.f32.mrf.mxu3 }
 0x2cc PF: > { %p16_p8 = scmp.ge.s32.totalorder %s7056_s17, 12   ;;  %s8442_s12 = smov %s7003_s13 }
 0x2cd   : > { %s8443_s13 = smov %s7007_s14  ;;  %s8444_s14 = smov %s7066_s20 }
 0x2ce   : > { %s8445_s15 = smov %s7056_s17  ;;  %18 = sbr.rel (!%p16_p8) target bundleno = 5 (0x5), region = 85 }
 0x2d3   :  { %4219 = vsyncpa [#allocation3], 1 }
 0x2d4   :  { %4221 = vsyncpa [#allocation3 + $0x1], 1 }
 0x2d5   :  { %4222 = vsyncpa [#allocation5], 1 }
 0x2d6   :  { %4224 = vsyncpa [#allocation5 + $0x1], 1 }

// kernel: discriminator_q_forward.5
= control target key start
LH: loop header
LB: loop body
LE: loop exit
PB: predicated region body
PF: predicated region fallthrough
CT: control target
= control target key end

     0   :  { %8 = vsyncpa [#allocation3], 0  ;;  %s4534_s0 = inlined_call_operand.vmem [shape: f32[8,1024], index: 0, kind: input, shape index: {}]   ;;  %s4535_s1 = inlined_call_operand.hbm [shape: bf16[1024,2048], index: 1, kind: input, shape index: {}]   ;;  %s4536_s2 = inlined_call_operand.hbm [shape: f32[1,2048], index: 2, kind: input, shape index: {}]   ;;  %s4537_s3 = inlined_call_operand.vmem [shape: f32[8,2048], index: 3, kind: output, shape index: {}]  }
   0x1   :  { %10 = vsyncpa [#allocation3 + $0x1], 0 }
   0x2   :  { %11 = vsyncpa [#allocation5], 0 }
   0x3   :  { %13 = vsyncpa [#allocation5 + $0x1], 0  ;;  %s3786_s12 = smov 0   ;;  %s3788_s13 = smov 0  }
   0x4   :  { %s3790_s14 = smov 0   ;;  %s3792_s15 = smov 0  }
   0x5 LB: > { %s2319_s16 = sadd.s32 4294967295, %s3761_s15   ;;  %s3806_s17 = sadd.s32 1, %s3761_s15   ;;  %s3761_s15 = sphi %s3792_s15, %s4545_s15   ;;  %s3757_s14 = sphi %s3790_s14, %s4544_s14   ;;  %s3753_s13 = sphi %s3788_s13, %s4543_s13   ;;  %s3749_s12 = sphi %s3786_s12, %s4542_s12  }
   0x6   : > { %s44_s18 = ssub.s32 %s3761_s15, %s3806_s17  ;;  %s47_s19 = sadd.s32 1, %s3757_s14 }
   0x7   : > { %p45_p0 = scmp.eq.s32.totalorder %s44_s18, 0  ;;  %p54_p1 = scmp.ne.s32.totalorder %s3757_s14, %s3753_s13 }
   0x8   : > { %p55_p2 = scmp.eq.s32.totalorder %s3761_s15, 0  ;;  %p60_p3 = scmp.ne.s32.totalorder %s3753_s13, %s3749_s12 }
   0x9   : > { %s3816_s20 = scalar_select %p45_p0, %s3757_s14, %s47_s19  }
   0xa   : > { %p3818_p4 = por %p55_p2, %p54_p1  ;;  %p61_p5 = scmp.eq.s32.totalorder %s2319_s16, 0 }
   0xb   : > { %p3627_p6 = scmp.lt.s32.totalorder %s3761_s15, 4  ;;  %s3830_s23 = sand.u32 1, %s3757_s14  }
   0xc   : > { %p3825_p7 = por %p61_p5, %p60_p3  ;;  %s2323_s24 = sshll.u32 %s3830_s23, 11 }
   0xd   : > { %s3359_s25 = sshll.u32 %s3761_s15, 4  ;;  %s143_s29 = scalar_lea.vmem [#allocation2], %s2323_s24 }
   0xe   : > { %s148_s28 = scalar_lea.hbm %s4535_s1, %s3359_s25  ;;  %s151_s30 = sshll.u32 %s143_s29, 4  ;;  %s152_s30 = int_to_ptr.vmem [resolvable:$true] %s151_s30 }
   0xf   : > { %s149_s4 = sshll.u32 %s148_s28, 4  ;;  %p3839_p8 = pnand %p3627_p6, %p3818_p4  ;;  %s150_s4 = int_to_ptr.hbm [resolvable:$true] %s149_s4 }
  0x10   : > { %s140_s6 = scalar_lea.sflag [#allocation3], %s3830_s23  ;;  %s3663_s7 = sshra.s32 %s150_s4, 4  ;;  %s3664_s7 = int_to_ptr.hbm [resolvable:$true] %s3663_s7 }
  0x11   : > { %s3665_s8 = scalar_lea.hbm %s3664_s7, 2048  ;;  %p3667_p10 = pneg %p3839_p8 }
  0x12   : > { %p3666_p9 = scmp.ne.s32.totalorder %s3664_s7, %s3665_s8  ;;  %s3670_s11 = scalar_lea.hbm %s4535_s1, 8192 }
  0x13   : > { %p3671_p13 = scmp.lt.s32.totalorder %s3664_s7, %s4535_s1  ;;  %p3672_p0 = scmp.lt.s32.totalorder %s3670_s11, %s3665_s8 }
  0x14   : > { %p3668_p11 = pnand %p3667_p10, %p3666_p9 }
  0x15   : > { %p3673_p1 = por %p3672_p0, %p3671_p13 }
  0x16   : > { %p3669_p12 = pneg %p3668_p11 }
  0x18   : > { %p3674_p2 = pnand %p3673_p1, %p3669_p12 }
  0x1a   : > { %3677 = shalt.err (!%p3674_p2)
}
  0x1b   : > { %s3763_s19 = smov 1024   ;;  %s3764_s21 = smov 256  }
  0x1c   : > { %s3765_s24 = smov 16   ;;  %p2328_p3 = scmp.ge.s32.totalorder %s3761_s15, 1 }
  0x1d   : > { %3623 = dma.hbm_to_vmem [thread:$0]  (!%p3839_p8), %s150_s4, 32768, %s152_s30, %s140_s6, %s3763_s19, %s3764_s21, %s3765_s24  }
  0x1e   : > { %p178_p4 = scmp.lt.s32.totalorder %s3761_s15, 5  ;;  %s2326_s25 = sshll.u32 %s3830_s23, 2 }
  0x1f   : > { %s2327_s27 = sshll.u32 %s3761_s15, 2  ;;  %s165_s28 = scalar_lea.vmem [#allocation4], %s2326_s25 }
  0x20   : > { %p3860_p5 = pnand %p2328_p3, %p178_p4  ;;  %s173_s29 = sshll.u32 %s165_s28, 4  ;;  %s174_s29 = int_to_ptr.vmem [resolvable:$true] %s173_s29 }
  0x21   : > { %s169_s9 = scalar_lea.hbm %s4536_s2, %s2327_s27  ;;  %s162_s11 = scalar_lea.sflag [#allocation5], %s3830_s23 }
  0x22   : > { %s171_s10 = sshll.u32 %s169_s9, 4  ;;  %s3700_s18 = scalar_lea.hbm %s4536_s2, 16  ;;  %s172_s10 = int_to_ptr.hbm [resolvable:$true] %s171_s10 }
  0x23   : > { %s3693_s30 = sshra.s32 %s172_s10, 4  ;;  %s3694_s30 = int_to_ptr.hbm [resolvable:$true] %s3693_s30 }
  0x24   : > { %s3695_s4 = scalar_lea.hbm %s3694_s30, 4  ;;  %p3701_p12 = scmp.lt.s32.totalorder %s3694_s30, %s4536_s2 }
  0x25   : > { %p3696_p6 = scmp.ne.s32.totalorder %s3694_s30, %s3695_s4  ;;  %p3702_p13 = scmp.lt.s32.totalorder %s3700_s18, %s3695_s4 }
  0x27   : > { %p3698_p9 = pnand %p3696_p6, %p3667_p10  ;;  %p3703_p0 = por %p3702_p13, %p3701_p12 }
  0x29   : > { %p3699_p11 = pneg %p3698_p9 }
  0x2b   : > { %p3704_p1 = pnand %p3703_p0, %p3699_p11 }
  0x2d   : > { %3707 = shalt.err (!%p3704_p1)
}
  0x2e   : > { %3626 = dma.hbm_to_vmem [thread:$0]  (!%p3839_p8), %s172_s10, 64, %s174_s29, %s162_s11  }
  0x2f   : > { %182 = sbr.rel (%p3860_p5) target bundleno = 458 (0x1ca), region = 32  ;;  %s184_s23 = sand.u32 (!%p3860_p5), 1, %s3753_s13  }
  0x30   : > { %s2329_s24 = sshll.u32 (!%p3860_p5), %s184_s23, 11  ;;  %s185_s25 = scalar_lea.sflag (!%p3860_p5), [#allocation3], %s184_s23 }
  0x31   : > { %s3883_s27 = scalar_lea.vmem (!%p3860_p5), [#allocation2], %s2329_s24 }
  0x34   : > { %3740 = dma.done.wait (%p3825_p7), %s185_s25, 32768  }
  0x35   : > { %3742 = vsyncadd (%p3825_p7), %s185_s25, 4294934528  ;;  %s2330_s28 = sshll.u32 %s184_s23, 2  ;;  %s195_s7 = scalar_lea.sflag [#allocation5], %s184_s23 }
  0x36   : > { %s3889_s5 = scalar_lea.vmem [#allocation4], %s2330_s28 }
  0x37   : > { %3744 = dma.done.wait (%p3825_p7), %s195_s7, 64  }
  0x38   : > { %3746 = vsyncadd (%p3825_p7), %s195_s7, 4294967232  ;;  %v2447_v0 = vld [vmem:[%s3883_s27 + $0xe0] sm:$0xf]  ;;  %v3390_v1 = vld [vmem:[%s3883_s27 + $0xec] sm:$0xf0]  ;;  %s4381_s25 = sshll.u32 %s2319_s16, 2 }
  0x39   : > { %v2575_v2 = vld [vmem:[%s3883_s27 + $0x1e0] sm:$0xf]  ;;  %v2448_v3 = vor.u32 %v3390_v1, %v2447_v0  ;;  %v3422_v4 = vld [vmem:[%s3883_s27 + $0x1ec] sm:$0xf0]  ;;  %p230_p7 = scmp.lt.s32.totalorder %s4381_s25, 15 }
  0x3a   : > { %v2703_v5 = vld [vmem:[%s3883_s27 + $0x2e0] sm:$0xf]  ;;  %v3454_v6 = vld [vmem:[%s3883_s27 + $0x2ec] sm:$0xf0]  ;;  %v2576_v7 = vor.u32 %v3422_v4, %v2575_v2 }
  0x3b   : > { %v2704_v8 = vor.u32 %v3454_v6, %v2703_v5  ;;  %v2831_v9 = vld [vmem:[%s3883_s27 + $0x3e0] sm:$0xf]  ;;  %v3486_v10 = vld [vmem:[%s3883_s27 + $0x3ec] sm:$0xf0]  ;;  %1797 = vmatpush.bf16.msra.mxu0 %v2448_v3  ;;  %s4547_s25 = smov (!%p230_p7, %s4381_s25), 15 }
  0x3c   : > { %v2431_v11 = vld [vmem:[%s3883_s27 + $0xc0] sm:$0xf]  ;;  %v2832_v12 = vor.u32 %v3486_v10, %v2831_v9  ;;  %v3386_v13 = vld [vmem:[%s3883_s27 + $0xcc] sm:$0xf0]  ;;  %1810 = vmatpush.bf16.msra.mxu1 %v2576_v7  ;;  %s2332_s15 = sshll.u32 %s4547_s25, 3 }
  0x3d   : > { %v2559_v14 = vld [vmem:[%s3883_s27 + $0x1c0] sm:$0xf]  ;;  %v3418_v15 = vld [vmem:[%s3883_s27 + $0x1cc] sm:$0xf0]  ;;  %1823 = vmatpush.bf16.msra.mxu2 %v2704_v8  ;;  %v2432_v16 = vor.u32 %v3386_v13, %v2431_v11  ;;  %s4423_s7 = scalar_lea.vmem %s4537_s3, %s2332_s15 }
  0x3e   : > { %v2560_v17 = vor.u32 %v3418_v15, %v2559_v14  ;;  %v2687_v18 = vld [vmem:[%s3883_s27 + $0x2c0] sm:$0xf]  ;;  %v3450_v19 = vld [vmem:[%s3883_s27 + $0x2cc] sm:$0xf0]  ;;  %1836 = vmatpush.bf16.msra.mxu3 %v2832_v12 }
  0x3f   : > { %v2815_v20 = vld [vmem:[%s3883_s27 + $0x3c0] sm:$0xf]  ;;  %v2688_v21 = vor.u32 %v3450_v19, %v2687_v18  ;;  %v3482_v22 = vld [vmem:[%s3883_s27 + $0x3cc] sm:$0xf0]  ;;  %1798 = vmatpush.bf16.msra.mxu0 %v2432_v16 }
  0x40   : > { %v2415_v23 = vld [vmem:[%s3883_s27 + $0xa0] sm:$0xf]  ;;  %v3382_v24 = vld [vmem:[%s3883_s27 + $0xac] sm:$0xf0]  ;;  %v2816_v25 = vor.u32 %v3482_v22, %v2815_v20  ;;  %1811 = vmatpush.bf16.msra.mxu1 %v2560_v17 }
  0x41   : > { %v2543_v26 = vld [vmem:[%s3883_s27 + $0x1a0] sm:$0xf]  ;;  %v3414_v27 = vld [vmem:[%s3883_s27 + $0x1ac] sm:$0xf0]  ;;  %v2416_v29 = vor.u32 %v3382_v24, %v2415_v23  ;;  %1824 = vmatpush.bf16.msra.mxu2 %v2688_v21 }
  0x42   : > { %v2671_v28 = vld [vmem:[%s3883_s27 + $0x2a0] sm:$0xf]  ;;  %v3446_v30 = vld [vmem:[%s3883_s27 + $0x2ac] sm:$0xf0]  ;;  %v2544_v33 = vor.u32 %v3414_v27, %v2543_v26  ;;  %1837 = vmatpush.bf16.msra.mxu3 %v2816_v25 }
  0x43   : > { %v2799_v31 = vld [vmem:[%s3883_s27 + $0x3a0] sm:$0xf]  ;;  %v3478_v32 = vld [vmem:[%s3883_s27 + $0x3ac] sm:$0xf0]  ;;  %v2672_v34 = vor.u32 %v3446_v30, %v2671_v28  ;;  %1799 = vmatpush.bf16.msra.mxu0 %v2416_v29 }
  0x44   : > { %v2399_v35 = vld [vmem:[%s3883_s27 + $0x80] sm:$0xf]  ;;  %v3378_v36 = vld [vmem:[%s3883_s27 + $0x8c] sm:$0xf0]  ;;  %v2800_v38 = vor.u32 %v3478_v32, %v2799_v31  ;;  %1812 = vmatpush.bf16.msra.mxu1 %v2544_v33 }
  0x45   : > { %v2527_v37 = vld [vmem:[%s3883_s27 + $0x180] sm:$0xf]  ;;  %v3410_v39 = vld [vmem:[%s3883_s27 + $0x18c] sm:$0xf0]  ;;  %v2400_v44 = vor.u32 %v3378_v36, %v2399_v35  ;;  %1825 = vmatpush.bf16.msra.mxu2 %v2672_v34 }
  0x46   : > { %v2655_v40 = vld [vmem:[%s3883_s27 + $0x280] sm:$0xf]  ;;  %v3442_v41 = vld [vmem:[%s3883_s27 + $0x28c] sm:$0xf0]  ;;  %v2528_v45 = vor.u32 %v3410_v39, %v2527_v37  ;;  %1838 = vmatpush.bf16.msra.mxu3 %v2800_v38 }
  0x47   : > { %v2783_v42 = vld [vmem:[%s3883_s27 + $0x380] sm:$0xf]  ;;  %v3474_v43 = vld [vmem:[%s3883_s27 + $0x38c] sm:$0xf0]  ;;  %v2656_v46 = vor.u32 %v3442_v41, %v2655_v40  ;;  %1800 = vmatpush.bf16.msra.mxu0 %v2400_v44 }
  0x48   : > { %v2383_v47 = vld [vmem:[%s3883_s27 + $0x60] sm:$0xf]  ;;  %v3374_v48 = vld [vmem:[%s3883_s27 + $0x6c] sm:$0xf0]  ;;  %v2784_v50 = vor.u32 %v3474_v43, %v2783_v42  ;;  %1813 = vmatpush.bf16.msra.mxu1 %v2528_v45 }
  0x49   : > { %v2511_v49 = vld [vmem:[%s3883_s27 + $0x160] sm:$0xf]  ;;  %v3406_v51 = vld [vmem:[%s3883_s27 + $0x16c] sm:$0xf0]  ;;  %v2384_v56 = vor.u32 %v3374_v48, %v2383_v47  ;;  %1826 = vmatpush.bf16.msra.mxu2 %v2656_v46 }
  0x4a   : > { %v2639_v52 = vld [vmem:[%s3883_s27 + $0x260] sm:$0xf]  ;;  %v3438_v53 = vld [vmem:[%s3883_s27 + $0x26c] sm:$0xf0]  ;;  %v2512_v57 = vor.u32 %v3406_v51, %v2511_v49  ;;  %1839 = vmatpush.bf16.msra.mxu3 %v2784_v50 }
  0x4b   : > { %v2767_v54 = vld [vmem:[%s3883_s27 + $0x360] sm:$0xf]  ;;  %v3470_v55 = vld [vmem:[%s3883_s27 + $0x36c] sm:$0xf0]  ;;  %v2640_v58 = vor.u32 %v3438_v53, %v2639_v52  ;;  %1801 = vmatpush.bf16.msra.mxu0 %v2384_v56 }
  0x4c   : > { %v2367_v59 = vld [vmem:[%s3883_s27 + $0x40] sm:$0xf]  ;;  %v3370_v60 = vld [vmem:[%s3883_s27 + $0x4c] sm:$0xf0]  ;;  %v2768_v62 = vor.u32 %v3470_v55, %v2767_v54  ;;  %1814 = vmatpush.bf16.msra.mxu1 %v2512_v57 }
  0x4d   : > { %v2495_v61 = vld [vmem:[%s3883_s27 + $0x140] sm:$0xf]  ;;  %v3402_v63 = vld [vmem:[%s3883_s27 + $0x14c] sm:$0xf0]  ;;  %v2368_v4 = vor.u32 %v3370_v60, %v2367_v59  ;;  %1827 = vmatpush.bf16.msra.mxu2 %v2640_v58 }
  0x4e   : > { %v2623_v0 = vld [vmem:[%s3883_s27 + $0x240] sm:$0xf]  ;;  %v3434_v1 = vld [vmem:[%s3883_s27 + $0x24c] sm:$0xf0]  ;;  %v2496_v5 = vor.u32 %v3402_v63, %v2495_v61  ;;  %1840 = vmatpush.bf16.msra.mxu3 %v2768_v62 }
  0x4f   : > { %v2751_v2 = vld [vmem:[%s3883_s27 + $0x340] sm:$0xf]  ;;  %v3466_v3 = vld [vmem:[%s3883_s27 + $0x34c] sm:$0xf0]  ;;  %v2624_v6 = vor.u32 %v3434_v1, %v2623_v0  ;;  %1802 = vmatpush.bf16.msra.mxu0 %v2368_v4  ;;  %v238_v1 = vld [vmem:[%s4534_s0 + $0x18] sm:$0xff] }
  0x50   : > { %v2351_v7 = vld [vmem:[%s3883_s27 + $0x20] sm:$0xf]  ;;  %v3366_v8 = vld [vmem:[%s3883_s27 + $0x2c] sm:$0xf0]  ;;  %v2752_v10 = vor.u32 %v3466_v3, %v2751_v2  ;;  %1815 = vmatpush.bf16.msra.mxu1 %v2496_v5  ;;  %v3996_v5 = vpack.c.bf16 %v238_v1, %v238_v1 }
  0x51   : > { %v2479_v9 = vld [vmem:[%s3883_s27 + $0x120] sm:$0xf]  ;;  %v3398_v11 = vld [vmem:[%s3883_s27 + $0x12c] sm:$0xf0]  ;;  %v2352_v16 = vor.u32 %v3366_v8, %v2351_v7  ;;  %1828 = vmatpush.bf16.msra.mxu2 %v2624_v6 }
  0x52   : > { %v2607_v12 = vld [vmem:[%s3883_s27 + $0x220] sm:$0xf]  ;;  %v3430_v13 = vld [vmem:[%s3883_s27 + $0x22c] sm:$0xf0]  ;;  %v2480_v19 = vor.u32 %v3398_v11, %v2479_v9  ;;  %1841 = vmatpush.bf16.msra.mxu3 %v2752_v10 }
  0x53   : > { %v2735_v14 = vld [vmem:[%s3883_s27 + $0x320] sm:$0xf]  ;;  %v3462_v15 = vld [vmem:[%s3883_s27 + $0x32c] sm:$0xf0]  ;;  %v2608_v20 = vor.u32 %v3430_v13, %v2607_v12  ;;  %1803 = vmatpush.bf16.msra.mxu0 %v2352_v16  ;;  %v236_v12 = vld [vmem:[%s4534_s0 + $0x8] sm:$0xff] }
  0x54   : > { %v2335_v17 = vld [vmem:[%s3883_s27] sm:$0xf]  ;;  %v3362_v18 = vld [vmem:[%s3883_s27 + $0xc] sm:$0xf0]  ;;  %v2736_v24 = vor.u32 %v3462_v15, %v2735_v14  ;;  %1816 = vmatpush.bf16.msra.mxu1 %v2480_v19 }
  0x55   : > { %v2463_v21 = vld [vmem:[%s3883_s27 + $0x100] sm:$0xf]  ;;  %v3394_v22 = vld [vmem:[%s3883_s27 + $0x10c] sm:$0xf0]  ;;  %v2336_v31 = vor.u32 %v3362_v18, %v2335_v17  ;;  %1829 = vmatpush.bf16.msra.mxu2 %v2608_v20  ;;  %v4009_v17 = vpack.c.bf16 %v236_v12, %v236_v12  ;;  %v3452_v12 = vld [vmem:[%s3883_s27 + $0x2e4] sm:$0xf] }
  0x56   : > { %v2591_v23 = vld [vmem:[%s3883_s27 + $0x200] sm:$0xf]  ;;  %v3426_v25 = vld [vmem:[%s3883_s27 + $0x20c] sm:$0xf0]  ;;  %v2464_v35 = vor.u32 %v3394_v22, %v2463_v21  ;;  %1842 = vmatpush.bf16.msra.mxu3 %v2736_v24 }
  0x57   : > { %v2719_v26 = vld [vmem:[%s3883_s27 + $0x300] sm:$0xf]  ;;  %v3458_v27 = vld [vmem:[%s3883_s27 + $0x30c] sm:$0xf0]  ;;  %v2592_v36 = vor.u32 %v3426_v25, %v2591_v23  ;;  %1804 = vmatpush.bf16.msra.mxu0 %v2336_v31 }
  0x58   : > { %v2959_v28 = vld [vmem:[%s3883_s27 + $0x4e0] sm:$0xf]  ;;  %v3518_v29 = vld [vmem:[%s3883_s27 + $0x4ec] sm:$0xf0]  ;;  %v2720_v39 = vor.u32 %v3458_v27, %v2719_v26  ;;  %1817 = vmatpush.bf16.msra.mxu1 %v2464_v35 }
  0x59   : > { %v3087_v30 = vld [vmem:[%s3883_s27 + $0x5e0] sm:$0xf]  ;;  %v3550_v32 = vld [vmem:[%s3883_s27 + $0x5ec] sm:$0xf0]  ;;  %v2960_v40 = vor.u32 %v3518_v29, %v2959_v28  ;;  %1830 = vmatpush.bf16.msra.mxu2 %v2592_v36 }
  0x5a   : > { %v3215_v33 = vld [vmem:[%s3883_s27 + $0x6e0] sm:$0xf]  ;;  %v3582_v34 = vld [vmem:[%s3883_s27 + $0x6ec] sm:$0xf0]  ;;  %v3088_v41 = vor.u32 %v3550_v32, %v3087_v30  ;;  %1843 = vmatpush.bf16.msra.mxu3 %v2720_v39 }
  0x5b   : > { %v3343_v37 = vld [vmem:[%s3883_s27 + $0x7e0] sm:$0xf]  ;;  %v3614_v38 = vld [vmem:[%s3883_s27 + $0x7ec] sm:$0xf0]  ;;  %v3216_v42 = vor.u32 %v3582_v34, %v3215_v33  ;;  %1849 = vmatpush.bf16.msrb.mxu0 %v2960_v40  ;;  %1818 = vmatmul.bf16.vlgmr.msra.gmra.mxu1 %v4009_v17 }
  0x5c   : > { %v2943_v43 = vld [vmem:[%s3883_s27 + $0x4c0] sm:$0xf]  ;;  %v3514_v44 = vld [vmem:[%s3883_s27 + $0x4cc] sm:$0xf0]  ;;  %v3344_v46 = vor.u32 %v3614_v38, %v3343_v37  ;;  %1862 = vmatpush.bf16.msrb.mxu1 %v3088_v41 }
  0x5d   : > { %v3071_v45 = vld [vmem:[%s3883_s27 + $0x5c0] sm:$0xf]  ;;  %v3546_v47 = vld [vmem:[%s3883_s27 + $0x5cc] sm:$0xf0]  ;;  %v2944_v52 = vor.u32 %v3514_v44, %v2943_v43  ;;  %1875 = vmatpush.bf16.msrb.mxu2 %v3216_v42  ;;  %1844 = vmatmul.bf16.vlgmr.msra.gmra.mxu3 %v3996_v5 }
  0x5e   : > { %v3199_v48 = vld [vmem:[%s3883_s27 + $0x6c0] sm:$0xf]  ;;  %v3578_v49 = vld [vmem:[%s3883_s27 + $0x6cc] sm:$0xf0]  ;;  %v3072_v56 = vor.u32 %v3546_v47, %v3071_v45  ;;  %1888 = vmatpush.bf16.msrb.mxu3 %v3344_v46 }
  0x5f   : > { %v3327_v50 = vld [vmem:[%s3883_s27 + $0x7c0] sm:$0xf]  ;;  %v3610_v51 = vld [vmem:[%s3883_s27 + $0x7cc] sm:$0xf0]  ;;  %v3200_v57 = vor.u32 %v3578_v49, %v3199_v48  ;;  %1850 = vmatpush.bf16.msrb.mxu0 %v2944_v52 }
  0x60   : > { %v2927_v53 = vld [vmem:[%s3883_s27 + $0x4a0] sm:$0xf]  ;;  %v3510_v54 = vld [vmem:[%s3883_s27 + $0x4ac] sm:$0xf0]  ;;  %v3328_v61 = vor.u32 %v3610_v51, %v3327_v50  ;;  %1863 = vmatpush.bf16.msrb.mxu1 %v3072_v56 }
  0x61   : > { %v3055_v55 = vld [vmem:[%s3883_s27 + $0x5a0] sm:$0xf]  ;;  %v3542_v58 = vld [vmem:[%s3883_s27 + $0x5ac] sm:$0xf0]  ;;  %v2928_v6 = vor.u32 %v3510_v54, %v2927_v53  ;;  %1876 = vmatpush.bf16.msrb.mxu2 %v3200_v57 }
  0x62   : > { %v3183_v59 = vld [vmem:[%s3883_s27 + $0x6a0] sm:$0xf]  ;;  %v237_v60 = vld [vmem:[%s4534_s0 + $0x10] sm:$0xff]  ;;  %v3056_v8 = vor.u32 %v3542_v58, %v3055_v55  ;;  %1889 = vmatpush.bf16.msrb.mxu3 %v3328_v61 }
  0x63   : > { %v3574_v62 = vld [vmem:[%s3883_s27 + $0x6ac] sm:$0xf0]  ;;  %v3984_v63 = vpack.c.bf16 %v237_v60, %v237_v60  ;;  %v235_v0 = vld [vmem:[%s4534_s0] sm:$0xff]  ;;  %1851 = vmatpush.bf16.msrb.mxu0 %v2928_v6 }
  0x64   : > { %v3311_v2 = vld [vmem:[%s3883_s27 + $0x7a0] sm:$0xf]  ;;  %v3606_v3 = vld [vmem:[%s3883_s27 + $0x7ac] sm:$0xf0]  ;;  %v3994_v4 = vpack.c.bf16 %v235_v0, %v235_v0  ;;  %v3184_v9 = vor.u32 %v3574_v62, %v3183_v59  ;;  %1864 = vmatpush.bf16.msrb.mxu1 %v3056_v8  ;;  %v2449_v8 = vld [vmem:[%s3883_s27 + $0xf0] sm:$0xf0] }
  0x65   : > { %v2911_v7 = vld [vmem:[%s3883_s27 + $0x480] sm:$0xf]  ;;  %1831 = vmatmul.bf16.vlgmr.msra.gmra.mxu2 %v3984_v63  ;;  %v3506_v10 = vld [vmem:[%s3883_s27 + $0x48c] sm:$0xf0]  ;;  %v3312_v13 = vor.u32 %v3606_v3, %v3311_v2 }
  0x66   : > { %v3039_v11 = vld [vmem:[%s3883_s27 + $0x580] sm:$0xf]  ;;  %v3538_v14 = vld [vmem:[%s3883_s27 + $0x58c] sm:$0xf0]  ;;  %1805 = vmatmul.bf16.vlgmr.msra.gmra.mxu0 %v3994_v4  ;;  %v2912_v20 = vor.u32 %v3506_v10, %v2911_v7  ;;  %1877 = vmatpush.bf16.msrb.mxu2 %v3184_v9  ;;  %v3388_v7 = vld [vmem:[%s3883_s27 + $0xe4] sm:$0xf] }
  0x67   : > { %v3167_v15 = vld [vmem:[%s3883_s27 + $0x680] sm:$0xf]  ;;  %v3570_v16 = vld [vmem:[%s3883_s27 + $0x68c] sm:$0xf0]  ;;  %v3040_v21 = vor.u32 %v3538_v14, %v3039_v11  ;;  %1890 = vmatpush.bf16.msrb.mxu3 %v3312_v13  ;;  %v3420_v9 = vld [vmem:[%s3883_s27 + $0x1e4] sm:$0xf] }
  0x68   : > { %v3295_v18 = vld [vmem:[%s3883_s27 + $0x780] sm:$0xf]  ;;  %v3602_v19 = vld [vmem:[%s3883_s27 + $0x78c] sm:$0xf0]  ;;  %v3168_v22 = vor.u32 %v3570_v16, %v3167_v15  ;;  %1852 = vmatpush.bf16.msrb.mxu0 %v2912_v20  ;;  %v2577_v11 = vld [vmem:[%s3883_s27 + $0x1f0] sm:$0xf0] }
  0x69   : > { %v2895_v23 = vld [vmem:[%s3883_s27 + $0x460] sm:$0xf]  ;;  %v3502_v24 = vld [vmem:[%s3883_s27 + $0x46c] sm:$0xf0]  ;;  %v3296_v26 = vor.u32 %v3602_v19, %v3295_v18  ;;  %1865 = vmatpush.bf16.msrb.mxu1 %v3040_v21  ;;  %v2705_v13 = vld [vmem:[%s3883_s27 + $0x2f0] sm:$0xf0]  ;;  %v2452_v21 = vor.u32 %v3388_v7, %v2449_v8 }
  0x6a   : > { %v3023_v25 = vld [vmem:[%s3883_s27 + $0x560] sm:$0xf]  ;;  %v3534_v27 = vld [vmem:[%s3883_s27 + $0x56c] sm:$0xf0]  ;;  %v2896_v32 = vor.u32 %v3502_v24, %v2895_v23  ;;  %1878 = vmatpush.bf16.msrb.mxu2 %v3168_v22  ;;  %v3484_v16 = vld [vmem:[%s3883_s27 + $0x3e4] sm:$0xf] }
  0x6b   : > { %v3151_v28 = vld [vmem:[%s3883_s27 + $0x660] sm:$0xf]  ;;  %v3566_v29 = vld [vmem:[%s3883_s27 + $0x66c] sm:$0xf0]  ;;  %v3024_v33 = vor.u32 %v3534_v27, %v3023_v25  ;;  %1891 = vmatpush.bf16.msrb.mxu3 %v3296_v26  ;;  %v2833_v18 = vld [vmem:[%s3883_s27 + $0x3f0] sm:$0xf0]  ;;  %v2580_v25 = vor.u32 %v3420_v9, %v2577_v11  ;;  %v2708_v26 = vor.u32 %v3452_v12, %v2705_v13 }
  0x6c   : > { %v3279_v30 = vld [vmem:[%s3883_s27 + $0x760] sm:$0xf]  ;;  %v3598_v31 = vld [vmem:[%s3883_s27 + $0x76c] sm:$0xf0]  ;;  %v3152_v34 = vor.u32 %v3566_v29, %v3151_v28  ;;  %1853 = vmatpush.bf16.msrb.mxu0 %v2896_v32  ;;  %v3384_v22 = vld [vmem:[%s3883_s27 + $0xc4] sm:$0xf] }
  0x6d   : > { %v2879_v35 = vld [vmem:[%s3883_s27 + $0x440] sm:$0xf]  ;;  %v3498_v36 = vld [vmem:[%s3883_s27 + $0x44c] sm:$0xf0]  ;;  %v3280_v38 = vor.u32 %v3598_v31, %v3279_v30  ;;  %1866 = vmatpush.bf16.msrb.mxu1 %v3024_v33  ;;  %v242_v24 = vld [vmem:[%s4534_s0 + $0x38] sm:$0xff]  ;;  %v2836_v30 = vor.u32 %v3484_v16, %v2833_v18 }
  0x6e   : > { %v3007_v37 = vld [vmem:[%s3883_s27 + $0x540] sm:$0xf]  ;;  %v3530_v39 = vld [vmem:[%s3883_s27 + $0x54c] sm:$0xf0]  ;;  %v2880_v44 = vor.u32 %v3498_v36, %v2879_v35  ;;  %1879 = vmatpush.bf16.msrb.mxu2 %v3152_v34  ;;  %v2433_v27 = vld [vmem:[%s3883_s27 + $0xd0] sm:$0xf0] }
  0x6f   : > { %v3135_v40 = vld [vmem:[%s3883_s27 + $0x640] sm:$0xf]  ;;  %v3562_v41 = vld [vmem:[%s3883_s27 + $0x64c] sm:$0xf0]  ;;  %v3008_v45 = vor.u32 %v3530_v39, %v3007_v37  ;;  %1892 = vmatpush.bf16.msrb.mxu3 %v3280_v38  ;;  %v3416_v28 = vld [vmem:[%s3883_s27 + $0x1c4] sm:$0xf]  ;;  %v4079_v38 = vpack.c.bf16 %v242_v24, %v242_v24  ;;  %v2436_v39 = vor.u32 %v3384_v22, %v2433_v27 }
  0x70   : > { %v3263_v42 = vld [vmem:[%s3883_s27 + $0x740] sm:$0xf]  ;;  %v3594_v43 = vld [vmem:[%s3883_s27 + $0x74c] sm:$0xf0]  ;;  %v3136_v46 = vor.u32 %v3562_v41, %v3135_v40  ;;  %1854 = vmatpush.bf16.msrb.mxu0 %v2880_v44  ;;  %v240_v29 = vld [vmem:[%s4534_s0 + $0x28] sm:$0xff] }
  0x71   : > { %v2863_v47 = vld [vmem:[%s3883_s27 + $0x420] sm:$0xf]  ;;  %v3494_v48 = vld [vmem:[%s3883_s27 + $0x42c] sm:$0xf0]  ;;  %v3264_v50 = vor.u32 %v3594_v43, %v3263_v42  ;;  %1867 = vmatpush.bf16.msrb.mxu1 %v3008_v45  ;;  %v2561_v32 = vld [vmem:[%s3883_s27 + $0x1d0] sm:$0xf0]  ;;  %v4081_v40 = vpack.c.bf16 %v240_v29, %v240_v29 }
  0x72   : > { %v2991_v49 = vld [vmem:[%s3883_s27 + $0x520] sm:$0xf]  ;;  %v3526_v51 = vld [vmem:[%s3883_s27 + $0x52c] sm:$0xf0]  ;;  %v2864_v56 = vor.u32 %v3494_v48, %v2863_v47  ;;  %1880 = vmatpush.bf16.msrb.mxu2 %v3136_v46  ;;  %v3448_v33 = vld [vmem:[%s3883_s27 + $0x2c4] sm:$0xf]  ;;  %v2564_v41 = vor.u32 %v3416_v28, %v2561_v32 }
  0x73   : > { %v3119_v52 = vld [vmem:[%s3883_s27 + $0x620] sm:$0xf]  ;;  %v3558_v53 = vld [vmem:[%s3883_s27 + $0x62c] sm:$0xf0]  ;;  %v2992_v59 = vor.u32 %v3526_v51, %v2991_v49  ;;  %1893 = vmatpush.bf16.msrb.mxu3 %v3264_v50  ;;  %v2689_v34 = vld [vmem:[%s3883_s27 + $0x2d0] sm:$0xf0] }
  0x74   : > { %v3247_v54 = vld [vmem:[%s3883_s27 + $0x720] sm:$0xf]  ;;  %v3590_v55 = vld [vmem:[%s3883_s27 + $0x72c] sm:$0xf0]  ;;  %v3120_v60 = vor.u32 %v3558_v53, %v3119_v52  ;;  %1855 = vmatpush.bf16.msrb.mxu0 %v2864_v56  ;;  %v3480_v35 = vld [vmem:[%s3883_s27 + $0x3c4] sm:$0xf]  ;;  %v2692_v42 = vor.u32 %v3448_v33, %v2689_v34 }
  0x75   : > { %v2847_v57 = vld [vmem:[%s3883_s27 + $0x400] sm:$0xf]  ;;  %v3490_v58 = vld [vmem:[%s3883_s27 + $0x40c] sm:$0xf0]  ;;  %v3248_v1 = vor.u32 %v3590_v55, %v3247_v54  ;;  %1868 = vmatpush.bf16.msrb.mxu1 %v2992_v59  ;;  %v2817_v36 = vld [vmem:[%s3883_s27 + $0x3d0] sm:$0xf0] }
  0x76   : > { %v2975_v61 = vld [vmem:[%s3883_s27 + $0x500] sm:$0xf]  ;;  %v3522_v62 = vld [vmem:[%s3883_s27 + $0x50c] sm:$0xf0]  ;;  %v2848_v10 = vor.u32 %v3490_v58, %v2847_v57  ;;  %1881 = vmatpush.bf16.msrb.mxu2 %v3120_v60  ;;  %v3380_v43 = vld [vmem:[%s3883_s27 + $0xa4] sm:$0xf]  ;;  %v2820_v46 = vor.u32 %v3480_v35, %v2817_v36 }
  0x77   : > { %v3103_v0 = vld [vmem:[%s3883_s27 + $0x600] sm:$0xf]  ;;  %v3554_v2 = vld [vmem:[%s3883_s27 + $0x60c] sm:$0xf0]  ;;  %v2976_v14 = vor.u32 %v3522_v62, %v2975_v61  ;;  %1894 = vmatpush.bf16.msrb.mxu3 %v3248_v1  ;;  %v2417_v44 = vld [vmem:[%s3883_s27 + $0xb0] sm:$0xf0] }
  0x78   : > { %v3231_v3 = vld [vmem:[%s3883_s27 + $0x700] sm:$0xf]  ;;  %v3586_v6 = vld [vmem:[%s3883_s27 + $0x70c] sm:$0xf0]  ;;  %v3104_v15 = vor.u32 %v3554_v2, %v3103_v0  ;;  %1856 = vmatpush.bf16.msrb.mxu0 %v2848_v10  ;;  %v3412_v45 = vld [vmem:[%s3883_s27 + $0x1a4] sm:$0xf]  ;;  %v2420_v52 = vor.u32 %v3380_v43, %v2417_v44 }
  0x79   : > { %v241_v19 = vld [vmem:[%s4534_s0 + $0x30] sm:$0xff]  ;;  %v3232_v20 = vor.u32 %v3586_v6, %v3231_v3  ;;  %v239_v23 = vld [vmem:[%s4534_s0 + $0x20] sm:$0xff]  ;;  %1869 = vmatpush.bf16.msrb.mxu1 %v2976_v14 }
  0x7a   : > { %v4070_v31 = vpack.c.bf16 %v241_v19, %v241_v19  ;;  %1882 = vmatpush.bf16.msrb.mxu2 %v3104_v15  ;;  %v4077_v37 = vpack.c.bf16 %v239_v23, %v239_v23  ;;  %v2545_v47 = vld [vmem:[%s3883_s27 + $0x1b0] sm:$0xf0]  ;;  %v3444_v48 = vld [vmem:[%s3883_s27 + $0x2a4] sm:$0xf] }
  0x7b   : > { %1895 = vmatpush.bf16.msrb.mxu3 %v3232_v20  ;;  %v2673_v49 = vld [vmem:[%s3883_s27 + $0x2b0] sm:$0xf0]  ;;  %v3476_v50 = vld [vmem:[%s3883_s27 + $0x3a4] sm:$0xf]  ;;  %v2548_v53 = vor.u32 %v3412_v45, %v2545_v47 }
  0x7c   : > { %1901 = vmatpush.bf16.msra.mxu0 %v2452_v21  ;;  %v2801_v51 = vld [vmem:[%s3883_s27 + $0x3b0] sm:$0xf0]  ;;  %1870 = vmatmul.bf16.vlgmr.msrb.gmra.mxu1 %v4081_v40  ;;  %v2676_v54 = vor.u32 %v3444_v48, %v2673_v49  ;;  %v3376_v55 = vld [vmem:[%s3883_s27 + $0x84] sm:$0xf] }
  0x7d   : > { %1914 = vmatpush.bf16.msra.mxu1 %v2580_v25  ;;  %1883 = vmatmul.bf16.vlgmr.msrb.gmra.mxu2 %v4070_v31  ;;  %v2401_v56 = vld [vmem:[%s3883_s27 + $0x90] sm:$0xf0]  ;;  %v3408_v57 = vld [vmem:[%s3883_s27 + $0x184] sm:$0xf]  ;;  %v2804_v58 = vor.u32 %v3476_v50, %v2801_v51 }
  0x7e   : > { %1927 = vmatpush.bf16.msra.mxu2 %v2708_v26  ;;  %1857 = vmatmul.bf16.vlgmr.msrb.gmra.mxu0 %v4077_v37  ;;  %v2529_v59 = vld [vmem:[%s3883_s27 + $0x190] sm:$0xf0]  ;;  %v3440_v60 = vld [vmem:[%s3883_s27 + $0x284] sm:$0xf]  ;;  %v2404_v1 = vor.u32 %v3376_v55, %v2401_v56 }
  0x7f   : > { %1940 = vmatpush.bf16.msra.mxu3 %v2836_v30  ;;  %v2657_v61 = vld [vmem:[%s3883_s27 + $0x290] sm:$0xf0]  ;;  %v3472_v62 = vld [vmem:[%s3883_s27 + $0x384] sm:$0xf]  ;;  %v2532_v2 = vor.u32 %v3408_v57, %v2529_v59 }
  0x80   : > { %1896 = vmatmul.bf16.vlgmr.msrb.gmra.mxu3 %v4079_v38  ;;  %1902 = vmatpush.bf16.msra.mxu0 %v2436_v39  ;;  %v2785_v0 = vld [vmem:[%s3883_s27 + $0x390] sm:$0xf0]  ;;  %v2660_v3 = vor.u32 %v3440_v60, %v2657_v61  ;;  %v3372_v6 = vld [vmem:[%s3883_s27 + $0x64] sm:$0xf] }
  0x81   : > { %1915 = vmatpush.bf16.msra.mxu1 %v2564_v41  ;;  %v2385_v7 = vld [vmem:[%s3883_s27 + $0x70] sm:$0xf0]  ;;  %v3404_v8 = vld [vmem:[%s3883_s27 + $0x164] sm:$0xf]  ;;  %v2788_v9 = vor.u32 %v3472_v62, %v2785_v0 }
  0x82   : > { %1928 = vmatpush.bf16.msra.mxu2 %v2692_v42  ;;  %v2513_v10 = vld [vmem:[%s3883_s27 + $0x170] sm:$0xf0]  ;;  %v3436_v11 = vld [vmem:[%s3883_s27 + $0x264] sm:$0xf]  ;;  %v2388_v15 = vor.u32 %v3372_v6, %v2385_v7 }
  0x83   : > { %1941 = vmatpush.bf16.msra.mxu3 %v2820_v46  ;;  %v2641_v12 = vld [vmem:[%s3883_s27 + $0x270] sm:$0xf0]  ;;  %v3468_v13 = vld [vmem:[%s3883_s27 + $0x364] sm:$0xf]  ;;  %v2516_v16 = vor.u32 %v3404_v8, %v2513_v10 }
  0x84   : > { %1903 = vmatpush.bf16.msra.mxu0 %v2420_v52  ;;  %v2769_v14 = vld [vmem:[%s3883_s27 + $0x370] sm:$0xf0]  ;;  %v2644_v18 = vor.u32 %v3436_v11, %v2641_v12  ;;  %v3368_v19 = vld [vmem:[%s3883_s27 + $0x44] sm:$0xf] }
  0x85   : > { %1916 = vmatpush.bf16.msra.mxu1 %v2548_v53  ;;  %v2369_v20 = vld [vmem:[%s3883_s27 + $0x50] sm:$0xf0]  ;;  %v3400_v21 = vld [vmem:[%s3883_s27 + $0x144] sm:$0xf]  ;;  %v2772_v22 = vor.u32 %v3468_v13, %v2769_v14 }
  0x86   : > { %1929 = vmatpush.bf16.msra.mxu2 %v2676_v54  ;;  %v2497_v23 = vld [vmem:[%s3883_s27 + $0x150] sm:$0xf0]  ;;  %v3432_v24 = vld [vmem:[%s3883_s27 + $0x244] sm:$0xf]  ;;  %v2372_v28 = vor.u32 %v3368_v19, %v2369_v20 }
  0x87   : > { %1942 = vmatpush.bf16.msra.mxu3 %v2804_v58  ;;  %v2625_v25 = vld [vmem:[%s3883_s27 + $0x250] sm:$0xf0]  ;;  %v3464_v26 = vld [vmem:[%s3883_s27 + $0x344] sm:$0xf]  ;;  %v2500_v29 = vor.u32 %v3400_v21, %v2497_v23 }
  0x88   : > { %1904 = vmatpush.bf16.msra.mxu0 %v2404_v1  ;;  %v2753_v27 = vld [vmem:[%s3883_s27 + $0x350] sm:$0xf0]  ;;  %v2628_v30 = vor.u32 %v3432_v24, %v2625_v25  ;;  %v3364_v32 = vld [vmem:[%s3883_s27 + $0x24] sm:$0xf] }
  0x89   : > { %1917 = vmatpush.bf16.msra.mxu1 %v2532_v2  ;;  %v2353_v33 = vld [vmem:[%s3883_s27 + $0x30] sm:$0xf0]  ;;  %v3396_v34 = vld [vmem:[%s3883_s27 + $0x124] sm:$0xf]  ;;  %v2756_v35 = vor.u32 %v3464_v26, %v2753_v27 }
  0x8a   : > { %1930 = vmatpush.bf16.msra.mxu2 %v2660_v3  ;;  %v2481_v36 = vld [vmem:[%s3883_s27 + $0x130] sm:$0xf0]  ;;  %v3428_v39 = vld [vmem:[%s3883_s27 + $0x224] sm:$0xf]  ;;  %v2356_v44 = vor.u32 %v3364_v32, %v2353_v33 }
  0x8b   : > { %1943 = vmatpush.bf16.msra.mxu3 %v2788_v9  ;;  %v2609_v41 = vld [vmem:[%s3883_s27 + $0x230] sm:$0xf0]  ;;  %v3460_v42 = vld [vmem:[%s3883_s27 + $0x324] sm:$0xf]  ;;  %v2484_v47 = vor.u32 %v3396_v34, %v2481_v36 }
  0x8c   : > { %1905 = vmatpush.bf16.msra.mxu0 %v2388_v15  ;;  %v2737_v43 = vld [vmem:[%s3883_s27 + $0x330] sm:$0xf0]  ;;  %v3360_v45 = vld [vmem:[%s3883_s27 + $0x4] sm:$0xf]  ;;  %v2612_v48 = vor.u32 %v3428_v39, %v2609_v41 }
  0x8d   : > { %1918 = vmatpush.bf16.msra.mxu1 %v2516_v16  ;;  %v2337_v46 = vld [vmem:[%s3883_s27 + $0x10] sm:$0xf0]  ;;  %v3392_v49 = vld [vmem:[%s3883_s27 + $0x104] sm:$0xf]  ;;  %v2740_v52 = vor.u32 %v3460_v42, %v2737_v43 }
  0x8e   : > { %1931 = vmatpush.bf16.msra.mxu2 %v2644_v18  ;;  %v2465_v50 = vld [vmem:[%s3883_s27 + $0x110] sm:$0xf0]  ;;  %v3424_v51 = vld [vmem:[%s3883_s27 + $0x204] sm:$0xf]  ;;  %v2340_v59 = vor.u32 %v3360_v45, %v2337_v46 }
  0x8f   : > { %1944 = vmatpush.bf16.msra.mxu3 %v2772_v22  ;;  %v2593_v53 = vld [vmem:[%s3883_s27 + $0x210] sm:$0xf0]  ;;  %v3456_v54 = vld [vmem:[%s3883_s27 + $0x304] sm:$0xf]  ;;  %v2468_v0 = vor.u32 %v3392_v49, %v2465_v50 }
  0x90   : > { %1906 = vmatpush.bf16.msra.mxu0 %v2372_v28  ;;  %v2721_v55 = vld [vmem:[%s3883_s27 + $0x310] sm:$0xf0]  ;;  %v3516_v56 = vld [vmem:[%s3883_s27 + $0x4e4] sm:$0xf]  ;;  %v2596_v1 = vor.u32 %v3424_v51, %v2593_v53 }
  0x91   : > { %1919 = vmatpush.bf16.msra.mxu1 %v2500_v29  ;;  %v2961_v57 = vld [vmem:[%s3883_s27 + $0x4f0] sm:$0xf0]  ;;  %v3548_v58 = vld [vmem:[%s3883_s27 + $0x5e4] sm:$0xf]  ;;  %v2724_v6 = vor.u32 %v3456_v54, %v2721_v55 }
  0x92   : > { %1932 = vmatpush.bf16.msra.mxu2 %v2628_v30  ;;  %v3089_v60 = vld [vmem:[%s3883_s27 + $0x5f0] sm:$0xf0]  ;;  %v3580_v61 = vld [vmem:[%s3883_s27 + $0x6e4] sm:$0xf]  ;;  %v2964_v7 = vor.u32 %v3516_v56, %v2961_v57 }
  0x93   : > { %1945 = vmatpush.bf16.msra.mxu3 %v2756_v35  ;;  %v3217_v62 = vld [vmem:[%s3883_s27 + $0x6f0] sm:$0xf0]  ;;  %v3612_v2 = vld [vmem:[%s3883_s27 + $0x7e4] sm:$0xf]  ;;  %v3092_v8 = vor.u32 %v3548_v58, %v3089_v60 }
  0x94   : > { %1907 = vmatpush.bf16.msra.mxu0 %v2356_v44  ;;  %v3345_v3 = vld [vmem:[%s3883_s27 + $0x7f0] sm:$0xf0]  ;;  %v3220_v9 = vor.u32 %v3580_v61, %v3217_v62  ;;  %v3512_v10 = vld [vmem:[%s3883_s27 + $0x4c4] sm:$0xf] }
  0x95   : > { %1920 = vmatpush.bf16.msra.mxu1 %v2484_v47  ;;  %v2945_v11 = vld [vmem:[%s3883_s27 + $0x4d0] sm:$0xf0]  ;;  %v3544_v12 = vld [vmem:[%s3883_s27 + $0x5c4] sm:$0xf]  ;;  %v3348_v13 = vor.u32 %v3612_v2, %v3345_v3 }
  0x96   : > { %1933 = vmatpush.bf16.msra.mxu2 %v2612_v48  ;;  %v3073_v14 = vld [vmem:[%s3883_s27 + $0x5d0] sm:$0xf0]  ;;  %v3576_v15 = vld [vmem:[%s3883_s27 + $0x6c4] sm:$0xf]  ;;  %v2948_v20 = vor.u32 %v3512_v10, %v2945_v11 }
  0x97   : > { %1946 = vmatpush.bf16.msra.mxu3 %v2740_v52  ;;  %v3201_v16 = vld [vmem:[%s3883_s27 + $0x6d0] sm:$0xf0]  ;;  %v3608_v18 = vld [vmem:[%s3883_s27 + $0x7c4] sm:$0xf]  ;;  %v3076_v21 = vor.u32 %v3544_v12, %v3073_v14 }
  0x98   : > { %1908 = vmatpush.bf16.msra.mxu0 %v2340_v59  ;;  %v3329_v19 = vld [vmem:[%s3883_s27 + $0x7d0] sm:$0xf0]  ;;  %v3204_v22 = vor.u32 %v3576_v15, %v3201_v16  ;;  %v3508_v23 = vld [vmem:[%s3883_s27 + $0x4a4] sm:$0xf] }
  0x99   : > { %1921 = vmatpush.bf16.msra.mxu1 %v2468_v0  ;;  %v2929_v24 = vld [vmem:[%s3883_s27 + $0x4b0] sm:$0xf0]  ;;  %v3540_v25 = vld [vmem:[%s3883_s27 + $0x5a4] sm:$0xf]  ;;  %v3332_v26 = vor.u32 %v3608_v18, %v3329_v19 }
  0x9a   : > { %1934 = vmatpush.bf16.msra.mxu2 %v2596_v1  ;;  %v3057_v27 = vld [vmem:[%s3883_s27 + $0x5b0] sm:$0xf0]  ;;  %v3572_v28 = vld [vmem:[%s3883_s27 + $0x6a4] sm:$0xf]  ;;  %v2932_v33 = vor.u32 %v3508_v23, %v2929_v24 }
  0x9b   : > { %1947 = vmatpush.bf16.msra.mxu3 %v2724_v6  ;;  %v3185_v29 = vld [vmem:[%s3883_s27 + $0x6b0] sm:$0xf0]  ;;  %v3604_v30 = vld [vmem:[%s3883_s27 + $0x7a4] sm:$0xf]  ;;  %1909 = vmatmul.bf16.vlgmr.msra.gmra.mxu0 %v3994_v4  ;;  %v3060_v34 = vor.u32 %v3540_v25, %v3057_v27 }
  0x9c   : > { %1953 = vmatpush.bf16.msrb.mxu0 %v2964_v7  ;;  %v3313_v32 = vld [vmem:[%s3883_s27 + $0x7b0] sm:$0xf0]  ;;  %1922 = vmatmul.bf16.vlgmr.msra.gmra.mxu1 %v4009_v17  ;;  %v3188_v35 = vor.u32 %v3572_v28, %v3185_v29  ;;  %v3504_v36 = vld [vmem:[%s3883_s27 + $0x484] sm:$0xf] }
  0x9d   : > { %1966 = vmatpush.bf16.msrb.mxu1 %v3092_v8  ;;  %1935 = vmatmul.bf16.vlgmr.msra.gmra.mxu2 %v3984_v63  ;;  %v2913_v39 = vld [vmem:[%s3883_s27 + $0x490] sm:$0xf0]  ;;  %v3536_v41 = vld [vmem:[%s3883_s27 + $0x584] sm:$0xf]  ;;  %v3316_v42 = vor.u32 %v3604_v30, %v3313_v32 }
  0x9e   : > { %1979 = vmatpush.bf16.msrb.mxu2 %v3220_v9  ;;  %1948 = vmatmul.bf16.vlgmr.msra.gmra.mxu3 %v3996_v5  ;;  %v3041_v43 = vld [vmem:[%s3883_s27 + $0x590] sm:$0xf0]  ;;  %v3568_v44 = vld [vmem:[%s3883_s27 + $0x684] sm:$0xf]  ;;  %v2916_v48 = vor.u32 %v3504_v36, %v2913_v39  ;;  %v2455_v39 = vld [vmem:[%s3883_s27 + $0xe8] sm:$0xf] }
  0x9f   : > { %1992 = vmatpush.bf16.msrb.mxu3 %v3348_v13  ;;  %v3169_v45 = vld [vmem:[%s3883_s27 + $0x690] sm:$0xf0]  ;;  %v3600_v46 = vld [vmem:[%s3883_s27 + $0x784] sm:$0xf]  ;;  %v3044_v49 = vor.u32 %v3536_v41, %v3041_v43  ;;  %v3391_v41 = vld [vmem:[%s3883_s27 + $0xf4] sm:$0xf0] }
  0xa0   : > { %1954 = vmatpush.bf16.msrb.mxu0 %v2948_v20  ;;  %v3297_v47 = vld [vmem:[%s3883_s27 + $0x790] sm:$0xf0]  ;;  %v3172_v50 = vor.u32 %v3568_v44, %v3169_v45  ;;  %v3500_v51 = vld [vmem:[%s3883_s27 + $0x464] sm:$0xf]  ;;  %v3423_v44 = vld [vmem:[%s3883_s27 + $0x1f4] sm:$0xf0] }
  0xa1   : > { %1967 = vmatpush.bf16.msrb.mxu1 %v3076_v21  ;;  %v2897_v52 = vld [vmem:[%s3883_s27 + $0x470] sm:$0xf0]  ;;  %v3532_v53 = vld [vmem:[%s3883_s27 + $0x564] sm:$0xf]  ;;  %v3300_v54 = vor.u32 %v3600_v46, %v3297_v47  ;;  %v2711_v45 = vld [vmem:[%s3883_s27 + $0x2e8] sm:$0xf] }
  0xa2   : > { %1980 = vmatpush.bf16.msrb.mxu2 %v3204_v22  ;;  %v3025_v55 = vld [vmem:[%s3883_s27 + $0x570] sm:$0xf0]  ;;  %v3564_v56 = vld [vmem:[%s3883_s27 + $0x664] sm:$0xf]  ;;  %v2900_v60 = vor.u32 %v3500_v51, %v2897_v52  ;;  %v3455_v46 = vld [vmem:[%s3883_s27 + $0x2f4] sm:$0xf0]  ;;  %v2456_v52 = vor.u32 %v3391_v41, %v2455_v39 }
  0xa3   : > { %1993 = vmatpush.bf16.msrb.mxu3 %v3332_v26  ;;  %v3153_v57 = vld [vmem:[%s3883_s27 + $0x670] sm:$0xf0]  ;;  %v3596_v58 = vld [vmem:[%s3883_s27 + $0x764] sm:$0xf]  ;;  %v3028_v61 = vor.u32 %v3532_v53, %v3025_v55  ;;  %v2439_v55 = vld [vmem:[%s3883_s27 + $0xc8] sm:$0xf] }
  0xa4   : > { %1955 = vmatpush.bf16.msrb.mxu0 %v2932_v33  ;;  %v3281_v59 = vld [vmem:[%s3883_s27 + $0x770] sm:$0xf0]  ;;  %v3156_v62 = vor.u32 %v3564_v56, %v3153_v57  ;;  %v3496_v0 = vld [vmem:[%s3883_s27 + $0x444] sm:$0xf]  ;;  %v3387_v56 = vld [vmem:[%s3883_s27 + $0xd4] sm:$0xf0] }
  0xa5   : > { %1968 = vmatpush.bf16.msrb.mxu1 %v3060_v34  ;;  %v2881_v1 = vld [vmem:[%s3883_s27 + $0x450] sm:$0xf0]  ;;  %v3528_v2 = vld [vmem:[%s3883_s27 + $0x544] sm:$0xf]  ;;  %v3284_v3 = vor.u32 %v3596_v58, %v3281_v59  ;;  %v2567_v57 = vld [vmem:[%s3883_s27 + $0x1c8] sm:$0xf] }
  0xa6   : > { %1981 = vmatpush.bf16.msrb.mxu2 %v3188_v35  ;;  %v3009_v6 = vld [vmem:[%s3883_s27 + $0x550] sm:$0xf0]  ;;  %v3560_v7 = vld [vmem:[%s3883_s27 + $0x644] sm:$0xf]  ;;  %v2884_v11 = vor.u32 %v3496_v0, %v2881_v1  ;;  %v3419_v59 = vld [vmem:[%s3883_s27 + $0x1d4] sm:$0xf0]  ;;  %v2440_v1 = vor.u32 %v3387_v56, %v2439_v55 }
  0xa7   : > { %1994 = vmatpush.bf16.msrb.mxu3 %v3316_v42  ;;  %v3137_v8 = vld [vmem:[%s3883_s27 + $0x650] sm:$0xf0]  ;;  %v3592_v9 = vld [vmem:[%s3883_s27 + $0x744] sm:$0xf]  ;;  %v3012_v12 = vor.u32 %v3528_v2, %v3009_v6  ;;  %v2583_v42 = vld [vmem:[%s3883_s27 + $0x1e8] sm:$0xf]  ;;  %v2568_v2 = vor.u32 %v3419_v59, %v2567_v57 }
  0xa8   : > { %1956 = vmatpush.bf16.msrb.mxu0 %v2916_v48  ;;  %v3265_v10 = vld [vmem:[%s3883_s27 + $0x750] sm:$0xf0]  ;;  %v3140_v13 = vor.u32 %v3560_v7, %v3137_v8  ;;  %v3492_v14 = vld [vmem:[%s3883_s27 + $0x424] sm:$0xf]  ;;  %v2584_v53 = vor.u32 %v3423_v44, %v2583_v42  ;;  %v3483_v0 = vld [vmem:[%s3883_s27 + $0x3d4] sm:$0xf0] }
  0xa9   : > { %1969 = vmatpush.bf16.msrb.mxu1 %v3044_v49  ;;  %v2865_v15 = vld [vmem:[%s3883_s27 + $0x430] sm:$0xf0]  ;;  %v3524_v16 = vld [vmem:[%s3883_s27 + $0x524] sm:$0xf]  ;;  %v3268_v18 = vor.u32 %v3592_v9, %v3265_v10  ;;  %v2839_v49 = vld [vmem:[%s3883_s27 + $0x3e8] sm:$0xf] }
  0xaa   : > { %1982 = vmatpush.bf16.msrb.mxu2 %v3172_v50  ;;  %v2993_v19 = vld [vmem:[%s3883_s27 + $0x530] sm:$0xf0]  ;;  %v3556_v20 = vld [vmem:[%s3883_s27 + $0x624] sm:$0xf]  ;;  %v2868_v24 = vor.u32 %v3492_v14, %v2865_v15  ;;  %v3487_v50 = vld [vmem:[%s3883_s27 + $0x3f4] sm:$0xf0] }
  0xab   : > { %1995 = vmatpush.bf16.msrb.mxu3 %v3300_v54  ;;  %v3121_v21 = vld [vmem:[%s3883_s27 + $0x630] sm:$0xf0]  ;;  %v3588_v22 = vld [vmem:[%s3883_s27 + $0x724] sm:$0xf]  ;;  %v2996_v27 = vor.u32 %v3524_v16, %v2993_v19  ;;  %v2712_v54 = vor.u32 %v3455_v46, %v2711_v45  ;;  %v2840_v58 = vor.u32 %v3487_v50, %v2839_v49  ;;  %v2423_v6 = vld [vmem:[%s3883_s27 + $0xa8] sm:$0xf] }
  0xac   : > { %1957 = vmatpush.bf16.msrb.mxu0 %v2900_v60  ;;  %v3249_v23 = vld [vmem:[%s3883_s27 + $0x730] sm:$0xf0]  ;;  %v3488_v25 = vld [vmem:[%s3883_s27 + $0x404] sm:$0xf]  ;;  %v3124_v28 = vor.u32 %v3556_v20, %v3121_v21  ;;  %v2695_v60 = vld [vmem:[%s3883_s27 + $0x2c8] sm:$0xf] }
  0xad   : > { %1970 = vmatpush.bf16.msrb.mxu1 %v3028_v61  ;;  %v2849_v26 = vld [vmem:[%s3883_s27 + $0x410] sm:$0xf0]  ;;  %v3520_v29 = vld [vmem:[%s3883_s27 + $0x504] sm:$0xf]  ;;  %v3252_v33 = vor.u32 %v3588_v22, %v3249_v23  ;;  %v3451_v61 = vld [vmem:[%s3883_s27 + $0x2d4] sm:$0xf0] }
  0xae   : > { %1983 = vmatpush.bf16.msrb.mxu2 %v3156_v62  ;;  %v2977_v30 = vld [vmem:[%s3883_s27 + $0x510] sm:$0xf0]  ;;  %v3552_v32 = vld [vmem:[%s3883_s27 + $0x604] sm:$0xf]  ;;  %v2852_v43 = vor.u32 %v3488_v25, %v2849_v26  ;;  %v2823_v62 = vld [vmem:[%s3883_s27 + $0x3c8] sm:$0xf] }
  0xaf   : > { %1996 = vmatpush.bf16.msrb.mxu3 %v3284_v3  ;;  %v3105_v34 = vld [vmem:[%s3883_s27 + $0x610] sm:$0xf0]  ;;  %v3584_v35 = vld [vmem:[%s3883_s27 + $0x704] sm:$0xf]  ;;  %v2980_v47 = vor.u32 %v3520_v29, %v2977_v30  ;;  %v2696_v3 = vor.u32 %v3451_v61, %v2695_v60  ;;  %v3383_v7 = vld [vmem:[%s3883_s27 + $0xb4] sm:$0xf0]  ;;  %v2824_v9 = vor.u32 %v3483_v0, %v2823_v62 }
  0xb0   : > { %1958 = vmatpush.bf16.msrb.mxu0 %v2884_v11  ;;  %v3233_v36 = vld [vmem:[%s3883_s27 + $0x710] sm:$0xf0]  ;;  %v3108_v48 = vor.u32 %v3552_v32, %v3105_v34  ;;  %v2551_v8 = vld [vmem:[%s3883_s27 + $0x1a8] sm:$0xf]  ;;  %v3415_v10 = vld [vmem:[%s3883_s27 + $0x1b4] sm:$0xf0]  ;;  %v2424_v15 = vor.u32 %v3383_v7, %v2423_v6 }
  0xb1   : > { %1971 = vmatpush.bf16.msrb.mxu1 %v3012_v12  ;;  %v3236_v51 = vor.u32 %v3584_v35, %v3233_v36  ;;  %v2679_v11 = vld [vmem:[%s3883_s27 + $0x2a8] sm:$0xf]  ;;  %v3447_v12 = vld [vmem:[%s3883_s27 + $0x2b4] sm:$0xf0]  ;;  %v2552_v16 = vor.u32 %v3415_v10, %v2551_v8 }
  0xb2   : > { %1984 = vmatpush.bf16.msrb.mxu2 %v3140_v13  ;;  %v2807_v13 = vld [vmem:[%s3883_s27 + $0x3a8] sm:$0xf]  ;;  %v3479_v14 = vld [vmem:[%s3883_s27 + $0x3b4] sm:$0xf0] }
  0xb3   : > { %1997 = vmatpush.bf16.msrb.mxu3 %v3268_v18  ;;  %v2680_v18 = vor.u32 %v3447_v12, %v2679_v11  ;;  %v2407_v19 = vld [vmem:[%s3883_s27 + $0x88] sm:$0xf]  ;;  %v3379_v20 = vld [vmem:[%s3883_s27 + $0x94] sm:$0xf0]  ;;  %v2808_v22 = vor.u32 %v3479_v14, %v2807_v13 }
  0xb4   : > { %1959 = vmatpush.bf16.msrb.mxu0 %v2868_v24  ;;  %v2535_v21 = vld [vmem:[%s3883_s27 + $0x188] sm:$0xf]  ;;  %v3411_v23 = vld [vmem:[%s3883_s27 + $0x194] sm:$0xf0] }
  0xb5   : > { %1972 = vmatpush.bf16.msrb.mxu1 %v2996_v27  ;;  %v2663_v24 = vld [vmem:[%s3883_s27 + $0x288] sm:$0xf]  ;;  %v3443_v25 = vld [vmem:[%s3883_s27 + $0x294] sm:$0xf0]  ;;  %v2536_v29 = vor.u32 %v3411_v23, %v2535_v21 }
  0xb6   : > { %1985 = vmatpush.bf16.msrb.mxu2 %v3124_v28  ;;  %v2791_v26 = vld [vmem:[%s3883_s27 + $0x388] sm:$0xf]  ;;  %v3475_v27 = vld [vmem:[%s3883_s27 + $0x394] sm:$0xf0]  ;;  %v2408_v28 = vor.u32 %v3379_v20, %v2407_v19  ;;  %v2664_v30 = vor.u32 %v3443_v25, %v2663_v24 }
  0xb7   : > { %1998 = vmatpush.bf16.msrb.mxu3 %v3252_v33  ;;  %v2391_v32 = vld [vmem:[%s3883_s27 + $0x68] sm:$0xf]  ;;  %v3375_v33 = vld [vmem:[%s3883_s27 + $0x74] sm:$0xf0]  ;;  %v2792_v35 = vor.u32 %v3475_v27, %v2791_v26 }
  0xb8   : > { %1960 = vmatpush.bf16.msrb.mxu0 %v2852_v43  ;;  %v2519_v34 = vld [vmem:[%s3883_s27 + $0x168] sm:$0xf]  ;;  %v3407_v36 = vld [vmem:[%s3883_s27 + $0x174] sm:$0xf0]  ;;  %v2392_v44 = vor.u32 %v3375_v33, %v2391_v32 }
  0xb9   : > { %1973 = vmatpush.bf16.msrb.mxu1 %v2980_v47  ;;  %v2647_v39 = vld [vmem:[%s3883_s27 + $0x268] sm:$0xf]  ;;  %v3439_v41 = vld [vmem:[%s3883_s27 + $0x274] sm:$0xf0]  ;;  %v2520_v45 = vor.u32 %v3407_v36, %v2519_v34 }
  0xba   : > { %1986 = vmatpush.bf16.msrb.mxu2 %v3108_v48  ;;  %v2775_v42 = vld [vmem:[%s3883_s27 + $0x368] sm:$0xf]  ;;  %v3471_v43 = vld [vmem:[%s3883_s27 + $0x374] sm:$0xf0]  ;;  %v2648_v46 = vor.u32 %v3439_v41, %v2647_v39 }
  0xbb   : > { %1999 = vmatpush.bf16.msrb.mxu3 %v3236_v51  ;;  %1961 = vmatmul.bf16.vlgmr.msrb.gmra.mxu0 %v4077_v37  ;;  %v2375_v47 = vld [vmem:[%s3883_s27 + $0x48] sm:$0xf]  ;;  %v3371_v48 = vld [vmem:[%s3883_s27 + $0x54] sm:$0xf0]  ;;  %v2776_v50 = vor.u32 %v3471_v43, %v2775_v42 }
  0xbc   : > { %2005 = vmatpush.bf16.msra.mxu0 %v2456_v52  ;;  %1974 = vmatmul.bf16.vlgmr.msrb.gmra.mxu1 %v4081_v40  ;;  %v2503_v49 = vld [vmem:[%s3883_s27 + $0x148] sm:$0xf]  ;;  %v3403_v51 = vld [vmem:[%s3883_s27 + $0x154] sm:$0xf0]  ;;  %v2376_v56 = vor.u32 %v3371_v48, %v2375_v47 }
  0xbd   : > { %2018 = vmatpush.bf16.msra.mxu1 %v2584_v53  ;;  %1987 = vmatmul.bf16.vlgmr.msrb.gmra.mxu2 %v4070_v31  ;;  %v2631_v52 = vld [vmem:[%s3883_s27 + $0x248] sm:$0xf]  ;;  %v3435_v53 = vld [vmem:[%s3883_s27 + $0x254] sm:$0xf0]  ;;  %v2504_v57 = vor.u32 %v3403_v51, %v2503_v49 }
  0xbe   : > { %2031 = vmatpush.bf16.msra.mxu2 %v2712_v54  ;;  %2000 = vmatmul.bf16.vlgmr.msrb.gmra.mxu3 %v4079_v38  ;;  %v2759_v54 = vld [vmem:[%s3883_s27 + $0x348] sm:$0xf]  ;;  %v3467_v55 = vld [vmem:[%s3883_s27 + $0x354] sm:$0xf0] }
  0xbf   : > { %2044 = vmatpush.bf16.msra.mxu3 %v2840_v58  ;;  %v2632_v58 = vor.u32 %v3435_v53, %v2631_v52  ;;  %v2359_v59 = vld [vmem:[%s3883_s27 + $0x28] sm:$0xf]  ;;  %v3367_v60 = vld [vmem:[%s3883_s27 + $0x34] sm:$0xf0]  ;;  %v2760_v62 = vor.u32 %v3467_v55, %v2759_v54 }
  0xc0   : > { %2006 = vmatpush.bf16.msra.mxu0 %v2440_v1  ;;  %v2487_v61 = vld [vmem:[%s3883_s27 + $0x128] sm:$0xf]  ;;  %v3399_v0 = vld [vmem:[%s3883_s27 + $0x134] sm:$0xf0]  ;;  %v2360_v7 = vor.u32 %v3367_v60, %v2359_v59 }
  0xc1   : > { %2019 = vmatpush.bf16.msra.mxu1 %v2568_v2  ;;  %v2615_v1 = vld [vmem:[%s3883_s27 + $0x228] sm:$0xf]  ;;  %v3431_v2 = vld [vmem:[%s3883_s27 + $0x234] sm:$0xf0]  ;;  %v2488_v10 = vor.u32 %v3399_v0, %v2487_v61 }
  0xc2   : > { %2032 = vmatpush.bf16.msra.mxu2 %v2696_v3  ;;  %v2743_v3 = vld [vmem:[%s3883_s27 + $0x328] sm:$0xf]  ;;  %v3463_v6 = vld [vmem:[%s3883_s27 + $0x334] sm:$0xf0]  ;;  %v2616_v11 = vor.u32 %v3431_v2, %v2615_v1 }
  0xc3   : > { %2045 = vmatpush.bf16.msra.mxu3 %v2824_v9  ;;  %v2343_v8 = vld [vmem:[%s3883_s27 + $0x8] sm:$0xf]  ;;  %v3363_v9 = vld [vmem:[%s3883_s27 + $0x14] sm:$0xf0] }
  0xc4   : > { %2007 = vmatpush.bf16.msra.mxu0 %v2424_v15  ;;  %v2471_v12 = vld [vmem:[%s3883_s27 + $0x108] sm:$0xf]  ;;  %v3395_v13 = vld [vmem:[%s3883_s27 + $0x114] sm:$0xf0]  ;;  %v2744_v15 = vor.u32 %v3463_v6, %v2743_v3  ;;  %v2344_v23 = vor.u32 %v3363_v9, %v2343_v8 }
  0xc5   : > { %2020 = vmatpush.bf16.msra.mxu1 %v2552_v16  ;;  %v2599_v14 = vld [vmem:[%s3883_s27 + $0x208] sm:$0xf]  ;;  %v3427_v16 = vld [vmem:[%s3883_s27 + $0x214] sm:$0xf0]  ;;  %v2472_v27 = vor.u32 %v3395_v13, %v2471_v12 }
  0xc6   : > { %2033 = vmatpush.bf16.msra.mxu2 %v2680_v18  ;;  %v2727_v18 = vld [vmem:[%s3883_s27 + $0x308] sm:$0xf]  ;;  %v3459_v19 = vld [vmem:[%s3883_s27 + $0x314] sm:$0xf0] }
  0xc7   : > { %2046 = vmatpush.bf16.msra.mxu3 %v2808_v22  ;;  %v2967_v20 = vld [vmem:[%s3883_s27 + $0x4e8] sm:$0xf]  ;;  %v3519_v21 = vld [vmem:[%s3883_s27 + $0x4f4] sm:$0xf0]  ;;  %v2728_v32 = vor.u32 %v3459_v19, %v2727_v18 }
  0xc8   : > { %2008 = vmatpush.bf16.msra.mxu0 %v2408_v28  ;;  %v3095_v22 = vld [vmem:[%s3883_s27 + $0x5e8] sm:$0xf]  ;;  %v3551_v24 = vld [vmem:[%s3883_s27 + $0x5f4] sm:$0xf0]  ;;  %v2600_v28 = vor.u32 %v3427_v16, %v2599_v14  ;;  %v2968_v33 = vor.u32 %v3519_v21, %v2967_v20 }
  0xc9   : > { %2021 = vmatpush.bf16.msra.mxu1 %v2536_v29  ;;  %v3223_v25 = vld [vmem:[%s3883_s27 + $0x6e8] sm:$0xf]  ;;  %v3583_v26 = vld [vmem:[%s3883_s27 + $0x6f4] sm:$0xf0]  ;;  %v3096_v34 = vor.u32 %v3551_v24, %v3095_v22 }
  0xca   : > { %2034 = vmatpush.bf16.msra.mxu2 %v2664_v30  ;;  %v3351_v29 = vld [vmem:[%s3883_s27 + $0x7e8] sm:$0xf]  ;;  %v3615_v30 = vld [vmem:[%s3883_s27 + $0x7f4] sm:$0xf0] }
  0xcb   : > { %2047 = vmatpush.bf16.msra.mxu3 %v2792_v35  ;;  %v3224_v35 = vor.u32 %v3583_v26, %v3223_v25  ;;  %v2951_v36 = vld [vmem:[%s3883_s27 + $0x4c8] sm:$0xf]  ;;  %v3515_v39 = vld [vmem:[%s3883_s27 + $0x4d4] sm:$0xf0]  ;;  %v3352_v42 = vor.u32 %v3615_v30, %v3351_v29 }
  0xcc   : > { %2009 = vmatpush.bf16.msra.mxu0 %v2392_v44  ;;  %v3079_v41 = vld [vmem:[%s3883_s27 + $0x5c8] sm:$0xf]  ;;  %v3547_v43 = vld [vmem:[%s3883_s27 + $0x5d4] sm:$0xf0]  ;;  %v2952_v48 = vor.u32 %v3515_v39, %v2951_v36 }
  0xcd   : > { %2022 = vmatpush.bf16.msra.mxu1 %v2520_v45  ;;  %v3207_v44 = vld [vmem:[%s3883_s27 + $0x6c8] sm:$0xf]  ;;  %v3579_v45 = vld [vmem:[%s3883_s27 + $0x6d4] sm:$0xf0]  ;;  %v3080_v49 = vor.u32 %v3547_v43, %v3079_v41 }
  0xce   : > { %2035 = vmatpush.bf16.msra.mxu2 %v2648_v46  ;;  %v3335_v46 = vld [vmem:[%s3883_s27 + $0x7c8] sm:$0xf]  ;;  %v3611_v47 = vld [vmem:[%s3883_s27 + $0x7d4] sm:$0xf0] }
  0xcf   : > { %2048 = vmatpush.bf16.msra.mxu3 %v2776_v50  ;;  %v3208_v50 = vor.u32 %v3579_v45, %v3207_v44  ;;  %v2935_v51 = vld [vmem:[%s3883_s27 + $0x4a8] sm:$0xf]  ;;  %v3511_v52 = vld [vmem:[%s3883_s27 + $0x4b4] sm:$0xf0]  ;;  %v3336_v54 = vor.u32 %v3611_v47, %v3335_v46  ;;  %v4328_v44 = vld [vmem:[%s3889_s5] sm:$0xf] }
  0xd0   : > { %2010 = vmatpush.bf16.msra.mxu0 %v2376_v56  ;;  %v3063_v53 = vld [vmem:[%s3883_s27 + $0x5a8] sm:$0xf]  ;;  %v3543_v55 = vld [vmem:[%s3883_s27 + $0x5b4] sm:$0xf0]  ;;  %v2936_v60 = vor.u32 %v3511_v52, %v2935_v51 }
  0xd1   : > { %2023 = vmatpush.bf16.msra.mxu1 %v2504_v57  ;;  %v3191_v56 = vld [vmem:[%s3883_s27 + $0x6a8] sm:$0xf]  ;;  %v3575_v57 = vld [vmem:[%s3883_s27 + $0x6b4] sm:$0xf0]  ;;  %v3064_v61 = vor.u32 %v3543_v55, %v3063_v53 }
  0xd2   : > { %2036 = vmatpush.bf16.msra.mxu2 %v2632_v58  ;;  %v3319_v58 = vld [vmem:[%s3883_s27 + $0x7a8] sm:$0xf]  ;;  %v3607_v59 = vld [vmem:[%s3883_s27 + $0x7b4] sm:$0xf0] }
  0xd3   : > { %2049 = vmatpush.bf16.msra.mxu3 %v2760_v62  ;;  %v3192_v62 = vor.u32 %v3575_v57, %v3191_v56  ;;  %v2919_v0 = vld [vmem:[%s3883_s27 + $0x488] sm:$0xf]  ;;  %v3507_v1 = vld [vmem:[%s3883_s27 + $0x494] sm:$0xf0]  ;;  %v3320_v3 = vor.u32 %v3607_v59, %v3319_v58  ;;  %v509_v57 = vperm.slane %v4328_v44, 0 }
  0xd4   : > { %2011 = vmatpush.bf16.msra.mxu0 %v2360_v7  ;;  %v3047_v2 = vld [vmem:[%s3883_s27 + $0x588] sm:$0xf]  ;;  %v3539_v6 = vld [vmem:[%s3883_s27 + $0x594] sm:$0xf0] }
  0xd5   : > { %2024 = vmatpush.bf16.msra.mxu1 %v2488_v10  ;;  %v3175_v7 = vld [vmem:[%s3883_s27 + $0x688] sm:$0xf]  ;;  %v3571_v8 = vld [vmem:[%s3883_s27 + $0x694] sm:$0xf0]  ;;  %v3048_v12 = vor.u32 %v3539_v6, %v3047_v2 }
  0xd6   : > { %2037 = vmatpush.bf16.msra.mxu2 %v2616_v11  ;;  %v3303_v9 = vld [vmem:[%s3883_s27 + $0x788] sm:$0xf]  ;;  %v3603_v10 = vld [vmem:[%s3883_s27 + $0x794] sm:$0xf0]  ;;  %v2920_v11 = vor.u32 %v3507_v1, %v2919_v0  ;;  %v3176_v13 = vor.u32 %v3571_v8, %v3175_v7 }
  0xd7   : > { %2050 = vmatpush.bf16.msra.mxu3 %v2744_v15  ;;  %v2903_v14 = vld [vmem:[%s3883_s27 + $0x468] sm:$0xf]  ;;  %v3503_v15 = vld [vmem:[%s3883_s27 + $0x474] sm:$0xf0]  ;;  %v3304_v18 = vor.u32 %v3603_v10, %v3303_v9 }
  0xd8   : > { %2012 = vmatpush.bf16.msra.mxu0 %v2344_v23  ;;  %v3031_v16 = vld [vmem:[%s3883_s27 + $0x568] sm:$0xf]  ;;  %v3535_v19 = vld [vmem:[%s3883_s27 + $0x574] sm:$0xf0]  ;;  %v2904_v25 = vor.u32 %v3503_v15, %v2903_v14  ;;  %v3421_v14 = vld [vmem:[%s3883_s27 + $0x1ec] sm:$0xf] }
  0xd9   : > { %2025 = vmatpush.bf16.msra.mxu1 %v2472_v27  ;;  %v3159_v20 = vld [vmem:[%s3883_s27 + $0x668] sm:$0xf]  ;;  %v3567_v21 = vld [vmem:[%s3883_s27 + $0x674] sm:$0xf0]  ;;  %v3032_v26 = vor.u32 %v3535_v19, %v3031_v16  ;;  %v3453_v19 = vld [vmem:[%s3883_s27 + $0x2ec] sm:$0xf] }
  0xda   : > { %2038 = vmatpush.bf16.msra.mxu2 %v2600_v28  ;;  %v3287_v22 = vld [vmem:[%s3883_s27 + $0x768] sm:$0xf]  ;;  %v3599_v23 = vld [vmem:[%s3883_s27 + $0x774] sm:$0xf0]  ;;  %v3160_v27 = vor.u32 %v3567_v21, %v3159_v20  ;;  %v2713_v20 = vld [vmem:[%s3883_s27 + $0x2f8] sm:$0xf0] }
  0xdb   : > { %2051 = vmatpush.bf16.msra.mxu3 %v2728_v32  ;;  %2013 = vmatmul.bf16.vlgmr.msra.gmra.mxu0 %v3994_v4  ;;  %v2887_v28 = vld [vmem:[%s3883_s27 + $0x448] sm:$0xf]  ;;  %v3499_v29 = vld [vmem:[%s3883_s27 + $0x454] sm:$0xf0]  ;;  %v4318_v32 = vpop.f32.mrf.mxu1 }
  0xdc   : > { %2057 = vmatpush.bf16.msrb.mxu0 %v2968_v33  ;;  %2026 = vmatmul.bf16.vlgmr.msra.gmra.mxu1 %v4009_v17  ;;  %v3015_v30 = vld [vmem:[%s3883_s27 + $0x548] sm:$0xf]  ;;  %v3288_v33 = vor.u32 %v3599_v23, %v3287_v22  ;;  %v3563_v36 = vld [vmem:[%s3883_s27 + $0x654] sm:$0xf0]  ;;  %v2888_v43 = vor.u32 %v3499_v29, %v2887_v28  ;;  %v3485_v23 = vld [vmem:[%s3883_s27 + $0x3ec] sm:$0xf]  ;;  %v2716_v29 = vor.u32 %v3453_v19, %v2713_v20 }
  0xdd   : > { %2070 = vmatpush.bf16.msrb.mxu1 %v3096_v34  ;;  %2039 = vmatmul.bf16.vlgmr.msra.gmra.mxu2 %v3984_v63  ;;  %v3531_v34 = vld [vmem:[%s3883_s27 + $0x554] sm:$0xf0]  ;;  %v3271_v39 = vld [vmem:[%s3883_s27 + $0x748] sm:$0xf] }
  0xde   : > { %2083 = vmatpush.bf16.msrb.mxu2 %v3224_v35  ;;  %2052 = vmatmul.bf16.vlgmr.msra.gmra.mxu3 %v3996_v5  ;;  %v3143_v35 = vld [vmem:[%s3883_s27 + $0x648] sm:$0xf]  ;;  %v3595_v41 = vld [vmem:[%s3883_s27 + $0x754] sm:$0xf0]  ;;  %v3016_v45 = vor.u32 %v3531_v34, %v3015_v30  ;;  %v2441_v34 = vld [vmem:[%s3883_s27 + $0xd8] sm:$0xf0] }
  0xdf   : > { %2096 = vmatpush.bf16.msrb.mxu3 %v3352_v42  ;;  %v3144_v46 = vor.u32 %v3563_v36, %v3143_v35  ;;  %v2871_v47 = vld [vmem:[%s3883_s27 + $0x428] sm:$0xf]  ;;  %v3527_v51 = vld [vmem:[%s3883_s27 + $0x534] sm:$0xf0]  ;;  %v3417_v35 = vld [vmem:[%s3883_s27 + $0x1cc] sm:$0xf] }
  0xe0   : > { %2058 = vmatpush.bf16.msrb.mxu0 %v2952_v48  ;;  %v3495_v48 = vld [vmem:[%s3883_s27 + $0x434] sm:$0xf0]  ;;  %v3127_v52 = vld [vmem:[%s3883_s27 + $0x628] sm:$0xf] }
  0xe1   : > { %2071 = vmatpush.bf16.msrb.mxu1 %v3080_v49  ;;  %v2999_v49 = vld [vmem:[%s3883_s27 + $0x528] sm:$0xf]  ;;  %v3559_v53 = vld [vmem:[%s3883_s27 + $0x634] sm:$0xf0]  ;;  %v2872_v59 = vor.u32 %v3495_v48, %v2871_v47 }
  0xe2   : > { %2084 = vmatpush.bf16.msrb.mxu2 %v3208_v50  ;;  %v3272_v50 = vor.u32 %v3595_v41, %v3271_v39  ;;  %v3255_v55 = vld [vmem:[%s3883_s27 + $0x728] sm:$0xf]  ;;  %v3591_v56 = vld [vmem:[%s3883_s27 + $0x734] sm:$0xf0]  ;;  %v3128_v0 = vor.u32 %v3559_v53, %v3127_v52  ;;  %v2569_v39 = vld [vmem:[%s3883_s27 + $0x1d8] sm:$0xf0] }
  0xe3   : > { %2097 = vmatpush.bf16.msrb.mxu3 %v3336_v54  ;;  %v1806_v24 = vpop.f32.mrf.mxu0  ;;  %v4336_v54 = vpop.f32.mrf.mxu3  ;;  %v2983_v1 = vld [vmem:[%s3883_s27 + $0x508] sm:$0xf]  ;;  %v3523_v2 = vld [vmem:[%s3883_s27 + $0x514] sm:$0xf0]  ;;  %v3256_v7 = vor.u32 %v3591_v56, %v3255_v55  ;;  %v3449_v41 = vld [vmem:[%s3883_s27 + $0x2cc] sm:$0xf]  ;;  %v2572_v48 = vor.u32 %v3417_v35, %v2569_v39 }
  0xe4   : > { %2059 = vmatpush.bf16.msrb.mxu0 %v2936_v60  ;;  %v2855_v60 = vld [vmem:[%s3883_s27 + $0x408] sm:$0xf]  ;;  %v1821_v6 = vpop.f32.mrf.mxu1  ;;  %v3555_v8 = vld [vmem:[%s3883_s27 + $0x614] sm:$0xf0]  ;;  %v2984_v21 = vor.u32 %v3523_v2, %v2983_v1  ;;  %v3413_v52 = vld [vmem:[%s3883_s27 + $0x1ac] sm:$0xf] }
  0xe5   : > { %2072 = vmatpush.bf16.msrb.mxu1 %v3064_v61  ;;  %v3491_v61 = vld [vmem:[%s3883_s27 + $0x414] sm:$0xf0]  ;;  %v3239_v9 = vld [vmem:[%s3883_s27 + $0x708] sm:$0xf]  ;;  %v2553_v55 = vld [vmem:[%s3883_s27 + $0x1b8] sm:$0xf0] }
  0xe6   : > { %2085 = vmatpush.bf16.msrb.mxu2 %v3192_v62  ;;  %v3000_v62 = vor.u32 %v3527_v51, %v2999_v49  ;;  %v3587_v10 = vld [vmem:[%s3883_s27 + $0x714] sm:$0xf0]  ;;  %v2856_v16 = vor.u32 %v3491_v61, %v2855_v60  ;;  %v2425_v51 = vld [vmem:[%s3883_s27 + $0xb8] sm:$0xf0]  ;;  %v3445_v56 = vld [vmem:[%s3883_s27 + $0x2ac] sm:$0xf]  ;;  %v2556_v61 = vor.u32 %v3413_v52, %v2553_v55 }
  0xe7   : > { %2098 = vmatpush.bf16.msrb.mxu3 %v3320_v3  ;;  %v3111_v3 = vld [vmem:[%s3883_s27 + $0x608] sm:$0xf]  ;;  %v2409_v1 = vld [vmem:[%s3883_s27 + $0x98] sm:$0xf0]  ;;  %v3409_v2 = vld [vmem:[%s3883_s27 + $0x18c] sm:$0xf] }
  0xe8   : > { %2060 = vmatpush.bf16.msrb.mxu0 %v2920_v11  ;;  %v4325_v42 = vpop.f32.mrf.mxu2  ;;  %v1807_v11 = vadd.f32 %v1806_v24, %v509_v57  ;;  %v3112_v22 = vor.u32 %v3555_v8, %v3111_v3  ;;  %v2841_v24 = vld [vmem:[%s3883_s27 + $0x3f8] sm:$0xf0]  ;;  %v3401_v35 = vld [vmem:[%s3883_s27 + $0x14c] sm:$0xf] }
  0xe9   : > { %2073 = vmatpush.bf16.msrb.mxu1 %v3048_v12  ;;  %v3389_v12 = vld [vmem:[%s3883_s27 + $0xec] sm:$0xf]  ;;  %v2844_v36 = vor.u32 %v3485_v23, %v2841_v24  ;;  %v2681_v57 = vld [vmem:[%s3883_s27 + $0x2b8] sm:$0xf0] }
  0xea   : > { %2086 = vmatpush.bf16.msrb.mxu2 %v3176_v13  ;;  %v2457_v13 = vld [vmem:[%s3883_s27 + $0xf8] sm:$0xf0]  ;;  %v1820_v30 = vadd.f32 %v4318_v32, %v1807_v11  ;;  %v3469_v24 = vld [vmem:[%s3883_s27 + $0x36c] sm:$0xf] }
  0xeb   : > { %2099 = vmatpush.bf16.msrb.mxu3 %v3304_v18  ;;  %v1808_v58 = vpop.f32.mrf.mxu0  ;;  %v2585_v18 = vld [vmem:[%s3883_s27 + $0x1f8] sm:$0xf0] }
  0xec   : > { %2061 = vmatpush.bf16.msrb.mxu0 %v2904_v25  ;;  %v3240_v25 = vor.u32 %v3587_v10, %v3239_v9  ;;  %v2588_v28 = vor.u32 %v3421_v14, %v2585_v18  ;;  %v1833_v47 = vadd.f32 %v4325_v42, %v1820_v30  ;;  %v3477_v42 = vld [vmem:[%s3883_s27 + $0x3ac] sm:$0xf]  ;;  %v2809_v58 = vld [vmem:[%s3883_s27 + $0x3b8] sm:$0xf0] }
  0xed   : > { %2074 = vmatpush.bf16.msrb.mxu1 %v3032_v26  ;;  %v2460_v26 = vor.u32 %v3389_v12, %v2457_v13  ;;  %v2812_v3 = vor.u32 %v3477_v42, %v2809_v58  ;;  %v2537_v6 = vld [vmem:[%s3883_s27 + $0x198] sm:$0xf0]  ;;  %v3473_v9 = vld [vmem:[%s3883_s27 + $0x38c] sm:$0xf] }
  0xee   : > { %2087 = vmatpush.bf16.msrb.mxu2 %v3160_v27  ;;  %v1847_v27 = vpop.f32.mrf.mxu3  ;;  %v1846_v60 = vadd.f32 %v4336_v54, %v1833_v47  ;;  %v2665_v8 = vld [vmem:[%s3883_s27 + $0x298] sm:$0xf0]  ;;  %v2540_v12 = vor.u32 %v3409_v2, %v2537_v6  ;;  %v3405_v18 = vld [vmem:[%s3883_s27 + $0x16c] sm:$0xf] }
  0xef   : > { %2100 = vmatpush.bf16.msrb.mxu3 %v3288_v33  ;;  %v3385_v33 = vld [vmem:[%s3883_s27 + $0xcc] sm:$0xf]  ;;  %v2793_v10 = vld [vmem:[%s3883_s27 + $0x398] sm:$0xf0] }
  0xf0   : > { %2062 = vmatpush.bf16.msrb.mxu0 %v2888_v43  ;;  %v1834_v15 = vpop.f32.mrf.mxu2  ;;  %v2697_v43 = vld [vmem:[%s3883_s27 + $0x2d8] sm:$0xf0]  ;;  %v2444_v32 = vor.u32 %v3385_v33, %v2441_v34  ;;  %v2796_v20 = vor.u32 %v3473_v9, %v2793_v10  ;;  %v3369_v33 = vld [vmem:[%s3883_s27 + $0x4c] sm:$0xf] }
  0xf1   : > { %2075 = vmatpush.bf16.msrb.mxu1 %v3016_v45  ;;  %v3481_v45 = vld [vmem:[%s3883_s27 + $0x3cc] sm:$0xf]  ;;  %v2700_v49 = vor.u32 %v3449_v41, %v2697_v43  ;;  %v2649_v23 = vld [vmem:[%s3883_s27 + $0x278] sm:$0xf0] }
  0xf2   : > { %2088 = vmatpush.bf16.msrb.mxu2 %v3144_v46  ;;  %v2825_v46 = vld [vmem:[%s3883_s27 + $0x3d8] sm:$0xf0]  ;;  %v3373_v15 = vld [vmem:[%s3883_s27 + $0x6c] sm:$0xf] }
  0xf3   : > { %2101 = vmatpush.bf16.msrb.mxu3 %v3272_v50  ;;  %v3381_v50 = vld [vmem:[%s3883_s27 + $0xac] sm:$0xf]  ;;  %v2828_v53 = vor.u32 %v3481_v45, %v2825_v46  ;;  %v2377_v34 = vld [vmem:[%s3883_s27 + $0x58] sm:$0xf0] }
  0xf4   : > { %2063 = vmatpush.bf16.msrb.mxu0 %v2872_v59  ;;  %v2428_v59 = vor.u32 %v3381_v50, %v2425_v51  ;;  %v2505_v41 = vld [vmem:[%s3883_s27 + $0x158] sm:$0xf0]  ;;  %v3433_v43 = vld [vmem:[%s3883_s27 + $0x24c] sm:$0xf] }
  0xf5   : > { %2076 = vmatpush.bf16.msrb.mxu1 %v3000_v62  ;;  %v2684_v62 = vor.u32 %v3445_v56, %v2681_v57  ;;  %v2633_v45 = vld [vmem:[%s3883_s27 + $0x258] sm:$0xf0]  ;;  %v3365_v50 = vld [vmem:[%s3883_s27 + $0x2c] sm:$0xf] }
  0xf6   : > { %2089 = vmatpush.bf16.msrb.mxu2 %v3128_v0  ;;  %v3377_v0 = vld [vmem:[%s3883_s27 + $0x8c] sm:$0xf]  ;;  %v2761_v47 = vld [vmem:[%s3883_s27 + $0x358] sm:$0xf0]  ;;  %v2636_v55 = vor.u32 %v3433_v43, %v2633_v45 }
  0xf7   : > { %2102 = vmatpush.bf16.msrb.mxu3 %v3256_v7  ;;  %v3441_v7 = vld [vmem:[%s3883_s27 + $0x28c] sm:$0xf]  ;;  %v2412_v54 = vor.u32 %v3377_v0, %v2409_v1  ;;  %v2361_v51 = vld [vmem:[%s3883_s27 + $0x38] sm:$0xf0] }
  0xf8   : > { %2064 = vmatpush.bf16.msrb.mxu0 %v2856_v16  ;;  %v2668_v13 = vor.u32 %v3441_v7, %v2665_v8  ;;  %v2393_v16 = vld [vmem:[%s3883_s27 + $0x78] sm:$0xf0]  ;;  %v3397_v56 = vld [vmem:[%s3883_s27 + $0x12c] sm:$0xf]  ;;  %v2364_v2 = vor.u32 %v3365_v50, %v2361_v51 }
  0xf9   : > { %2077 = vmatpush.bf16.msrb.mxu1 %v2984_v21  ;;  %v1871_v19 = vpop.f32.mrf.mxu1  ;;  %v2521_v21 = vld [vmem:[%s3883_s27 + $0x178] sm:$0xf0]  ;;  %v2396_v27 = vor.u32 %v3373_v15, %v2393_v16  ;;  %v3429_v42 = vld [vmem:[%s3883_s27 + $0x22c] sm:$0xf] }
  0xfa   : > { %2090 = vmatpush.bf16.msrb.mxu2 %v3112_v22  ;;  %v3437_v22 = vld [vmem:[%s3883_s27 + $0x26c] sm:$0xf]  ;;  %v2489_v57 = vld [vmem:[%s3883_s27 + $0x138] sm:$0xf0] }
  0xfb   : > { %2103 = vmatpush.bf16.msrb.mxu3 %v3240_v25  ;;  %2065 = vmatmul.bf16.vlgmr.msrb.gmra.mxu0 %v4077_v37  ;;  %v1858_v11 = vpop.f32.mrf.mxu0  ;;  %v2777_v25 = vld [vmem:[%s3883_s27 + $0x378] sm:$0xf0]  ;;  %v2492_v7 = vor.u32 %v3397_v56, %v2489_v57  ;;  %v3393_v9 = vld [vmem:[%s3883_s27 + $0x10c] sm:$0xf] }
  0xfc   : > { %2109 = vmatpush.bf16.msra.mxu0 %v2460_v26  ;;  %2078 = vmatmul.bf16.vlgmr.msrb.gmra.mxu1 %v4081_v40  ;;  %v1859_v14 = vadd.f32 %v1858_v11, %v1846_v60  ;;  %v2745_v0 = vld [vmem:[%s3883_s27 + $0x338] sm:$0xf0]  ;;  %v3577_v45 = vld [vmem:[%s3883_s27 + $0x6cc] sm:$0xf] }
  0xfd   : > { %2122 = vmatpush.bf16.msra.mxu1 %v2588_v28  ;;  %2091 = vmatmul.bf16.vlgmr.msrb.gmra.mxu2 %v4070_v31  ;;  %v2524_v28 = vor.u32 %v3405_v18, %v2521_v21  ;;  %v2345_v6 = vld [vmem:[%s3883_s27 + $0x18] sm:$0xf0]  ;;  %v3517_v18 = vld [vmem:[%s3883_s27 + $0x4ec] sm:$0xf] }
  0xfe   : > { %2135 = vmatpush.bf16.msra.mxu2 %v2716_v29  ;;  %2104 = vmatmul.bf16.vlgmr.msrb.gmra.mxu3 %v4079_v38  ;;  %v1872_v26 = vadd.f32 %v1871_v19, %v1859_v14  ;;  %v2652_v29 = vor.u32 %v3437_v22, %v2649_v23  ;;  %v2473_v10 = vld [vmem:[%s3883_s27 + $0x118] sm:$0xf0]  ;;  %v3457_v14 = vld [vmem:[%s3883_s27 + $0x30c] sm:$0xf] }
  0xff   : > { %2148 = vmatpush.bf16.msra.mxu3 %v2844_v36  ;;  %v2780_v36 = vor.u32 %v3469_v24, %v2777_v25  ;;  %v2729_v15 = vld [vmem:[%s3883_s27 + $0x318] sm:$0xf0]  ;;  %v3581_v23 = vld [vmem:[%s3883_s27 + $0x6ec] sm:$0xf]  ;;  %v2476_v25 = vor.u32 %v3393_v9, %v2473_v10 }
 0x100   : > { %2110 = vmatpush.bf16.msra.mxu0 %v2444_v32  ;;  %v1884_v30 = vpop.f32.mrf.mxu2  ;;  %v3465_v32 = vld [vmem:[%s3883_s27 + $0x34c] sm:$0xf]  ;;  %v2969_v19 = vld [vmem:[%s3883_s27 + $0x4f8] sm:$0xf0] }
 0x101   : > { %2123 = vmatpush.bf16.msra.mxu1 %v2572_v48  ;;  %v1885_v39 = vadd.f32 %v1884_v30, %v1872_v26  ;;  %v2380_v48 = vor.u32 %v3369_v33, %v2377_v34  ;;  %v1873_v58 = vpop.f32.mrf.mxu1  ;;  %v3097_v22 = vld [vmem:[%s3883_s27 + $0x5f8] sm:$0xf0]  ;;  %v2972_v30 = vor.u32 %v3517_v18, %v2969_v19  ;;  %v3509_v51 = vld [vmem:[%s3883_s27 + $0x4ac] sm:$0xf] }
 0x102   : > { %2136 = vmatpush.bf16.msra.mxu2 %v2700_v49  ;;  %v3225_v24 = vld [vmem:[%s3883_s27 + $0x6f8] sm:$0xf0]  ;;  %v3573_v57 = vld [vmem:[%s3883_s27 + $0x6ac] sm:$0xf] }
 0x103   : > { %2149 = vmatpush.bf16.msra.mxu3 %v2828_v53  ;;  %v1897_v46 = vpop.f32.mrf.mxu3  ;;  %v1860_v52 = vpop.f32.mrf.mxu0  ;;  %v2508_v53 = vor.u32 %v3401_v35, %v2505_v41  ;;  %v3228_v34 = vor.u32 %v3581_v23, %v3225_v24  ;;  %v3513_v35 = vld [vmem:[%s3883_s27 + $0x4cc] sm:$0xf]  ;;  %v3081_v43 = vld [vmem:[%s3883_s27 + $0x5d8] sm:$0xf0] }
 0x104   : > { %2111 = vmatpush.bf16.msra.mxu0 %v2428_v59  ;;  %v1898_v49 = vadd.f32 %v1897_v46, %v1885_v39  ;;  %v2764_v59 = vor.u32 %v3465_v32, %v2761_v47  ;;  %v3545_v39 = vld [vmem:[%s3883_s27 + $0x5cc] sm:$0xf]  ;;  %v3209_v46 = vld [vmem:[%s3883_s27 + $0x6d8] sm:$0xf0] }
 0x105   : > { %2124 = vmatpush.bf16.msra.mxu1 %v2556_v61  ;;  %v2617_v61 = vld [vmem:[%s3883_s27 + $0x238] sm:$0xf0]  ;;  %v3609_v32 = vld [vmem:[%s3883_s27 + $0x7cc] sm:$0xf]  ;;  %v3212_v50 = vor.u32 %v3577_v45, %v3209_v46 }
 0x106   : > { %2137 = vmatpush.bf16.msra.mxu2 %v2684_v62  ;;  %vm2213_vm0 = vcmp.gt.f32.partialorder %v1898_v49, 0.0  ;;  %v2217_v60 = vmul.f32 0.01, %v1898_v49  ;;  %v3461_v62 = vld [vmem:[%s3883_s27 + $0x32c] sm:$0xf]  ;;  %v2620_v8 = vor.u32 %v3429_v42, %v2617_v61 }
 0x107   : > { %2150 = vmatpush.bf16.msra.mxu3 %v2812_v3  ;;  %v3361_v3 = vld [vmem:[%s3883_s27 + $0xc] sm:$0xf]  ;;  %v3337_v47 = vld [vmem:[%s3883_s27 + $0x7d8] sm:$0xf0] }
 0x108   : > { %2112 = vmatpush.bf16.msra.mxu0 %v2412_v54  ;;  %v2221_v1 = vsel %vm2213_vm0, %v1898_v49, %v2217_v60  ;;  %v3425_v54 = vld [vmem:[%s3883_s27 + $0x20c] sm:$0xf]  ;;  %v1886_v11 = vpop.f32.mrf.mxu2  ;;  %v2348_v21 = vor.u32 %v3361_v3, %v2345_v6  ;;  %v3084_v49 = vor.u32 %v3545_v39, %v3081_v43  ;;  %v2937_v52 = vld [vmem:[%s3883_s27 + $0x4b8] sm:$0xf0] }
 0x109   : > { %2125 = vmatpush.bf16.msra.mxu1 %v2540_v12  ;;  %2225 = vst [vmem:[%s4423_s7] sm:$0xff] %v2221_v1  ;;  %v2748_v12 = vor.u32 %v3461_v62, %v2745_v0  ;;  %v3065_v56 = vld [vmem:[%s3883_s27 + $0x5b8] sm:$0xf0]  ;;  %v3605_v58 = vld [vmem:[%s3883_s27 + $0x7ac] sm:$0xf]  ;;  %v2940_v60 = vor.u32 %v3509_v51, %v2937_v52 }
 0x10a   : > { %2138 = vmatpush.bf16.msra.mxu2 %v2668_v13  ;;  %v2601_v13 = vld [vmem:[%s3883_s27 + $0x218] sm:$0xf0]  ;;  %v3505_v62 = vld [vmem:[%s3883_s27 + $0x48c] sm:$0xf] }
 0x10b   : > { %2151 = vmatpush.bf16.msra.mxu3 %v2796_v20  ;;  %v1899_v16 = vpop.f32.mrf.mxu3  ;;  %v3549_v20 = vld [vmem:[%s3883_s27 + $0x5ec] sm:$0xf]  ;;  %v2604_v26 = vor.u32 %v3425_v54, %v2601_v13  ;;  %v3193_v42 = vld [vmem:[%s3883_s27 + $0x6b8] sm:$0xf0] }
 0x10c   : > { %2113 = vmatpush.bf16.msra.mxu0 %v2396_v27  ;;  %v3613_v27 = vld [vmem:[%s3883_s27 + $0x7ec] sm:$0xf]  ;;  %v3100_v33 = vor.u32 %v3549_v20, %v3097_v22  ;;  %v3196_v61 = vor.u32 %v3573_v57, %v3193_v42  ;;  %v2921_v0 = vld [vmem:[%s3883_s27 + $0x498] sm:$0xf0] }
 0x10d   : > { %2126 = vmatpush.bf16.msra.mxu1 %v2524_v28  ;;  %v3353_v28 = vld [vmem:[%s3883_s27 + $0x7f8] sm:$0xf0]  ;;  %v3601_v6 = vld [vmem:[%s3883_s27 + $0x78c] sm:$0xf] }
 0x10e   : > { %2139 = vmatpush.bf16.msra.mxu2 %v2652_v29  ;;  %v2732_v29 = vor.u32 %v3457_v14, %v2729_v15  ;;  %v3356_v41 = vor.u32 %v3613_v27, %v3353_v28  ;;  %v3177_v3 = vld [vmem:[%s3883_s27 + $0x698] sm:$0xf0]  ;;  %v3501_v54 = vld [vmem:[%s3883_s27 + $0x46c] sm:$0xf] }
 0x10f   : > { %2152 = vmatpush.bf16.msra.mxu3 %v2780_v36  ;;  %v2953_v36 = vld [vmem:[%s3883_s27 + $0x4d8] sm:$0xf0]  ;;  %v3565_v16 = vld [vmem:[%s3883_s27 + $0x66c] sm:$0xf] }
 0x110   : > { %2114 = vmatpush.bf16.msra.mxu0 %v2380_v48  ;;  %v2956_v48 = vor.u32 %v3513_v35, %v2953_v36  ;;  %v2905_v11 = vld [vmem:[%s3883_s27 + $0x478] sm:$0xf0]  ;;  %v3597_v19 = vld [vmem:[%s3883_s27 + $0x76c] sm:$0xf] }
 0x111   : > { %2127 = vmatpush.bf16.msra.mxu1 %v2508_v53  ;;  %v3541_v53 = vld [vmem:[%s3883_s27 + $0x5ac] sm:$0xf]  ;;  %v3033_v15 = vld [vmem:[%s3883_s27 + $0x578] sm:$0xf0] }
 0x112   : > { %2140 = vmatpush.bf16.msra.mxu2 %v2636_v55  ;;  %v3340_v55 = vor.u32 %v3609_v32, %v3337_v47  ;;  %v3161_v18 = vld [vmem:[%s3883_s27 + $0x678] sm:$0xf0]  ;;  %v3497_v24 = vld [vmem:[%s3883_s27 + $0x44c] sm:$0xf] }
 0x113   : > { %2153 = vmatpush.bf16.msra.mxu3 %v2764_v59  ;;  %v3321_v59 = vld [vmem:[%s3883_s27 + $0x7b8] sm:$0xf0]  ;;  %v3164_v23 = vor.u32 %v3565_v16, %v3161_v18  ;;  %v3593_v35 = vld [vmem:[%s3883_s27 + $0x74c] sm:$0xf] }
 0x114   : > { %2115 = vmatpush.bf16.msra.mxu0 %v2364_v2  ;;  %v3324_v1 = vor.u32 %v3605_v58, %v3321_v59  ;;  %v3049_v2 = vld [vmem:[%s3883_s27 + $0x598] sm:$0xf0]  ;;  %v3493_v46 = vld [vmem:[%s3883_s27 + $0x42c] sm:$0xf] }
 0x115   : > { %2128 = vmatpush.bf16.msra.mxu1 %v2492_v7  ;;  %v3305_v7 = vld [vmem:[%s3883_s27 + $0x798] sm:$0xf0]  ;;  %v3525_v47 = vld [vmem:[%s3883_s27 + $0x52c] sm:$0xf] }
 0x116   : > { %2141 = vmatpush.bf16.msra.mxu2 %v2620_v8  ;;  %v3308_v14 = vor.u32 %v3601_v6, %v3305_v7  ;;  %v3289_v20 = vld [vmem:[%s3883_s27 + $0x778] sm:$0xf0]  ;;  %v3557_v51 = vld [vmem:[%s3883_s27 + $0x62c] sm:$0xf] }
 0x117   : > { %2154 = vmatpush.bf16.msra.mxu3 %v2748_v12  ;;  %v3533_v12 = vld [vmem:[%s3883_s27 + $0x56c] sm:$0xf]  ;;  %v3292_v28 = vor.u32 %v3597_v19, %v3289_v20  ;;  %v3273_v36 = vld [vmem:[%s3883_s27 + $0x758] sm:$0xf0] }
 0x118   : > { %2116 = vmatpush.bf16.msra.mxu0 %v2348_v21  ;;  %v4473_v8 = vpop.f32.mrf.mxu0  ;;  %v2908_v21 = vor.u32 %v3501_v54, %v2905_v11  ;;  %v3036_v22 = vor.u32 %v3533_v12, %v3033_v15  ;;  %v2873_v32 = vld [vmem:[%s3883_s27 + $0x438] sm:$0xf0]  ;;  %v3489_v59 = vld [vmem:[%s3883_s27 + $0x40c] sm:$0xf] }
 0x119   : > { %2129 = vmatpush.bf16.msra.mxu1 %v2476_v25  ;;  %v4478_v13 = vpop.f32.mrf.mxu1  ;;  %v2889_v25 = vld [vmem:[%s3883_s27 + $0x458] sm:$0xf0]  ;;  %v2876_v57 = vor.u32 %v3493_v46, %v2873_v32 }
 0x11a   : > { %2142 = vmatpush.bf16.msra.mxu2 %v2604_v26  ;;  %v3529_v26 = vld [vmem:[%s3883_s27 + $0x54c] sm:$0xf]  ;;  %v2892_v39 = vor.u32 %v3497_v24, %v2889_v25  ;;  %v3129_v52 = vld [vmem:[%s3883_s27 + $0x638] sm:$0xf0] }
 0x11b   : > { %2155 = vmatpush.bf16.msra.mxu3 %v2732_v29  ;;  %2117 = vmatmul.bf16.vlgmr.msra.gmra.mxu0 %v3994_v4  ;;  %v3569_v4 = vld [vmem:[%s3883_s27 + $0x68c] sm:$0xf]  ;;  %v3017_v29 = vld [vmem:[%s3883_s27 + $0x558] sm:$0xf0]  ;;  %v3132_v58 = vor.u32 %v3557_v51, %v3129_v52 }
 0x11c   : > { %2161 = vmatpush.bf16.msrb.mxu0 %v2972_v30  ;;  %2130 = vmatmul.bf16.vlgmr.msra.gmra.mxu1 %v4009_v17  ;;  %v2924_v17 = vor.u32 %v3505_v62, %v2921_v0  ;;  %v3180_v10 = vor.u32 %v3569_v4, %v3177_v3  ;;  %v3561_v30 = vld [vmem:[%s3883_s27 + $0x64c] sm:$0xf]  ;;  %v3020_v43 = vor.u32 %v3529_v26, %v3017_v29  ;;  %v2985_v0 = vld [vmem:[%s3883_s27 + $0x518] sm:$0xf0]  ;;  %v511_v29 = vperm.slane %v4328_v44, 2 }
 0x11d   : > { %2174 = vmatpush.bf16.msrb.mxu1 %v3100_v33  ;;  %2143 = vmatmul.bf16.vlgmr.msra.gmra.mxu2 %v3984_v63  ;;  %v3068_v63 = vor.u32 %v3541_v53, %v3065_v56  ;;  %v3145_v33 = vld [vmem:[%s3883_s27 + $0x658] sm:$0xf0]  ;;  %v3589_v53 = vld [vmem:[%s3883_s27 + $0x72c] sm:$0xf]  ;;  %v510_v56 = vperm.slane %v4328_v44, 1 }
 0x11e   : > { %2187 = vmatpush.bf16.msrb.mxu2 %v3228_v34  ;;  %2156 = vmatmul.bf16.vlgmr.msra.gmra.mxu3 %v3996_v5  ;;  %v3537_v5 = vld [vmem:[%s3883_s27 + $0x58c] sm:$0xf]  ;;  %v3148_v45 = vor.u32 %v3561_v30, %v3145_v33  ;;  %v3241_v6 = vld [vmem:[%s3883_s27 + $0x718] sm:$0xf0] }
 0x11f   : > { %2200 = vmatpush.bf16.msrb.mxu3 %v3356_v41  ;;  %v3052_v9 = vor.u32 %v3537_v5, %v3049_v2  ;;  %v3553_v5 = vld [vmem:[%s3883_s27 + $0x60c] sm:$0xf]  ;;  %v1911_v4 = vadd.f32 %v4473_v8, %v510_v56 }
 0x120   : > { %2162 = vmatpush.bf16.msrb.mxu0 %v2956_v48  ;;  %v1936_v27 = vpop.f32.mrf.mxu2  ;;  %v1912_v41 = vpop.f32.mrf.mxu0  ;;  %v3585_v3 = vld [vmem:[%s3883_s27 + $0x70c] sm:$0xf] }
 0x121   : > { %2175 = vmatpush.bf16.msrb.mxu1 %v3084_v49  ;;  %v1949_v34 = vpop.f32.mrf.mxu3  ;;  %v1925_v48 = vpop.f32.mrf.mxu1  ;;  %v3276_v49 = vor.u32 %v3593_v35, %v3273_v36  ;;  %v1924_v54 = vadd.f32 %v4478_v13, %v1911_v4 }
 0x122   : > { %2188 = vmatpush.bf16.msrb.mxu2 %v3212_v50  ;;  %v3001_v50 = vld [vmem:[%s3883_s27 + $0x538] sm:$0xf0] }
 0x123   : > { %2201 = vmatpush.bf16.msrb.mxu3 %v3340_v55  ;;  %v3257_v55 = vld [vmem:[%s3883_s27 + $0x738] sm:$0xf0]  ;;  %v3004_v42 = vor.u32 %v3525_v47, %v3001_v50  ;;  %v1937_v11 = vadd.f32 %v1936_v27, %v1924_v54 }
 0x124   : > { %2163 = vmatpush.bf16.msrb.mxu0 %v2940_v60  ;;  %v2857_v60 = vld [vmem:[%s3883_s27 + $0x418] sm:$0xf0]  ;;  %v3260_v62 = vor.u32 %v3589_v53, %v3257_v55 }
 0x125   : > { %2176 = vmatpush.bf16.msrb.mxu1 %v3068_v63  ;;  %v3521_v63 = vld [vmem:[%s3883_s27 + $0x50c] sm:$0xf]  ;;  %v2860_v7 = vor.u32 %v3489_v59, %v2857_v60  ;;  %v1950_v8 = vadd.f32 %v1949_v34, %v1937_v11 }
 0x126   : > { %2189 = vmatpush.bf16.msrb.mxu2 %v3196_v61 }
 0x127   : > { %2202 = vmatpush.bf16.msrb.mxu3 %v3324_v1  ;;  %v3113_v1 = vld [vmem:[%s3883_s27 + $0x618] sm:$0xf0] }
 0x128   : > { %2164 = vmatpush.bf16.msrb.mxu0 %v2924_v17  ;;  %v1938_v61 = vpop.f32.mrf.mxu2  ;;  %v2988_v17 = vor.u32 %v3521_v63, %v2985_v0 }
 0x129   : > { %2177 = vmatpush.bf16.msrb.mxu1 %v3052_v9  ;;  %v1951_v2 = vpop.f32.mrf.mxu3  ;;  %v3116_v9 = vor.u32 %v3553_v5, %v3113_v1  ;;  %v512_v61 = vperm.slane %v4328_v44, 3 }
 0x12a   : > { %2190 = vmatpush.bf16.msrb.mxu2 %v3180_v10  ;;  %v3244_v10 = vor.u32 %v3585_v3, %v3241_v6 }
 0x12b   : > { %2203 = vmatpush.bf16.msrb.mxu3 %v3308_v14 }
 0x12c   : > { %2165 = vmatpush.bf16.msrb.mxu0 %v2908_v21 }
 0x12d   : > { %2178 = vmatpush.bf16.msrb.mxu1 %v3036_v22 }
 0x12e   : > { %2191 = vmatpush.bf16.msrb.mxu2 %v3164_v23 }
 0x12f   : > { %2204 = vmatpush.bf16.msrb.mxu3 %v3292_v28 }
 0x130   : > { %2166 = vmatpush.bf16.msrb.mxu0 %v2892_v39 }
 0x131   : > { %2179 = vmatpush.bf16.msrb.mxu1 %v3020_v43 }
 0x132   : > { %2192 = vmatpush.bf16.msrb.mxu2 %v3148_v45 }
 0x133   : > { %2205 = vmatpush.bf16.msrb.mxu3 %v3276_v49 }
 0x134   : > { %2167 = vmatpush.bf16.msrb.mxu0 %v2876_v57 }
 0x135   : > { %2180 = vmatpush.bf16.msrb.mxu1 %v3004_v42 }
 0x136   : > { %2193 = vmatpush.bf16.msrb.mxu2 %v3132_v58 }
 0x137   : > { %2206 = vmatpush.bf16.msrb.mxu3 %v3260_v62 }
 0x138   : > { %2168 = vmatpush.bf16.msrb.mxu0 %v2860_v7  ;;  %v1962_v12 = vpop.f32.mrf.mxu0 }
 0x139   : > { %2181 = vmatpush.bf16.msrb.mxu1 %v2988_v17  ;;  %v1963_v14 = vadd.f32 %v1962_v12, %v1950_v8  ;;  %v1975_v15 = vpop.f32.mrf.mxu1 }
 0x13a   : > { %2194 = vmatpush.bf16.msrb.mxu2 %v3116_v9 }
 0x13b   : > { %2207 = vmatpush.bf16.msrb.mxu3 %v3244_v10  ;;  %2169 = vmatmul.bf16.vlgmr.msrb.gmra.mxu0 %v4077_v37  ;;  %v1976_v16 = vadd.f32 %v1975_v15, %v1963_v14 }
 0x13c   : > { %2182 = vmatmul.bf16.vlgmr.msrb.gmra.mxu1 %v4081_v40 }
 0x13d   : > { %2195 = vmatmul.bf16.vlgmr.msrb.gmra.mxu2 %v4070_v31 }
 0x13e   : > { %2208 = vmatmul.bf16.vlgmr.msrb.gmra.mxu3 %v4079_v38 }
 0x140   : > { %v1988_v13 = vpop.f32.mrf.mxu2  ;;  %v1964_v21 = vpop.f32.mrf.mxu0 }
 0x141   : > { %v1989_v18 = vadd.f32 %v1988_v13, %v1976_v16  ;;  %v2001_v19 = vpop.f32.mrf.mxu3  ;;  %v1977_v22 = vpop.f32.mrf.mxu1 }
 0x143   : > { %v2002_v20 = vadd.f32 %v2001_v19, %v1989_v18 }
 0x145   : > { %vm2214_vm1 = vcmp.gt.f32.partialorder %v2002_v20, 0.0  ;;  %v2218_v37 = vmul.f32 0.01, %v2002_v20 }
 0x147   : > { %v2222_v23 = vsel %vm2214_vm1, %v2002_v20, %v2218_v37 }
 0x148   : > { %2226 = vst [vmem:[%s4423_s7 + $0x8] sm:$0xff] %v2222_v23  ;;  %v1990_v40 = vpop.f32.mrf.mxu2 }
 0x149   : > { %v2003_v31 = vpop.f32.mrf.mxu3 }
 0x158   : > { %v2014_v24 = vpop.f32.mrf.mxu0 }
 0x159   : > { %v2027_v25 = vpop.f32.mrf.mxu1  ;;  %v2015_v34 = vadd.f32 %v2014_v24, %v511_v29 }
 0x15b   : > { %v2028_v35 = vadd.f32 %v2027_v25, %v2015_v34 }
 0x160   : > { %v2040_v38 = vpop.f32.mrf.mxu2  ;;  %v2016_v27 = vpop.f32.mrf.mxu0 }
 0x161   : > { %v2053_v26 = vpop.f32.mrf.mxu3  ;;  %v2029_v28 = vpop.f32.mrf.mxu1  ;;  %v2041_v36 = vadd.f32 %v2040_v38, %v2028_v35 }
 0x163   : > { %v2054_v39 = vadd.f32 %v2053_v26, %v2041_v36 }
 0x168   : > { %v2042_v30 = vpop.f32.mrf.mxu2 }
 0x169   : > { %v2055_v33 = vpop.f32.mrf.mxu3 }
 0x178   : > { %v2066_v41 = vpop.f32.mrf.mxu0 }
 0x179   : > { %v2067_v43 = vadd.f32 %v2066_v41, %v2054_v39  ;;  %v2079_v45 = vpop.f32.mrf.mxu1 }
 0x17b   : > { %v2080_v46 = vadd.f32 %v2079_v45, %v2067_v43 }
 0x180   : > { %v2092_v32 = vpop.f32.mrf.mxu2  ;;  %v2068_v50 = vpop.f32.mrf.mxu0 }
 0x181   : > { %v2093_v47 = vadd.f32 %v2092_v32, %v2080_v46  ;;  %v2105_v48 = vpop.f32.mrf.mxu3  ;;  %v2081_v51 = vpop.f32.mrf.mxu1 }
 0x183   : > { %v2106_v49 = vadd.f32 %v2105_v48, %v2093_v47 }
 0x185   : > { %vm2215_vm2 = vcmp.gt.f32.partialorder %v2106_v49, 0.0  ;;  %v2219_v52 = vmul.f32 0.01, %v2106_v49 }
 0x187   : > { %v2223_v53 = vsel %vm2215_vm2, %v2106_v49, %v2219_v52 }
 0x188   : > { %2227 = vst [vmem:[%s4423_s7 + $0x10] sm:$0xff] %v2223_v53  ;;  %v2094_v55 = vpop.f32.mrf.mxu2 }
 0x189   : > { %v2107_v56 = vpop.f32.mrf.mxu3 }
 0x198   : > { %v2118_v57 = vpop.f32.mrf.mxu0 }
 0x199   : > { %v2131_v42 = vpop.f32.mrf.mxu1  ;;  %v2119_v5 = vadd.f32 %v2118_v57, %v512_v61 }
 0x19b   : > { %v2132_v1 = vadd.f32 %v2131_v42, %v2119_v5 }
 0x1a0   : > { %v2144_v58 = vpop.f32.mrf.mxu2  ;;  %v2120_v60 = vpop.f32.mrf.mxu0 }
 0x1a1   : > { %v2157_v59 = vpop.f32.mrf.mxu3  ;;  %v2133_v63 = vpop.f32.mrf.mxu1  ;;  %v2145_v2 = vadd.f32 %v2144_v58, %v2132_v1 }
 0x1a3   : > { %v2158_v4 = vadd.f32 %v2157_v59, %v2145_v2 }
 0x1a8   : > { %v2146_v62 = vpop.f32.mrf.mxu2 }
 0x1a9   : > { %v2159_v0 = vpop.f32.mrf.mxu3 }
 0x1b8   : > { %v2170_v3 = vpop.f32.mrf.mxu0 }
 0x1b9   : > { %v2183_v6 = vpop.f32.mrf.mxu1  ;;  %v2171_v7 = vadd.f32 %v2170_v3, %v2158_v4 }
 0x1bb   : > { %v2184_v17 = vadd.f32 %v2183_v6, %v2171_v7 }
 0x1c0   : > { %v2196_v9 = vpop.f32.mrf.mxu2  ;;  %v2172_v11 = vpop.f32.mrf.mxu0 }
 0x1c1   : > { %v2197_v10 = vadd.f32 %v2196_v9, %v2184_v17  ;;  %v2209_v54 = vpop.f32.mrf.mxu3  ;;  %v2185_v8 = vpop.f32.mrf.mxu1 }
 0x1c3   : > { %v2210_v12 = vadd.f32 %v2209_v54, %v2197_v10 }
 0x1c5   : > { %vm2216_vm3 = vcmp.gt.f32.partialorder %v2210_v12, 0.0  ;;  %v2220_v14 = vmul.f32 0.01, %v2210_v12 }
 0x1c7   : > { %v2224_v44 = vsel %vm2216_vm3, %v2210_v12, %v2220_v14 }
 0x1c8   : > { %2228 = vst [vmem:[%s4423_s7 + $0x18] sm:$0xff] %v2224_v44  ;;  %v2198_v15 = vpop.f32.mrf.mxu2 }
 0x1c9   : > { %v2211_v16 = vpop.f32.mrf.mxu3 }
 0x1ca PF: > { %p16_p8 = scmp.ge.s32.totalorder %s3806_s17, 6   ;;  %s4542_s12 = smov %s3753_s13 }
 0x1cb   : > { %s4543_s13 = smov %s3757_s14  ;;  %s4544_s14 = smov %s3816_s20 }
 0x1cc   : > { %s4545_s15 = smov %s3806_s17  ;;  %18 = sbr.rel (!%p16_p8) target bundleno = 5 (0x5), region = 85 }
 0x1d1   :  { %2251 = vsyncpa [#allocation3], 1 }
 0x1d2   :  { %2253 = vsyncpa [#allocation3 + $0x1], 1 }
 0x1d3   :  { %2254 = vsyncpa [#allocation5], 1 }
 0x1d4   :  { %2256 = vsyncpa [#allocation5 + $0x1], 1 }

// kernel: discriminator_q_forward.7
= control target key start
LH: loop header
LB: loop body
LE: loop exit
PB: predicated region body
PF: predicated region fallthrough
CT: control target
= control target key end

     0   :  { %8 = vsyncpa [#allocation3], 0  ;;  %s5081_s0 = inlined_call_operand.vmem [shape: f32[8,5120], index: 0, kind: input, shape index: {}]   ;;  %s5082_s1 = inlined_call_operand.hbm [shape: bf16[5120,128], index: 1, kind: input, shape index: {}]   ;;  %s5083_s2 = inlined_call_operand.hbm [shape: f32[1,128], index: 2, kind: input, shape index: {}]   ;;  %s5084_s3 = inlined_call_operand.vmem [shape: f32[8,128], index: 3, kind: output, shape index: {}]  }
   0x1   :  { %s16_s14 = sshll.u32 %s5082_s1, 4  ;;  %s17_s14 = int_to_ptr.hbm [resolvable:$true] %s16_s14 }
   0x2   :  { %9 = vsyncpa [#allocation5], 0  ;;  %s4906_s15 = smov [#allocation2]   ;;  %s30_s19 = sshll.u32 %s5083_s2, 4  ;;  %s31_s19 = int_to_ptr.hbm [resolvable:$true] %s30_s19 }
   0x3   :  { %s18_s16 = sshll.u32 %s4906_s15, 4  ;;  %s4907_s20 = smov 64   ;;  %s19_s16 = int_to_ptr.vmem [resolvable:$true] %s18_s16 }
   0x4   :  { %s4908_s21 = smov 4   ;;  %s4909_s22 = smov [#allocation4]  }
   0x5   :  { %24 = dma.hbm_to_vmem [thread:$0]  %s17_s14, 40960, %s19_s16, [#allocation3], %s4907_s20, %s4907_s20, %s4908_s21  }
   0x6   :  { %s32_s23 = sshll.u32 %s4909_s22, 4  ;;  %s33_s23 = int_to_ptr.vmem [resolvable:$true] %s32_s23 }
   0x7   :  { %35 = dma.hbm_to_vmem [thread:$0]  %s31_s19, 16, %s33_s23, [#allocation5]  }
   0x8   :  { %4902 = dma.done.wait [#allocation3], 40960  }
   0x9   :  { %4903 = vsyncadd [#allocation3], 4294926336 }
   0xa   :  { %4904 = dma.done.wait [#allocation5], 16  }
   0xb   :  { %4905 = vsyncadd [#allocation5], 4294967280  ;;  %v4532_v0 = vld [vmem:[#allocation2 + $0x38] sm:$0xff]  ;;  %v4531_v4 = vld [vmem:[#allocation2 + $0x30] sm:$0xff] }
   0xc   :  { %v4540_v1 = vld [vmem:[#allocation2 + $0x78] sm:$0xff]  ;;  %2688 = vmatpush.bf16.msra.mxu0 %v4532_v0  ;;  %v4539_v5 = vld [vmem:[#allocation2 + $0x70] sm:$0xff]  ;;  %v4530_v8 = vld [vmem:[#allocation2 + $0x28] sm:$0xff] }
   0xd   :  { %v4548_v2 = vld [vmem:[#allocation2 + $0xb8] sm:$0xff]  ;;  %2701 = vmatpush.bf16.msra.mxu1 %v4540_v1  ;;  %v4547_v6 = vld [vmem:[#allocation2 + $0xb0] sm:$0xff]  ;;  %v4538_v9 = vld [vmem:[#allocation2 + $0x68] sm:$0xff] }
   0xe   :  { %v4556_v3 = vld [vmem:[#allocation2 + $0xf8] sm:$0xff]  ;;  %2714 = vmatpush.bf16.msra.mxu2 %v4548_v2  ;;  %v4555_v7 = vld [vmem:[#allocation2 + $0xf0] sm:$0xff]  ;;  %v4546_v10 = vld [vmem:[#allocation2 + $0xa8] sm:$0xff] }
   0xf   :  { %2727 = vmatpush.bf16.msra.mxu3 %v4556_v3  ;;  %v4554_v11 = vld [vmem:[#allocation2 + $0xe8] sm:$0xff]  ;;  %v4529_v12 = vld [vmem:[#allocation2 + $0x20] sm:$0xff]  ;;  %v4528_v16 = vld [vmem:[#allocation2 + $0x18] sm:$0xff] }
  0x10   :  { %2689 = vmatpush.bf16.msra.mxu0 %v4531_v4  ;;  %v4537_v13 = vld [vmem:[#allocation2 + $0x60] sm:$0xff]  ;;  %v4536_v17 = vld [vmem:[#allocation2 + $0x58] sm:$0xff]  ;;  %v4527_v20 = vld [vmem:[#allocation2 + $0x10] sm:$0xff] }
  0x11   :  { %2702 = vmatpush.bf16.msra.mxu1 %v4539_v5  ;;  %v4545_v14 = vld [vmem:[#allocation2 + $0xa0] sm:$0xff]  ;;  %v4544_v18 = vld [vmem:[#allocation2 + $0x98] sm:$0xff]  ;;  %v4535_v21 = vld [vmem:[#allocation2 + $0x50] sm:$0xff] }
  0x12   :  { %2715 = vmatpush.bf16.msra.mxu2 %v4547_v6  ;;  %v4553_v15 = vld [vmem:[#allocation2 + $0xe0] sm:$0xff]  ;;  %v4552_v19 = vld [vmem:[#allocation2 + $0xd8] sm:$0xff]  ;;  %v4543_v22 = vld [vmem:[#allocation2 + $0x90] sm:$0xff] }
  0x13   :  { %2728 = vmatpush.bf16.msra.mxu3 %v4555_v7  ;;  %v4551_v23 = vld [vmem:[#allocation2 + $0xd0] sm:$0xff]  ;;  %v4526_v24 = vld [vmem:[#allocation2 + $0x8] sm:$0xff]  ;;  %v4525_v28 = vld [vmem:[#allocation2] sm:$0xff] }
  0x14   :  { %2690 = vmatpush.bf16.msra.mxu0 %v4530_v8  ;;  %v4534_v25 = vld [vmem:[#allocation2 + $0x48] sm:$0xff]  ;;  %v4533_v29 = vld [vmem:[#allocation2 + $0x40] sm:$0xff]  ;;  %v4564_v32 = vld [vmem:[#allocation2 + $0x138] sm:$0xff] }
  0x15   :  { %2703 = vmatpush.bf16.msra.mxu1 %v4538_v9  ;;  %v4542_v26 = vld [vmem:[#allocation2 + $0x88] sm:$0xff]  ;;  %v4541_v30 = vld [vmem:[#allocation2 + $0x80] sm:$0xff]  ;;  %v46_v33 = vld [vmem:[%s5081_s0 + $0x10] sm:$0xff] }
  0x16   :  { %2716 = vmatpush.bf16.msra.mxu2 %v4546_v10  ;;  %v4550_v27 = vld [vmem:[#allocation2 + $0xc8] sm:$0xff]  ;;  %v4549_v31 = vld [vmem:[#allocation2 + $0xc0] sm:$0xff]  ;;  %v4572_v35 = vld [vmem:[#allocation2 + $0x178] sm:$0xff]  ;;  %v86_v40 = vpack.c.bf16 %v46_v33, %v46_v33 }
  0x17   :  { %2729 = vmatpush.bf16.msra.mxu3 %v4554_v11  ;;  %v44_v34 = vld [vmem:[%s5081_s0] sm:$0xff]  ;;  %v47_v36 = vld [vmem:[%s5081_s0 + $0x18] sm:$0xff]  ;;  %v45_v37 = vld [vmem:[%s5081_s0 + $0x8] sm:$0xff] }
  0x18   :  { %2691 = vmatpush.bf16.msra.mxu0 %v4529_v12  ;;  %v4580_v38 = vld [vmem:[#allocation2 + $0x1b8] sm:$0xff]  ;;  %v84_v41 = vpack.c.bf16 %v44_v34, %v44_v34  ;;  %v87_v42 = vpack.c.bf16 %v47_v36, %v47_v36  ;;  %v85_v43 = vpack.c.bf16 %v45_v37, %v45_v37  ;;  %v4563_v44 = vld [vmem:[#allocation2 + $0x130] sm:$0xff]  ;;  %v4562_v48 = vld [vmem:[#allocation2 + $0x128] sm:$0xff] }
  0x19   :  { %2704 = vmatpush.bf16.msra.mxu1 %v4537_v13  ;;  %v4588_v39 = vld [vmem:[#allocation2 + $0x1f8] sm:$0xff]  ;;  %v4571_v45 = vld [vmem:[#allocation2 + $0x170] sm:$0xff]  ;;  %v4570_v49 = vld [vmem:[#allocation2 + $0x168] sm:$0xff] }
  0x1a   :  { %2717 = vmatpush.bf16.msra.mxu2 %v4545_v14  ;;  %v4579_v46 = vld [vmem:[#allocation2 + $0x1b0] sm:$0xff]  ;;  %v4578_v50 = vld [vmem:[#allocation2 + $0x1a8] sm:$0xff]  ;;  %v4561_v52 = vld [vmem:[#allocation2 + $0x120] sm:$0xff] }
  0x1b   :  { %2730 = vmatpush.bf16.msra.mxu3 %v4553_v15  ;;  %v4587_v47 = vld [vmem:[#allocation2 + $0x1f0] sm:$0xff]  ;;  %v4586_v51 = vld [vmem:[#allocation2 + $0x1e8] sm:$0xff]  ;;  %v4569_v53 = vld [vmem:[#allocation2 + $0x160] sm:$0xff] }
  0x1c   :  { %2692 = vmatpush.bf16.msra.mxu0 %v4528_v16  ;;  %v4577_v54 = vld [vmem:[#allocation2 + $0x1a0] sm:$0xff]  ;;  %v4560_v56 = vld [vmem:[#allocation2 + $0x118] sm:$0xff]  ;;  %v4559_v60 = vld [vmem:[#allocation2 + $0x110] sm:$0xff] }
  0x1d   :  { %2705 = vmatpush.bf16.msra.mxu1 %v4536_v17  ;;  %v4585_v55 = vld [vmem:[#allocation2 + $0x1e0] sm:$0xff]  ;;  %v4568_v57 = vld [vmem:[#allocation2 + $0x158] sm:$0xff]  ;;  %v4567_v61 = vld [vmem:[#allocation2 + $0x150] sm:$0xff] }
  0x1e   :  { %2718 = vmatpush.bf16.msra.mxu2 %v4544_v18  ;;  %v4576_v58 = vld [vmem:[#allocation2 + $0x198] sm:$0xff]  ;;  %v4575_v62 = vld [vmem:[#allocation2 + $0x190] sm:$0xff]  ;;  %v4558_v0 = vld [vmem:[#allocation2 + $0x108] sm:$0xff] }
  0x1f   :  { %2731 = vmatpush.bf16.msra.mxu3 %v4552_v19  ;;  %v4584_v59 = vld [vmem:[#allocation2 + $0x1d8] sm:$0xff]  ;;  %v4583_v63 = vld [vmem:[#allocation2 + $0x1d0] sm:$0xff]  ;;  %v4566_v1 = vld [vmem:[#allocation2 + $0x148] sm:$0xff] }
  0x20   :  { %2693 = vmatpush.bf16.msra.mxu0 %v4527_v20  ;;  %v4574_v2 = vld [vmem:[#allocation2 + $0x188] sm:$0xff]  ;;  %v4557_v4 = vld [vmem:[#allocation2 + $0x100] sm:$0xff]  ;;  %v4596_v8 = vld [vmem:[#allocation2 + $0x238] sm:$0xff] }
  0x21   :  { %2706 = vmatpush.bf16.msra.mxu1 %v4535_v21  ;;  %v4582_v3 = vld [vmem:[#allocation2 + $0x1c8] sm:$0xff]  ;;  %v4565_v5 = vld [vmem:[#allocation2 + $0x140] sm:$0xff]  ;;  %v50_v9 = vld [vmem:[%s5081_s0 + $0x30] sm:$0xff] }
  0x22   :  { %2719 = vmatpush.bf16.msra.mxu2 %v4543_v22  ;;  %v4573_v6 = vld [vmem:[#allocation2 + $0x180] sm:$0xff]  ;;  %v4604_v11 = vld [vmem:[#allocation2 + $0x278] sm:$0xff]  ;;  %v49_v13 = vld [vmem:[%s5081_s0 + $0x28] sm:$0xff]  ;;  %v90_v16 = vpack.c.bf16 %v50_v9, %v50_v9 }
  0x23   :  { %2732 = vmatpush.bf16.msra.mxu3 %v4551_v23  ;;  %v4581_v7 = vld [vmem:[#allocation2 + $0x1c0] sm:$0xff]  ;;  %v51_v12 = vld [vmem:[%s5081_s0 + $0x38] sm:$0xff]  ;;  %v89_v19 = vpack.c.bf16 %v49_v13, %v49_v13  ;;  %v4595_v20 = vld [vmem:[#allocation2 + $0x230] sm:$0xff] }
  0x24   :  { %2694 = vmatpush.bf16.msra.mxu0 %v4526_v24  ;;  %v48_v10 = vld [vmem:[%s5081_s0 + $0x20] sm:$0xff]  ;;  %v4612_v14 = vld [vmem:[#allocation2 + $0x2b8] sm:$0xff]  ;;  %v91_v18 = vpack.c.bf16 %v51_v12, %v51_v12  ;;  %v4603_v21 = vld [vmem:[#allocation2 + $0x270] sm:$0xff] }
  0x25   :  { %2707 = vmatpush.bf16.msra.mxu1 %v4534_v25  ;;  %v4620_v15 = vld [vmem:[#allocation2 + $0x2f8] sm:$0xff]  ;;  %v88_v17 = vpack.c.bf16 %v48_v10, %v48_v10  ;;  %v4611_v22 = vld [vmem:[#allocation2 + $0x2b0] sm:$0xff]  ;;  %v4594_v24 = vld [vmem:[#allocation2 + $0x228] sm:$0xff] }
  0x26   :  { %2720 = vmatpush.bf16.msra.mxu2 %v4542_v26  ;;  %v4619_v23 = vld [vmem:[#allocation2 + $0x2f0] sm:$0xff]  ;;  %v4602_v25 = vld [vmem:[#allocation2 + $0x268] sm:$0xff]  ;;  %v4600_v33 = vld [vmem:[#allocation2 + $0x258] sm:$0xff] }
  0x27   :  { %2733 = vmatpush.bf16.msra.mxu3 %v4550_v27  ;;  %v4610_v26 = vld [vmem:[#allocation2 + $0x2a8] sm:$0xff]  ;;  %v4608_v34 = vld [vmem:[#allocation2 + $0x298] sm:$0xff]  ;;  %v4591_v36 = vld [vmem:[#allocation2 + $0x210] sm:$0xff] }
  0x28   :  { %2695 = vmatpush.bf16.msra.mxu0 %v4525_v28  ;;  %v4618_v27 = vld [vmem:[#allocation2 + $0x2e8] sm:$0xff]  ;;  %v4593_v28 = vld [vmem:[#allocation2 + $0x220] sm:$0xff]  ;;  %v4599_v37 = vld [vmem:[#allocation2 + $0x250] sm:$0xff] }
  0x29   :  { %2708 = vmatpush.bf16.msra.mxu1 %v4533_v29  ;;  %v4601_v29 = vld [vmem:[#allocation2 + $0x260] sm:$0xff]  ;;  %v4632_v9 = vld [vmem:[#allocation2 + $0x358] sm:$0xff]  ;;  %v4623_v12 = vld [vmem:[#allocation2 + $0x310] sm:$0xff] }
  0x2a   :  { %2721 = vmatpush.bf16.msra.mxu2 %v4541_v30  ;;  %v4609_v30 = vld [vmem:[#allocation2 + $0x2a0] sm:$0xff]  ;;  %v4640_v10 = vld [vmem:[#allocation2 + $0x398] sm:$0xff]  ;;  %v4631_v13 = vld [vmem:[#allocation2 + $0x350] sm:$0xff] }
  0x2b   :  { %2734 = vmatpush.bf16.msra.mxu3 %v4549_v31  ;;  %2696 = vmatmul.bf16.vlgmr.msra.gmra.mxu0 %v84_v41  ;;  %v4617_v31 = vld [vmem:[#allocation2 + $0x2e0] sm:$0xff]  ;;  %v4598_v41 = vld [vmem:[#allocation2 + $0x248] sm:$0xff] }
  0x2c   :  { %2740 = vmatpush.bf16.msrb.mxu0 %v4564_v32  ;;  %2709 = vmatmul.bf16.vlgmr.msra.gmra.mxu1 %v85_v43  ;;  %v4592_v32 = vld [vmem:[#allocation2 + $0x218] sm:$0xff]  ;;  %v4614_v43 = vld [vmem:[#allocation2 + $0x2c8] sm:$0xff] }
  0x2d   :  { %2753 = vmatpush.bf16.msrb.mxu1 %v4572_v35  ;;  %2722 = vmatmul.bf16.vlgmr.msra.gmra.mxu2 %v86_v40  ;;  %v4616_v35 = vld [vmem:[#allocation2 + $0x2d8] sm:$0xff]  ;;  %v4590_v40 = vld [vmem:[#allocation2 + $0x208] sm:$0xff] }
  0x2e   :  { %2766 = vmatpush.bf16.msrb.mxu2 %v4580_v38  ;;  %2735 = vmatmul.bf16.vlgmr.msra.gmra.mxu3 %v87_v42  ;;  %v4607_v38 = vld [vmem:[#allocation2 + $0x290] sm:$0xff]  ;;  %v4606_v42 = vld [vmem:[#allocation2 + $0x288] sm:$0xff] }
  0x2f   :  { %2779 = vmatpush.bf16.msrb.mxu3 %v4588_v39  ;;  %v4615_v39 = vld [vmem:[#allocation2 + $0x2d0] sm:$0xff] }
  0x30   :  { %2741 = vmatpush.bf16.msrb.mxu0 %v4563_v44  ;;  %v4589_v44 = vld [vmem:[#allocation2 + $0x200] sm:$0xff] }
  0x31   :  { %2754 = vmatpush.bf16.msrb.mxu1 %v4571_v45  ;;  %v4597_v45 = vld [vmem:[#allocation2 + $0x240] sm:$0xff] }
  0x32   :  { %2767 = vmatpush.bf16.msrb.mxu2 %v4579_v46  ;;  %v4605_v46 = vld [vmem:[#allocation2 + $0x280] sm:$0xff] }
  0x33   :  { %2780 = vmatpush.bf16.msrb.mxu3 %v4587_v47  ;;  %v4613_v47 = vld [vmem:[#allocation2 + $0x2c0] sm:$0xff] }
  0x34   :  { %2742 = vmatpush.bf16.msrb.mxu0 %v4562_v48  ;;  %v4628_v48 = vld [vmem:[#allocation2 + $0x338] sm:$0xff] }
  0x35   :  { %2755 = vmatpush.bf16.msrb.mxu1 %v4570_v49  ;;  %v52_v49 = vld [vmem:[%s5081_s0 + $0x40] sm:$0xff] }
  0x36   :  { %2768 = vmatpush.bf16.msrb.mxu2 %v4578_v50  ;;  %v54_v50 = vld [vmem:[%s5081_s0 + $0x50] sm:$0xff] }
  0x37   :  { %2781 = vmatpush.bf16.msrb.mxu3 %v4586_v51  ;;  %v4636_v51 = vld [vmem:[#allocation2 + $0x378] sm:$0xff] }
  0x38   :  { %2743 = vmatpush.bf16.msrb.mxu0 %v4561_v52  ;;  %v53_v52 = vld [vmem:[%s5081_s0 + $0x48] sm:$0xff] }
  0x39   :  { %2756 = vmatpush.bf16.msrb.mxu1 %v4569_v53  ;;  %v55_v53 = vld [vmem:[%s5081_s0 + $0x58] sm:$0xff] }
  0x3a   :  { %2769 = vmatpush.bf16.msrb.mxu2 %v4577_v54  ;;  %v4644_v54 = vld [vmem:[#allocation2 + $0x3b8] sm:$0xff] }
  0x3b   :  { %2782 = vmatpush.bf16.msrb.mxu3 %v4585_v55  ;;  %v4652_v55 = vld [vmem:[#allocation2 + $0x3f8] sm:$0xff] }
  0x3c   :  { %2744 = vmatpush.bf16.msrb.mxu0 %v4560_v56  ;;  %v92_v56 = vpack.c.bf16 %v52_v49, %v52_v49  ;;  %v4664_v49 = vld [vmem:[#allocation2 + $0x458] sm:$0xff] }
  0x3d   :  { %2757 = vmatpush.bf16.msrb.mxu1 %v4568_v57  ;;  %v94_v57 = vpack.c.bf16 %v54_v50, %v54_v50  ;;  %v4672_v50 = vld [vmem:[#allocation2 + $0x498] sm:$0xff] }
  0x3e   :  { %2770 = vmatpush.bf16.msrb.mxu2 %v4576_v58  ;;  %v93_v58 = vpack.c.bf16 %v53_v52, %v53_v52  ;;  %v4655_v52 = vld [vmem:[#allocation2 + $0x410] sm:$0xff] }
  0x3f   :  { %2783 = vmatpush.bf16.msrb.mxu3 %v4584_v59  ;;  %v95_v59 = vpack.c.bf16 %v55_v53, %v55_v53  ;;  %v4663_v53 = vld [vmem:[#allocation2 + $0x450] sm:$0xff] }
  0x40   :  { %2745 = vmatpush.bf16.msrb.mxu0 %v4559_v60  ;;  %v4627_v60 = vld [vmem:[#allocation2 + $0x330] sm:$0xff] }
  0x41   :  { %2758 = vmatpush.bf16.msrb.mxu1 %v4567_v61  ;;  %v4635_v61 = vld [vmem:[#allocation2 + $0x370] sm:$0xff] }
  0x42   :  { %2771 = vmatpush.bf16.msrb.mxu2 %v4575_v62  ;;  %v4643_v62 = vld [vmem:[#allocation2 + $0x3b0] sm:$0xff] }
  0x43   :  { %2784 = vmatpush.bf16.msrb.mxu3 %v4583_v63  ;;  %v4651_v63 = vld [vmem:[#allocation2 + $0x3f0] sm:$0xff] }
  0x44   :  { %2746 = vmatpush.bf16.msrb.mxu0 %v4558_v0  ;;  %v4626_v0 = vld [vmem:[#allocation2 + $0x328] sm:$0xff] }
  0x45   :  { %2759 = vmatpush.bf16.msrb.mxu1 %v4566_v1  ;;  %v4634_v1 = vld [vmem:[#allocation2 + $0x368] sm:$0xff] }
  0x46   :  { %2772 = vmatpush.bf16.msrb.mxu2 %v4574_v2  ;;  %v4642_v2 = vld [vmem:[#allocation2 + $0x3a8] sm:$0xff] }
  0x47   :  { %2785 = vmatpush.bf16.msrb.mxu3 %v4582_v3  ;;  %v4650_v3 = vld [vmem:[#allocation2 + $0x3e8] sm:$0xff] }
  0x48   :  { %2747 = vmatpush.bf16.msrb.mxu0 %v4557_v4  ;;  %v4625_v4 = vld [vmem:[#allocation2 + $0x320] sm:$0xff] }
  0x49   :  { %2760 = vmatpush.bf16.msrb.mxu1 %v4565_v5  ;;  %v4633_v5 = vld [vmem:[#allocation2 + $0x360] sm:$0xff] }
  0x4a   :  { %2773 = vmatpush.bf16.msrb.mxu2 %v4573_v6  ;;  %v4641_v6 = vld [vmem:[#allocation2 + $0x3a0] sm:$0xff] }
  0x4b   :  { %2786 = vmatpush.bf16.msrb.mxu3 %v4581_v7  ;;  %2748 = vmatmul.bf16.vlgmr.msrb.gmra.mxu0 %v88_v17  ;;  %v4649_v7 = vld [vmem:[#allocation2 + $0x3e0] sm:$0xff]  ;;  %v4630_v17 = vld [vmem:[#allocation2 + $0x348] sm:$0xff] }
  0x4c   :  { %2792 = vmatpush.bf16.msra.mxu0 %v4596_v8  ;;  %2761 = vmatmul.bf16.vlgmr.msrb.gmra.mxu1 %v89_v19  ;;  %v4624_v8 = vld [vmem:[#allocation2 + $0x318] sm:$0xff]  ;;  %v4646_v19 = vld [vmem:[#allocation2 + $0x3c8] sm:$0xff] }
  0x4d   :  { %2805 = vmatpush.bf16.msra.mxu1 %v4604_v11  ;;  %2774 = vmatmul.bf16.vlgmr.msrb.gmra.mxu2 %v90_v16  ;;  %v4648_v11 = vld [vmem:[#allocation2 + $0x3d8] sm:$0xff]  ;;  %v4622_v16 = vld [vmem:[#allocation2 + $0x308] sm:$0xff] }
  0x4e   :  { %2818 = vmatpush.bf16.msra.mxu2 %v4612_v14  ;;  %2787 = vmatmul.bf16.vlgmr.msrb.gmra.mxu3 %v91_v18  ;;  %v4639_v14 = vld [vmem:[#allocation2 + $0x390] sm:$0xff]  ;;  %v4638_v18 = vld [vmem:[#allocation2 + $0x388] sm:$0xff] }
  0x4f   :  { %2831 = vmatpush.bf16.msra.mxu3 %v4620_v15  ;;  %v4647_v15 = vld [vmem:[#allocation2 + $0x3d0] sm:$0xff] }
  0x50   :  { %2793 = vmatpush.bf16.msra.mxu0 %v4595_v20  ;;  %v4621_v20 = vld [vmem:[#allocation2 + $0x300] sm:$0xff] }
  0x51   :  { %2806 = vmatpush.bf16.msra.mxu1 %v4603_v21  ;;  %v4629_v21 = vld [vmem:[#allocation2 + $0x340] sm:$0xff] }
  0x52   :  { %2819 = vmatpush.bf16.msra.mxu2 %v4611_v22  ;;  %v4637_v22 = vld [vmem:[#allocation2 + $0x380] sm:$0xff] }
  0x53   :  { %2832 = vmatpush.bf16.msra.mxu3 %v4619_v23  ;;  %v4645_v23 = vld [vmem:[#allocation2 + $0x3c0] sm:$0xff] }
  0x54   :  { %2794 = vmatpush.bf16.msra.mxu0 %v4594_v24  ;;  %v4660_v24 = vld [vmem:[#allocation2 + $0x438] sm:$0xff] }
  0x55   :  { %2807 = vmatpush.bf16.msra.mxu1 %v4602_v25  ;;  %v56_v25 = vld [vmem:[%s5081_s0 + $0x60] sm:$0xff] }
  0x56   :  { %2820 = vmatpush.bf16.msra.mxu2 %v4610_v26  ;;  %v58_v26 = vld [vmem:[%s5081_s0 + $0x70] sm:$0xff] }
  0x57   :  { %2833 = vmatpush.bf16.msra.mxu3 %v4618_v27  ;;  %v4668_v27 = vld [vmem:[#allocation2 + $0x478] sm:$0xff] }
  0x58   :  { %2795 = vmatpush.bf16.msra.mxu0 %v4593_v28  ;;  %v57_v28 = vld [vmem:[%s5081_s0 + $0x68] sm:$0xff] }
  0x59   :  { %2808 = vmatpush.bf16.msra.mxu1 %v4601_v29  ;;  %v59_v29 = vld [vmem:[%s5081_s0 + $0x78] sm:$0xff] }
  0x5a   :  { %2821 = vmatpush.bf16.msra.mxu2 %v4609_v30  ;;  %v4676_v30 = vld [vmem:[#allocation2 + $0x4b8] sm:$0xff] }
  0x5b   :  { %2834 = vmatpush.bf16.msra.mxu3 %v4617_v31  ;;  %v4684_v31 = vld [vmem:[#allocation2 + $0x4f8] sm:$0xff] }
  0x5c   :  { %2796 = vmatpush.bf16.msra.mxu0 %v4592_v32  ;;  %v96_v32 = vpack.c.bf16 %v56_v25, %v56_v25 }
  0x5d   :  { %2809 = vmatpush.bf16.msra.mxu1 %v4600_v33  ;;  %v98_v33 = vpack.c.bf16 %v58_v26, %v58_v26  ;;  %v4705_v26 = vld [vmem:[#allocation2 + $0x5a0] sm:$0xff] }
  0x5e   :  { %2822 = vmatpush.bf16.msra.mxu2 %v4608_v34  ;;  %v97_v34 = vpack.c.bf16 %v57_v28, %v57_v28 }
  0x5f   :  { %2835 = vmatpush.bf16.msra.mxu3 %v4616_v35  ;;  %v99_v35 = vpack.c.bf16 %v59_v29, %v59_v29  ;;  %v4688_v29 = vld [vmem:[#allocation2 + $0x518] sm:$0xff] }
  0x60   :  { %2797 = vmatpush.bf16.msra.mxu0 %v4591_v36  ;;  %v4659_v36 = vld [vmem:[#allocation2 + $0x430] sm:$0xff] }
  0x61   :  { %2810 = vmatpush.bf16.msra.mxu1 %v4599_v37  ;;  %v4667_v37 = vld [vmem:[#allocation2 + $0x470] sm:$0xff] }
  0x62   :  { %2823 = vmatpush.bf16.msra.mxu2 %v4607_v38  ;;  %v4675_v38 = vld [vmem:[#allocation2 + $0x4b0] sm:$0xff] }
  0x63   :  { %2836 = vmatpush.bf16.msra.mxu3 %v4615_v39  ;;  %v4683_v39 = vld [vmem:[#allocation2 + $0x4f0] sm:$0xff] }
  0x64   :  { %2798 = vmatpush.bf16.msra.mxu0 %v4590_v40  ;;  %v4658_v40 = vld [vmem:[#allocation2 + $0x428] sm:$0xff] }
  0x65   :  { %2811 = vmatpush.bf16.msra.mxu1 %v4598_v41  ;;  %v4666_v41 = vld [vmem:[#allocation2 + $0x468] sm:$0xff] }
  0x66   :  { %2824 = vmatpush.bf16.msra.mxu2 %v4606_v42  ;;  %v4674_v42 = vld [vmem:[#allocation2 + $0x4a8] sm:$0xff] }
  0x67   :  { %2837 = vmatpush.bf16.msra.mxu3 %v4614_v43  ;;  %v4682_v43 = vld [vmem:[#allocation2 + $0x4e8] sm:$0xff] }
  0x68   :  { %2799 = vmatpush.bf16.msra.mxu0 %v4589_v44  ;;  %v4657_v44 = vld [vmem:[#allocation2 + $0x420] sm:$0xff] }
  0x69   :  { %2812 = vmatpush.bf16.msra.mxu1 %v4597_v45  ;;  %v4665_v45 = vld [vmem:[#allocation2 + $0x460] sm:$0xff] }
  0x6a   :  { %2825 = vmatpush.bf16.msra.mxu2 %v4605_v46  ;;  %v4673_v46 = vld [vmem:[#allocation2 + $0x4a0] sm:$0xff] }
  0x6b   :  { %2838 = vmatpush.bf16.msra.mxu3 %v4613_v47  ;;  %2800 = vmatmul.bf16.vlgmr.msra.gmra.mxu0 %v92_v56  ;;  %v4681_v47 = vld [vmem:[#allocation2 + $0x4e0] sm:$0xff]  ;;  %v4654_v56 = vld [vmem:[#allocation2 + $0x408] sm:$0xff] }
  0x6c   :  { %2844 = vmatpush.bf16.msrb.mxu0 %v4628_v48  ;;  %2813 = vmatmul.bf16.vlgmr.msra.gmra.mxu1 %v93_v58  ;;  %v4656_v48 = vld [vmem:[#allocation2 + $0x418] sm:$0xff]  ;;  %v4670_v58 = vld [vmem:[#allocation2 + $0x488] sm:$0xff] }
  0x6d   :  { %2857 = vmatpush.bf16.msrb.mxu1 %v4636_v51  ;;  %2826 = vmatmul.bf16.vlgmr.msra.gmra.mxu2 %v94_v57  ;;  %v4680_v51 = vld [vmem:[#allocation2 + $0x4d8] sm:$0xff]  ;;  %v4662_v57 = vld [vmem:[#allocation2 + $0x448] sm:$0xff] }
  0x6e   :  { %2870 = vmatpush.bf16.msrb.mxu2 %v4644_v54  ;;  %2839 = vmatmul.bf16.vlgmr.msra.gmra.mxu3 %v95_v59  ;;  %v4671_v54 = vld [vmem:[#allocation2 + $0x490] sm:$0xff]  ;;  %v4678_v59 = vld [vmem:[#allocation2 + $0x4c8] sm:$0xff] }
  0x6f   :  { %2883 = vmatpush.bf16.msrb.mxu3 %v4652_v55  ;;  %v4679_v55 = vld [vmem:[#allocation2 + $0x4d0] sm:$0xff] }
  0x70   :  { %2845 = vmatpush.bf16.msrb.mxu0 %v4627_v60  ;;  %v4653_v60 = vld [vmem:[#allocation2 + $0x400] sm:$0xff] }
  0x71   :  { %2858 = vmatpush.bf16.msrb.mxu1 %v4635_v61  ;;  %v4661_v61 = vld [vmem:[#allocation2 + $0x440] sm:$0xff] }
  0x72   :  { %2871 = vmatpush.bf16.msrb.mxu2 %v4643_v62  ;;  %v4669_v62 = vld [vmem:[#allocation2 + $0x480] sm:$0xff] }
  0x73   :  { %2884 = vmatpush.bf16.msrb.mxu3 %v4651_v63  ;;  %v4677_v63 = vld [vmem:[#allocation2 + $0x4c0] sm:$0xff] }
  0x74   :  { %2846 = vmatpush.bf16.msrb.mxu0 %v4626_v0  ;;  %v4692_v0 = vld [vmem:[#allocation2 + $0x538] sm:$0xff] }
  0x75   :  { %2859 = vmatpush.bf16.msrb.mxu1 %v4634_v1  ;;  %v60_v1 = vld [vmem:[%s5081_s0 + $0x80] sm:$0xff] }
  0x76   :  { %2872 = vmatpush.bf16.msrb.mxu2 %v4642_v2  ;;  %v62_v2 = vld [vmem:[%s5081_s0 + $0x90] sm:$0xff] }
  0x77   :  { %2885 = vmatpush.bf16.msrb.mxu3 %v4650_v3  ;;  %v4700_v3 = vld [vmem:[#allocation2 + $0x578] sm:$0xff] }
  0x78   :  { %2847 = vmatpush.bf16.msrb.mxu0 %v4625_v4  ;;  %v61_v4 = vld [vmem:[%s5081_s0 + $0x88] sm:$0xff] }
  0x79   :  { %2860 = vmatpush.bf16.msrb.mxu1 %v4633_v5  ;;  %v63_v5 = vld [vmem:[%s5081_s0 + $0x98] sm:$0xff] }
  0x7a   :  { %2873 = vmatpush.bf16.msrb.mxu2 %v4641_v6  ;;  %v4708_v6 = vld [vmem:[#allocation2 + $0x5b8] sm:$0xff] }
  0x7b   :  { %2886 = vmatpush.bf16.msrb.mxu3 %v4649_v7  ;;  %v4716_v7 = vld [vmem:[#allocation2 + $0x5f8] sm:$0xff] }
  0x7c   :  { %2848 = vmatpush.bf16.msrb.mxu0 %v4624_v8  ;;  %v100_v8 = vpack.c.bf16 %v60_v1, %v60_v1  ;;  %v4723_v1 = vld [vmem:[#allocation2 + $0x630] sm:$0xff] }
  0x7d   :  { %2861 = vmatpush.bf16.msrb.mxu1 %v4632_v9  ;;  %v102_v9 = vpack.c.bf16 %v62_v2, %v62_v2  ;;  %v4731_v2 = vld [vmem:[#allocation2 + $0x670] sm:$0xff] }
  0x7e   :  { %2874 = vmatpush.bf16.msrb.mxu2 %v4640_v10  ;;  %v101_v10 = vpack.c.bf16 %v61_v4, %v61_v4  ;;  %v4747_v4 = vld [vmem:[#allocation2 + $0x6f0] sm:$0xff] }
  0x7f   :  { %2887 = vmatpush.bf16.msrb.mxu3 %v4648_v11  ;;  %v103_v11 = vpack.c.bf16 %v63_v5, %v63_v5  ;;  %v4722_v5 = vld [vmem:[#allocation2 + $0x628] sm:$0xff] }
  0x80   :  { %2849 = vmatpush.bf16.msrb.mxu0 %v4623_v12  ;;  %v4691_v12 = vld [vmem:[#allocation2 + $0x530] sm:$0xff] }
  0x81   :  { %2862 = vmatpush.bf16.msrb.mxu1 %v4631_v13  ;;  %v4699_v13 = vld [vmem:[#allocation2 + $0x570] sm:$0xff] }
  0x82   :  { %2875 = vmatpush.bf16.msrb.mxu2 %v4639_v14  ;;  %v4707_v14 = vld [vmem:[#allocation2 + $0x5b0] sm:$0xff] }
  0x83   :  { %2888 = vmatpush.bf16.msrb.mxu3 %v4647_v15  ;;  %v4715_v15 = vld [vmem:[#allocation2 + $0x5f0] sm:$0xff] }
  0x84   :  { %2850 = vmatpush.bf16.msrb.mxu0 %v4622_v16  ;;  %v4690_v16 = vld [vmem:[#allocation2 + $0x528] sm:$0xff] }
  0x85   :  { %2863 = vmatpush.bf16.msrb.mxu1 %v4630_v17  ;;  %v4698_v17 = vld [vmem:[#allocation2 + $0x568] sm:$0xff] }
  0x86   :  { %2876 = vmatpush.bf16.msrb.mxu2 %v4638_v18  ;;  %v4849_v18 = vld [vmem:[#allocation4] ss:$0 sm:$0xff] }
  0x87   :  { %2889 = vmatpush.bf16.msrb.mxu3 %v4646_v19  ;;  %v4706_v19 = vld [vmem:[#allocation2 + $0x5a8] sm:$0xff] }
  0x88   :  { %2851 = vmatpush.bf16.msrb.mxu0 %v4621_v20  ;;  %v4714_v20 = vld [vmem:[#allocation2 + $0x5e8] sm:$0xff] }
  0x89   :  { %2864 = vmatpush.bf16.msrb.mxu1 %v4629_v21 }
  0x8a   :  { %2877 = vmatpush.bf16.msrb.mxu2 %v4637_v22  ;;  %v4689_v22 = vld [vmem:[#allocation2 + $0x520] sm:$0xff] }
  0x8b   :  { %2890 = vmatpush.bf16.msrb.mxu3 %v4645_v23  ;;  %2852 = vmatmul.bf16.vlgmr.msrb.gmra.mxu0 %v96_v32  ;;  %v4697_v23 = vld [vmem:[#allocation2 + $0x560] sm:$0xff]  ;;  %v4712_v32 = vld [vmem:[#allocation2 + $0x5d8] sm:$0xff] }
  0x8c   :  { %2896 = vmatpush.bf16.msra.mxu0 %v4660_v24  ;;  %2865 = vmatmul.bf16.vlgmr.msrb.gmra.mxu1 %v97_v34 }
  0x8d   :  { %2909 = vmatpush.bf16.msra.mxu1 %v4668_v27  ;;  %2878 = vmatmul.bf16.vlgmr.msrb.gmra.mxu2 %v98_v33  ;;  %v4713_v27 = vld [vmem:[#allocation2 + $0x5e0] sm:$0xff] }
  0x8e   :  { %2922 = vmatpush.bf16.msra.mxu2 %v4676_v30  ;;  %2891 = vmatmul.bf16.vlgmr.msrb.gmra.mxu3 %v99_v35  ;;  %v4696_v30 = vld [vmem:[#allocation2 + $0x558] sm:$0xff] }
  0x8f   :  { %2935 = vmatpush.bf16.msra.mxu3 %v4684_v31  ;;  %v4704_v31 = vld [vmem:[#allocation2 + $0x598] sm:$0xff] }
  0x90   :  { %2897 = vmatpush.bf16.msra.mxu0 %v4659_v36 }
  0x91   :  { %2910 = vmatpush.bf16.msra.mxu1 %v4667_v37  ;;  %v4687_v37 = vld [vmem:[#allocation2 + $0x510] sm:$0xff] }
  0x92   :  { %2923 = vmatpush.bf16.msra.mxu2 %v4675_v38  ;;  %v4695_v38 = vld [vmem:[#allocation2 + $0x550] sm:$0xff] }
  0x93   :  { %2936 = vmatpush.bf16.msra.mxu3 %v4683_v39 }
  0x94   :  { %2898 = vmatpush.bf16.msra.mxu0 %v4658_v40 }
  0x95   :  { %2911 = vmatpush.bf16.msra.mxu1 %v4666_v41  ;;  %v4703_v41 = vld [vmem:[#allocation2 + $0x590] sm:$0xff] }
  0x96   :  { %2924 = vmatpush.bf16.msra.mxu2 %v4674_v42  ;;  %v4711_v42 = vld [vmem:[#allocation2 + $0x5d0] sm:$0xff] }
  0x97   :  { %2937 = vmatpush.bf16.msra.mxu3 %v4682_v43  ;;  %v4686_v43 = vld [vmem:[#allocation2 + $0x508] sm:$0xff] }
  0x98   :  { %2899 = vmatpush.bf16.msra.mxu0 %v4657_v44  ;;  %v4694_v44 = vld [vmem:[#allocation2 + $0x548] sm:$0xff] }
  0x99   :  { %2912 = vmatpush.bf16.msra.mxu1 %v4665_v45  ;;  %v4702_v45 = vld [vmem:[#allocation2 + $0x588] sm:$0xff] }
  0x9a   :  { %2925 = vmatpush.bf16.msra.mxu2 %v4673_v46  ;;  %v4710_v46 = vld [vmem:[#allocation2 + $0x5c8] sm:$0xff] }
  0x9b   :  { %2938 = vmatpush.bf16.msra.mxu3 %v4681_v47 }
  0x9c   :  { %2900 = vmatpush.bf16.msra.mxu0 %v4656_v48 }
  0x9d   :  { %2913 = vmatpush.bf16.msra.mxu1 %v4664_v49  ;;  %v4685_v49 = vld [vmem:[#allocation2 + $0x500] sm:$0xff] }
  0x9e   :  { %2926 = vmatpush.bf16.msra.mxu2 %v4672_v50  ;;  %v4693_v50 = vld [vmem:[#allocation2 + $0x540] sm:$0xff] }
  0x9f   :  { %2939 = vmatpush.bf16.msra.mxu3 %v4680_v51  ;;  %v4701_v51 = vld [vmem:[#allocation2 + $0x580] sm:$0xff] }
  0xa0   :  { %2901 = vmatpush.bf16.msra.mxu0 %v4655_v52  ;;  %v4709_v52 = vld [vmem:[#allocation2 + $0x5c0] sm:$0xff] }
  0xa1   :  { %2914 = vmatpush.bf16.msra.mxu1 %v4663_v53  ;;  %v4724_v53 = vld [vmem:[#allocation2 + $0x638] sm:$0xff] }
  0xa2   :  { %2927 = vmatpush.bf16.msra.mxu2 %v4671_v54  ;;  %v64_v54 = vld [vmem:[%s5081_s0 + $0xa0] sm:$0xff] }
  0xa3   :  { %2940 = vmatpush.bf16.msra.mxu3 %v4679_v55  ;;  %v66_v55 = vld [vmem:[%s5081_s0 + $0xb0] sm:$0xff] }
  0xa4   :  { %2902 = vmatpush.bf16.msra.mxu0 %v4654_v56  ;;  %v4732_v56 = vld [vmem:[#allocation2 + $0x678] sm:$0xff] }
  0xa5   :  { %2915 = vmatpush.bf16.msra.mxu1 %v4662_v57  ;;  %v65_v57 = vld [vmem:[%s5081_s0 + $0xa8] sm:$0xff] }
  0xa6   :  { %2928 = vmatpush.bf16.msra.mxu2 %v4670_v58  ;;  %v67_v58 = vld [vmem:[%s5081_s0 + $0xb8] sm:$0xff] }
  0xa7   :  { %2941 = vmatpush.bf16.msra.mxu3 %v4678_v59  ;;  %v4740_v59 = vld [vmem:[#allocation2 + $0x6b8] sm:$0xff] }
  0xa8   :  { %2903 = vmatpush.bf16.msra.mxu0 %v4653_v60  ;;  %v2697_v21 = vpop.f32.mrf.mxu0  ;;  %v4748_v60 = vld [vmem:[#allocation2 + $0x6f8] sm:$0xff] }
  0xa9   :  { %2916 = vmatpush.bf16.msra.mxu1 %v4661_v61  ;;  %v2698_v24 = vadd.f32 %v4849_v18, %v2697_v21  ;;  %v2710_v25 = vpop.f32.mrf.mxu1  ;;  %v104_v61 = vpack.c.bf16 %v64_v54, %v64_v54  ;;  %v4728_v18 = vld [vmem:[#allocation2 + $0x658] sm:$0xff]  ;;  %v4763_v54 = vld [vmem:[#allocation2 + $0x770] sm:$0xff] }
  0xaa   :  { %2929 = vmatpush.bf16.msra.mxu2 %v4669_v62  ;;  %v106_v62 = vpack.c.bf16 %v66_v55, %v66_v55  ;;  %v4771_v55 = vld [vmem:[#allocation2 + $0x7b0] sm:$0xff] }
  0xab   :  { %2942 = vmatpush.bf16.msra.mxu3 %v4677_v63  ;;  %2904 = vmatmul.bf16.vlgmr.msra.gmra.mxu0 %v100_v8  ;;  %v2711_v28 = vadd.f32 %v2710_v25, %v2698_v24  ;;  %v105_v63 = vpack.c.bf16 %v65_v57, %v65_v57  ;;  %v4746_v8 = vld [vmem:[#allocation2 + $0x6e8] sm:$0xff]  ;;  %v4719_v25 = vld [vmem:[#allocation2 + $0x610] sm:$0xff] }
  0xac   :  { %2948 = vmatpush.bf16.msrb.mxu0 %v4692_v0  ;;  %2917 = vmatmul.bf16.vlgmr.msra.gmra.mxu1 %v101_v10  ;;  %v107_v0 = vpack.c.bf16 %v67_v58, %v67_v58  ;;  %v4721_v10 = vld [vmem:[#allocation2 + $0x620] sm:$0xff]  ;;  %v4754_v57 = vld [vmem:[#allocation2 + $0x728] sm:$0xff] }
  0xad   :  { %2961 = vmatpush.bf16.msrb.mxu1 %v4700_v3  ;;  %2930 = vmatmul.bf16.vlgmr.msra.gmra.mxu2 %v102_v9  ;;  %v4739_v3 = vld [vmem:[#allocation2 + $0x6b0] sm:$0xff]  ;;  %v4762_v58 = vld [vmem:[#allocation2 + $0x768] sm:$0xff] }
  0xae   :  { %2974 = vmatpush.bf16.msrb.mxu2 %v4708_v6  ;;  %2943 = vmatmul.bf16.vlgmr.msra.gmra.mxu3 %v103_v11  ;;  %v4730_v6 = vld [vmem:[#allocation2 + $0x668] sm:$0xff]  ;;  %v4729_v11 = vld [vmem:[#allocation2 + $0x660] sm:$0xff] }
  0xaf   :  { %2987 = vmatpush.bf16.msrb.mxu3 %v4716_v7  ;;  %v4738_v7 = vld [vmem:[#allocation2 + $0x6a8] sm:$0xff] }
  0xb0   :  { %2949 = vmatpush.bf16.msrb.mxu0 %v4691_v12  ;;  %v2723_v33 = vpop.f32.mrf.mxu2  ;;  %v2699_v36 = vpop.f32.mrf.mxu0 }
  0xb1   :  { %2962 = vmatpush.bf16.msrb.mxu1 %v4699_v13  ;;  %v2724_v34 = vadd.f32 %v2723_v33, %v2711_v28  ;;  %v2736_v35 = vpop.f32.mrf.mxu3  ;;  %v2712_v40 = vpop.f32.mrf.mxu1  ;;  %v4734_v33 = vld [vmem:[#allocation2 + $0x688] sm:$0xff] }
  0xb2   :  { %2975 = vmatpush.bf16.msrb.mxu2 %v4707_v14  ;;  %v4737_v14 = vld [vmem:[#allocation2 + $0x6a0] sm:$0xff] }
  0xb3   :  { %2988 = vmatpush.bf16.msrb.mxu3 %v4715_v15  ;;  %v4996_v39 = vadd.f32 %v2736_v35, %v2724_v34  ;;  %v4745_v15 = vld [vmem:[#allocation2 + $0x6e0] sm:$0xff]  ;;  %v4742_v34 = vld [vmem:[#allocation2 + $0x6c8] sm:$0xff] }
  0xb4   :  { %2950 = vmatpush.bf16.msrb.mxu0 %v4690_v16  ;;  %v4741_v40 = vld [vmem:[#allocation2 + $0x6c0] sm:$0xff] }
  0xb5   :  { %2963 = vmatpush.bf16.msrb.mxu1 %v4698_v17  ;;  %v4720_v17 = vld [vmem:[#allocation2 + $0x618] sm:$0xff] }
  0xb6   :  { %2976 = vmatpush.bf16.msrb.mxu2 %v4706_v19  ;;  %v4736_v19 = vld [vmem:[#allocation2 + $0x698] sm:$0xff] }
  0xb7   :  { %2989 = vmatpush.bf16.msrb.mxu3 %v4714_v20  ;;  %v4744_v20 = vld [vmem:[#allocation2 + $0x6d8] sm:$0xff] }
  0xb8   :  { %2951 = vmatpush.bf16.msrb.mxu0 %v4689_v22  ;;  %v2725_v47 = vpop.f32.mrf.mxu2 }
  0xb9   :  { %2964 = vmatpush.bf16.msrb.mxu1 %v4697_v23  ;;  %v2738_v48 = vpop.f32.mrf.mxu3  ;;  %v4772_v47 = vld [vmem:[#allocation2 + $0x7b8] sm:$0xff] }
  0xba   :  { %2977 = vmatpush.bf16.msrb.mxu2 %v4705_v26  ;;  %v4727_v26 = vld [vmem:[#allocation2 + $0x650] sm:$0xff]  ;;  %v4780_v48 = vld [vmem:[#allocation2 + $0x7f8] sm:$0xff] }
  0xbb   :  { %2990 = vmatpush.bf16.msrb.mxu3 %v4713_v27 }
  0xbc   :  { %2952 = vmatpush.bf16.msrb.mxu0 %v4688_v29  ;;  %v4735_v29 = vld [vmem:[#allocation2 + $0x690] sm:$0xff] }
  0xbd   :  { %2965 = vmatpush.bf16.msrb.mxu1 %v4696_v30  ;;  %v4743_v30 = vld [vmem:[#allocation2 + $0x6d0] sm:$0xff] }
  0xbe   :  { %2978 = vmatpush.bf16.msrb.mxu2 %v4704_v31  ;;  %v4718_v31 = vld [vmem:[#allocation2 + $0x608] sm:$0xff] }
  0xbf   :  { %2991 = vmatpush.bf16.msrb.mxu3 %v4712_v32  ;;  %v4726_v32 = vld [vmem:[#allocation2 + $0x648] sm:$0xff] }
  0xc0   :  { %2953 = vmatpush.bf16.msrb.mxu0 %v4687_v37  ;;  %v4717_v37 = vld [vmem:[#allocation2 + $0x600] sm:$0xff] }
  0xc1   :  { %2966 = vmatpush.bf16.msrb.mxu1 %v4695_v38  ;;  %v4725_v38 = vld [vmem:[#allocation2 + $0x640] sm:$0xff] }
  0xc2   :  { %2979 = vmatpush.bf16.msrb.mxu2 %v4703_v41  ;;  %v4756_v41 = vld [vmem:[#allocation2 + $0x738] sm:$0xff] }
  0xc3   :  { %2992 = vmatpush.bf16.msrb.mxu3 %v4711_v42  ;;  %v68_v42 = vld [vmem:[%s5081_s0 + $0xc0] sm:$0xff] }
  0xc4   :  { %2954 = vmatpush.bf16.msrb.mxu0 %v4686_v43  ;;  %v70_v43 = vld [vmem:[%s5081_s0 + $0xd0] sm:$0xff] }
  0xc5   :  { %2967 = vmatpush.bf16.msrb.mxu1 %v4694_v44  ;;  %v4764_v44 = vld [vmem:[#allocation2 + $0x778] sm:$0xff] }
  0xc6   :  { %2980 = vmatpush.bf16.msrb.mxu2 %v4702_v45  ;;  %v69_v45 = vld [vmem:[%s5081_s0 + $0xc8] sm:$0xff] }
  0xc7   :  { %2993 = vmatpush.bf16.msrb.mxu3 %v4710_v46  ;;  %v71_v46 = vld [vmem:[%s5081_s0 + $0xd8] sm:$0xff] }
  0xc8   :  { %2955 = vmatpush.bf16.msrb.mxu0 %v4685_v49  ;;  %v2749_v9 = vpop.f32.mrf.mxu0  ;;  %v108_v49 = vpack.c.bf16 %v68_v42, %v68_v42  ;;  %v4795_v42 = vld [vmem:[#allocation2 + $0x870] sm:$0xff] }
  0xc9   :  { %2968 = vmatpush.bf16.msrb.mxu1 %v4693_v50  ;;  %v2750_v12 = vadd.f32 %v2749_v9, %v4996_v39  ;;  %v2762_v13 = vpop.f32.mrf.mxu1  ;;  %v4733_v39 = vld [vmem:[#allocation2 + $0x680] sm:$0xff]  ;;  %v110_v50 = vpack.c.bf16 %v70_v43, %v70_v43  ;;  %v4803_v43 = vld [vmem:[#allocation2 + $0x8b0] sm:$0xff] }
  0xca   :  { %2981 = vmatpush.bf16.msrb.mxu2 %v4701_v51  ;;  %v109_v51 = vpack.c.bf16 %v69_v45, %v69_v45  ;;  %v4786_v45 = vld [vmem:[#allocation2 + $0x828] sm:$0xff] }
  0xcb   :  { %2994 = vmatpush.bf16.msrb.mxu3 %v4709_v52  ;;  %2956 = vmatmul.bf16.vlgmr.msrb.gmra.mxu0 %v104_v61  ;;  %v2763_v16 = vadd.f32 %v2762_v13, %v2750_v12  ;;  %v111_v52 = vpack.c.bf16 %v71_v46, %v71_v46  ;;  %v4794_v46 = vld [vmem:[#allocation2 + $0x868] sm:$0xff] }
  0xcc   :  { %3000 = vmatpush.bf16.msra.mxu0 %v4724_v53  ;;  %2969 = vmatmul.bf16.vlgmr.msrb.gmra.mxu1 %v105_v63  ;;  %v4755_v53 = vld [vmem:[#allocation2 + $0x730] sm:$0xff]  ;;  %v4753_v63 = vld [vmem:[#allocation2 + $0x720] sm:$0xff] }
  0xcd   :  { %3013 = vmatpush.bf16.msra.mxu1 %v4732_v56  ;;  %2982 = vmatmul.bf16.vlgmr.msrb.gmra.mxu2 %v106_v62  ;;  %v4779_v56 = vld [vmem:[#allocation2 + $0x7f0] sm:$0xff] }
  0xce   :  { %3026 = vmatpush.bf16.msra.mxu2 %v4740_v59  ;;  %2995 = vmatmul.bf16.vlgmr.msrb.gmra.mxu3 %v107_v0  ;;  %v4770_v59 = vld [vmem:[#allocation2 + $0x7a8] sm:$0xff]  ;;  %v4761_v0 = vld [vmem:[#allocation2 + $0x760] sm:$0xff] }
  0xcf   :  { %3039 = vmatpush.bf16.msra.mxu3 %v4748_v60  ;;  %v4778_v60 = vld [vmem:[#allocation2 + $0x7e8] sm:$0xff] }
  0xd0   :  { %3001 = vmatpush.bf16.msra.mxu0 %v4723_v1  ;;  %v2775_v21 = vpop.f32.mrf.mxu2  ;;  %v2751_v24 = vpop.f32.mrf.mxu0 }
  0xd1   :  { %3014 = vmatpush.bf16.msra.mxu1 %v4731_v2  ;;  %v2776_v22 = vadd.f32 %v2775_v21, %v2763_v16  ;;  %v2788_v23 = vpop.f32.mrf.mxu3  ;;  %v2764_v28 = vpop.f32.mrf.mxu1  ;;  %v4769_v2 = vld [vmem:[#allocation2 + $0x7a0] sm:$0xff]  ;;  %v4766_v21 = vld [vmem:[#allocation2 + $0x788] sm:$0xff] }
  0xd2   :  { %3027 = vmatpush.bf16.msra.mxu2 %v4739_v3  ;;  %v4777_v3 = vld [vmem:[#allocation2 + $0x7e0] sm:$0xff] }
  0xd3   :  { %3040 = vmatpush.bf16.msra.mxu3 %v4747_v4  ;;  %v5011_v27 = vadd.f32 %v2788_v23, %v2776_v22  ;;  %v4774_v22 = vld [vmem:[#allocation2 + $0x7c8] sm:$0xff]  ;;  %v4773_v28 = vld [vmem:[#allocation2 + $0x7c0] sm:$0xff] }
  0xd4   :  { %3002 = vmatpush.bf16.msra.mxu0 %v4722_v5  ;;  %v4752_v5 = vld [vmem:[#allocation2 + $0x718] sm:$0xff] }
  0xd5   :  { %3015 = vmatpush.bf16.msra.mxu1 %v4730_v6  ;;  %v4760_v6 = vld [vmem:[#allocation2 + $0x758] sm:$0xff] }
  0xd6   :  { %3028 = vmatpush.bf16.msra.mxu2 %v4738_v7  ;;  %v4768_v7 = vld [vmem:[#allocation2 + $0x798] sm:$0xff] }
  0xd7   :  { %3041 = vmatpush.bf16.msra.mxu3 %v4746_v8  ;;  %v4776_v8 = vld [vmem:[#allocation2 + $0x7d8] sm:$0xff] }
  0xd8   :  { %3003 = vmatpush.bf16.msra.mxu0 %v4721_v10  ;;  %v2777_v35 = vpop.f32.mrf.mxu2 }
  0xd9   :  { %3016 = vmatpush.bf16.msra.mxu1 %v4729_v11  ;;  %v2790_v36 = vpop.f32.mrf.mxu3  ;;  %v4804_v35 = vld [vmem:[#allocation2 + $0x8b8] sm:$0xff] }
  0xda   :  { %3029 = vmatpush.bf16.msra.mxu2 %v4737_v14  ;;  %v4751_v14 = vld [vmem:[#allocation2 + $0x710] sm:$0xff]  ;;  %v4812_v36 = vld [vmem:[#allocation2 + $0x8f8] sm:$0xff] }
  0xdb   :  { %3042 = vmatpush.bf16.msra.mxu3 %v4745_v15  ;;  %v4759_v15 = vld [vmem:[#allocation2 + $0x750] sm:$0xff] }
  0xdc   :  { %3004 = vmatpush.bf16.msra.mxu0 %v4720_v17  ;;  %v4767_v17 = vld [vmem:[#allocation2 + $0x790] sm:$0xff] }
  0xdd   :  { %3017 = vmatpush.bf16.msra.mxu1 %v4728_v18  ;;  %v4775_v18 = vld [vmem:[#allocation2 + $0x7d0] sm:$0xff] }
  0xde   :  { %3030 = vmatpush.bf16.msra.mxu2 %v4736_v19  ;;  %v4750_v19 = vld [vmem:[#allocation2 + $0x708] sm:$0xff] }
  0xdf   :  { %3043 = vmatpush.bf16.msra.mxu3 %v4744_v20  ;;  %v4758_v20 = vld [vmem:[#allocation2 + $0x748] sm:$0xff] }
  0xe0   :  { %3005 = vmatpush.bf16.msra.mxu0 %v4719_v25  ;;  %v4749_v25 = vld [vmem:[#allocation2 + $0x700] sm:$0xff] }
  0xe1   :  { %3018 = vmatpush.bf16.msra.mxu1 %v4727_v26  ;;  %v4757_v26 = vld [vmem:[#allocation2 + $0x740] sm:$0xff] }
  0xe2   :  { %3031 = vmatpush.bf16.msra.mxu2 %v4735_v29  ;;  %v4788_v29 = vld [vmem:[#allocation2 + $0x838] sm:$0xff] }
  0xe3   :  { %3044 = vmatpush.bf16.msra.mxu3 %v4743_v30  ;;  %v72_v30 = vld [vmem:[%s5081_s0 + $0xe0] sm:$0xff] }
  0xe4   :  { %3006 = vmatpush.bf16.msra.mxu0 %v4718_v31  ;;  %v74_v31 = vld [vmem:[%s5081_s0 + $0xf0] sm:$0xff] }
  0xe5   :  { %3019 = vmatpush.bf16.msra.mxu1 %v4726_v32  ;;  %v4796_v32 = vld [vmem:[#allocation2 + $0x878] sm:$0xff] }
  0xe6   :  { %3032 = vmatpush.bf16.msra.mxu2 %v4734_v33  ;;  %v73_v33 = vld [vmem:[%s5081_s0 + $0xe8] sm:$0xff] }
  0xe7   :  { %3045 = vmatpush.bf16.msra.mxu3 %v4742_v34  ;;  %v75_v34 = vld [vmem:[%s5081_s0 + $0xf8] sm:$0xff] }
  0xe8   :  { %3007 = vmatpush.bf16.msra.mxu0 %v4717_v37  ;;  %v2801_v61 = vpop.f32.mrf.mxu0  ;;  %v112_v37 = vpack.c.bf16 %v72_v30, %v72_v30  ;;  %v4827_v30 = vld [vmem:[#allocation2 + $0x970] sm:$0xff] }
  0xe9   :  { %3020 = vmatpush.bf16.msra.mxu1 %v4725_v38  ;;  %v2802_v62 = vadd.f32 %v2801_v61, %v5011_v27  ;;  %v2814_v1 = vpop.f32.mrf.mxu1  ;;  %v4765_v27 = vld [vmem:[#allocation2 + $0x780] sm:$0xff]  ;;  %v114_v38 = vpack.c.bf16 %v74_v31, %v74_v31  ;;  %v4835_v31 = vld [vmem:[#allocation2 + $0x9b0] sm:$0xff] }
  0xea   :  { %3033 = vmatpush.bf16.msra.mxu2 %v4733_v39  ;;  %v113_v39 = vpack.c.bf16 %v73_v33, %v73_v33  ;;  %v4818_v33 = vld [vmem:[#allocation2 + $0x928] sm:$0xff] }
  0xeb   :  { %3046 = vmatpush.bf16.msra.mxu3 %v4741_v40  ;;  %3008 = vmatmul.bf16.vlgmr.msra.gmra.mxu0 %v108_v49  ;;  %v2815_v4 = vadd.f32 %v2814_v1, %v2802_v62  ;;  %v115_v40 = vpack.c.bf16 %v75_v34, %v75_v34  ;;  %v4826_v34 = vld [vmem:[#allocation2 + $0x968] sm:$0xff] }
  0xec   :  { %3052 = vmatpush.bf16.msrb.mxu0 %v4756_v41  ;;  %3021 = vmatmul.bf16.vlgmr.msra.gmra.mxu1 %v109_v51  ;;  %v4787_v41 = vld [vmem:[#allocation2 + $0x830] sm:$0xff]  ;;  %v4785_v51 = vld [vmem:[#allocation2 + $0x820] sm:$0xff] }
  0xed   :  { %3065 = vmatpush.bf16.msrb.mxu1 %v4764_v44  ;;  %3034 = vmatmul.bf16.vlgmr.msra.gmra.mxu2 %v110_v50  ;;  %v4811_v44 = vld [vmem:[#allocation2 + $0x8f0] sm:$0xff] }
  0xee   :  { %3078 = vmatpush.bf16.msrb.mxu2 %v4772_v47  ;;  %3047 = vmatmul.bf16.vlgmr.msra.gmra.mxu3 %v111_v52  ;;  %v4802_v47 = vld [vmem:[#allocation2 + $0x8a8] sm:$0xff]  ;;  %v4793_v52 = vld [vmem:[#allocation2 + $0x860] sm:$0xff] }
  0xef   :  { %3091 = vmatpush.bf16.msrb.mxu3 %v4780_v48  ;;  %v4810_v48 = vld [vmem:[#allocation2 + $0x8e8] sm:$0xff] }
  0xf0   :  { %3053 = vmatpush.bf16.msrb.mxu0 %v4755_v53  ;;  %v2827_v9 = vpop.f32.mrf.mxu2  ;;  %v2803_v12 = vpop.f32.mrf.mxu0 }
  0xf1   :  { %3066 = vmatpush.bf16.msrb.mxu1 %v4763_v54  ;;  %v2828_v10 = vadd.f32 %v2827_v9, %v2815_v4  ;;  %v2840_v11 = vpop.f32.mrf.mxu3  ;;  %v2816_v16 = vpop.f32.mrf.mxu1  ;;  %v4801_v54 = vld [vmem:[#allocation2 + $0x8a0] sm:$0xff]  ;;  %v4798_v9 = vld [vmem:[#allocation2 + $0x888] sm:$0xff] }
  0xf2   :  { %3079 = vmatpush.bf16.msrb.mxu2 %v4771_v55  ;;  %v4809_v55 = vld [vmem:[#allocation2 + $0x8e0] sm:$0xff] }
  0xf3   :  { %3092 = vmatpush.bf16.msrb.mxu3 %v4779_v56  ;;  %v5026_v13 = vadd.f32 %v2840_v11, %v2828_v10  ;;  %v4806_v10 = vld [vmem:[#allocation2 + $0x8c8] sm:$0xff]  ;;  %v4805_v16 = vld [vmem:[#allocation2 + $0x8c0] sm:$0xff] }
  0xf4   :  { %3054 = vmatpush.bf16.msrb.mxu0 %v4754_v57  ;;  %v4784_v57 = vld [vmem:[#allocation2 + $0x818] sm:$0xff] }
  0xf5   :  { %3067 = vmatpush.bf16.msrb.mxu1 %v4762_v58  ;;  %v4792_v58 = vld [vmem:[#allocation2 + $0x858] sm:$0xff] }
  0xf6   :  { %3080 = vmatpush.bf16.msrb.mxu2 %v4770_v59  ;;  %v4800_v59 = vld [vmem:[#allocation2 + $0x898] sm:$0xff] }
  0xf7   :  { %3093 = vmatpush.bf16.msrb.mxu3 %v4778_v60  ;;  %v4808_v60 = vld [vmem:[#allocation2 + $0x8d8] sm:$0xff] }
  0xf8   :  { %3055 = vmatpush.bf16.msrb.mxu0 %v4753_v63  ;;  %v2829_v23 = vpop.f32.mrf.mxu2 }
  0xf9   :  { %3068 = vmatpush.bf16.msrb.mxu1 %v4761_v0  ;;  %v2842_v24 = vpop.f32.mrf.mxu3  ;;  %v4836_v23 = vld [vmem:[#allocation2 + $0x9b8] sm:$0xff] }
  0xfa   :  { %3081 = vmatpush.bf16.msrb.mxu2 %v4769_v2  ;;  %v4783_v2 = vld [vmem:[#allocation2 + $0x810] sm:$0xff]  ;;  %v4844_v24 = vld [vmem:[#allocation2 + $0x9f8] sm:$0xff] }
  0xfb   :  { %3094 = vmatpush.bf16.msrb.mxu3 %v4777_v3  ;;  %v4791_v3 = vld [vmem:[#allocation2 + $0x850] sm:$0xff] }
  0xfc   :  { %3056 = vmatpush.bf16.msrb.mxu0 %v4752_v5  ;;  %v4799_v5 = vld [vmem:[#allocation2 + $0x890] sm:$0xff] }
  0xfd   :  { %3069 = vmatpush.bf16.msrb.mxu1 %v4760_v6  ;;  %v4807_v6 = vld [vmem:[#allocation2 + $0x8d0] sm:$0xff] }
  0xfe   :  { %3082 = vmatpush.bf16.msrb.mxu2 %v4768_v7  ;;  %v4782_v7 = vld [vmem:[#allocation2 + $0x808] sm:$0xff] }
  0xff   :  { %3095 = vmatpush.bf16.msrb.mxu3 %v4776_v8  ;;  %v4790_v8 = vld [vmem:[#allocation2 + $0x848] sm:$0xff] }
 0x100   :  { %3057 = vmatpush.bf16.msrb.mxu0 %v4751_v14  ;;  %v4789_v14 = vld [vmem:[#allocation2 + $0x840] sm:$0xff] }
 0x101   :  { %3070 = vmatpush.bf16.msrb.mxu1 %v4759_v15  ;;  %v4797_v15 = vld [vmem:[#allocation2 + $0x880] sm:$0xff] }
 0x102   :  { %3083 = vmatpush.bf16.msrb.mxu2 %v4767_v17  ;;  %v4820_v17 = vld [vmem:[#allocation2 + $0x938] sm:$0xff] }
 0x103   :  { %3096 = vmatpush.bf16.msrb.mxu3 %v4775_v18  ;;  %v76_v18 = vld [vmem:[%s5081_s0 + $0x100] sm:$0xff] }
 0x104   :  { %3058 = vmatpush.bf16.msrb.mxu0 %v4750_v19  ;;  %v78_v19 = vld [vmem:[%s5081_s0 + $0x110] sm:$0xff] }
 0x105   :  { %3071 = vmatpush.bf16.msrb.mxu1 %v4758_v20  ;;  %v4828_v20 = vld [vmem:[#allocation2 + $0x978] sm:$0xff] }
 0x106   :  { %3084 = vmatpush.bf16.msrb.mxu2 %v4766_v21  ;;  %v77_v21 = vld [vmem:[%s5081_s0 + $0x108] sm:$0xff] }
 0x107   :  { %3097 = vmatpush.bf16.msrb.mxu3 %v4774_v22  ;;  %v79_v22 = vld [vmem:[%s5081_s0 + $0x118] sm:$0xff] }
 0x108   :  { %3059 = vmatpush.bf16.msrb.mxu0 %v4749_v25  ;;  %v2853_v49 = vpop.f32.mrf.mxu0  ;;  %v116_v25 = vpack.c.bf16 %v76_v18, %v76_v18 }
 0x109   :  { %3072 = vmatpush.bf16.msrb.mxu1 %v4757_v26  ;;  %v2854_v50 = vadd.f32 %v2853_v49, %v5026_v13  ;;  %v2866_v53 = vpop.f32.mrf.mxu1  ;;  %v4781_v13 = vld [vmem:[#allocation2 + $0x800] sm:$0xff]  ;;  %v118_v26 = vpack.c.bf16 %v78_v19, %v78_v19 }
 0x10a   :  { %3085 = vmatpush.bf16.msrb.mxu2 %v4765_v27  ;;  %v117_v27 = vpack.c.bf16 %v77_v21, %v77_v21 }
 0x10b   :  { %3098 = vmatpush.bf16.msrb.mxu3 %v4773_v28  ;;  %3060 = vmatmul.bf16.vlgmr.msrb.gmra.mxu0 %v112_v37  ;;  %v2867_v56 = vadd.f32 %v2866_v53, %v2854_v50  ;;  %v119_v28 = vpack.c.bf16 %v79_v22, %v79_v22 }
 0x10c   :  { %3104 = vmatpush.bf16.msra.mxu0 %v4788_v29  ;;  %3073 = vmatmul.bf16.vlgmr.msrb.gmra.mxu1 %v113_v39  ;;  %v4819_v29 = vld [vmem:[#allocation2 + $0x930] sm:$0xff]  ;;  %v4817_v39 = vld [vmem:[#allocation2 + $0x920] sm:$0xff] }
 0x10d   :  { %3117 = vmatpush.bf16.msra.mxu1 %v4796_v32  ;;  %3086 = vmatmul.bf16.vlgmr.msrb.gmra.mxu2 %v114_v38  ;;  %v4843_v32 = vld [vmem:[#allocation2 + $0x9f0] sm:$0xff] }
 0x10e   :  { %3130 = vmatpush.bf16.msra.mxu2 %v4804_v35  ;;  %3099 = vmatmul.bf16.vlgmr.msrb.gmra.mxu3 %v115_v40  ;;  %v4834_v35 = vld [vmem:[#allocation2 + $0x9a8] sm:$0xff]  ;;  %v4825_v40 = vld [vmem:[#allocation2 + $0x960] sm:$0xff] }
 0x10f   :  { %3143 = vmatpush.bf16.msra.mxu3 %v4812_v36  ;;  %v4842_v36 = vld [vmem:[#allocation2 + $0x9e8] sm:$0xff] }
 0x110   :  { %3105 = vmatpush.bf16.msra.mxu0 %v4787_v41  ;;  %v2879_v61 = vpop.f32.mrf.mxu2  ;;  %v2855_v0 = vpop.f32.mrf.mxu0 }
 0x111   :  { %3118 = vmatpush.bf16.msra.mxu1 %v4795_v42  ;;  %v2880_v62 = vadd.f32 %v2879_v61, %v2867_v56  ;;  %v2892_v63 = vpop.f32.mrf.mxu3  ;;  %v2868_v4 = vpop.f32.mrf.mxu1  ;;  %v4833_v42 = vld [vmem:[#allocation2 + $0x9a0] sm:$0xff]  ;;  %v4830_v61 = vld [vmem:[#allocation2 + $0x988] sm:$0xff] }
 0x112   :  { %3131 = vmatpush.bf16.msra.mxu2 %v4803_v43  ;;  %v4841_v43 = vld [vmem:[#allocation2 + $0x9e0] sm:$0xff] }
 0x113   :  { %3144 = vmatpush.bf16.msra.mxu3 %v4811_v44  ;;  %v5041_v1 = vadd.f32 %v2892_v63, %v2880_v62  ;;  %v4838_v62 = vld [vmem:[#allocation2 + $0x9c8] sm:$0xff]  ;;  %v80_v4 = vld [vmem:[%s5081_s0 + $0x120] sm:$0xff] }
 0x114   :  { %3106 = vmatpush.bf16.msra.mxu0 %v4786_v45  ;;  %v4816_v45 = vld [vmem:[#allocation2 + $0x918] sm:$0xff] }
 0x115   :  { %3119 = vmatpush.bf16.msra.mxu1 %v4794_v46  ;;  %v4824_v46 = vld [vmem:[#allocation2 + $0x958] sm:$0xff] }
 0x116   :  { %3132 = vmatpush.bf16.msra.mxu2 %v4802_v47  ;;  %v4832_v47 = vld [vmem:[#allocation2 + $0x998] sm:$0xff] }
 0x117   :  { %3145 = vmatpush.bf16.msra.mxu3 %v4810_v48  ;;  %v4840_v48 = vld [vmem:[#allocation2 + $0x9d8] sm:$0xff] }
 0x118   :  { %3107 = vmatpush.bf16.msra.mxu0 %v4785_v51  ;;  %v2881_v11 = vpop.f32.mrf.mxu2 }
 0x119   :  { %3120 = vmatpush.bf16.msra.mxu1 %v4793_v52  ;;  %v2894_v12 = vpop.f32.mrf.mxu3 }
 0x11a   :  { %3133 = vmatpush.bf16.msra.mxu2 %v4801_v54  ;;  %v4815_v54 = vld [vmem:[#allocation2 + $0x910] sm:$0xff] }
 0x11b   :  { %3146 = vmatpush.bf16.msra.mxu3 %v4809_v55  ;;  %v4823_v55 = vld [vmem:[#allocation2 + $0x950] sm:$0xff] }
 0x11c   :  { %3108 = vmatpush.bf16.msra.mxu0 %v4784_v57  ;;  %v4831_v57 = vld [vmem:[#allocation2 + $0x990] sm:$0xff] }
 0x11d   :  { %3121 = vmatpush.bf16.msra.mxu1 %v4792_v58  ;;  %v4839_v58 = vld [vmem:[#allocation2 + $0x9d0] sm:$0xff] }
 0x11e   :  { %3134 = vmatpush.bf16.msra.mxu2 %v4800_v59  ;;  %v4814_v59 = vld [vmem:[#allocation2 + $0x908] sm:$0xff] }
 0x11f   :  { %3147 = vmatpush.bf16.msra.mxu3 %v4808_v60  ;;  %v4822_v60 = vld [vmem:[#allocation2 + $0x948] sm:$0xff] }
 0x120   :  { %3109 = vmatpush.bf16.msra.mxu0 %v4783_v2  ;;  %v4821_v2 = vld [vmem:[#allocation2 + $0x940] sm:$0xff] }
 0x121   :  { %3122 = vmatpush.bf16.msra.mxu1 %v4791_v3  ;;  %v4829_v3 = vld [vmem:[#allocation2 + $0x980] sm:$0xff] }
 0x122   :  { %3135 = vmatpush.bf16.msra.mxu2 %v4799_v5  ;;  %v81_v5 = vld [vmem:[%s5081_s0 + $0x128] sm:$0xff] }
 0x123   :  { %3148 = vmatpush.bf16.msra.mxu3 %v4807_v6  ;;  %v4837_v6 = vld [vmem:[#allocation2 + $0x9c0] sm:$0xff] }
 0x124   :  { %3110 = vmatpush.bf16.msra.mxu0 %v4782_v7  ;;  %v82_v7 = vld [vmem:[%s5081_s0 + $0x130] sm:$0xff] }
 0x125   :  { %3123 = vmatpush.bf16.msra.mxu1 %v4790_v8  ;;  %v83_v8 = vld [vmem:[%s5081_s0 + $0x138] sm:$0xff]  ;;  %v122_v11 = vpack.c.bf16 %v82_v7, %v82_v7 }
 0x126   :  { %3136 = vmatpush.bf16.msra.mxu2 %v4798_v9  ;;  %v120_v9 = vpack.c.bf16 %v80_v4, %v80_v4  ;;  %v123_v12 = vpack.c.bf16 %v83_v8, %v83_v8 }
 0x127   :  { %3149 = vmatpush.bf16.msra.mxu3 %v4806_v10  ;;  %v121_v10 = vpack.c.bf16 %v81_v5, %v81_v5 }
 0x128   :  { %3111 = vmatpush.bf16.msra.mxu0 %v4781_v13  ;;  %v2905_v37 = vpop.f32.mrf.mxu0 }
 0x129   :  { %3124 = vmatpush.bf16.msra.mxu1 %v4789_v14  ;;  %v2906_v38 = vadd.f32 %v2905_v37, %v5041_v1  ;;  %v2918_v41 = vpop.f32.mrf.mxu1  ;;  %v4813_v1 = vld [vmem:[#allocation2 + $0x900] sm:$0xff] }
 0x12a   :  { %3137 = vmatpush.bf16.msra.mxu2 %v4797_v15 }
 0x12b   :  { %3150 = vmatpush.bf16.msra.mxu3 %v4805_v16  ;;  %3112 = vmatmul.bf16.vlgmr.msra.gmra.mxu0 %v116_v25  ;;  %v2919_v44 = vadd.f32 %v2918_v41, %v2906_v38 }
 0x12c   :  { %3156 = vmatpush.bf16.msrb.mxu0 %v4820_v17  ;;  %3125 = vmatmul.bf16.vlgmr.msra.gmra.mxu1 %v117_v27 }
 0x12d   :  { %3169 = vmatpush.bf16.msrb.mxu1 %v4828_v20  ;;  %3138 = vmatmul.bf16.vlgmr.msra.gmra.mxu2 %v118_v26 }
 0x12e   :  { %3182 = vmatpush.bf16.msrb.mxu2 %v4836_v23  ;;  %3151 = vmatmul.bf16.vlgmr.msra.gmra.mxu3 %v119_v28 }
 0x12f   :  { %3195 = vmatpush.bf16.msrb.mxu3 %v4844_v24 }
 0x130   :  { %3157 = vmatpush.bf16.msrb.mxu0 %v4819_v29  ;;  %v2931_v49 = vpop.f32.mrf.mxu2  ;;  %v2907_v52 = vpop.f32.mrf.mxu0 }
 0x131   :  { %3170 = vmatpush.bf16.msrb.mxu1 %v4827_v30  ;;  %v2932_v50 = vadd.f32 %v2931_v49, %v2919_v44  ;;  %v2944_v51 = vpop.f32.mrf.mxu3  ;;  %v2920_v56 = vpop.f32.mrf.mxu1 }
 0x132   :  { %3183 = vmatpush.bf16.msrb.mxu2 %v4835_v31 }
 0x133   :  { %3196 = vmatpush.bf16.msrb.mxu3 %v4843_v32  ;;  %v2945_v53 = vadd.f32 %v2944_v51, %v2932_v50 }
 0x134   :  { %3158 = vmatpush.bf16.msrb.mxu0 %v4818_v33 }
 0x135   :  { %3171 = vmatpush.bf16.msrb.mxu1 %v4826_v34 }
 0x136   :  { %3184 = vmatpush.bf16.msrb.mxu2 %v4834_v35 }
 0x137   :  { %3197 = vmatpush.bf16.msrb.mxu3 %v4842_v36 }
 0x138   :  { %3159 = vmatpush.bf16.msrb.mxu0 %v4817_v39  ;;  %v2933_v63 = vpop.f32.mrf.mxu2 }
 0x139   :  { %3172 = vmatpush.bf16.msrb.mxu1 %v4825_v40  ;;  %v2946_v0 = vpop.f32.mrf.mxu3 }
 0x13a   :  { %3185 = vmatpush.bf16.msrb.mxu2 %v4833_v42 }
 0x13b   :  { %3198 = vmatpush.bf16.msrb.mxu3 %v4841_v43 }
 0x13c   :  { %3160 = vmatpush.bf16.msrb.mxu0 %v4816_v45 }
 0x13d   :  { %3173 = vmatpush.bf16.msrb.mxu1 %v4824_v46 }
 0x13e   :  { %3186 = vmatpush.bf16.msrb.mxu2 %v4832_v47 }
 0x13f   :  { %3199 = vmatpush.bf16.msrb.mxu3 %v4840_v48 }
 0x140   :  { %3161 = vmatpush.bf16.msrb.mxu0 %v4815_v54 }
 0x141   :  { %3174 = vmatpush.bf16.msrb.mxu1 %v4823_v55 }
 0x142   :  { %3187 = vmatpush.bf16.msrb.mxu2 %v4831_v57 }
 0x143   :  { %3200 = vmatpush.bf16.msrb.mxu3 %v4839_v58 }
 0x144   :  { %3162 = vmatpush.bf16.msrb.mxu0 %v4814_v59 }
 0x145   :  { %3175 = vmatpush.bf16.msrb.mxu1 %v4822_v60  ;;  %v3208_v60 = vlaneseq }
 0x146   :  { %3188 = vmatpush.bf16.msrb.mxu2 %v4830_v61 }
 0x147   :  { %3201 = vmatpush.bf16.msrb.mxu3 %v4838_v62 }
 0x148   :  { %3163 = vmatpush.bf16.msrb.mxu0 %v4813_v1  ;;  %v2957_v13 = vpop.f32.mrf.mxu0  ;;  %v3209_v1 = vand.u32 127, %v3208_v60 }
 0x149   :  { %3176 = vmatpush.bf16.msrb.mxu1 %v4821_v2  ;;  %v2958_v14 = vadd.f32 %v2957_v13, %v2945_v53  ;;  %v2970_v15 = vpop.f32.mrf.mxu1 }
 0x14a   :  { %3189 = vmatpush.bf16.msrb.mxu2 %v4829_v3  ;;  %vm3210_vm0 = vcmp.ge.s32.totalorder %v3209_v1, 1  ;;  %vm3211_vm1 = vcmp.lt.s32.totalorder %v3209_v1, 11 }
 0x14b   :  { %3202 = vmatpush.bf16.msrb.mxu3 %v4837_v6  ;;  %3164 = vmatmul.bf16.vlgmr.msrb.gmra.mxu0 %v120_v9  ;;  %v2971_v16 = vadd.f32 %v2970_v15, %v2958_v14  ;;  %vm5068_vm2 = vmand %vm3210_vm0, %vm3211_vm1 }
 0x14c   :  { %3177 = vmatmul.bf16.vlgmr.msrb.gmra.mxu1 %v121_v10 }
 0x14d   :  { %3190 = vmatmul.bf16.vlgmr.msrb.gmra.mxu2 %v122_v11 }
 0x14e   :  { %3203 = vmatmul.bf16.vlgmr.msrb.gmra.mxu3 %v123_v12 }
 0x150   :  { %v2983_v17 = vpop.f32.mrf.mxu2  ;;  %v2959_v20 = vpop.f32.mrf.mxu0 }
 0x151   :  { %v2984_v18 = vadd.f32 %v2983_v17, %v2971_v16  ;;  %v2996_v19 = vpop.f32.mrf.mxu3  ;;  %v2972_v22 = vpop.f32.mrf.mxu1 }
 0x153   :  { %v2997_v21 = vadd.f32 %v2996_v19, %v2984_v18 }
 0x158   :  { %v2985_v23 = vpop.f32.mrf.mxu2 }
 0x159   :  { %v2998_v24 = vpop.f32.mrf.mxu3 }
 0x168   :  { %v3009_v25 = vpop.f32.mrf.mxu0 }
 0x169   :  { %v3010_v26 = vadd.f32 %v3009_v25, %v2997_v21  ;;  %v3022_v27 = vpop.f32.mrf.mxu1 }
 0x16b   :  { %v3023_v28 = vadd.f32 %v3022_v27, %v3010_v26 }
 0x170   :  { %v3035_v29 = vpop.f32.mrf.mxu2  ;;  %v3011_v32 = vpop.f32.mrf.mxu0 }
 0x171   :  { %v3036_v30 = vadd.f32 %v3035_v29, %v3023_v28  ;;  %v3048_v31 = vpop.f32.mrf.mxu3  ;;  %v3024_v34 = vpop.f32.mrf.mxu1 }
 0x173   :  { %v3049_v33 = vadd.f32 %v3048_v31, %v3036_v30 }
 0x178   :  { %v3037_v35 = vpop.f32.mrf.mxu2 }
 0x179   :  { %v3050_v36 = vpop.f32.mrf.mxu3 }
 0x188   :  { %v3061_v37 = vpop.f32.mrf.mxu0 }
 0x189   :  { %v3074_v38 = vpop.f32.mrf.mxu1  ;;  %v3062_v48 = vadd.f32 %v3061_v37, %v3049_v33 }
 0x18b   :  { %v3075_v52 = vadd.f32 %v3074_v38, %v3062_v48 }
 0x190   :  { %v3087_v39 = vpop.f32.mrf.mxu2  ;;  %v3063_v41 = vpop.f32.mrf.mxu0 }
 0x191   :  { %v3100_v40 = vpop.f32.mrf.mxu3  ;;  %v3076_v42 = vpop.f32.mrf.mxu1  ;;  %v3088_v53 = vadd.f32 %v3087_v39, %v3075_v52 }
 0x193   :  { %v3101_v56 = vadd.f32 %v3100_v40, %v3088_v53 }
 0x198   :  { %v3089_v43 = vpop.f32.mrf.mxu2 }
 0x199   :  { %v3102_v44 = vpop.f32.mrf.mxu3 }
 0x1a8   :  { %v3113_v45 = vpop.f32.mrf.mxu0 }
 0x1a9   :  { %v3126_v46 = vpop.f32.mrf.mxu1  ;;  %v3114_v57 = vadd.f32 %v3113_v45, %v3101_v56 }
 0x1ab   :  { %v3127_v58 = vadd.f32 %v3126_v46, %v3114_v57 }
 0x1b0   :  { %v3139_v47 = vpop.f32.mrf.mxu2  ;;  %v3115_v50 = vpop.f32.mrf.mxu0 }
 0x1b1   :  { %v3152_v49 = vpop.f32.mrf.mxu3  ;;  %v3128_v51 = vpop.f32.mrf.mxu1  ;;  %v3140_v59 = vadd.f32 %v3139_v47, %v3127_v58 }
 0x1b3   :  { %v3153_v61 = vadd.f32 %v3152_v49, %v3140_v59 }
 0x1b8   :  { %v3141_v54 = vpop.f32.mrf.mxu2 }
 0x1b9   :  { %v3154_v55 = vpop.f32.mrf.mxu3 }
 0x1c8   :  { %v3165_v62 = vpop.f32.mrf.mxu0 }
 0x1c9   :  { %v3178_v63 = vpop.f32.mrf.mxu1  ;;  %v3166_v0 = vadd.f32 %v3165_v62, %v3153_v61 }
 0x1cb   :  { %v3179_v2 = vadd.f32 %v3178_v63, %v3166_v0 }
 0x1d0   :  { %v3191_v3 = vpop.f32.mrf.mxu2  ;;  %v3167_v6 = vpop.f32.mrf.mxu0 }
 0x1d1   :  { %v3204_v4 = vpop.f32.mrf.mxu3  ;;  %v3192_v5 = vadd.f32 %v3191_v3, %v3179_v2  ;;  %v3180_v7 = vpop.f32.mrf.mxu1 }
 0x1d3   :  { %v3205_v9 = vadd.f32 %v3204_v4, %v3192_v5 }
 0x1d5   :  { %v3213_v10 = vsel %vm5068_vm2, %v3205_v9, -inf }
 0x1d6   :  { %3214 = vmax.xlane.f32.xlu0 %v3213_v10 }
 0x1d8   :  { %v3193_v11 = vpop.f32.mrf.mxu2 }
 0x1d9   :  { %v3206_v12 = vpop.f32.mrf.mxu3 }
 0x249   :  { %v3215_v13 = vpop.xlane.xlu0 %3214 }
 0x24a   :  { %v3216_v14 = vsub.f32 %v3213_v10, %v3215_v13 }
 0x24c   :  { %v3217_v15 = vmul.f32 1.442695, %v3216_v14 }
 0x24e   :  { %4850 = vpow2.f32 %v3217_v15 }
 0x254   :  { %v4851_v16 = vpop.eup %4850 }
 0x255   :  { %v3219_v17 = vsel %vm5068_vm2, %v4851_v16, 0.0 }
 0x256   :  { %3220 = vadd.xlane.f32.xlu0 %v3219_v17 }
 0x2c9   :  { %v3221_v18 = vpop.xlane.xlu0 %3220 }
 0x2ca   :  { %4852 = vrcp.f32 %v3221_v18  ;;  %v3233_v22 = vand.u32 2147483648, %v3221_v18  ;;  %v3231_v24 = vand.u32 2147483647, %v3221_v18  ;;  %vm3227_vm4 = vweird.f32 %v3221_v18 }
 0x2cc   :  { %v3234_v26 = vor.u32 1.1754944e-38, %v3233_v22  ;;  %vm3232_vm6 = vcmp.eq.f32.partialorder %v3231_v24, 8.507059e+37 }
 0x2d0   :  { %v4853_v19 = vpop.eup %4852 }
 0x2d1   :  { %v3223_v20 = vmul.f32 %v4853_v19, %v3221_v18  ;;  %vm3228_vm3 = vweird.f32 %v4853_v19 }
 0x2d2   :  { %vm3229_vm5 = vmor %vm3227_vm4, %vm3228_vm3 }
 0x2d3   :  { %v3224_v21 = vsub.f32 1.0, %v3223_v20 }
 0x2d5   :  { %v3225_v23 = vmul.f32 %v4853_v19, %v3224_v21 }
 0x2d7   :  { %v3226_v25 = vadd.f32 %v4853_v19, %v3225_v23 }
 0x2d9   :  { %v3230_v27 = vsel %vm3229_vm5, %v4853_v19, %v3226_v25 }
 0x2da   :  { %v3235_v28 = vsel %vm3232_vm6, %v3234_v26, %v3230_v27 }
 0x2db   :  { %v3236_v29 = vmul.f32 %v3235_v28, %v3219_v17 }
 0x2dd   :  { %v3237_v30 = vsel %vm5068_vm2, %v3236_v29, %v3205_v9 }
 0x2de   :  { %3238 = vst [vmem:[%s5084_s3] sm:$0xff] %v3237_v30 }
 0x2df   :  { %3243 = vsyncpa [#allocation3], 1 }
 0x2e0   :  { %3244 = vsyncpa [#allocation5], 1 }

</bundles_post_ra>
